<compile_context>
chip_gen: v7x
topology: tpu7x:2x2x1
jax: 0.10.0
libtpu: 0.0.40
codegen_flags: <defaults>
</compile_context>

<pallas_src>
import functools

import jax
import jax.numpy as jnp
from jax.experimental import pallas as pl
from jax.experimental.pallas import tpu as pltpu


def _round_up(n, m):
    return ((n + m - 1) // m) * m


# ---------------------------------------------------------------------------
# Fused Pallas kernel: conv1 + ReLU + conv2 + ReLU + GAP + Dropout(p=0) + fc
# ---------------------------------------------------------------------------

def fused_cls_kernel(xcol_ref, w1_ref, b1_ref, w2_ref, b2_ref, wfc_ref,
                     bfc_ref, pool_ref, out_ref, pad_ref, col_ref,
                     *, G, H, W, S, TAIL, C1):
    Wp = W + 2
    HWp = H * Wp
    T = Wp + 1                         # top pad row + left pad of row 0

    # --- zero only the border / margin rows of the padded h1 scratch.
    pad_ref[0:T, :] = jnp.zeros((T, C1), pad_ref.dtype)
    for g in range(G):
        start = g * S + T + HWp
        end = (g + 1) * S + T if g + 1 < G else G * S + TAIL
        pad_ref[start:end, :] = jnp.zeros((end - start, C1), pad_ref.dtype)

    # --- conv1 (+bias+ReLU): one K=9*C_IN matmul per image (wrapper im2col).
    row_ids = jax.lax.broadcasted_iota(jnp.int32, (HWp, 1), 0)
    h1_valid = (row_ids % Wp) < W      # junk columns w in {W, W+1} -> zero
    for g in range(G):
        xg = xcol_ref[g * HWp:(g + 1) * HWp, :]                 # bf16
        hg = jnp.dot(xg, w1_ref[...], preferred_element_type=jnp.float32)
        hg = jnp.maximum(hg + b1_ref[...], 0.0)                 # f32 bias+ReLU
        hg = jnp.where(h1_valid, hg, 0.0)
        pad_ref[g * S + T:g * S + T + HWp, :] = hg.astype(pad_ref.dtype)

    # --- conv2: K-pack the 9 taps -> single [G*S, 9*C1] @ [9*C1, C2P] matmul.
    for kh in range(3):
        for kw in range(3):
            t = kh * 3 + kw
            off = kh * Wp + kw                                  # static offset
            col_ref[:, t * C1:(t + 1) * C1] = pad_ref[off:off + G * S, :]
    h2 = jnp.dot(col_ref[...], w2_ref[...], preferred_element_type=jnp.float32)
    h2 = jnp.maximum(h2 + b2_ref[...], 0.0).astype(jnp.bfloat16)

    # --- GAP as an MXU matmul (pool matrix already zeroes junk cols / margin
    #     rows), base_model.fc = Dropout(p=0) -> identity, then new_fc Linear.
    pooled = jnp.dot(pool_ref[...], h2, preferred_element_type=jnp.float32)
    logits = jnp.dot(pooled.astype(jnp.bfloat16), wfc_ref[...],
                     preferred_element_type=jnp.float32) + bfc_ref[...]
    out_ref[...] = logits


# ---------------------------------------------------------------------------
# Wrapper
# ---------------------------------------------------------------------------

def _pick_group_size(batch, max_group=8):
    divisors = [g for g in range(1, min(batch, max_group) + 1) if batch % g == 0]
    multi_step = [g for g in divisors if batch // g >= 2]   # keep grid >= 2
    return max(multi_step) if multi_step else max(divisors)


@jax.jit
def cls_model_forward(params, x_nchw):
    B, C_IN, H, W = x_nchw.shape
    Wp = W + 2
    HWp = H * Wp
    T = Wp + 1

    C1 = params["conv1_w"].shape[-1]
    C2 = params["conv2_w"].shape[-1]
    NC = params["fc_w"].shape[-1]
    C2P = _round_up(C2, 128)
    NCP = _round_up(NC, 128)

    G = _pick_group_size(B)                  # images per grid step
    S = _round_up(HWp + T, 8)                # per-image row stride in scratch
    TAIL = _round_up(2 * Wp + 2, 8)          # bottom margin for the last taps

    # conv1 im2col in the W-padded-row layout (junk cols w in {W,W+1} = zeros).
    x = jnp.transpose(x_nchw, (0, 2, 3, 1))                    # NHWC
    xp = jnp.pad(x, ((0, 0), (1, 1), (1, 1), (0, 0)))          # SAME padding
    taps = [xp[:, kh:kh + H, kw:kw + W, :]
            for kh in range(3) for kw in range(3)]
    xcol = jnp.stack(taps, axis=3).reshape(B, H, W, 9 * C_IN)
    xcol = jnp.pad(xcol, ((0, 0), (0, 0), (0, 2), (0, 0)))     # W -> Wp
    xcol = xcol.reshape(B // G, G * HWp, 9 * C_IN).astype(jnp.bfloat16)

    # Weights flattened for im2col / K-packed matmuls, bf16 for the MXU.
    w1 = params["conv1_w"].reshape(9 * C_IN, C1).astype(jnp.bfloat16)
    b1 = params["conv1_b"].reshape(1, C1).astype(jnp.float32)
    w2 = params["conv2_w"].reshape(9 * C1, C2)
    w2 = jnp.pad(w2, ((0, 0), (0, C2P - C2))).astype(jnp.bfloat16)
    b2 = jnp.pad(params["conv2_b"], (0, C2P - C2)).reshape(1, C2P)
    b2 = b2.astype(jnp.float32)
    wfc = jnp.pad(params["fc_w"], ((0, C2P - C2), (0, NCP - NC)))
    wfc = wfc.astype(jnp.bfloat16)
    bfc = jnp.pad(params["fc_b"], (0, NCP - NC)).reshape(1, NCP)
    bfc = bfc.astype(jnp.float32)

    # Pooling matrix: per-image mean over valid rows (junk cols/margins -> 0).
    j = jnp.arange(G * S)
    g_of_j = j // S
    r = j - g_of_j * S
    row_valid = (r < HWp) & ((r % Wp) < W)
    pool_mat = jnp.where(
        (g_of_j[None, :] == jnp.arange(G)[:, None]) & row_valid[None, :],
        1.0 / (H * W), 0.0).astype(jnp.bfloat16)               # [G, G*S]

    kern = functools.partial(fused_cls_kernel, G=G, H=H, W=W, S=S,
                             TAIL=TAIL, C1=C1)

    # Honest VMEM budget (with headroom) instead of a flat 32 MiB.
    in_block_bytes = G * HWp * (9 * C_IN) * 2
    weight_bytes = (9 * C_IN * C1 + 9 * C1 * C2P + C2P * NCP + G * G * S) * 2 \
        + (C1 + C2P + NCP) * 4
    scratch_bytes = (G * S + TAIL) * C1 * 2 + G * S * 9 * C1 * 2
    temp_bytes = 6 * G * S * C2P * 4
    vmem_est = 2 * in_block_bytes + 2 * weight_bytes + scratch_bytes \
        + temp_bytes + (1 << 20)
    vmem_limit = int(min(100 << 20, max(8 << 20, vmem_est)))

    out = pl.pallas_call(
        kern,
        out_shape=jax.ShapeDtypeStruct((B // G, G, NCP), jnp.float32),
        grid=(B // G,),
        in_specs=[
            pl.BlockSpec((None, G * HWp, 9 * C_IN), lambda i: (i, 0, 0)),
            pl.BlockSpec((9 * C_IN, C1), lambda i: (0, 0)),     # resident
            pl.BlockSpec((1, C1), lambda i: (0, 0)),
            pl.BlockSpec((9 * C1, C2P), lambda i: (0, 0)),
            pl.BlockSpec((1, C2P), lambda i: (0, 0)),
            pl.BlockSpec((C2P, NCP), lambda i: (0, 0)),
            pl.BlockSpec((1, NCP), lambda i: (0, 0)),
            pl.BlockSpec((G, G * S), lambda i: (0, 0)),
        ],
        out_specs=pl.BlockSpec((None, G, NCP), lambda i: (i, 0, 0)),
        scratch_shapes=[
            pltpu.VMEM((G * S + TAIL, C1), jnp.bfloat16),       # padded h1
            pltpu.VMEM((G * S, 9 * C1), jnp.bfloat16),          # conv2 im2col
        ],
        compiler_params=pltpu.CompilerParams(
            dimension_semantics=("parallel",),
            vmem_limit_bytes=vmem_limit,
        ),
    )(xcol, w1, b1, w2, b2, wfc, bfc, pool_mat)

    return out.reshape(B, NCP)[:, :NC]       # slice off the 128-lane padding


# ---------------------------------------------------------------------------
# Parameters + pure-JAX reference (for a numerical sanity check)
# ---------------------------------------------------------------------------

def init_params(key, in_ch=4, c1=16, feature_dim=32, num_classes=10):
    k0, k1, k2, k3, k4, k5 = jax.random.split(key, 6)
    return {
        # synthetic backbone (feature extractor)
        "conv1_w": 0.1 * jax.random.normal(k0, (3, 3, in_ch, c1), jnp.float32),
        "conv1_b": 0.1 * jax.random.normal(k1, (c1,), jnp.float32),
        "conv2_w": 0.1 * jax.random.normal(k2, (3, 3, c1, feature_dim),
                                           jnp.float32),
        "conv2_b": 0.1 * jax.random.normal(k3, (feature_dim,), jnp.float32),
        # new_fc: nn.Linear(feature_dim, num_classes)
        "fc_w": 0.1 * jax.random.normal(k4, (feature_dim, num_classes),
                                        jnp.float32),
        "fc_b": 0.1 * jax.random.normal(k5, (num_classes,), jnp.float32),
    }


def cls_model_reference(params, x_nchw):
    x = jnp.transpose(x_nchw, (0, 2, 3, 1))
    dn = ("NHWC", "HWIO", "NHWC")
    h = jax.lax.conv_general_dilated(x, params["conv1_w"], (1, 1), "SAME",
                                     dimension_numbers=dn)
    h = jnp.maximum(h + params["conv1_b"], 0.0)
    h = jax.lax.conv_general_dilated(h, params["conv2_w"], (1, 1), "SAME",
                                     dimension_numbers=dn)
    h = jnp.maximum(h + params["conv2_b"], 0.0)
    feats = jnp.mean(h, axis=(1, 2))           # global average pool
    # base_model.fc was replaced by nn.Dropout(p=0): identity.
    return feats @ params["fc_w"] + params["fc_b"]


if __name__ == "__main__":
    key = jax.random.PRNGKey(0)
    kx, kp = jax.random.split(key)

    B, C, H, W = 4, 4, 16, 16        # grid = 2 steps x 2 images per step
    num_classes = 10
    feature_dim = 32

    x = jax.random.normal(kx, (B, C, H, W), jnp.float32)   # NCHW, like PyTorch
    params = init_params(kp, in_ch=C, c1=16, feature_dim=feature_dim,
                         num_classes=num_classes)

    logits = cls_model_forward(params, x)
    jax.block_until_ready(logits)

    assert logits.shape == (B, num_classes)
    assert logits.dtype == jnp.float32

    ref = cls_model_reference(params, x)
    err = float(jnp.max(jnp.abs(logits - ref)))
    assert err < 3e-2, f"max abs error vs reference: {err}"

    print("KERNEL_OK")
</pallas_src>

<mosaic_0001>
module attributes {stable_mosaic.version = 11 : i64} {
  func.func @fused_cls_kernel(%arg0: i32, %arg1: memref<1x576x36xbf16, #tpu.memory_space<vmem>>, %arg2: memref<36x16xbf16, #tpu.memory_space<vmem>>, %arg3: memref<1x16xf32, #tpu.memory_space<vmem>>, %arg4: memref<144x128xbf16, #tpu.memory_space<vmem>>, %arg5: memref<1x128xf32, #tpu.memory_space<vmem>>, %arg6: memref<128x128xbf16, #tpu.memory_space<vmem>>, %arg7: memref<1x128xf32, #tpu.memory_space<vmem>>, %arg8: memref<2x624xbf16, #tpu.memory_space<vmem>>, %arg9: memref<1x2x128xf32, #tpu.memory_space<vmem>>, %arg10: memref<664x16xbf16, #tpu.memory_space<vmem>>, %arg11: memref<624x144xbf16, #tpu.memory_space<vmem>>) attributes {dimension_semantics = [#tpu.dimension_semantics<parallel>], iteration_bounds = array<i64: 2>, scalar_prefetch = 0 : i64, scratch_operands = 2 : i64, tpu.core_type = #tpu.core_type<tc>, window_params = [{transform_indices = @transform_0, window_bounds = array<i64: 1, 576, 36>}, {pipeline_mode = #tpu.pipeline_mode<synchronous>, transform_indices = @transform_1, window_bounds = array<i64: 36, 16>}, {pipeline_mode = #tpu.pipeline_mode<synchronous>, transform_indices = @transform_2, window_bounds = array<i64: 1, 16>}, {pipeline_mode = #tpu.pipeline_mode<synchronous>, transform_indices = @transform_3, window_bounds = array<i64: 144, 128>}, {pipeline_mode = #tpu.pipeline_mode<synchronous>, transform_indices = @transform_4, window_bounds = array<i64: 1, 128>}, {pipeline_mode = #tpu.pipeline_mode<synchronous>, transform_indices = @transform_5, window_bounds = array<i64: 128, 128>}, {pipeline_mode = #tpu.pipeline_mode<synchronous>, transform_indices = @transform_6, window_bounds = array<i64: 1, 128>}, {pipeline_mode = #tpu.pipeline_mode<synchronous>, transform_indices = @transform_7, window_bounds = array<i64: 2, 624>}, {transform_indices = @transform_8, window_bounds = array<i64: 1, 2, 128>}]} {
    %cst = arith.constant 0.000000e+00 : bf16
    %0 = vector.broadcast %cst : bf16 to vector<19x16xbf16>
    %c0 = arith.constant 0 : index
    %c0_0 = arith.constant 0 : index
    %1 = vector.load %arg10[%c0, %c0_0] : memref<664x16xbf16, #tpu.memory_space<vmem>>, vector<19x16xbf16>
    tpu.vector_store %arg10[%c0, %c0_0], %0 {strides = array<i32>} : memref<664x16xbf16, #tpu.memory_space<vmem>>, vector<19x16xbf16>,
    %cst_1 = arith.constant 0.000000e+00 : bf16
    %2 = vector.broadcast %cst_1 : bf16 to vector<24x16xbf16>
    %c307 = arith.constant 307 : index
    %c0_2 = arith.constant 0 : index
    %3 = vector.load %arg10[%c307, %c0_2] : memref<664x16xbf16, #tpu.memory_space<vmem>>, vector<24x16xbf16>
    tpu.vector_store %arg10[%c307, %c0_2], %2 {strides = array<i32>} : memref<664x16xbf16, #tpu.memory_space<vmem>>, vector<24x16xbf16>,
    %cst_3 = arith.constant 0.000000e+00 : bf16
    %4 = vector.broadcast %cst_3 : bf16 to vector<45x16xbf16>
    %c619 = arith.constant 619 : index
    %c0_4 = arith.constant 0 : index
    %5 = vector.load %arg10[%c619, %c0_4] : memref<664x16xbf16, #tpu.memory_space<vmem>>, vector<45x16xbf16>
    tpu.vector_store %arg10[%c619, %c0_4], %4 {strides = array<i32>} : memref<664x16xbf16, #tpu.memory_space<vmem>>, vector<45x16xbf16>,
    %6 = tpu.iota {dimensions = array<i32: 0>} : vector<288x1xi32>
    %c18_i32 = arith.constant 18 : i32
    %c0_i32 = arith.constant 0 : i32
    %7 = arith.cmpi eq, %c18_i32, %c0_i32 : i32
    %c1_i32 = arith.constant 1 : i32
    %8 = arith.select %7, %c1_i32, %c18_i32 : i32
    %9 = vector.broadcast %8 : i32 to vector<288x1xi32>
    %10 = arith.remsi %6, %9 : vector<288x1xi32>
    %c0_i32_5 = arith.constant 0 : i32
    %11 = vector.broadcast %c0_i32_5 : i32 to vector<288x1xi32>
    %12 = arith.cmpi ne, %10, %11 : vector<288x1xi32>
    %c0_i32_6 = arith.constant 0 : i32
    %13 = vector.broadcast %c0_i32_6 : i32 to vector<288x1xi32>
    %14 = arith.cmpi slt, %10, %13 : vector<288x1xi32>
    %c0_i32_7 = arith.constant 0 : i32
    %15 = arith.cmpi slt, %8, %c0_i32_7 : i32
    %16 = vector.broadcast %15 : i1 to vector<288x1xi1>
    %17 = vector.broadcast %16 : vector<288x1xi1> to vector<288x1xi1>
    %18 = arith.xori %14, %17 : vector<288x1xi1>
    %19 = arith.andi %18, %12 : vector<288x1xi1>
    %20 = vector.broadcast %8 : i32 to vector<288x1xi32>
    %21 = arith.addi %10, %20 : vector<288x1xi32>
    %22 = arith.select %19, %21, %10 : vector<288x1xi1>, vector<288x1xi32>
    %c16_i32 = arith.constant 16 : i32
    %23 = vector.broadcast %c16_i32 : i32 to vector<288x1xi32>
    %24 = arith.cmpi slt, %22, %23 : vector<288x1xi32>
    %c0_8 = arith.constant 0 : index
    %c0_9 = arith.constant 0 : index
    %c0_10 = arith.constant 0 : index
    %25 = vector.load %arg1[%c0_8, %c0_9, %c0_10] : memref<1x576x36xbf16, #tpu.memory_space<vmem>>, vector<1x288x36xbf16>
    %26 = vector.shape_cast %25 : vector<1x288x36xbf16> to vector<288x36xbf16>
    %c0_11 = arith.constant 0 : index
    %c0_12 = arith.constant 0 : index
    %27 = vector.load %arg2[%c0_11, %c0_12] : memref<36x16xbf16, #tpu.memory_space<vmem>>, vector<36x16xbf16>
    %cst_13 = arith.constant dense<0.000000e+00> : vector<288x16xf32>
    %28 = tpu.matmul %26, %27, %cst_13 {dimension_numbers = #tpu.dot_dimension_numbers<[1], [0], [0], [1], [0, 0, 1, 1], [], []>} : vector<288x36xbf16>, vector<36x16xbf16>, vector<288x16xf32> -> vector<288x16xf32>
    %c0_14 = arith.constant 0 : index
    %c0_15 = arith.constant 0 : index
    %29 = vector.load %arg3[%c0_14, %c0_15] : memref<1x16xf32, #tpu.memory_space<vmem>>, vector<1x16xf32>
    %30 = vector.broadcast %29 : vector<1x16xf32> to vector<288x16xf32>
    %31 = arith.addf %28, %30 : vector<288x16xf32>
    %cst_16 = arith.constant 0.000000e+00 : f32
    %32 = vector.broadcast %cst_16 : f32 to vector<288x16xf32>
    %33 = arith.maximumf %31, %32 : vector<288x16xf32>
    %cst_17 = arith.constant 0.000000e+00 : f32
    %34 = vector.shape_cast %24 : vector<288x1xi1> to vector<288x1xi1>
    %35 = vector.broadcast %34 : vector<288x1xi1> to vector<288x16xi1>
    %36 = vector.broadcast %cst_17 : f32 to vector<288x16xf32>
    %37 = arith.select %35, %33, %36 : vector<288x16xi1>, vector<288x16xf32>
    %38 = arith.truncf %37 : vector<288x16xf32> to vector<288x16xbf16>
    %c19 = arith.constant 19 : index
    %c0_18 = arith.constant 0 : index
    %39 = vector.load %arg10[%c19, %c0_18] : memref<664x16xbf16, #tpu.memory_space<vmem>>, vector<288x16xbf16>
    tpu.vector_store %arg10[%c19, %c0_18], %38 {strides = array<i32>} : memref<664x16xbf16, #tpu.memory_space<vmem>>, vector<288x16xbf16>,
    %c0_19 = arith.constant 0 : index
    %c288 = arith.constant 288 : index
    %c0_20 = arith.constant 0 : index
    %40 = vector.load %arg1[%c0_19, %c288, %c0_20] : memref<1x576x36xbf16, #tpu.memory_space<vmem>>, vector<1x288x36xbf16>
    %41 = vector.shape_cast %40 : vector<1x288x36xbf16> to vector<288x36xbf16>
    %c0_21 = arith.constant 0 : index
    %c0_22 = arith.constant 0 : index
    %42 = vector.load %arg2[%c0_21, %c0_22] : memref<36x16xbf16, #tpu.memory_space<vmem>>, vector<36x16xbf16>
    %cst_23 = arith.constant dense<0.000000e+00> : vector<288x16xf32>
    %43 = tpu.matmul %41, %42, %cst_23 {dimension_numbers = #tpu.dot_dimension_numbers<[1], [0], [0], [1], [0, 0, 1, 1], [], []>} : vector<288x36xbf16>, vector<36x16xbf16>, vector<288x16xf32> -> vector<288x16xf32>
    %c0_24 = arith.constant 0 : index
    %c0_25 = arith.constant 0 : index
    %44 = vector.load %arg3[%c0_24, %c0_25] : memref<1x16xf32, #tpu.memory_space<vmem>>, vector<1x16xf32>
    %45 = vector.broadcast %44 : vector<1x16xf32> to vector<288x16xf32>
    %46 = arith.addf %43, %45 : vector<288x16xf32>
    %cst_26 = arith.constant 0.000000e+00 : f32
    %47 = vector.broadcast %cst_26 : f32 to vector<288x16xf32>
    %48 = arith.maximumf %46, %47 : vector<288x16xf32>
    %cst_27 = arith.constant 0.000000e+00 : f32
    %49 = vector.shape_cast %24 : vector<288x1xi1> to vector<288x1xi1>
    %50 = vector.broadcast %49 : vector<288x1xi1> to vector<288x16xi1>
    %51 = vector.broadcast %cst_27 : f32 to vector<288x16xf32>
    %52 = arith.select %50, %48, %51 : vector<288x16xi1>, vector<288x16xf32>
    %53 = arith.truncf %52 : vector<288x16xf32> to vector<288x16xbf16>
    %c331 = arith.constant 331 : index
    %c0_28 = arith.constant 0 : index
    %54 = vector.load %arg10[%c331, %c0_28] : memref<664x16xbf16, #tpu.memory_space<vmem>>, vector<288x16xbf16>
    tpu.vector_store %arg10[%c331, %c0_28], %53 {strides = array<i32>} : memref<664x16xbf16, #tpu.memory_space<vmem>>, vector<288x16xbf16>,
    %c0_29 = arith.constant 0 : index
    %c0_30 = arith.constant 0 : index
    %55 = vector.load %arg10[%c0_29, %c0_30] : memref<664x16xbf16, #tpu.memory_space<vmem>>, vector<624x16xbf16>
    %c0_31 = arith.constant 0 : index
    %c0_32 = arith.constant 0 : index
    %56 = vector.load %arg11[%c0_31, %c0_32] : memref<624x144xbf16, #tpu.memory_space<vmem>>, vector<624x16xbf16>
    tpu.vector_store %arg11[%c0_31, %c0_32], %55 {strides = array<i32>} : memref<624x144xbf16, #tpu.memory_space<vmem>>, vector<624x16xbf16>,
    %c1 = arith.constant 1 : index
    %c0_33 = arith.constant 0 : index
    %57 = vector.load %arg10[%c1, %c0_33] : memref<664x16xbf16, #tpu.memory_space<vmem>>, vector<624x16xbf16>
    %c0_34 = arith.constant 0 : index
    %c16 = arith.constant 16 : index
    %58 = vector.load %arg11[%c0_34, %c16] : memref<624x144xbf16, #tpu.memory_space<vmem>>, vector<624x16xbf16>
    tpu.vector_store %arg11[%c0_34, %c16], %57 {strides = array<i32>} : memref<624x144xbf16, #tpu.memory_space<vmem>>, vector<624x16xbf16>,
    %c2 = arith.constant 2 : index
    %c0_35 = arith.constant 0 : index
    %59 = vector.load %arg10[%c2, %c0_35] : memref<664x16xbf16, #tpu.memory_space<vmem>>, vector<624x16xbf16>
    %c0_36 = arith.constant 0 : index
    %c32 = arith.constant 32 : index
    %60 = vector.load %arg11[%c0_36, %c32] : memref<624x144xbf16, #tpu.memory_space<vmem>>, vector<624x16xbf16>
    tpu.vector_store %arg11[%c0_36, %c32], %59 {strides = array<i32>} : memref<624x144xbf16, #tpu.memory_space<vmem>>, vector<624x16xbf16>,
    %c18 = arith.constant 18 : index
    %c0_37 = arith.constant 0 : index
    %61 = vector.load %arg10[%c18, %c0_37] : memref<664x16xbf16, #tpu.memory_space<vmem>>, vector<624x16xbf16>
    %c0_38 = arith.constant 0 : index
    %c48 = arith.constant 48 : index
    %62 = vector.load %arg11[%c0_38, %c48] : memref<624x144xbf16, #tpu.memory_space<vmem>>, vector<624x16xbf16>
    tpu.vector_store %arg11[%c0_38, %c48], %61 {strides = array<i32>} : memref<624x144xbf16, #tpu.memory_space<vmem>>, vector<624x16xbf16>,
    %c19_39 = arith.constant 19 : index
    %c0_40 = arith.constant 0 : index
    %63 = vector.load %arg10[%c19_39, %c0_40] : memref<664x16xbf16, #tpu.memory_space<vmem>>, vector<624x16xbf16>
    %c0_41 = arith.constant 0 : index
    %c64 = arith.constant 64 : index
    %64 = vector.load %arg11[%c0_41, %c64] : memref<624x144xbf16, #tpu.memory_space<vmem>>, vector<624x16xbf16>
    tpu.vector_store %arg11[%c0_41, %c64], %63 {strides = array<i32>} : memref<624x144xbf16, #tpu.memory_space<vmem>>, vector<624x16xbf16>,
    %c20 = arith.constant 20 : index
    %c0_42 = arith.constant 0 : index
    %65 = vector.load %arg10[%c20, %c0_42] : memref<664x16xbf16, #tpu.memory_space<vmem>>, vector<624x16xbf16>
    %c0_43 = arith.constant 0 : index
    %c80 = arith.constant 80 : index
    %66 = vector.load %arg11[%c0_43, %c80] : memref<624x144xbf16, #tpu.memory_space<vmem>>, vector<624x16xbf16>
    tpu.vector_store %arg11[%c0_43, %c80], %65 {strides = array<i32>} : memref<624x144xbf16, #tpu.memory_space<vmem>>, vector<624x16xbf16>,
    %c36 = arith.constant 36 : index
    %c0_44 = arith.constant 0 : index
    %67 = vector.load %arg10[%c36, %c0_44] : memref<664x16xbf16, #tpu.memory_space<vmem>>, vector<624x16xbf16>
    %c0_45 = arith.constant 0 : index
    %c96 = arith.constant 96 : index
    %68 = vector.load %arg11[%c0_45, %c96] : memref<624x144xbf16, #tpu.memory_space<vmem>>, vector<624x16xbf16>
    tpu.vector_store %arg11[%c0_45, %c96], %67 {strides = array<i32>} : memref<624x144xbf16, #tpu.memory_space<vmem>>, vector<624x16xbf16>,
    %c37 = arith.constant 37 : index
    %c0_46 = arith.constant 0 : index
    %69 = vector.load %arg10[%c37, %c0_46] : memref<664x16xbf16, #tpu.memory_space<vmem>>, vector<624x16xbf16>
    %c0_47 = arith.constant 0 : index
    %c112 = arith.constant 112 : index
    %70 = vector.load %arg11[%c0_47, %c112] : memref<624x144xbf16, #tpu.memory_space<vmem>>, vector<624x16xbf16>
    tpu.vector_store %arg11[%c0_47, %c112], %69 {strides = array<i32>} : memref<624x144xbf16, #tpu.memory_space<vmem>>, vector<624x16xbf16>,
    %c38 = arith.constant 38 : index
    %c0_48 = arith.constant 0 : index
    %71 = vector.load %arg10[%c38, %c0_48] : memref<664x16xbf16, #tpu.memory_space<vmem>>, vector<624x16xbf16>
    %c0_49 = arith.constant 0 : index
    %c128 = arith.constant 128 : index
    %72 = vector.load %arg11[%c0_49, %c128] : memref<624x144xbf16, #tpu.memory_space<vmem>>, vector<624x16xbf16>
    tpu.vector_store %arg11[%c0_49, %c128], %71 {strides = array<i32>} : memref<624x144xbf16, #tpu.memory_space<vmem>>, vector<624x16xbf16>,
    %c0_50 = arith.constant 0 : index
    %c0_51 = arith.constant 0 : index
    %73 = vector.load %arg11[%c0_50, %c0_51] : memref<624x144xbf16, #tpu.memory_space<vmem>>, vector<624x144xbf16>
    %c0_52 = arith.constant 0 : index
    %c0_53 = arith.constant 0 : index
    %74 = vector.load %arg4[%c0_52, %c0_53] : memref<144x128xbf16, #tpu.memory_space<vmem>>, vector<144x128xbf16>
    %cst_54 = arith.constant dense<0.000000e+00> : vector<624x128xf32>
    %75 = tpu.matmul %73, %74, %cst_54 {dimension_numbers = #tpu.dot_dimension_numbers<[1], [0], [0], [1], [0, 0, 1, 1], [], []>} : vector<624x144xbf16>, vector<144x128xbf16>, vector<624x128xf32> -> vector<624x128xf32>
    %c0_55 = arith.constant 0 : index
    %c0_56 = arith.constant 0 : index
    %76 = vector.load %arg5[%c0_55, %c0_56] : memref<1x128xf32, #tpu.memory_space<vmem>>, vector<1x128xf32>
    %77 = vector.broadcast %76 : vector<1x128xf32> to vector<624x128xf32>
    %78 = arith.addf %75, %77 : vector<624x128xf32>
    %cst_57 = arith.constant 0.000000e+00 : f32
    %79 = vector.broadcast %cst_57 : f32 to vector<624x128xf32>
    %80 = arith.maximumf %78, %79 : vector<624x128xf32>
    %81 = arith.truncf %80 : vector<624x128xf32> to vector<624x128xbf16>
    %c0_58 = arith.constant 0 : index
    %c0_59 = arith.constant 0 : index
    %82 = vector.load %arg8[%c0_58, %c0_59] : memref<2x624xbf16, #tpu.memory_space<vmem>>, vector<2x624xbf16>
    %cst_60 = arith.constant dense<0.000000e+00> : vector<2x128xf32>
    %83 = tpu.matmul %82, %81, %cst_60 {dimension_numbers = #tpu.dot_dimension_numbers<[1], [0], [0], [1], [0, 0, 1, 1], [], []>} : vector<2x624xbf16>, vector<624x128xbf16>, vector<2x128xf32> -> vector<2x128xf32>
    %84 = arith.truncf %83 : vector<2x128xf32> to vector<2x128xbf16>
    %c0_61 = arith.constant 0 : index
    %c0_62 = arith.constant 0 : index
    %85 = vector.load %arg6[%c0_61, %c0_62] : memref<128x128xbf16, #tpu.memory_space<vmem>>, vector<128x128xbf16>
    %cst_63 = arith.constant dense<0.000000e+00> : vector<2x128xf32>
    %86 = tpu.matmul %84, %85, %cst_63 {dimension_numbers = #tpu.dot_dimension_numbers<[1], [0], [0], [1], [0, 0, 1, 1], [], []>} : vector<2x128xbf16>, vector<128x128xbf16>, vector<2x128xf32> -> vector<2x128xf32>
    %c0_64 = arith.constant 0 : index
    %c0_65 = arith.constant 0 : index
    %87 = vector.load %arg7[%c0_64, %c0_65] : memref<1x128xf32, #tpu.memory_space<vmem>>, vector<1x128xf32>
    %88 = vector.broadcast %87 : vector<1x128xf32> to vector<2x128xf32>
    %89 = arith.addf %86, %88 : vector<2x128xf32>
    %c0_66 = arith.constant 0 : index
    %c0_67 = arith.constant 0 : index
    %c0_68 = arith.constant 0 : index
    %90 = vector.load %arg9[%c0_66, %c0_67, %c0_68] : memref<1x2x128xf32, #tpu.memory_space<vmem>>, vector<1x2x128xf32>
    %91 = vector.shape_cast %90 : vector<1x2x128xf32> to vector<2x128xf32>
    %92 = vector.shape_cast %89 : vector<2x128xf32> to vector<1x2x128xf32>
    tpu.vector_store %arg9[%c0_66, %c0_67, %c0_68], %92 {strides = array<i32>} : memref<1x2x128xf32, #tpu.memory_space<vmem>>, vector<1x2x128xf32>,
    return
  }
  func.func @transform_0(%arg0: i32) -> (i32, i32, i32) {
    %c0_i32 = arith.constant 0 : i32
    %c0_i32_0 = arith.constant 0 : i32
    %c0_i32_1 = arith.constant 0 : i32
    return %arg0, %c0_i32, %c0_i32_0 : i32, i32, i32
  }
  func.func @transform_1(%arg0: i32) -> (i32, i32) {
    %c0_i32 = arith.constant 0 : i32
    %c0_i32_0 = arith.constant 0 : i32
    %c0_i32_1 = arith.constant 0 : i32
    return %c0_i32, %c0_i32_0 : i32, i32
  }
  func.func @transform_2(%arg0: i32) -> (i32, i32) {
    %c0_i32 = arith.constant 0 : i32
    %c0_i32_0 = arith.constant 0 : i32
    %c0_i32_1 = arith.constant 0 : i32
    return %c0_i32, %c0_i32_0 : i32, i32
  }
  func.func @transform_3(%arg0: i32) -> (i32, i32) {
    %c0_i32 = arith.constant 0 : i32
    %c0_i32_0 = arith.constant 0 : i32
    %c0_i32_1 = arith.constant 0 : i32
    return %c0_i32, %c0_i32_0 : i32, i32
  }
  func.func @transform_4(%arg0: i32) -> (i32, i32) {
    %c0_i32 = arith.constant 0 : i32
    %c0_i32_0 = arith.constant 0 : i32
    %c0_i32_1 = arith.constant 0 : i32
    return %c0_i32, %c0_i32_0 : i32, i32
  }
  func.func @transform_5(%arg0: i32) -> (i32, i32) {
    %c0_i32 = arith.constant 0 : i32
    %c0_i32_0 = arith.constant 0 : i32
    %c0_i32_1 = arith.constant 0 : i32
    return %c0_i32, %c0_i32_0 : i32, i32
  }
  func.func @transform_6(%arg0: i32) -> (i32, i32) {
    %c0_i32 = arith.constant 0 : i32
    %c0_i32_0 = arith.constant 0 : i32
    %c0_i32_1 = arith.constant 0 : i32
    return %c0_i32, %c0_i32_0 : i32, i32
  }
  func.func @transform_7(%arg0: i32) -> (i32, i32) {
    %c0_i32 = arith.constant 0 : i32
    %c0_i32_0 = arith.constant 0 : i32
    %c0_i32_1 = arith.constant 0 : i32
    return %c0_i32, %c0_i32_0 : i32, i32
  }
  func.func @transform_8(%arg0: i32) -> (i32, i32, i32) {
    %c0_i32 = arith.constant 0 : i32
    %c0_i32_0 = arith.constant 0 : i32
    %c0_i32_1 = arith.constant 0 : i32
    return %arg0, %c0_i32, %c0_i32_0 : i32, i32, i32
  }
}

</mosaic_0001>

<bundles_post_ra>
// kernel: cls_model_forward.1
= control target key start
LH: loop header
LB: loop body
LE: loop exit
PB: predicated region body
PF: predicated region fallthrough
CT: control target
= control target key end

     0   :  { %13 = vsyncpa [#allocation5], 0  ;;  %s16109_s0 = inlined_call_operand.vmem [shape: bf16[2,576,36], index: 0, kind: input, shape index: {}]   ;;  %s16110_s1 = inlined_call_operand.vmem [shape: bf16[36,16], index: 1, kind: input, shape index: {}]   ;;  %s16111_s2 = inlined_call_operand.vmem [shape: f32[1,16], index: 2, kind: input, shape index: {}]   ;;  %s16112_s3 = inlined_call_operand.vmem [shape: bf16[144,128], index: 3, kind: input, shape index: {}]   ;;  %s16113_s4 = inlined_call_operand.vmem [shape: f32[1,128], index: 4, kind: input, shape index: {}]   ;;  %s16114_s5 = inlined_call_operand.vmem [shape: bf16[128,128], index: 5, kind: input, shape index: {}]   ;;  %s16115_s6 = inlined_call_operand.vmem [shape: f32[1,128], index: 6, kind: input, shape index: {}]   ;;  %s16116_s7 = inlined_call_operand.vmem [shape: bf16[2,624], index: 7, kind: input, shape index: {}]   ;;  %s16117_s8 = inlined_call_operand.hbm [shape: f32[2,2,128], index: 8, kind: output, shape index: {}]  }
   0x1   :  { %15 = vsyncpa [#allocation5 + $0x1], 0  ;;  %s10908_s27 = smov 0   ;;  %s10910_s28 = smov 0  }
   0x2   :  { %s10912_s29 = smov 0   ;;  %s10914_s30 = smov 0  }
   0x3 LB: > { %s10929_s9 = sadd.s32 4294967295, %s10849_s30   ;;  %s9337_s10 = sadd.s32 4294967294, %s10849_s30   ;;  %s10849_s30 = sphi %s10914_s30, %s17286_s30   ;;  %s10845_s29 = sphi %s10912_s29, %s17285_s29   ;;  %s10841_s28 = sphi %s10910_s28, %s17284_s28   ;;  %s10837_s27 = sphi %s10908_s27, %s17283_s27  }
   0x4   : > { %s10933_s11 = sadd.s32 1, %s10849_s30   ;;  %s201_s12 = sadd.s32 1, %s10845_s29 }
   0x5   : > { %s198_s13 = ssub.s32 %s10849_s30, %s10933_s11  ;;  %p211_p0 = scmp.ne.s32.totalorder %s10845_s29, %s10841_s28 }
   0x6   : > { %p199_p1 = scmp.eq.s32.totalorder %s198_s13, 0  ;;  %p212_p2 = scmp.eq.s32.totalorder %s10929_s9, 1 }
   0x7   : > { %p217_p3 = scmp.ne.s32.totalorder %s10841_s28, %s10837_s27  ;;  %p218_p4 = scmp.eq.s32.totalorder %s9337_s10, 1 }
   0x8   : > { %s10944_s14 = scalar_select %p199_p1, %s10845_s29, %s201_s12  }
   0x9   : > { %p10946_p5 = por %p212_p2, %p211_p0  ;;  %p10950_p6 = por %p218_p4, %p217_p3 }
   0xa   : > { %p9340_p7 = scmp.ge.s32.totalorder %s10849_s30, 1  ;;  %p265_p8 = scmp.lt.s32.totalorder %s10849_s30, 3 }
   0xc   : > { %p266_p9 = pnand %p9340_p7, %p265_p8 }
   0xe   : > { %269 = sbr.rel (%p266_p9) target bundleno = 1786 (0x6fa), region = 52 }
  0x15   : > { %v10357_v0 = vld [vmem:[%s16110_s1] sm:$0xff]   ;;  %p299_p10 = scmp.lt.s32.totalorder %s10929_s9, 1  ;;  %v10359_v2 = vld [vmem:[%s16110_s1 + $0x8] sm:$0xff]   ;;  %v10361_v4 = vld [vmem:[%s16110_s1 + $0x10] ss:$0 sps:$4 sm:$0x33]   ;;  %v333_v50 = vlaneseq }
  0x16   : > { %v10358_v1 = vld [vmem:[%s16110_s1] sm:$0xff]   ;;  %10092 = vmatprep.subr.bf16.mxu0 %v10357_v0  ;;  %v10360_v3 = vld [vmem:[%s16110_s1 + $0x8] sm:$0xff]   ;;  %vm1190_vm0 = vcmask 1041408   ;;  %v10362_v5 = vld [vmem:[%s16110_s1 + $0x10] ss:$0 sps:$4 sm:$0x33]  }
  0x17   : > { %10134 = vmatprep.subr.bf16.mxu1 %v10358_v1  ;;  %10093 = vmatpush3.bf16.msra.mxu0 %v10357_v0  ;;  %s300_s25 = scalar_select %p299_p10, %s10929_s9, 1  ;;  %vm16118_vm1 = vcmask 293888   ;;  %v1192_v6 = vsel %vm1190_vm0, %v10361_v4, 0  ;;  %v2270_v8 = vsel %vm1190_vm0, %v10362_v5, 0  ;;  %vm308_vm2 = vcmask 123904  }
  0x18   : > { %10135 = vmatpush3.bf16.msra.mxu1 %v10358_v1  ;;  %10094 = vmatprep.subr.bf16.mxu0 %v10359_v2  ;;  %vm16120_vm3 = vsmask.f32 1280  ;;  %v16317_v40 = vmov 0  ;;  %v311_v41 = vld [vmem:[#allocation2 + $0x8] sm:$0x3]  ;;  %vm314_vm5 = vcmask 125953  }
  0x19   : > { %10136 = vmatprep.subr.bf16.mxu1 %v10360_v3  ;;  %s10234_s17 = smul.u32 288, %s300_s25  ;;  %vm11046_vm4 = vmand %vm308_vm2, %vm16120_vm3  ;;  %v322_v43 = vld [vmem:[#allocation2 + $0xa4] sm:$0x3]  ;;  %vm315_vm6 = vsmask.f32 7942  ;;  %v16320_v45 = vmov 0 }
  0x1a   : > { %v16318_v40 = vsel %vm11046_vm4, 4294967295, %v16317_v40  ;;  %v312_v42 = vsel %vm11046_vm4, 0, %v311_v41  ;;  %v323_v44 = vsel %vm11046_vm4, 0, %v322_v43  ;;  %vm11054_vm7 = vmand %vm314_vm5, %vm315_vm6  ;;  %v317_v46 = vld [vmem:[#allocation2 + $0x98] sm:$0xe]  ;;  %v11062_v51 = vshrl.u32 %v333_v50, 7 }
  0x1b   : > { %10095 = vmatpush3.bf16.msra.mxu0 %v10359_v2  ;;  %s10979_s20 = scalar_lea.vmem %s16109_s0, %s10234_s17  ;;  %16319 = vst [vmem:[#allocation7_spill] sm:$0xff] %v16318_v40  ;;  %313 = vst [vmem:[#allocation2 + $0x8] sm:$0x3] %v312_v42  ;;  %v16321_v45 = vsel %vm11054_vm7, 4294967295, %v16320_v45  ;;  %v325_v47 = vld [vmem:[#allocation2 + $0x134] sm:$0xe] }
  0x1c   : > { %10137 = vmatpush3.bf16.msra.mxu1 %v10360_v3  ;;  %10232 = vmatprep.subr.msk.bf16.mxu0 %vm1190_vm0, %v10361_v4  ;;  %v10363_v7 = vld [vmem:[%s10979_s20] sm:$0xff]   ;;  %v10364_v9 = vld [vmem:[%s10979_s20 + $0x90] sm:$0xff]   ;;  %v10365_v10 = vld [vmem:[%s10979_s20 + $0x8] sm:$0xff]   ;;  %324 = vst [vmem:[#allocation2 + $0xa4] sm:$0x3] %v323_v44  ;;  %v318_v48 = vsel %vm11054_vm7, 0, %v317_v46 }
  0x1d   : > { %10233 = vmatprep.subr.msk.bf16.mxu1 %vm1190_vm0, %v10362_v5  ;;  %10098 = vmatprep.mubr.msk.bf16.mxu0 %vm16118_vm1, %v10363_v7  ;;  %v10366_v11 = vld [vmem:[%s10979_s20 + $0x98] sm:$0xff]   ;;  %v10367_v12 = vld [vmem:[%s10979_s20 + $0x10] sm:$0xff]   ;;  %v10368_v13 = vld [vmem:[%s10979_s20 + $0xa0] sm:$0xff]   ;;  %v326_v49 = vsel %vm11054_vm7, 0, %v325_v47  ;;  %319 = vst [vmem:[#allocation2 + $0x98] sm:$0xe] %v318_v48 }
  0x1e   : > { %10140 = vmatprep.mubr.msk.bf16.mxu1 %vm16118_vm1, %v10364_v9  ;;  %v10369_v14 = vld [vmem:[%s10979_s20 + $0x18] sm:$0xff]   ;;  %v10370_v15 = vld [vmem:[%s10979_s20 + $0xa8] sm:$0xff]   ;;  %v10371_v16 = vld [vmem:[%s10979_s20 + $0x20] sm:$0xff]   ;;  %327 = vst [vmem:[#allocation2 + $0x134] sm:$0xe] %v326_v49  ;;  %vm16119_vm8 = vcmask 125952  }
  0x1f   : > { %10097 = vmatpush3.bf16.msra.mxu0 %v1192_v6  ;;  %v10376_v17 = vld [vmem:[%s10979_s20 + $0xb0] sm:$0xff]   ;;  %v10372_v18 = vld [vmem:[%s10979_s20 + $0x28] sm:$0xff]   ;;  %v10378_v20 = vld [vmem:[%s10979_s20 + $0xb8] sm:$0xff]   ;;  %16322 = vst [vmem:[#allocation8_spill] sm:$0xff] %v11062_v51  ;;  %v336_v52 = vadd.s32 16, %v11062_v51  ;;  %v16123_v53 = vmov 0  }
  0x20   : > { %10139 = vmatpush3.bf16.msra.mxu1 %v2270_v8  ;;  %v10373_v19 = vld [vmem:[%s10979_s20 + $0x30] sm:$0xff]   ;;  %v10387_v21 = vld [vmem:[%s10979_s20 + $0xc0] sm:$0xff]   ;;  %v10374_v22 = vld [vmem:[%s10979_s20 + $0x38] sm:$0xff]   ;;  %306 = vst.msk [vmem:[#allocation2] sm:$0xf] %vm16119_vm8, %v16123_v53  ;;  %8520 = vmatprep.subr.bf16.mxu0 %v16123_v53  ;;  %v337_v54 = vadd.s32 24, %v11062_v51 }
  0x21   : > { %v10375_v23 = vld [vmem:[%s10979_s20 + $0x40] sm:$0xff]   ;;  %v10388_v24 = vld [vmem:[%s10979_s20 + $0xc8] sm:$0xff]   ;;  %v10389_v25 = vld [vmem:[%s10979_s20 + $0xd0] sm:$0xff]   ;;  %307 = vst.msk [vmem:[#allocation2 + $0x4] sm:$0xf] %vm16119_vm8, %v16123_v53  ;;  %10214 = vmatprep.subr.bf16.mxu1 %v16123_v53  ;;  %v335_v61 = vadd.s32 8, %v11062_v51 }
  0x22   : > { %10099 = vmatmul.mubr.msk.bf16.vlgmr.msra.gmra.mrb[0].mxu0 %vm16118_vm1, %v10365_v10  ;;  %v10377_v26 = vld [vmem:[%s10979_s20 + $0x48] sm:$0xff]   ;;  %v10379_v27 = vld [vmem:[%s10979_s20 + $0x50] sm:$0xff]   ;;  %v10390_v28 = vld [vmem:[%s10979_s20 + $0xd8] sm:$0xff]   ;;  %320 = vst.msk [vmem:[#allocation2 + $0x9c] sm:$0xf] %vm16119_vm8, %v16123_v53  ;;  %v340_v3 = vadd.s32 48, %v11062_v51 }
  0x23   : > { %10141 = vmatmul.mubr.msk.bf16.vlgmr.msra.gmra.mrb[0].mxu1 %vm16118_vm1, %v10366_v11  ;;  %10102 = vmatprep.mubr.msk.bf16.mxu0 %vm16118_vm1, %v10367_v12  ;;  %v10391_v29 = vld [vmem:[%s10979_s20 + $0xe0] sm:$0xff]   ;;  %v10380_v30 = vld [vmem:[%s10979_s20 + $0x58] sm:$0xff]   ;;  %v10392_v32 = vld [vmem:[%s10979_s20 + $0xe8] sm:$0xff]   ;;  %321 = vst.msk [vmem:[#allocation2 + $0xa0] sm:$0xf] %vm16119_vm8, %v16123_v53  ;;  %v338_v4 = vadd.s32 32, %v11062_v51 }
  0x24   : > { %10144 = vmatprep.mubr.msk.bf16.mxu1 %vm16118_vm1, %v10368_v13  ;;  %v10381_v31 = vld [vmem:[%s10979_s20 + $0x60] sm:$0xff]   ;;  %v10393_v33 = vld [vmem:[%s10979_s20 + $0xf0] sm:$0xff]   ;;  %v10382_v34 = vld [vmem:[%s10979_s20 + $0x68] sm:$0xff]   ;;  %328 = vst.msk [vmem:[#allocation2 + $0x138] sm:$0xf] %vm16119_vm8, %v16123_v53  ;;  %v11112_v10 = vadd.s32 40, %v11062_v51 }
  0x25   : > { %v10383_v35 = vld [vmem:[%s10979_s20 + $0x70] sm:$0xff]   ;;  %v10394_v36 = vld [vmem:[%s10979_s20 + $0xf8] sm:$0xff]   ;;  %v10385_v38 = vld [vmem:[%s10979_s20 + $0x80] sm:$0xff]   ;;  %329 = vst.msk [vmem:[#allocation2 + $0x13c] sm:$0xf] %vm16119_vm8, %v16123_v53  ;;  %v11116_v12 = vadd.s32 56, %v11062_v51 }
  0x26   : > { %v10384_v37 = vld [vmem:[%s10979_s20 + $0x78] sm:$0xff]   ;;  %v10386_v39 = vld [vmem:[%s10979_s20 + $0x88] sm:$0xff]   ;;  %330 = vst.msk [vmem:[#allocation2 + $0x140] sm:$0xf] %vm16119_vm8, %v16123_v53  ;;  %331 = vst.msk [vmem:[#allocation2 + $0x144] sm:$0xf] %vm16119_vm8, %v16123_v53 }
  0x27   : > { %332 = vst.msk [vmem:[#allocation2 + $0x148] sm:$0xf] %vm16119_vm8, %v16123_v53  ;;  %v11086_v55 = vmul.u32.u64.low 3817748708, %v336_v52  ;;  %v11087_v56 = vmul.u32.u64.high 3817748708, %v336_v52, %v11086_v55  ;;  %v11090_v57 = vmul.u32.u64.low 3817748708, %v11062_v51  ;;  %v11091_v58 = vmul.u32.u64.high 3817748708, %v11062_v51, %v11090_v57 }
  0x28   : > { %v11093_v59 = vmul.u32.u64.low 3817748708, %v337_v54  ;;  %v11094_v60 = vmul.u32.u64.high 3817748708, %v337_v54, %v11093_v59  ;;  %v11098_v63 = vmul.u32.u64.low 3817748708, %v335_v61  ;;  %v11099_v0 = vmul.u32.u64.high 3817748708, %v335_v61, %v11098_v63  ;;  %s10852_s23 = smov 32   ;;  %s10853_s24 = smov 48  }
  0x29   : > { %v398_v62 = vshrl.u32 %v11087_v56, 4  ;;  %v376_v1 = vshrl.u32 %v11091_v58, 4  ;;  %v11105_v5 = vmul.u32.u64.low 3817748708, %v338_v4  ;;  %v11106_v6 = vmul.u32.u64.high 3817748708, %v338_v4, %v11105_v5  ;;  %s10854_s25 = smov 16   ;;  %s10855_s26 = smov 96  }
  0x2a   : > { %10103 = vmatmul.mubr.msk.bf16.gmra.mrb[4].mxu0 %vm16118_vm1, %v10369_v14  ;;  %v409_v2 = vshrl.u32 %v11094_v60, 4  ;;  %v11108_v7 = vmul.u32.u64.low 3817748708, %v340_v3  ;;  %v11109_v8 = vmul.u32.u64.high 3817748708, %v340_v3, %v11108_v7  ;;  %v387_v11 = vshrl.u32 %v11099_v0, 4  ;;  %s10856_s10 = smov 80   ;;  %s10857_s17 = smov 112  }
  0x2b   : > { %10145 = vmatmul.mubr.msk.bf16.gmra.mrb[4].mxu1 %vm16118_vm1, %v10370_v15  ;;  %10106 = vmatprep.mubr.msk.bf16.mxu0 %vm16118_vm1, %v10371_v16  ;;  %v399_v9 = vmul.u32 18, %v398_v62  ;;  %v377_v13 = vmul.u32 18, %v376_v1  ;;  %v11119_v15 = vadd.s32 64, %v11062_v51  ;;  %v420_v16 = vshrl.u32 %v11106_v6, 4  ;;  %s10858_s18 = smov 64   ;;  %s296_s12 = sand.u32 1, %s10841_s28  }
  0x2c   : > { %10148 = vmatprep.mubr.msk.bf16.mxu1 %vm16118_vm1, %v10376_v17  ;;  %v410_v14 = vmul.u32 18, %v409_v2  ;;  %v11223_v58 = vadd.s32 112, %v11062_v51  ;;  %v16331_v1 = vmov 0  ;;  %v16333_v6 = vmov 0  ;;  %s9341_s13 = sshll.u32 %s296_s12, 1  ;;  %s9914_s21 = sshll.u32 %s10929_s9, 5 }
  0x2d   : > { %v11122_v17 = vsub.s32 %v336_v52, %v399_v9  ;;  %v356_v40 = vadd.s32 176, %v11062_v51  ;;  %s298_s22 = scalar_lea.vmem [#allocation4], %s9341_s13 }
  0x2f   : > { %vm768_vm9 = vcmp.ne.s32.totalorder %v11122_v17, 0  ;;  %vm804_vm10 = vcmp.lt.s32.totalorder %v11122_v17, 0  ;;  %v11183_v46 = vadd.s32 18, %v11122_v17 }
  0x30   : > { %vm11178_vm15 = vmand %vm804_vm10, %vm768_vm9 }
  0x32   : > { %10107 = vmatmul.mubr.msk.bf16.gmra.mrb[8].mxu0 %vm16118_vm1, %v10372_v18  ;;  %v442_v18 = vshrl.u32 %v11109_v8, 4  ;;  %v11267_v8 = vadd.s32 120, %v11062_v51 }
  0x33   : > { %10110 = vmatprep.mubr.msk.bf16.mxu0 %vm16118_vm1, %v10373_v19  ;;  %10149 = vmatmul.mubr.msk.bf16.gmra.mrb[8].mxu1 %vm16118_vm1, %v10378_v20  ;;  %v11126_v19 = vmul.u32.u64.low 3817748708, %v11112_v10  ;;  %v11127_v20 = vmul.u32.u64.high 3817748708, %v11112_v10, %v11126_v19 }
  0x34   : > { %10152 = vmatprep.mubr.msk.bf16.mxu1 %vm16118_vm1, %v10387_v21  ;;  %v388_v21 = vmul.u32 18, %v387_v11 }
  0x35   : > { %v431_v41 = vshrl.u32 %v11127_v20, 4  ;;  %v11285_v20 = vadd.s32 104, %v11062_v51 }
  0x37   : > { %v432_v57 = vmul.u32 18, %v431_v41  ;;  %v11324_v41 = vadd.s32 128, %v11062_v51 }
  0x39   : > { %v11270_v9 = vsub.s32 %v11112_v10, %v432_v57  ;;  %v10399_v57 = vld [vmem:[#allocation2] sm:$0xff]  }
  0x3a   : > { %10111 = vmatmul.mubr.msk.bf16.gmra.mrb[12].mxu0 %vm16118_vm1, %v10374_v22  ;;  %v3697_v63 = vshrl.u32 %v10399_v57, 16 }
  0x3b   : > { %10114 = vmatprep.mubr.msk.bf16.mxu0 %vm16118_vm1, %v10375_v23  ;;  %10153 = vmatmul.mubr.msk.bf16.gmra.mrb[12].mxu1 %vm16118_vm1, %v10388_v24  ;;  %v11130_v22 = vmul.u32.u64.low 3817748708, %v11116_v12  ;;  %v11131_v23 = vmul.u32.u64.high 3817748708, %v11116_v12, %v11130_v22  ;;  %v11134_v24 = vadd.s32 80, %v11062_v51 }
  0x3c   : > { %10156 = vmatprep.mubr.msk.bf16.mxu1 %vm16118_vm1, %v10389_v25  ;;  %v11137_v25 = vsub.s32 %v11062_v51, %v377_v13 }
  0x3d   : > { %v453_v47 = vshrl.u32 %v11131_v23, 4 }
  0x3e   : > { %vm766_vm11 = vcmp.ne.s32.totalorder %v11137_v25, 0  ;;  %vm802_vm12 = vcmp.lt.s32.totalorder %v11137_v25, 0  ;;  %v11197_v49 = vadd.s32 18, %v11137_v25 }
  0x3f   : > { %vm11192_vm5 = vmand %vm802_vm12, %vm766_vm11 }
  0x42   : > { %10115 = vmatmul.mubr.msk.bf16.gmra.mrb[16].mxu0 %vm16118_vm1, %v10377_v26  ;;  %v11139_v26 = vsub.s32 %v337_v54, %v410_v14  ;;  %v11274_v13 = vmul.u32.u64.low 3817748708, %v11223_v58  ;;  %v11275_v14 = vmul.u32.u64.high 3817748708, %v11223_v58, %v11274_v13 }
  0x43   : > { %10118 = vmatprep.mubr.msk.bf16.mxu0 %vm16118_vm1, %v10379_v27  ;;  %10157 = vmatmul.mubr.msk.bf16.gmra.mrb[16].mxu1 %vm16118_vm1, %v10390_v28  ;;  %v11142_v27 = vmul.u32.u64.low 3817748708, %v11119_v15  ;;  %v11143_v28 = vmul.u32.u64.high 3817748708, %v11119_v15, %v11142_v27 }
  0x44   : > { %10160 = vmatprep.mubr.msk.bf16.mxu1 %vm16118_vm1, %v10391_v29  ;;  %v421_v29 = vmul.u32 18, %v420_v16  ;;  %vm769_vm13 = vcmp.ne.s32.totalorder %v11139_v26, 0  ;;  %vm805_vm14 = vcmp.lt.s32.totalorder %v11139_v26, 0  ;;  %v11209_v54 = vadd.s32 18, %v11139_v26 }
  0x45   : > { %v464_v50 = vshrl.u32 %v11143_v28, 4  ;;  %vm11204_vm6 = vmand %vm805_vm14, %vm769_vm13  ;;  %v16354_v16 = vmov 0 }
  0x47   : > { %v465_v2 = vmul.u32 18, %v464_v50 }
  0x4a   : > { %10119 = vmatmul.mubr.msk.bf16.gmra.mrb[20].mxu0 %vm16118_vm1, %v10380_v30  ;;  %v11146_v30 = vadd.s32 72, %v11062_v51 }
  0x4b   : > { %10122 = vmatprep.mubr.msk.bf16.mxu0 %vm16118_vm1, %v10381_v31  ;;  %10161 = vmatmul.mubr.msk.bf16.gmra.mrb[20].mxu1 %vm16118_vm1, %v10392_v32  ;;  %v443_v31 = vmul.u32 18, %v442_v18  ;;  %v11149_v32 = vadd.s32 88, %v11062_v51 }
  0x4c   : > { %10164 = vmatprep.mubr.msk.bf16.mxu1 %vm16118_vm1, %v10393_v33  ;;  %v11152_v33 = vsub.s32 %v335_v61, %v388_v21  ;;  %v454_v61 = vmul.u32 18, %v453_v47  ;;  %v11292_v21 = vsub.s32 %v11119_v15, %v465_v2 }
  0x4d   : > { %v11173_v42 = vmul.u32.u64.low 3817748708, %v11149_v32  ;;  %v11174_v43 = vmul.u32.u64.high 3817748708, %v11149_v32, %v11173_v42 }
  0x4e   : > { %vm767_vm0 = vcmp.ne.s32.totalorder %v11152_v33, 0  ;;  %vm803_vm2 = vcmp.lt.s32.totalorder %v11152_v33, 0  ;;  %v11212_v55 = vadd.s32 18, %v11152_v33  ;;  %v11282_v18 = vsub.s32 %v11116_v12, %v454_v61  ;;  %16335 = vst [vmem:[#allocation9_spill] sm:$0xff] %v11292_v21 }
  0x4f   : > { %vm11216_vm11 = vmand %vm803_vm2, %vm767_vm0  ;;  %v497_v11 = vshrl.u32 %v11174_v43, 4  ;;  %v11299_v12 = vmul.u32.u64.low 3817748708, %v11267_v8  ;;  %v11300_v28 = vmul.u32.u64.high 3817748708, %v11267_v8, %v11299_v12  ;;  %vm771_vm2 = vcmp.ne.s32.totalorder %v11270_v9, 0 }
  0x50   : > { %v11335_v47 = vadd.s32 18, %v11292_v21  ;;  %v530_v61 = vshrl.u32 %v11275_v14, 4 }
  0x51   : > { %v498_v15 = vmul.u32 18, %v497_v11 }
  0x52   : > { %10123 = vmatmul.mubr.msk.bf16.gmra.mrb[24].mxu0 %vm16118_vm1, %v10382_v34  ;;  %16337 = vst [vmem:[#allocation11_spill] sm:$0xff] %v11335_v47 }
  0x53   : > { %10126 = vmatprep.mubr.msk.bf16.mxu0 %vm16118_vm1, %v10383_v35  ;;  %10165 = vmatmul.mubr.msk.bf16.gmra.mrb[24].mxu1 %vm16118_vm1, %v10394_v36  ;;  %v11155_v34 = vmul.u32.u64.low 3817748708, %v11134_v24  ;;  %v11156_v35 = vmul.u32.u64.high 3817748708, %v11134_v24, %v11155_v34  ;;  %v11163_v36 = vsub.s32 %v338_v4, %v421_v29  ;;  %v11303_v29 = vadd.s32 144, %v11062_v51  ;;  %v11437_v4 = vld [vmem:[#allocation2] sm:$0xfe]  }
  0x54   : > { %v11338_v50 = vsub.s32 %v11149_v32, %v498_v15  ;;  %v11355_v32 = vmul.u32.u64.low 3817748708, %v11324_v41  ;;  %v11356_v2 = vmul.u32.u64.high 3817748708, %v11324_v41, %v11355_v32  ;;  %v3699_v15 = vshll.u32 %v10399_v57, 16  ;;  %16356 = vst [vmem:[#allocation13_spill] sm:$0xff] %v11437_v4 }
  0x55   : > { %vm770_vm9 = vcmp.ne.s32.totalorder %v11163_v36, 0  ;;  %vm806_vm10 = vcmp.lt.s32.totalorder %v11163_v36, 0  ;;  %v11230_v60 = vadd.s32 18, %v11163_v36  ;;  %v486_v62 = vshrl.u32 %v11156_v35, 4 }
  0x56   : > { %vm11242_vm14 = vmand %vm806_vm10, %vm770_vm9  ;;  %vm807_vm9 = vcmp.lt.s32.totalorder %v11270_v9, 0  ;;  %vm773_vm10 = vcmp.ne.s32.totalorder %v11282_v18, 0  ;;  %vm777_vm3 = vcmp.ne.s32.totalorder %v11338_v50, 0  ;;  %v552_v5 = vshrl.u32 %v11356_v2, 4 }
  0x57   : > { %v16332_v1 = vsel %vm11242_vm14, 4294967295, %v16331_v1  ;;  %v487_v19 = vmul.u32 18, %v486_v62  ;;  %v11342_v62 = vadd.s32 152, %v11062_v51  ;;  %vm11348_vm8 = vmand %vm807_vm9, %vm771_vm2  ;;  %vm16342_vm2 = vcmp.ne.s32.totalorder %v11292_v21, 0 }
  0x58   : > { %vm16343_vm9 = vcmp.lt.s32.totalorder %v11292_v21, 0  ;;  %v3701_v59 = vrot.slane %v3699_v15, 1 }
  0x59   : > { %v11312_v34 = vsub.s32 %v11134_v24, %v487_v19  ;;  %v11331_v24 = vmul.u32.u64.low 3817748708, %v11303_v29  ;;  %v11332_v43 = vmul.u32.u64.high 3817748708, %v11303_v29, %v11331_v24 }
  0x5a   : > { %10127 = vmatmul.mubr.msk.bf16.gmra.mrb[28].mxu0 %vm16118_vm1, %v10384_v37  ;;  %v11371_v14 = vmul.u32.u64.low 3817748708, %v11342_v62  ;;  %v11372_v19 = vmul.u32.u64.high 3817748708, %v11342_v62, %v11371_v14  ;;  %v16349_v24 = vmov 0 }
  0x5b   : > { %10130 = vmatprep.mubr.msk.bf16.mxu0 %vm16118_vm1, %v10385_v38  ;;  %v11166_v37 = vmul.u32.u64.low 3817748708, %v11146_v30  ;;  %v11167_v38 = vmul.u32.u64.high 3817748708, %v11146_v30, %v11166_v37  ;;  %v11367_v11 = vadd.s32 18, %v11312_v34  ;;  %v574_v53 = vshrl.u32 %v11332_v43, 4 }
  0x5c   : > { %v11315_v35 = vmul.u32.u64.low 3817748708, %v11285_v20  ;;  %v11316_v37 = vmul.u32.u64.high 3817748708, %v11285_v20, %v11315_v35  ;;  %v585_v21 = vshrl.u32 %v11372_v19, 4  ;;  %v16389_v43 = vmov 0 }
  0x5d   : > { %v475_v7 = vshrl.u32 %v11167_v38, 4  ;;  %v11320_v38 = vadd.s32 18, %v11282_v18  ;;  %v531_v35 = vmul.u32 18, %v530_v61  ;;  %v11427_v61 = vadd.s32 18, %v11338_v50 }
  0x5e   : > { %v575_v2 = vmul.u32 18, %v574_v53  ;;  %v16428_v19 = vsel %vm11216_vm11, %v11212_v55, %v11152_v33 }
  0x5f   : > { %v476_v27 = vmul.u32 18, %v475_v7  ;;  %v16340_v7 = vmov 0 }
  0x61   : > { %v11328_v42 = vsub.s32 %v11146_v30, %v476_v27  ;;  %v16338_v30 = vmov 0  ;;  %v541_v27 = vshrl.u32 %v11300_v28, 4  ;;  %v519_v28 = vshrl.u32 %v11316_v37, 4 }
  0x62   : > { %10131 = vmatmul.mubr.msk.bf16.gmra.mrb[32].mxu0 %vm16118_vm1, %v10386_v39  ;;  %v11169_v39 = vsub.s32 %v340_v3, %v443_v31  ;;  %v11247_v3 = vadd.s32 96, %v11062_v51  ;;  %v11308_v31 = vadd.s32 18, %v11270_v9  ;;  %v16339_v30 = vsel %vm11348_vm8, 4294967295, %v16338_v30  ;;  %vm11378_vm1 = vmand %vm16343_vm9, %vm16342_vm2 }
  0x63   : > { %16336 = vst [vmem:[#allocation10_spill] sm:$0xff] %v11328_v42  ;;  %v11390_v12 = vadd.s32 18, %v11328_v42  ;;  %vm16347_vm2 = vcmp.ne.s32.totalorder %v11312_v34, 0  ;;  %vm16348_vm9 = vcmp.lt.s32.totalorder %v11312_v34, 0  ;;  %v16352_v37 = vmov 0 }
  0x64   : > { %vm772_vm12 = vcmp.ne.s32.totalorder %v11169_v39, 0  ;;  %vm808_vm13 = vcmp.lt.s32.totalorder %v11169_v39, 0  ;;  %v11238_v0 = vadd.s32 18, %v11169_v39  ;;  %vm11396_vm4 = vmand %vm16348_vm9, %vm16347_vm2  ;;  %vm16351_vm2 = vcmp.lt.s32.totalorder %v11328_v42, 0 }
  0x65   : > { %vm11261_vm0 = vmand %vm808_vm13, %vm772_vm12  ;;  %v11295_v22 = vmul.u32.u64.low 3817748708, %v11247_v3  ;;  %v11296_v23 = vmul.u32.u64.high 3817748708, %v11247_v3, %v11295_v22  ;;  %vm809_vm12 = vcmp.lt.s32.totalorder %v11282_v18, 0  ;;  %16346 = vst [vmem:[#allocation12_spill] sm:$0xff] %v11390_v12  ;;  %v16350_v24 = vsel %vm11396_vm4, 4294967295, %v16349_v24 }
  0x66   : > { %v16334_v6 = vsel %vm11261_vm0, 4294967295, %v16333_v6  ;;  %vm11362_vm13 = vmand %vm809_vm12, %vm773_vm10  ;;  %v16344_v22 = vmov 0  ;;  %vm775_vm10 = vcmp.ne.s32.totalorder %v11328_v42, 0  ;;  %vm813_vm12 = vcmp.lt.s32.totalorder %v11338_v50, 0 }
  0x67   : > { %v16341_v7 = vsel %vm11362_vm13, 4294967295, %v16340_v7  ;;  %v508_v13 = vshrl.u32 %v11296_v23, 4  ;;  %v16345_v22 = vsel %vm11378_vm1, 4294967295, %v16344_v22  ;;  %v11386_v23 = vadd.s32 136, %v11062_v51  ;;  %vm11422_vm9 = vmand %vm16351_vm2, %vm775_vm10 }
  0x68   : > { %v16353_v37 = vsel %vm11422_vm9, 4294967295, %v16352_v37  ;;  %v542_v10 = vmul.u32 18, %v541_v27  ;;  %vm11433_vm1 = vmand %vm813_vm12, %vm777_vm3  ;;  %v520_v27 = vmul.u32 18, %v519_v28  ;;  %v11467_v42 = vor.u32 %v3701_v59, %v3697_v63 }
  0x69   : > { %v11403_v32 = vmul.u32.u64.low 3817748708, %v11386_v23  ;;  %v11404_v14 = vmul.u32.u64.high 3817748708, %v11386_v23, %v11403_v32  ;;  %v16355_v16 = vsel %vm11433_vm1, 4294967295, %v16354_v16  ;;  %v553_v28 = vmul.u32 18, %v552_v5 }
  0x6a   : > { %v509_v32 = vmul.u32 18, %v508_v13  ;;  %v11440_v13 = vsub.s32 %v11223_v58, %v531_v35  ;;  %v11456_v15 = vmul.u32.u64.low 3817748708, %v356_v40  ;;  %v11457_v35 = vmul.u32.u64.high 3817748708, %v356_v40, %v11456_v15  ;;  %16359 = vst [vmem:[#allocation16_spill] sm:$0xff] %v11467_v42 }
  0x6b   : > { %v563_v58 = vshrl.u32 %v11404_v14, 4  ;;  %v11464_v47 = vsub.s32 %v11267_v8, %v542_v10  ;;  %v11475_v14 = vsub.s32 %v11285_v20, %v520_v27  ;;  %v354_v8 = vadd.s32 160, %v11062_v51 }
  0x6c   : > { %16357 = vst [vmem:[#allocation14_spill] sm:$0xff] %v11440_v13  ;;  %v11453_v57 = vsub.s32 %v11247_v3, %v509_v32  ;;  %vm780_vm3 = vcmp.ne.s32.totalorder %v11440_v13, 0  ;;  %v11472_v3 = vadd.s32 18, %v11440_v13  ;;  %v586_v32 = vmul.u32 18, %v585_v21 }
  0x6d   : > { %16358 = vst [vmem:[#allocation15_spill] sm:$0xff] %v11464_v47  ;;  %16361 = vst [vmem:[#allocation18_spill] sm:$0xff] %v11475_v14  ;;  %v564_v53 = vmul.u32 18, %v563_v58  ;;  %v618_v59 = vshrl.u32 %v11457_v35, 4  ;;  %v11486_v5 = vsub.s32 %v11303_v29, %v575_v2  ;;  %v11489_v20 = vsub.s32 %v11324_v41, %v553_v28 }
  0x6e   : > { %16360 = vst [vmem:[#allocation17_spill] sm:$0xff] %v11472_v3  ;;  %v11482_v63 = vadd.s32 18, %v11453_v57  ;;  %v11491_v21 = vmul.u32.u64.low 3817748708, %v354_v8  ;;  %v11492_v27 = vmul.u32.u64.high 3817748708, %v354_v8, %v11491_v21  ;;  %v357_v15 = vadd.s32 184, %v11062_v51 }
  0x6f   : > { %16362 = vst [vmem:[#allocation19_spill] sm:$0xff] %v11486_v5  ;;  %16363 = vst [vmem:[#allocation20_spill] sm:$0xff] %v11489_v20  ;;  %v619_v10 = vmul.u32 18, %v618_v59  ;;  %vm817_vm2 = vcmp.lt.s32.totalorder %v11464_v47, 0  ;;  %v11497_v58 = vadd.s32 18, %v11464_v47  ;;  %v11501_v35 = vsub.s32 %v11342_v62, %v586_v32 }
  0x70   : > { %vm16366_vm10 = vcmp.lt.s32.totalorder %v11440_v13, 0  ;;  %v16367_v29 = vmov 0  ;;  %v11513_v41 = vsub.s32 %v11386_v23, %v564_v53  ;;  %vm16371_vm12 = vcmp.ne.s32.totalorder %v11453_v57, 0 }
  0x71   : > { %16364 = vst [vmem:[#allocation21_spill] sm:$0xff] %v11497_v58  ;;  %16365 = vst [vmem:[#allocation22_spill] sm:$0xff] %v11501_v35  ;;  %v11515_v2 = vmul.u32.u64.low 3817748708, %v357_v15  ;;  %v11516_v28 = vmul.u32.u64.high 3817748708, %v357_v15, %v11515_v2  ;;  %vm16372_vm4 = vcmp.lt.s32.totalorder %v11453_v57, 0  ;;  %v11528_v32 = vsub.s32 %v356_v40, %v619_v10 }
  0x72   : > { %vm11507_vm9 = vmand %vm16366_vm10, %vm780_vm3  ;;  %16370 = vst [vmem:[#allocation24_spill] sm:$0xff] %v11513_v41  ;;  %vm820_vm10 = vcmp.lt.s32.totalorder %v11486_v5, 0  ;;  %v11531_v23 = vadd.s32 168, %v11062_v51  ;;  %vm16376_vm1 = vcmp.ne.s32.totalorder %v11464_v47, 0  ;;  %v11540_v59 = vadd.s32 18, %v11475_v14 }
  0x73   : > { %v16368_v29 = vsel %vm11507_vm9, 4294967295, %v16367_v29  ;;  %vm11522_vm8 = vmand %vm16372_vm4, %vm16371_vm12  ;;  %16375 = vst [vmem:[#allocation25_spill] sm:$0xff] %v11528_v32  ;;  %vm782_vm4 = vcmp.ne.s32.totalorder %v11489_v20, 0  ;;  %v596_v21 = vshrl.u32 %v11492_v27, 4  ;;  %vm16380_vm3 = vcmp.ne.s32.totalorder %v11475_v14, 0 }
  0x74   : > { %16369 = vst [vmem:[#allocation23_spill] sm:$0xff] %v16368_v29  ;;  %vm11535_vm13 = vmand %vm817_vm2, %vm16376_vm1  ;;  %vm16381_vm7 = vcmp.lt.s32.totalorder %v11475_v14, 0  ;;  %v16382_v40 = vmov 0  ;;  %v11556_v10 = vmul.u32.u64.low 3817748708, %v11531_v23  ;;  %v11557_v2 = vmul.u32.u64.high 3817748708, %v11531_v23, %v11556_v10 }
  0x75   : > { %16379 = vst [vmem:[#allocation26_spill] sm:$0xff] %v11540_v59  ;;  %vm11549_vm14 = vmand %vm16381_vm7, %vm16380_vm3  ;;  %v16385_v27 = vsel %vm11178_vm15, %v11183_v46, %v11122_v17  ;;  %vm16388_vm7 = vcmp.ne.s32.totalorder %v11486_v5, 0  ;;  %v597_v10 = vmul.u32 18, %v596_v21  ;;  %v629_v44 = vshrl.u32 %v11516_v28, 4 }
  0x76   : > { %v16383_v40 = vsel %vm11549_vm14, 4294967295, %v16382_v40  ;;  %vm11564_vm12 = vcmp.lt.s32.totalorder %v16385_v27, 16  ;;  %vm11570_vm3 = vmand %vm820_vm10, %vm16388_vm7  ;;  %v16392_v17 = vsel %vm11192_vm5, %v11197_v49, %v11137_v25  ;;  %v11587_v27 = vadd.s32 18, %v11486_v5 }
  0x77   : > { %16384 = vst [vmem:[#allocation27_spill] sm:$0xff] %v16383_v40  ;;  %v16390_v43 = vsel %vm11570_vm3, 4294967295, %v16389_v43  ;;  %vm11582_vm15 = vcmp.lt.s32.totalorder %v16392_v17, 16  ;;  %vm16396_vm10 = vcmp.lt.s32.totalorder %v11489_v20, 0  ;;  %v16397_v21 = vmov 0 }
  0x78   : > { %16391 = vst [vmem:[#allocation28_spill] sm:$0xff] %v16390_v43  ;;  %16395 = vst [vmem:[#allocation29_spill] sm:$0xff] %v11587_v27  ;;  %v11598_v48 = vadd.s32 18, %v11489_v20  ;;  %vm788_vm5 = vcmp.ne.s32.totalorder %v11528_v32, 0  ;;  %vm824_vm1 = vcmp.lt.s32.totalorder %v11528_v32, 0  ;;  %v16401_v25 = vsel %vm11204_vm6, %v11209_v54, %v11139_v26 }
  0x79   : > { %vm11593_vm7 = vmand %vm16396_vm10, %vm782_vm4  ;;  %vm11607_vm2 = vcmp.lt.s32.totalorder %v16401_v25, 16  ;;  %vm16404_vm4 = vcmp.ne.s32.totalorder %v11501_v35, 0  ;;  %vm16405_vm10 = vcmp.lt.s32.totalorder %v11501_v35, 0  ;;  %v16406_v28 = vmov 0 }
  0x7a   : > { %v16398_v21 = vsel %vm11593_vm7, 4294967295, %v16397_v21  ;;  %16400 = vst [vmem:[#allocation31_spill] sm:$0xff] %v11598_v48  ;;  %vm11615_vm0 = vmand %vm16405_vm10, %vm16404_vm4  ;;  %v11620_v17 = vadd.s32 18, %v11501_v35  ;;  %v11623_v52 = vadd.s32 18, %v11513_v41  ;;  %v11625_v42 = vsub.s32 %v354_v8, %v597_v10 }
  0x7b   : > { %16399 = vst [vmem:[#allocation30_spill] sm:$0xff] %v16398_v21  ;;  %v16407_v28 = vsel %vm11615_vm0, 4294967295, %v16406_v28  ;;  %v630_v26 = vmul.u32 18, %v629_v44  ;;  %vm16412_vm6 = vcmp.ne.s32.totalorder %v11513_v41, 0  ;;  %vm16413_vm4 = vcmp.lt.s32.totalorder %v11513_v41, 0  ;;  %vm11653_vm9 = vmand %vm824_vm1, %vm788_vm5 }
  0x7c   : > { %16408 = vst [vmem:[#allocation32_spill] sm:$0xff] %v16407_v28  ;;  %16409 = vst [vmem:[#allocation33_spill] sm:$0xff] %v11620_v17  ;;  %v16414_v25 = vmov 0  ;;  %v11640_v4 = vadd.s32 18, %v11528_v32  ;;  %v607_v8 = vshrl.u32 %v11557_v2, 4  ;;  %v11644_v10 = vadd.s32 208, %v11062_v51 }
  0x7d   : > { %16410 = vst [vmem:[#allocation34_spill] sm:$0xff] %v11623_v52  ;;  %16411 = vst [vmem:[#allocation35_spill] sm:$0xff] %v11625_v42  ;;  %v11649_v44 = vld [vmem:[%s16111_s2] ss:$0 sm:$0xff]  ;;  %v16419_v54 = vmov 0  ;;  %v11660_v2 = vadd.s32 18, %v11625_v42  ;;  %v11662_v51 = vsub.s32 %v357_v15, %v630_v26  ;;  %vm16431_vm11 = vnez %v16334_v6 }
  0x7e   : > { %vm11635_vm10 = vmand %vm16413_vm4, %vm16412_vm6  ;;  %16417 = vst [vmem:[#allocation37_spill] sm:$0xff] %v11640_v4  ;;  %v16420_v54 = vsel %vm11653_vm9, 4294967295, %v16419_v54  ;;  %vm786_vm6 = vcmp.ne.s32.totalorder %v11625_v42, 0  ;;  %vm822_vm4 = vcmp.lt.s32.totalorder %v11625_v42, 0  ;;  %v16423_v12 = vmov 0 }
  0x7f   : > { %v16415_v25 = vsel %vm11635_vm10, 4294967295, %v16414_v25  ;;  %16418 = vst [vmem:[#allocation38_spill] sm:$0xff] %v11644_v10  ;;  %16421 = vst [vmem:[#allocation39_spill] sm:$0xff] %v16420_v54  ;;  %v608_v15 = vmul.u32 18, %v607_v8  ;;  %v11702_v3 = vmul.u32.u64.low 3817748708, %v11644_v10  ;;  %v11703_v20 = vmul.u32.u64.high 3817748708, %v11644_v10, %v11702_v3 }
  0x80   : > { %16416 = vst [vmem:[#allocation36_spill] sm:$0xff] %v16415_v25  ;;  %16422 = vst [vmem:[#allocation40_spill] sm:$0xff] %v11660_v2  ;;  %v11713_v41 = vadd.s32 18, %v11662_v51  ;;  %vm1623_vm5 = vsmask.f32 5392  ;;  %vm16473_vm9 = vcmask 125952  }
  0x81   : > { %vm11676_vm1 = vmand %vm822_vm4, %vm786_vm6  ;;  %16426 = vst [vmem:[#allocation42_spill] sm:$0xff] %v11703_v20  ;;  %vm16435_vm6 = vnez %v16332_v1 }
  0x82   : > { %v16424_v12 = vsel %vm11676_vm1, 4294967295, %v16423_v12 }
  0x83   : > { %16425 = vst [vmem:[#allocation41_spill] sm:$0xff] %v16424_v12 }
  0xf5   : > { %v10100_v26 = vpop.f32.mrb[0].mxu0 }
  0xf6   : > { %v1237_v14 = vadd.f32 %v10100_v26, %v11649_v44  ;;  %v10142_v59 = vpop.f32.mrb[0].mxu1  ;;  %v1228_v43 = vpop.f32.mrb[1].mxu0 }
  0xf7   : > { %v2315_v29 = vadd.f32 %v10142_v59, %v11649_v44  ;;  %v1229_v35 = vadd.f32 %v11649_v44, %v1228_v43  ;;  %v2306_v25 = vpop.f32.mrb[1].mxu1  ;;  %v10101_v8 = vpop.f32.mrb[2].mxu0  ;;  %v11718_v59 = vsub.s32 %v11531_v23, %v608_v15 }
  0xf8   : > { %v1373_v13 = vmax.f32 %v1237_v14, 0.0  ;;  %v2307_v32 = vadd.f32 %v11649_v44, %v2306_v25  ;;  %v1240_v10 = vadd.f32 %v10101_v8, %v11649_v44  ;;  %v10143_v3 = vpop.f32.mrb[2].mxu1  ;;  %v1231_v20 = vpop.f32.mrb[3].mxu0 }
  0xf9   : > { %16427 = vst [vmem:[#allocation43_spill] sm:$0xff] %v11718_v59  ;;  %v2451_v43 = vmax.f32 %v2315_v29, 0.0  ;;  %v1371_v4 = vmax.f32 %v1229_v35, 0.0  ;;  %v2318_v54 = vadd.f32 %v10143_v3, %v11649_v44  ;;  %v11722_v12 = vadd.f32 %v11649_v44, %v1231_v20  ;;  %v2309_v26 = vpop.f32.mrb[3].mxu1 }
  0xfa   : > { %v1481_v14 = vsel %vm11564_vm12, %v1373_v13, 0.0  ;;  %v2449_v25 = vmax.f32 %v2307_v32, 0.0  ;;  %v1374_v42 = vmax.f32 %v1240_v10, 0.0  ;;  %v11727_v8 = vadd.f32 %v11649_v44, %v2309_v26 }
  0xfb   : > { %v9919_v2 = vpack.c.bf16 %v1481_v14, %v1481_v14  ;;  %v2487_v29 = vsel %vm11564_vm12, %v2451_v43, 0.0  ;;  %v1479_v35 = vsel %vm11582_vm15, %v1371_v4, 0.0  ;;  %v2452_v23 = vmax.f32 %v2318_v54, 0.0 }
  0xfc   : > { %v9955_v20 = vpack.c.bf16 %v2487_v29, %v2487_v29  ;;  %v9917_v15 = vpack.c.bf16 %v1479_v35, %v1479_v35  ;;  %v2485_v3 = vsel %vm11582_vm15, %v2449_v25, 0.0  ;;  %v1482_v13 = vsel %vm11607_vm2, %v1374_v42, 0.0 }
  0xfd   : > { %v1645_v32 = vshrl.u32 %v9919_v2, 16  ;;  %v1648_v10 = vshll.u32 %v9919_v2, 16  ;;  %v9953_v26 = vpack.c.bf16 %v2485_v3, %v2485_v3  ;;  %v9920_v59 = vpack.c.bf16 %v1482_v13, %v1482_v13  ;;  %v10104_v54 = vpop.f32.mrb[4].mxu0 }
  0xfe   : > { %vm11742_vm12 = vcmp.lt.s32.totalorder %v16428_v19, 16  ;;  %v2649_v43 = vshrl.u32 %v9955_v20, 16  ;;  %v2652_v46 = vshll.u32 %v9955_v20, 16  ;;  %v1626_v14 = vshrl.u32 %v9917_v15, 16  ;;  %v10146_v29 = vpop.f32.mrb[4].mxu1  ;;  %v1244_v42 = vpop.f32.mrb[5].mxu0 }
  0xff   : > { %v1629_v25 = vshll.u32 %v9917_v15, 16  ;;  %v1647_v35 = vrot.slane %v1645_v32, 6  ;;  %v1650_v2 = vrot.slane %v1648_v10, 7  ;;  %v2630_v3 = vshrl.u32 %v9953_v26, 16  ;;  %v11746_v52 = vpop.f32.mrb[5].mxu1  ;;  %v11748_v56 = vpop.f32.mrb[6].mxu0 }
 0x100   : > { %v2633_v13 = vshll.u32 %v9953_v26, 16  ;;  %v2651_v33 = vrot.slane %v2649_v43, 6  ;;  %v2654_v55 = vrot.slane %v2652_v46, 7  ;;  %v1628_v19 = vrot.slane %v1626_v14, 6  ;;  %v11750_v28 = vpop.f32.mrb[6].mxu1  ;;  %v11752_v48 = vpop.f32.mrb[7].mxu0 }
 0x101   : > { %v1631_v17 = vrot.slane %v1629_v25, 7  ;;  %v11754_v20 = vor.u32 %v1650_v2, %v1647_v35  ;;  %v2021_v15 = vld [vmem:[#allocation2 + $0x8] sm:$0xe]  ;;  %v2632_v21 = vrot.slane %v2630_v3, 6  ;;  %v1655_v10 = vshrl.u32 %v9920_v59, 16  ;;  %v11765_v46 = vpop.f32.mrb[7].mxu1 }
 0x102   : > { %v2635_v32 = vrot.slane %v2633_v13, 7  ;;  %v16432_v26 = vsel %vm16431_vm11, %v11238_v0, %v11169_v39  ;;  %v11767_v14 = vor.u32 %v2654_v55, %v2651_v33  ;;  %v3025_v35 = vld [vmem:[#allocation2 + $0xa4] sm:$0xe]  ;;  %v1658_v2 = vshll.u32 %v9920_v59, 16 }
 0x103   : > { %vm11761_vm15 = vcmp.lt.s32.totalorder %v16432_v26, 16  ;;  %v11769_v25 = vor.u32 %v1631_v17, %v1628_v19  ;;  %v2488_v3 = vsel %vm11607_vm2, %v2452_v23, 0.0  ;;  %v1653_v6 = vrot.slane %v11754_v20, 4 }
 0x104   : > { %v11774_v13 = vor.u32 %v2635_v32, %v2632_v21  ;;  %v1657_v39 = vrot.slane %v1655_v10, 6  ;;  %v9956_v0 = vpack.c.bf16 %v2488_v3, %v2488_v3  ;;  %v16436_v26 = vsel %vm16435_vm6, %v11230_v60, %v11163_v36 }
 0x105   : > { %vm11781_vm4 = vcmp.lt.s32.totalorder %v16436_v26, 16  ;;  %v2657_v17 = vrot.slane %v11767_v14, 4  ;;  %vm16439_vm2 = vnez %v16321_v45  ;;  %v1660_v59 = vrot.slane %v1658_v2, 7  ;;  %v11800_v19 = vpop.f32.mrb[8].mxu0 }
 0x106   : > { %v2022_v21 = vsel %vm16439_vm2, %v11769_v25, %v2021_v15  ;;  %vm16440_vm11 = vsmask.f32 1280  ;;  %v3026_v60 = vsel %vm16439_vm2, %v11774_v13, %v3025_v35  ;;  %v2659_v23 = vshrl.u32 %v9956_v0, 16  ;;  %v11807_v3 = vpop.f32.mrb[9].mxu0  ;;  %v11809_v26 = vpop.f32.mrb[8].mxu1 }
 0x107   : > { %vm11792_vm1 = vmor %vm16440_vm11, %vm1623_vm5  ;;  %2023 = vst [vmem:[#allocation2 + $0x8] sm:$0xe] %v2022_v21  ;;  %v2662_v55 = vshll.u32 %v9956_v0, 16  ;;  %v11802_v15 = vor.u32 %v1660_v59, %v1657_v39  ;;  %v1372_v32 = vmax.f32 %v11722_v12, 0.0  ;;  %v2450_v10 = vmax.f32 %v11727_v8, 0.0  ;;  %v11815_v21 = vpop.f32.mrb[10].mxu0 }
 0x108   : > { %3027 = vst [vmem:[#allocation2 + $0xa4] sm:$0xe] %v3026_v60  ;;  %v1253_v2 = vadd.f32 %v10104_v54, %v11649_v44  ;;  %vm789_vm5 = vcmp.ne.s32.totalorder %v11662_v51, 0  ;;  %vm825_vm6 = vcmp.lt.s32.totalorder %v11662_v51, 0  ;;  %v2661_v45 = vrot.slane %v2659_v23, 6  ;;  %v11817_v12 = vpop.f32.mrb[9].mxu1 }
 0x109   : > { %v2664_v35 = vrot.slane %v2662_v55, 7  ;;  %v2331_v0 = vadd.f32 %v10146_v29, %v11649_v44  ;;  %v1245_v39 = vadd.f32 %v11649_v44, %v1244_v42  ;;  %v1662_v8 = vsel %vm11792_vm1, %v1653_v6, %v11802_v15  ;;  %v11827_v23 = vpop.f32.mrb[11].mxu0  ;;  %v11829_v29 = vpop.f32.mrb[10].mxu1 }
 0x10a   : > { %v1480_v59 = vsel %vm11742_vm12, %v1372_v32, 0.0  ;;  %v2486_v60 = vsel %vm11742_vm12, %v2450_v10, 0.0  ;;  %vm16443_vm2 = vcmask 125952   ;;  %v1377_v49 = vmax.f32 %v1253_v2, 0.0  ;;  %v11834_v6 = vpop.f32.mrb[11].mxu1 }
 0x10b   : > { %2026 = vst.msk [vmem:[#allocation2 + $0x14] sm:$0xf] %vm16443_vm2, %v1662_v8  ;;  %v11832_v42 = vor.u32 %v2664_v35, %v2661_v45  ;;  %v9918_v55 = vpack.c.bf16 %v1480_v59, %v1480_v59  ;;  %v9954_v36 = vpack.c.bf16 %v2486_v60, %v2486_v60  ;;  %v2455_v54 = vmax.f32 %v2331_v0, 0.0 }
 0x10c   : > { %v1375_v5 = vmax.f32 %v1245_v39, 0.0  ;;  %v2323_v32 = vadd.f32 %v11649_v44, %v11746_v52  ;;  %v1256_v4 = vadd.f32 %v11748_v56, %v11649_v44  ;;  %vm16444_vm12 = vnez %v16341_v7 }
 0x10d   : > { %v2666_v10 = vsel %vm11792_vm1, %v2657_v17, %v11832_v42  ;;  %v1635_v35 = vshrl.u32 %v9918_v55, 16  ;;  %v1638_v8 = vshll.u32 %v9918_v55, 16  ;;  %v16445_v2 = vsel %vm16444_vm12, %v11320_v38, %v11282_v18  ;;  %v11888_v33 = vpop.f32.mrb[12].mxu0 }
 0x10e   : > { %vm11849_vm11 = vcmp.lt.s32.totalorder %v16445_v2, 16  ;;  %3030 = vst.msk [vmem:[#allocation2 + $0xb0] sm:$0xf] %vm16443_vm2, %v2666_v10  ;;  %v2639_v52 = vshrl.u32 %v9954_v36, 16  ;;  %v2642_v56 = vshll.u32 %v9954_v36, 16  ;;  %v1485_v17 = vsel %vm11761_vm15, %v1377_v49, 0.0 }
 0x10f   : > { %v2491_v39 = vsel %vm11761_vm15, %v2455_v54, 0.0  ;;  %v1637_v59 = vrot.slane %v1635_v35, 6  ;;  %v1640_v60 = vrot.slane %v1638_v8, 7  ;;  %v9923_v7 = vpack.c.bf16 %v1485_v17, %v1485_v17 }
 0x110   : > { %v9959_v55 = vpack.c.bf16 %v2491_v39, %v2491_v39  ;;  %v2641_v45 = vrot.slane %v2639_v52, 6  ;;  %v2644_v18 = vrot.slane %v2642_v56, 7  ;;  %v1483_v38 = vsel %vm11781_vm4, %v1375_v5, 0.0 }
 0x111   : > { %v2453_v2 = vmax.f32 %v2323_v32, 0.0  ;;  %v1641_v27 = vor.u32 %v1640_v60, %v1637_v59  ;;  %v1685_v10 = vshrl.u32 %v9923_v7, 16  ;;  %v1688_v40 = vshll.u32 %v9923_v7, 16 }
 0x112   : > { %v2689_v36 = vshrl.u32 %v9959_v55, 16  ;;  %v2645_v47 = vor.u32 %v2644_v18, %v2641_v45  ;;  %v2692_v58 = vshll.u32 %v9959_v55, 16  ;;  %v9921_v49 = vpack.c.bf16 %v1483_v38, %v1483_v38 }
 0x113   : > { %v2489_v43 = vsel %vm11781_vm4, %v2453_v2, 0.0  ;;  %v16448_v54 = vrot.slane %v11769_v25, 4  ;;  %v1643_v8 = vrot.slane %v1641_v27, 4  ;;  %v1687_v52 = vrot.slane %v1685_v10, 6  ;;  %vm11879_vm4 = vmand %vm825_vm6, %vm789_vm5 }
 0x114   : > { %v1690_v56 = vrot.slane %v1688_v40, 7  ;;  %vm16449_vm15 = vnez %v16339_v30  ;;  %v16453_v25 = vmov 0  ;;  %v16455_v40 = vrot.slane %v11774_v13, 4  ;;  %vm16456_vm5 = vmmov %vm16443_vm2 }
 0x115   : > { %v1642_v35 = vsel %vm11792_vm1, %v16448_v54, %v1641_v27  ;;  %v16450_v5 = vsel %vm16449_vm15, %v11308_v31, %v11270_v9  ;;  %v16454_v25 = vsel %vm11879_vm4, 4294967295, %v16453_v25  ;;  %v2647_v9 = vrot.slane %v2645_v47, 4 }
 0x116   : > { %vm11871_vm12 = vcmp.lt.s32.totalorder %v16450_v5, 16  ;;  %2024 = vst.msk [vmem:[#allocation2 + $0xc] sm:$0xf] %vm16443_vm2, %v1642_v35  ;;  %v2646_v30 = vsel %vm11792_vm1, %v16455_v40, %v2645_v47  ;;  %v2691_v31 = vrot.slane %v2689_v36, 6  ;;  %v2694_v27 = vrot.slane %v2692_v58, 7  ;;  %v11905_v58 = vpop.f32.mrb[13].mxu0 }
 0x117   : > { %v1652_v45 = vsel %vm11792_vm1, %v1643_v8, %v11754_v20  ;;  %3028 = vst.msk [vmem:[#allocation2 + $0xa8] sm:$0xf] %vm16456_vm5, %v2646_v30  ;;  %v11894_v17 = vor.u32 %v1690_v56, %v1687_v52  ;;  %v1665_v39 = vshrl.u32 %v9921_v49, 16  ;;  %v1668_v59 = vshll.u32 %v9921_v49, 16  ;;  %v11911_v55 = vpop.f32.mrb[14].mxu0  ;;  %vm16461_vm5 = vmmov %vm16443_vm2 }
 0x118   : > { %vm16457_vm6 = vnez %v16350_v24  ;;  %2025 = vst.msk [vmem:[#allocation2 + $0x10] sm:$0xf] %vm16443_vm2, %v1652_v45  ;;  %v2656_v20 = vsel %vm11792_vm1, %v2647_v9, %v11767_v14  ;;  %v9957_v60 = vpack.c.bf16 %v2489_v43, %v2489_v43  ;;  %v1378_v7 = vmax.f32 %v1256_v4, 0.0  ;;  %v11922_v2 = vpop.f32.mrb[15].mxu0 }
 0x119   : > { %v16458_v13 = vsel %vm16457_vm6, %v11367_v11, %v11312_v34  ;;  %3029 = vst.msk [vmem:[#allocation2 + $0xac] sm:$0xf] %vm16461_vm5, %v2656_v20  ;;  %v11918_v11 = vor.u32 %v2694_v27, %v2691_v31  ;;  %v1667_v24 = vrot.slane %v1665_v39, 6  ;;  %v1670_v18 = vrot.slane %v1668_v59, 7  ;;  %v11927_v49 = vpop.f32.mrb[16].mxu0  ;;  %v16464_v39 = vld [vmem:[#allocation11_spill] sm:$0xff] }
 0x11a   : > { %vm11901_vm15 = vcmp.lt.s32.totalorder %v16458_v13, 16  ;;  %v2334_v38 = vadd.f32 %v11750_v28, %v11649_v44  ;;  %v1693_v14 = vrot.slane %v11894_v17, 4  ;;  %v2669_v4 = vshrl.u32 %v9957_v60, 16  ;;  %v11933_v52 = vpop.f32.mrb[17].mxu0  ;;  %v16465_v59 = vld [vmem:[#allocation9_spill] sm:$0xff] }
 0x11b   : > { %v2672_v10 = vshll.u32 %v9957_v60, 16  ;;  %v1486_v36 = vsel %vm11849_vm11, %v1378_v7, 0.0  ;;  %v11929_v43 = vor.u32 %v1670_v18, %v1667_v24  ;;  %v1248_v8 = vadd.f32 %v11649_v44, %v11752_v48  ;;  %v11939_v30 = vpop.f32.mrb[18].mxu0 }
 0x11c   : > { %v9924_v54 = vpack.c.bf16 %v1486_v36, %v1486_v36  ;;  %v2456_v35 = vmax.f32 %v2334_v38, 0.0  ;;  %v2671_v28 = vrot.slane %v2669_v4, 6  ;;  %v2326_v5 = vadd.f32 %v11649_v44, %v11765_v46 }
 0x11d   : > { %v2674_v56 = vrot.slane %v2672_v10, 7  ;;  %v1269_v40 = vadd.f32 %v11800_v19, %v11649_v44  ;;  %v2697_v9 = vrot.slane %v11918_v11, 4  ;;  %v16462_v31 = vrot.slane %v11802_v15, 4  ;;  %v16492_v15 = vld [vmem:[#allocation23_spill] sm:$0xff] }
 0x11e   : > { %v1695_v27 = vshrl.u32 %v9924_v54, 16  ;;  %v1698_v45 = vshll.u32 %v9924_v54, 16  ;;  %vm16463_vm6 = vnez %v16345_v22  ;;  %vm16469_vm5 = vnez %v16355_v16 }
 0x11f   : > { %v1672_v48 = vsel %vm11792_vm1, %v16462_v31, %v11929_v43  ;;  %v16466_v46 = vsel %vm16463_vm6, %v16464_v39, %v16465_v59  ;;  %v16470_v19 = vsel %vm16469_vm5, %v11427_v61, %v11338_v50  ;;  %v2675_v20 = vor.u32 %v2674_v56, %v2671_v28 }
 0x120   : > { %vm11952_vm2 = vcmp.lt.s32.totalorder %v16466_v46, 16  ;;  %vm11961_vm4 = vcmp.lt.s32.totalorder %v16470_v19, 16  ;;  %2027 = vst.msk [vmem:[#allocation2 + $0x18] sm:$0xf] %vm16473_vm9, %v1672_v48  ;;  %v2492_v22 = vsel %vm11849_vm11, %v2456_v35, 0.0  ;;  %v1376_v60 = vmax.f32 %v1248_v8, 0.0  ;;  %vm16475_vm11 = vmmov %vm16473_vm9 }
 0x121   : > { %v2454_v7 = vmax.f32 %v2326_v5, 0.0  ;;  %v1697_v24 = vrot.slane %v1695_v27, 6  ;;  %v1700_v18 = vrot.slane %v1698_v45, 7  ;;  %v9960_v38 = vpack.c.bf16 %v2492_v22, %v2492_v22 }
 0x122   : > { %v1381_v4 = vmax.f32 %v1269_v40, 0.0  ;;  %v1673_v16 = vrot.slane %v11929_v43, 4  ;;  %v16474_v50 = vrot.slane %v11832_v42, 4  ;;  %v1484_v10 = vsel %vm11871_vm12, %v1376_v60, 0.0 }
 0x123   : > { %v2490_v0 = vsel %vm11871_vm12, %v2454_v7, 0.0  ;;  %v11978_v36 = vor.u32 %v1700_v18, %v1697_v24  ;;  %v2699_v54 = vshrl.u32 %v9960_v38, 16  ;;  %v2702_v35 = vshll.u32 %v9960_v38, 16 }
 0x124   : > { %v2676_v61 = vsel %vm11792_vm1, %v16474_v50, %v2675_v20  ;;  %v9922_v8 = vpack.c.bf16 %v1484_v10, %v1484_v10  ;;  %v9958_v28 = vpack.c.bf16 %v2490_v0, %v2490_v0  ;;  %v1489_v42 = vsel %vm11901_vm15, %v1381_v4, 0.0 }
 0x125   : > { %3031 = vst.msk [vmem:[#allocation2 + $0xb4] sm:$0xf] %vm16473_vm9, %v2676_v61  ;;  %v1261_v43 = vadd.f32 %v11649_v44, %v11807_v3  ;;  %v1272_v56 = vadd.f32 %v11815_v21, %v11649_v44  ;;  %v2677_v5 = vrot.slane %v2675_v20, 4  ;;  %v1702_v32 = vsel %vm11792_vm1, %v1693_v14, %v11978_v36  ;;  %v16477_v21 = vld [vmem:[#allocation12_spill] sm:$0xff]  ;;  %v16478_v20 = vld [vmem:[#allocation10_spill] sm:$0xff] }
 0x126   : > { %v2701_v40 = vrot.slane %v2699_v54, 6  ;;  %v2704_v31 = vrot.slane %v2702_v35, 7  ;;  %2030 = vst.msk [vmem:[#allocation2 + $0x24] sm:$0xf] %vm16475_vm11, %v1702_v32  ;;  %v1675_v48 = vshrl.u32 %v9922_v8, 16  ;;  %v1678_v27 = vshll.u32 %v9922_v8, 16  ;;  %vm16482_vm11 = vmmov %vm16473_vm9 }
 0x127   : > { %v2679_v45 = vshrl.u32 %v9958_v28, 16  ;;  %v2682_v39 = vshll.u32 %v9958_v28, 16  ;;  %v9927_v46 = vpack.c.bf16 %v1489_v42, %v1489_v42  ;;  %v1379_v3 = vmax.f32 %v1261_v43, 0.0  ;;  %v12010_v35 = vld [vmem:[#allocation2 + $0x8] sm:$0xff]   ;;  %v16495_v14 = vld [vmem:[#allocation14_spill] sm:$0xff] }
 0x128   : > { %v11990_v59 = vor.u32 %v2704_v31, %v2701_v40  ;;  %v1382_v19 = vmax.f32 %v1272_v56, 0.0  ;;  %vm16476_vm12 = vnez %v16353_v37  ;;  %vm16197_vm5 = vcmask 1046528   ;;  %v10397_v40 = vld [vmem:[#allocation2 + $0x8] sm:$0xfe]  }
 0x129   : > { %v16479_v22 = vsel %vm16476_vm12, %v16477_v21, %v16478_v20  ;;  %v1677_v60 = vrot.slane %v1675_v48, 6  ;;  %v1680_v7 = vrot.slane %v1678_v27, 7  ;;  %v2681_v24 = vrot.slane %v2679_v45, 6  ;;  %vm16483_vm12 = vmmov %vm16473_vm9 }
 0x12a   : > { %vm11997_vm6 = vcmp.lt.s32.totalorder %v16479_v22, 16  ;;  %v2684_v18 = vrot.slane %v2682_v39, 7  ;;  %v1703_v38 = vrot.slane %v11978_v36, 4  ;;  %v2706_v4 = vsel %vm11792_vm1, %v2697_v9, %v11990_v59  ;;  %v12020_v39 = vld [vmem:[#allocation2 + $0x10] sm:$0xff]  }
 0x12b   : > { %v1725_v50 = vshrl.u32 %v9927_v46, 16  ;;  %v1728_v37 = vshll.u32 %v9927_v46, 16  ;;  %3034 = vst.msk [vmem:[#allocation2 + $0xc0] sm:$0xf] %vm16473_vm9, %v2706_v4  ;;  %v1681_v61 = vor.u32 %v1680_v7, %v1677_v60  ;;  %v1487_v0 = vsel %vm11952_vm2, %v1379_v3, 0.0 }
 0x12c   : > { %v2685_v10 = vor.u32 %v2684_v18, %v2681_v24  ;;  %v1490_v54 = vsel %vm11961_vm4, %v1382_v19, 0.0  ;;  %v9925_v28 = vpack.c.bf16 %v1487_v0, %v1487_v0  ;;  %v1264_v3 = vadd.f32 %v11649_v44, %v11827_v23  ;;  %v12030_v19 = vpop.f32.mrb[19].mxu0  ;;  %v16485_v0 = vld [vmem:[#allocation13_spill] sm:$0xff] }
 0x12d   : > { %v1727_v8 = vrot.slane %v1725_v50, 6  ;;  %v1730_v36 = vrot.slane %v1728_v37, 7  ;;  %v9928_v42 = vpack.c.bf16 %v1490_v54, %v1490_v54  ;;  %v1682_v9 = vsel %vm11792_vm1, %v1673_v16, %v1681_v61  ;;  %v12043_v37 = vpop.f32.mrb[20].mxu0 }
 0x12e   : > { %v1683_v43 = vrot.slane %v1681_v61, 4  ;;  %v2686_v56 = vsel %vm11792_vm1, %v2677_v5, %v2685_v10  ;;  %v2687_v32 = vrot.slane %v2685_v10, 4  ;;  %2028 = vst.msk [vmem:[#allocation2 + $0x1c] sm:$0xf] %vm16482_vm11, %v1682_v9  ;;  %v1705_v48 = vshrl.u32 %v9925_v28, 16  ;;  %vm16484_vm11 = vmmov %vm16473_vm9 }
 0x12f   : > { %3032 = vst.msk [vmem:[#allocation2 + $0xb8] sm:$0xf] %vm16483_vm12, %v2686_v56  ;;  %v12018_v31 = vor.u32 %v1730_v36, %v1727_v8  ;;  %v1708_v27 = vshll.u32 %v9925_v28, 16  ;;  %v1735_v45 = vshrl.u32 %v9928_v42, 16  ;;  %v1738_v46 = vshll.u32 %v9928_v42, 16  ;;  %v12054_v36 = vld [vmem:[#allocation2 + $0x8] sm:$0xff]  }
 0x130   : > { %v1692_v16 = vsel %vm11792_vm1, %v1683_v43, %v11894_v17  ;;  %v2696_v5 = vsel %vm11792_vm1, %v2687_v32, %v11918_v11  ;;  %v1707_v20 = vrot.slane %v1705_v48, 6  ;;  %v1380_v7 = vmax.f32 %v1264_v3, 0.0 }
 0x131   : > { %2029 = vst.msk [vmem:[#allocation2 + $0x20] sm:$0xf] %vm16473_vm9, %v1692_v16  ;;  %v1733_v21 = vrot.slane %v12018_v31, 4  ;;  %v1710_v22 = vrot.slane %v1708_v27, 7  ;;  %v1737_v60 = vrot.slane %v1735_v45, 6  ;;  %v1740_v17 = vrot.slane %v1738_v46, 7 }
 0x132   : > { %3033 = vst.msk [vmem:[#allocation2 + $0xbc] sm:$0xf] %vm16484_vm11, %v2696_v5  ;;  %v4448_v24 = vrot.slane %v12010_v35, 1  ;;  %v2347_v11 = vadd.f32 %v11809_v26, %v11649_v44  ;;  %v2339_v23 = vadd.f32 %v11649_v44, %v11817_v12  ;;  %v4960_v4 = vrot.slane %v10397_v40, 1  ;;  %v12056_v12 = vpop.f32.mrb[21].mxu0  ;;  %vm16487_vm11 = vmmov %vm16473_vm9 }
 0x133   : > { %v12038_v18 = vor.u32 %v1710_v22, %v1707_v20  ;;  %v16176_v50 = vrot.slane %v12020_v39, 1  ;;  %vm16208_vm12 = vsmask.f32 7424  ;;  %v12045_v61 = vor.u32 %v1740_v17, %v1737_v60  ;;  %v12063_v56 = vpop.f32.mrb[22].mxu0 }
 0x134   : > { %v1488_v10 = vsel %vm11997_vm6, %v1380_v7, 0.0  ;;  %v16486_v26 = vrot.slane %v16485_v0, 1  ;;  %v2459_v8 = vmax.f32 %v2347_v11, 0.0  ;;  %v2707_v28 = vrot.slane %v11990_v59, 4  ;;  %v12075_v27 = vpop.f32.mrb[23].mxu0  ;;  %v12088_v11 = vld [vmem:[#allocation2 + $0xa0] sm:$0xff]  }
 0x135   : > { %v1712_v42 = vsel %vm11792_vm1, %v1703_v38, %v12038_v18  ;;  %v9926_v9 = vpack.c.bf16 %v1488_v10, %v1488_v10  ;;  %v2457_v43 = vmax.f32 %v2339_v23, 0.0  ;;  %v1713_v32 = vrot.slane %v12038_v18, 4  ;;  %v12086_v22 = vpop.f32.mrb[24].mxu0  ;;  %16488 = vst [vmem:[#allocation11_spill] sm:$0xff] %v12088_v11  ;;  %v16506_v59 = vld [vmem:[#allocation21_spill] sm:$0xff] }
 0x136   : > { %v4449_v54 = vsel %vm16197_vm5, %v16486_v26, %v4448_v24  ;;  %2031 = vst.msk [vmem:[#allocation2 + $0x28] sm:$0xf] %vm16473_vm9, %v1712_v42  ;;  %v1742_v40 = vsel %vm11792_vm1, %v1733_v21, %v12045_v61  ;;  %v2495_v48 = vsel %vm11901_vm15, %v2459_v8, 0.0  ;;  %v4962_v38 = vsel %vm16197_vm5, %v4960_v4, %v16176_v50  ;;  %v12090_v18 = vpop.f32.mrb[25].mxu0  ;;  %v12094_v8 = vld [vmem:[#allocation2 + $0xa8] sm:$0xff]  }
 0x137   : > { %4526 = vrot.lane.b32.xlu0 %v4449_v54, %s10852_s23  ;;  %2034 = vst.msk [vmem:[#allocation2 + $0x34] sm:$0xf] %vm16487_vm11, %v1742_v40  ;;  %v1715_v45 = vshrl.u32 %v9926_v9, 16  ;;  %v1718_v16 = vshll.u32 %v9926_v9, 16  ;;  %v9963_v5 = vpack.c.bf16 %v2495_v48, %v2495_v48  ;;  %v2493_v46 = vsel %vm11952_vm2, %v2457_v43, 0.0  ;;  %5039 = vrot.lane.b32.xlu1 %v4962_v38, %s10853_s24  ;;  %v12096_v9 = vpop.f32.mrb[26].mxu0 }
 0x138   : > { %v9961_v3 = vpack.c.bf16 %v2493_v46, %v2493_v46  ;;  %v2350_v47 = vadd.f32 %v11829_v29, %v11649_v44  ;;  %v2342_v21 = vadd.f32 %v11649_v44, %v11834_v6  ;;  %v3704_v20 = vshll.u32 %v12054_v36, 16  ;;  %v10403_v42 = vld [vmem:[#allocation2 + $0x8] sm:$0xfc]  }
 0x139   : > { %vm16201_vm15 = vcmask 1045504   ;;  %v1717_v60 = vrot.slane %v1715_v45, 6  ;;  %v1720_v17 = vrot.slane %v1718_v16, 7  ;;  %v2729_v7 = vshrl.u32 %v9963_v5, 16  ;;  %v12102_v45 = vld [vmem:[#allocation2 + $0x10] sm:$0xff]   ;;  %v12104_v16 = vld [vmem:[#allocation2 + $0xa0] sm:$0xff]  }
 0x13a   : > { %v2732_v13 = vshll.u32 %v9963_v5, 16  ;;  %v2709_v23 = vshrl.u32 %v9961_v3, 16  ;;  %v2712_v4 = vshll.u32 %v9961_v3, 16  ;;  %v2460_v10 = vmax.f32 %v2350_v47, 0.0  ;;  %16489 = vst [vmem:[#allocation9_spill] sm:$0xff] %v12102_v45  ;;  %16490 = vst [vmem:[#allocation12_spill] sm:$0xff] %v12104_v16 }
 0x13b   : > { %v2458_v29 = vmax.f32 %v2342_v21, 0.0  ;;  %v1721_v0 = vor.u32 %v1720_v17, %v1717_v60  ;;  %v2731_v26 = vrot.slane %v2729_v7, 6  ;;  %v12092_v54 = vrot.slane %v3704_v20, 1  ;;  %v12110_v21 = vld [vmem:[#allocation2 + $0xa8] sm:$0xff]   ;;  %v12112_v20 = vld [vmem:[#allocation2 + $0x10] sm:$0xff]  }
 0x13c   : > { %v2734_v6 = vrot.slane %v2732_v13, 7  ;;  %v2711_v43 = vrot.slane %v2709_v23, 6  ;;  %v2714_v40 = vrot.slane %v2712_v4, 7  ;;  %v2496_v48 = vsel %vm11961_vm4, %v2460_v10, 0.0  ;;  %16491 = vst [vmem:[#allocation10_spill] sm:$0xff] %v12112_v20  ;;  %v16494_v60 = vld [vmem:[#allocation17_spill] sm:$0xff] }
 0x13d   : > { %v2494_v38 = vsel %vm11997_vm6, %v2458_v29, 0.0  ;;  %v1722_v5 = vsel %vm11792_vm1, %v1713_v32, %v1721_v0  ;;  %v1723_v46 = vrot.slane %v1721_v0, 4  ;;  %v9964_v47 = vpack.c.bf16 %v2496_v48, %v2496_v48  ;;  %v12132_v23 = vpop.f32.mrb[27].mxu0  ;;  %v16502_v29 = vld [vmem:[#allocation16_spill] sm:$0xff] }
 0x13e   : > { %v12108_v3 = vor.u32 %v2734_v6, %v2731_v26  ;;  %vm16493_vm4 = vnez %v16492_v15  ;;  %v16499_v32 = vsel %vm11522_vm8, %v11482_v63, %v11453_v57  ;;  %2032 = vst.msk [vmem:[#allocation2 + $0x2c] sm:$0xf] %vm16473_vm9, %v1722_v5  ;;  %v2715_v4 = vor.u32 %v2714_v40, %v2711_v43  ;;  %v12139_v62 = vpop.f32.mrb[28].mxu0  ;;  %vm16503_vm8 = vmmov %vm16473_vm9 }
 0x13f   : > { %v16496_v17 = vsel %vm16493_vm4, %v16494_v60, %v16495_v14  ;;  %vm12128_vm6 = vcmp.lt.s32.totalorder %v16499_v32, 16  ;;  %v9962_v10 = vpack.c.bf16 %v2494_v38, %v2494_v38  ;;  %v3707_v0 = vsel %vm16208_vm12, %v16502_v29, %v12092_v54  ;;  %v12146_v43 = vpop.f32.mrb[29].mxu0  ;;  %vm16504_vm11 = vmmov %vm16503_vm8  ;;  %v16507_v32 = vld [vmem:[#allocation15_spill] sm:$0xff] }
 0x140   : > { %vm12119_vm2 = vcmp.lt.s32.totalorder %v16496_v17, 16  ;;  %v16177_v26 = vrot.slane %v12088_v11, 2  ;;  %v1732_v57 = vsel %vm11792_vm1, %v1723_v46, %v12018_v31  ;;  %v2737_v63 = vrot.slane %v12108_v3, 4  ;;  %4012 = vrot.lane.b32.xlu0 %v3707_v0, %s10854_s25  ;;  %v12153_v31 = vpop.f32.mrb[30].mxu0  ;;  %v12157_v17 = vld [vmem:[#allocation2 + $0xa0] sm:$0xff]   ;;  %v16514_v0 = vld [vmem:[#allocation18_spill] sm:$0xff] }
 0x141   : > { %v2739_v6 = vshrl.u32 %v9964_v47, 16  ;;  %v2742_v48 = vshll.u32 %v9964_v47, 16  ;;  %2033 = vst.msk [vmem:[#allocation2 + $0x30] sm:$0xf] %vm16503_vm8, %v1732_v57  ;;  %v2716_v40 = vsel %vm11792_vm1, %v2707_v28, %v2715_v4  ;;  %v2717_v38 = vrot.slane %v2715_v4, 4  ;;  %16505 = vst [vmem:[#allocation13_spill] sm:$0xff] %v12157_v17 }
 0x142   : > { %v2719_v5 = vshrl.u32 %v9962_v10, 16  ;;  %v2722_v15 = vshll.u32 %v9962_v10, 16  ;;  %3035 = vst.msk [vmem:[#allocation2 + $0xc4] sm:$0xf] %vm16504_vm11, %v2716_v40  ;;  %v16179_v60 = vrot.slane %v12094_v8, 2  ;;  %v6268_v14 = vrot.slane %v10403_v42, 2  ;;  %vm16520_vm11 = vmmov %vm16503_vm8 }
 0x143   : > { %v2741_v46 = vrot.slane %v2739_v6, 6  ;;  %v2744_v47 = vrot.slane %v2742_v48, 7  ;;  %v16508_v29 = vsel %vm11535_vm13, %v16506_v59, %v16507_v32  ;;  %v16509_v28 = vmov 0  ;;  %v16513_v10 = vld [vmem:[#allocation26_spill] sm:$0xff]  ;;  %v12179_v59 = vld [vmem:[#allocation2 + $0xa8] sm:$0xff]  }
 0x144   : > { %vm12164_vm4 = vcmp.lt.s32.totalorder %v16508_v29, 16  ;;  %v16515_v57 = vsel %vm11549_vm14, %v16513_v10, %v16514_v0  ;;  %v16516_v6 = vmov 0  ;;  %v2721_v42 = vrot.slane %v2719_v5, 6  ;;  %v10410_v32 = vld [vmem:[#allocation2 + $0x10] sm:$0xf8]   ;;  %v12181_v29 = vpop.f32.mrb[31].mxu0 }
 0x145   : > { %v16510_v28 = vsel %vm12164_vm4, 4294967295, %v16509_v28  ;;  %vm12173_vm9 = vcmp.lt.s32.totalorder %v16515_v57, 16  ;;  %v2724_v48 = vrot.slane %v2722_v15, 7  ;;  %v16178_v53 = vrot.slane %v12102_v45, 2  ;;  %v12200_v57 = vpop.f32.mrb[32].mxu0 }
 0x146   : > { %16511 = vst [vmem:[#allocation23_spill] sm:$0xff] %v16510_v28  ;;  %v16517_v6 = vsel %vm12173_vm9, 4294967295, %v16516_v6  ;;  %v16180_v40 = vrot.slane %v12104_v16, 1  ;;  %v12183_v50 = vor.u32 %v2744_v47, %v2741_v46  ;;  %v6819_v4 = vsel %vm16201_vm15, %v16177_v26, %v16179_v60  ;;  %v10412_v60 = vld [vmem:[#allocation2 + $0xa0] sm:$0xff]  }
 0x147   : > { %16518 = vst [vmem:[#allocation17_spill] sm:$0xff] %v16517_v6  ;;  %v16182_v5 = vrot.slane %v12110_v21, 1  ;;  %v16181_v15 = vrot.slane %v12112_v20, 1  ;;  %vm16191_vm14 = vcmask 1044480   ;;  %v2725_v10 = vor.u32 %v2724_v48, %v2721_v42  ;;  %6896 = vrot.lane.b32.xlu1 %v6819_v4, %s10855_s26  ;;  %v10416_v28 = vld [vmem:[#allocation2 + $0xa0] sm:$0xff]  }
 0x148   : > { %v6270_v46 = vsel %vm16201_vm15, %v6268_v14, %v16178_v53  ;;  %v1285_v47 = vadd.f32 %v11888_v33, %v11649_v44  ;;  %v1277_v0 = vadd.f32 %v11649_v44, %v11905_v58  ;;  %vm16198_vm13 = vcmask 130048   ;;  %v12217_v14 = vpop.f32.mrb[33].mxu0  ;;  %v12222_v53 = vld [vmem:[#allocation2 + $0x18] sm:$0xff]  }
 0x149   : > { %v2746_v42 = vsel %vm11792_vm1, %v2737_v63, %v12183_v50  ;;  %6347 = vrot.lane.b32.xlu0 %v6270_v46, %s10856_s10  ;;  %v5000_v33 = vsel %vm16197_vm5, %v16180_v40, %v16182_v5  ;;  %v4451_v58 = vsel %vm16197_vm5, %v4448_v24, %v16181_v15  ;;  %v2726_v63 = vsel %vm11792_vm1, %v2717_v38, %v2725_v10  ;;  %v12224_v40 = vpop.f32.mrb[34].mxu0  ;;  %v16523_v5 = vld [vmem:[#allocation19_spill] sm:$0xff] }
 0x14a   : > { %3038 = vst.msk [vmem:[#allocation2 + $0xd0] sm:$0xf] %vm16503_vm8, %v2746_v42  ;;  %v2727_v48 = vrot.slane %v2725_v10, 4  ;;  %v1385_v4 = vmax.f32 %v1285_v47, 0.0  ;;  %v1383_v46 = vmax.f32 %v1277_v0, 0.0  ;;  %16519 = vst [vmem:[#allocation14_spill] sm:$0xff] %v12222_v53  ;;  %v1288_v42 = vadd.f32 %v11911_v55, %v11649_v44 }
 0x14b   : > { %3036 = vst.msk [vmem:[#allocation2 + $0xc8] sm:$0xf] %vm16520_vm11, %v2726_v63  ;;  %v16183_v35 = vrot.slane %v12157_v17, 2  ;;  %v16184_v24 = vrot.slane %v12179_v59, 2  ;;  %v1280_v38 = vadd.f32 %v11649_v44, %v11922_v2  ;;  %5077 = vrot.lane.b32.xlu1 %v5000_v33, %s10853_s24  ;;  %v8089_v63 = vrot.slane %v10410_v32, 3 }
 0x14c   : > { %v2736_v10 = vsel %vm11792_vm1, %v2727_v48, %v12108_v3  ;;  %v1493_v47 = vsel %vm12119_vm2, %v1385_v4, 0.0  ;;  %v1491_v0 = vsel %vm12128_vm6, %v1383_v46, 0.0  ;;  %v1386_v2 = vmax.f32 %v1288_v42, 0.0  ;;  %v10413_v3 = vld [vmem:[#allocation2 + $0xa8] sm:$0xff]  }
 0x14d   : > { %3037 = vst.msk [vmem:[#allocation2 + $0xcc] sm:$0xf] %vm16503_vm8, %v2736_v10  ;;  %4528 = vrot.lane.b32.xlu0 %v4451_v58, %s10852_s23  ;;  %v9931_v55 = vpack.c.bf16 %v1493_v47, %v1493_v47  ;;  %v9929_v15 = vpack.c.bf16 %v1491_v0, %v1491_v0  ;;  %v6308_v44 = vsel %vm16201_vm15, %v16183_v35, %v16184_v24  ;;  %v1384_v33 = vmax.f32 %v1280_v38, 0.0  ;;  %v16522_v10 = vld [vmem:[#allocation29_spill] sm:$0xff] }
 0x14e   : > { %v16187_v48 = vrot.slane %v12222_v53, 3  ;;  %v7457_v4 = vshrl.u32 %v10412_v60, 16  ;;  %v7460_v46 = vshll.u32 %v10412_v60, 16  ;;  %v16524_v58 = vsel %vm11570_vm3, %v16522_v10, %v16523_v5  ;;  %v16528_v10 = vld [vmem:[#allocation31_spill] sm:$0xff] }
 0x14f   : > { %vm12254_vm11 = vcmp.lt.s32.totalorder %v16524_v58, 16  ;;  %v1765_v0 = vshrl.u32 %v9931_v55, 16  ;;  %v1768_v34 = vshll.u32 %v9931_v55, 16  ;;  %v1745_v26 = vshrl.u32 %v9929_v15, 16  ;;  %6385 = vrot.lane.b32.xlu1 %v6308_v44, %s10856_s10  ;;  %v16529_v55 = vld [vmem:[#allocation20_spill] sm:$0xff] }
 0x150   : > { %v1748_v35 = vshll.u32 %v9929_v15, 16  ;;  %v1494_v42 = vsel %vm12164_vm4, %v1386_v2, 0.0  ;;  %v1492_v60 = vsel %vm12173_vm9, %v1384_v33, 0.0  ;;  %v8091_v5 = vsel %vm16191_vm14, %v8089_v63, %v16187_v48  ;;  %v13090_v15 = vld [vmem:[#allocation2 + $0x30] sm:$0xff]  }
 0x151   : > { %vm16196_vm3 = vsmask.f32 5376  ;;  %v7459_v38 = vrot.slane %v7457_v4, 2  ;;  %v16530_v58 = vsel %vm11593_vm7, %v16528_v10, %v16529_v55  ;;  %v1767_v44 = vrot.slane %v1765_v0, 6  ;;  %8207 = vst.msk [vmem:[#allocation3 + $0x8] sm:$0xff] %vm16198_vm13, %v8091_v5  ;;  %v12276_v4 = vld [vmem:[#allocation2 + $0xa0] sm:$0xff]  }
 0x152   : > { %vm12271_vm8 = vcmp.lt.s32.totalorder %v16530_v58, 16  ;;  %v1770_v2 = vrot.slane %v1768_v34, 7  ;;  %v1747_v24 = vrot.slane %v1745_v26, 6  ;;  %v1750_v17 = vrot.slane %v1748_v35, 7  ;;  %16533 = vst [vmem:[#allocation16_spill] sm:$0xff] %v12276_v4  ;;  %v12285_v26 = vld [vmem:[#allocation2 + $0xa8] sm:$0xff]  }
 0x153   : > { %v9932_v33 = vpack.c.bf16 %v1494_v42, %v1494_v42  ;;  %v9930_v16 = vpack.c.bf16 %v1492_v60, %v1492_v60  ;;  %v7462_v63 = vrot.slane %v7460_v46, 3  ;;  %v7466_v48 = vshrl.u32 %v10413_v3, 16  ;;  %v12281_v10 = vld [vmem:[%s16111_s2] ss:$0 sm:$0xff]  ;;  %v16535_v0 = vld [vmem:[#allocation33_spill] sm:$0xff]  ;;  %v16536_v46 = vld [vmem:[#allocation22_spill] sm:$0xff] }
 0x154   : > { %v1771_v32 = vor.u32 %v1770_v2, %v1767_v44  ;;  %v1751_v11 = vor.u32 %v1750_v17, %v1747_v24  ;;  %v7469_v53 = vshll.u32 %v10413_v3, 16  ;;  %v1301_v34 = vadd.f32 %v12281_v10, %v11927_v49 }
 0x155   : > { %v16537_v42 = vsel %vm11615_vm0, %v16535_v0, %v16536_v46  ;;  %v1775_v17 = vshrl.u32 %v9932_v33, 16  ;;  %v1778_v24 = vshll.u32 %v9932_v33, 16  ;;  %v1755_v3 = vshrl.u32 %v9930_v16, 16  ;;  %v16543_v0 = vld [vmem:[#allocation34_spill] sm:$0xff]  ;;  %v16544_v46 = vld [vmem:[#allocation24_spill] sm:$0xff] }
 0x156   : > { %vm12292_vm7 = vcmp.lt.s32.totalorder %v16537_v42, 16  ;;  %v1758_v5 = vshll.u32 %v9930_v16, 16  ;;  %v1773_v55 = vrot.slane %v1771_v32, 4  ;;  %v16540_v58 = vrot.slane %v12045_v61, 4 }
 0x157   : > { %v1753_v44 = vrot.slane %v1751_v11, 4  ;;  %v12300_v2 = vor.u32 %v7462_v63, %v7459_v38  ;;  %v16545_v42 = vsel %vm11635_vm10, %v16543_v0, %v16544_v46  ;;  %vm16548_vm14 = vcmask 125952  }
 0x158   : > { %v1752_v49 = vsel %vm11792_vm1, %v16540_v58, %v1751_v11  ;;  %vm12307_vm0 = vcmp.lt.s32.totalorder %v16545_v42, 16  ;;  %v1777_v16 = vrot.slane %v1775_v17, 6  ;;  %v1780_v33 = vrot.slane %v1778_v24, 7  ;;  %v8247_v0 = vld [vmem:[#allocation3 + $0x8] sm:$0xff]  ;;  %vm16549_vm10 = vmmov %vm16548_vm14 }
 0x159   : > { %16541 = vst [vmem:[#allocation21_spill] sm:$0xff] %v12300_v2  ;;  %2035 = vst.msk [vmem:[#allocation2 + $0x38] sm:$0xf] %vm16548_vm14, %v1752_v49  ;;  %v1757_v61 = vrot.slane %v1755_v3, 6  ;;  %v1760_v6 = vrot.slane %v1758_v5, 7  ;;  %v7468_v45 = vrot.slane %v7466_v48, 2  ;;  %v1293_v38 = vadd.f32 %v12281_v10, %v11933_v52  ;;  %9864 = vmatprep.mubr.msk.bf16.mxu0 %vm16198_vm13, %v8247_v0 }
 0x15a   : > { %v7471_v58 = vrot.slane %v7469_v53, 3  ;;  %v1389_v11 = vmax.f32 %v1301_v34, 0.0  ;;  %v12314_v63 = vor.u32 %v1780_v33, %v1777_v16  ;;  %v16195_v46 = vrot.slane %v12276_v4, 1  ;;  %vm16550_vm14 = vmmov %vm16549_vm10 }
 0x15b   : > { %v1761_v35 = vor.u32 %v1760_v6, %v1757_v61  ;;  %v16199_v42 = vrot.slane %v12285_v26, 1  ;;  %v1387_v48 = vmax.f32 %v1293_v38, 0.0  ;;  %v1304_v52 = vadd.f32 %v12281_v10, %v11939_v30  ;;  %v10417_v61 = vld [vmem:[#allocation2 + $0xa8] sm:$0xff]  }
 0x15c   : > { %v12319_v17 = vor.u32 %v7471_v58, %v7468_v45  ;;  %v1497_v53 = vsel %vm12254_vm11, %v1389_v11, 0.0  ;;  %v1782_v6 = vsel %vm11792_vm1, %v1773_v55, %v12314_v63  ;;  %v1783_v34 = vrot.slane %v12314_v63, 4  ;;  %v12349_v58 = vpop.f32.mrb[12].mxu1 }
 0x15d   : > { %v1762_v24 = vsel %vm11792_vm1, %v1753_v44, %v1761_v35  ;;  %v1763_v3 = vrot.slane %v1761_v35, 4  ;;  %2038 = vst.msk [vmem:[#allocation2 + $0x44] sm:$0xf] %vm16549_vm10, %v1782_v6  ;;  %v9935_v5 = vpack.c.bf16 %v1497_v53, %v1497_v53  ;;  %v1495_v30 = vsel %vm12271_vm8, %v1387_v48, 0.0 }
 0x15e   : > { %2036 = vst.msk [vmem:[#allocation2 + $0x3c] sm:$0xf] %vm16550_vm14, %v1762_v24  ;;  %v7473_v45 = vsel %vm16196_vm3, %v12300_v2, %v12319_v17  ;;  %v4489_v55 = vsel %vm16197_vm5, %v16195_v46, %v16199_v42  ;;  %v9933_v44 = vpack.c.bf16 %v1495_v30, %v1495_v30  ;;  %v1390_v16 = vmax.f32 %v1304_v52, 0.0 }
 0x15f   : > { %v1772_v49 = vsel %vm11792_vm1, %v1763_v3, %v1771_v32  ;;  %7690 = vrot.lane.b32.xlu0 %v7473_v45, %s10857_s17  ;;  %4566 = vrot.lane.b32.xlu1 %v4489_v55, %s10852_s23  ;;  %v1296_v33 = vadd.f32 %v12281_v10, %v12030_v19  ;;  %v1805_v11 = vshrl.u32 %v9935_v5, 16  ;;  %v1808_v38 = vshll.u32 %v9935_v5, 16  ;;  %v12354_v3 = vpop.f32.mrb[13].mxu1 }
 0x160   : > { %2037 = vst.msk [vmem:[#allocation2 + $0x40] sm:$0xf] %vm16549_vm10, %v1772_v49  ;;  %v5645_v63 = vshrl.u32 %v10416_v28, 16  ;;  %v5648_v35 = vshll.u32 %v10416_v28, 16  ;;  %v1785_v32 = vshrl.u32 %v9933_v44, 16  ;;  %v1788_v0 = vshll.u32 %v9933_v44, 16 }
 0x161   : > { %v1498_v53 = vsel %vm12292_vm7, %v1390_v16, 0.0  ;;  %v1388_v48 = vmax.f32 %v1296_v33, 0.0  ;;  %vm16202_vm14 = vsmask.f32 6400  ;;  %v1807_v52 = vrot.slane %v1805_v11, 6  ;;  %v16551_v28 = vld [vmem:[#allocation39_spill] sm:$0xff] }
 0x162   : > { %v1810_v6 = vrot.slane %v1808_v38, 7  ;;  %v9936_v24 = vpack.c.bf16 %v1498_v53, %v1498_v53  ;;  %v5647_v19 = vrot.slane %v5645_v63, 1  ;;  %v1787_v45 = vrot.slane %v1785_v32, 6  ;;  %v16553_v49 = vld [vmem:[#allocation37_spill] sm:$0xff]  ;;  %v12369_v11 = vpop.f32.mrb[14].mxu1 }
 0x163   : > { %v1790_v30 = vrot.slane %v1788_v0, 7  ;;  %v1496_v5 = vsel %vm12307_vm0, %v1388_v48, 0.0  ;;  %v5650_v55 = vrot.slane %v5648_v35, 2  ;;  %vm16552_vm10 = vnez %v16551_v28  ;;  %v16554_v44 = vld [vmem:[#allocation25_spill] sm:$0xff]  ;;  %v16561_v35 = vld [vmem:[#allocation40_spill] sm:$0xff]  ;;  %v16562_v48 = vld [vmem:[#allocation35_spill] sm:$0xff] }
 0x164   : > { %v16555_v46 = vsel %vm16552_vm10, %v16553_v49, %v16554_v44  ;;  %v16556_v16 = vmov 0  ;;  %v12367_v33 = vld [vmem:[#allocation2 + $0x10] sm:$0xff]   ;;  %v1811_v38 = vor.u32 %v1810_v6, %v1807_v52  ;;  %v1815_v63 = vshrl.u32 %v9936_v24, 16 }
 0x165   : > { %vm12363_vm3 = vcmp.lt.s32.totalorder %v16555_v46, 16  ;;  %v1818_v32 = vshll.u32 %v9936_v24, 16  ;;  %v9934_v0 = vpack.c.bf16 %v1496_v5, %v1496_v5  ;;  %v16559_v53 = vld [vmem:[#allocation41_spill] sm:$0xff]  ;;  %v16564_v42 = vmov 0 }
 0x166   : > { %v16557_v16 = vsel %vm12363_vm3, 4294967295, %v16556_v16  ;;  %vm16560_vm5 = vnez %v16559_v53  ;;  %v1791_v46 = vor.u32 %v1790_v30, %v1787_v45  ;;  %v12380_v49 = vor.u32 %v5650_v55, %v5647_v19 }
 0x167   : > { %16558 = vst [vmem:[#allocation15_spill] sm:$0xff] %v16557_v16  ;;  %v16563_v28 = vsel %vm16560_vm5, %v16561_v35, %v16562_v48  ;;  %v5654_v44 = vshrl.u32 %v10417_v61, 16  ;;  %v5657_v2 = vshll.u32 %v10417_v61, 16  ;;  %vm16568_vm10 = vnez %v16454_v25  ;;  %v12391_v48 = vpop.f32.mrb[15].mxu1 }
 0x168   : > { %vm12376_vm13 = vcmp.lt.s32.totalorder %v16563_v28, 16  ;;  %16567 = vst [vmem:[#allocation26_spill] sm:$0xff] %v12380_v49  ;;  %v16569_v52 = vsel %vm16568_vm10, %v11713_v41, %v11662_v51  ;;  %v16570_v6 = vmov 0  ;;  %v1813_v24 = vrot.slane %v1811_v38, 4 }
 0x169   : > { %v16565_v42 = vsel %vm12376_vm13, 4294967295, %v16564_v42  ;;  %vm12387_vm15 = vcmp.lt.s32.totalorder %v16569_v52, 16  ;;  %v1817_v5 = vrot.slane %v1815_v63, 6  ;;  %v1820_v53 = vrot.slane %v1818_v32, 7  ;;  %v12410_v52 = vpop.f32.mrb[16].mxu1 }
 0x16a   : > { %16566 = vst [vmem:[#allocation27_spill] sm:$0xff] %v16565_v42  ;;  %v16571_v6 = vsel %vm12387_vm15, 4294967295, %v16570_v6  ;;  %v1795_v35 = vshrl.u32 %v9934_v0, 16  ;;  %v1792_v19 = vsel %vm11792_vm1, %v1783_v34, %v1791_v46  ;;  %v1793_v45 = vrot.slane %v1791_v46, 4 }
 0x16b   : > { %16572 = vst [vmem:[#allocation18_spill] sm:$0xff] %v16571_v6  ;;  %v1798_v61 = vshll.u32 %v9934_v0, 16  ;;  %v5656_v30 = vrot.slane %v5654_v44, 1  ;;  %vm16573_vm5 = vcmask 125952   ;;  %v12396_v25 = vor.u32 %v1820_v53, %v1817_v5  ;;  %v12416_v53 = vpop.f32.mrb[17].mxu1 }
 0x16c   : > { %2039 = vst.msk [vmem:[#allocation2 + $0x48] sm:$0xf] %vm16573_vm5, %v1792_v19  ;;  %v1797_v51 = vrot.slane %v1795_v35, 6  ;;  %v5659_v41 = vrot.slane %v5657_v2, 2  ;;  %v1317_v55 = vadd.f32 %v12281_v10, %v12043_v37  ;;  %v1309_v32 = vadd.f32 %v12281_v10, %v12056_v12  ;;  %vm16574_vm10 = vmmov %vm16573_vm5 }
 0x16d   : > { %v1800_v63 = vrot.slane %v1798_v61, 7  ;;  %v3708_v28 = vshrl.u32 %v12054_v36, 16  ;;  %v3712_v34 = vshll.u32 %v12367_v33, 16  ;;  %v1822_v0 = vsel %vm11792_vm1, %v1813_v24, %v12396_v25  ;;  %v16575_v61 = vld [vmem:[#allocation43_spill] sm:$0xff] }
 0x16e   : > { %v12408_v44 = vor.u32 %v5659_v41, %v5656_v30  ;;  %v1393_v2 = vmax.f32 %v1317_v55, 0.0  ;;  %2042 = vst.msk [vmem:[#allocation2 + $0x54] sm:$0xf] %vm16574_vm10, %v1822_v0  ;;  %v1391_v5 = vmax.f32 %v1309_v32, 0.0  ;;  %v1320_v19 = vadd.f32 %v12281_v10, %v12063_v56  ;;  %v12426_v30 = vpop.f32.mrb[18].mxu1 }
 0x16f   : > { %v1801_v37 = vor.u32 %v1800_v63, %v1797_v51  ;;  %v3710_v12 = vor.u32 %v3708_v28, %v12092_v54  ;;  %v12414_v36 = vrot.slane %v3712_v34, 1  ;;  %vm787_vm5 = vcmp.ne.s32.totalorder %v16575_v61, 0  ;;  %v12433_v63 = vpop.f32.mrb[19].mxu1 }
 0x170   : > { %v5661_v24 = vsel %vm16202_vm14, %v12380_v49, %v12408_v44  ;;  %v1501_v35 = vsel %vm12363_vm3, %v1393_v2, 0.0  ;;  %v1499_v55 = vsel %vm12376_vm13, %v1391_v5, 0.0  ;;  %v1394_v28 = vmax.f32 %v1320_v19, 0.0  ;;  %v12449_v5 = vld [vmem:[#allocation2 + $0x18] sm:$0xff]   ;;  %v12456_v19 = vld [vmem:[#allocation2 + $0x20] sm:$0xff]  }
 0x171   : > { %v1802_v54 = vsel %vm11792_vm1, %v1793_v45, %v1801_v37  ;;  %v1803_v51 = vrot.slane %v1801_v37, 4  ;;  %5871 = vrot.lane.b32.xlu0 %v5661_v24, %s10858_s18  ;;  %v9939_v41 = vpack.c.bf16 %v1501_v35, %v1501_v35  ;;  %v9937_v56 = vpack.c.bf16 %v1499_v55, %v1499_v55  ;;  %16578 = vst [vmem:[#allocation28_spill] sm:$0xff] %v12456_v19  ;;  %v16582_v2 = vld [vmem:[#allocation42_spill] sm:$0xff] }
 0x172   : > { %2040 = vst.msk [vmem:[#allocation2 + $0x4c] sm:$0xf] %vm16574_vm10, %v1802_v54  ;;  %v3715_v32 = vsel %vm16208_vm12, %v3710_v12, %v12414_v36  ;;  %vm823_vm14 = vcmp.lt.s32.totalorder %v16575_v61, 0  ;;  %v895_v37 = vadd.s32 18, %v16575_v61  ;;  %v1312_v35 = vadd.f32 %v12281_v10, %v12075_v27 }
 0x173   : > { %v1812_v45 = vsel %vm11792_vm1, %v1803_v51, %v1811_v38  ;;  %v1845_v34 = vshrl.u32 %v9939_v41, 16  ;;  %v1848_v0 = vshll.u32 %v9939_v41, 16  ;;  %4014 = vrot.lane.b32.xlu1 %v3715_v32, %s10854_s25  ;;  %vm12444_vm13 = vmand %vm823_vm14, %vm787_vm5  ;;  %v1825_v12 = vshrl.u32 %v9937_v56, 16 }
 0x174   : > { %2041 = vst.msk [vmem:[#allocation2 + $0x50] sm:$0xf] %vm16574_vm10, %v1812_v45  ;;  %v1828_v24 = vshll.u32 %v9937_v56, 16  ;;  %v1502_v38 = vsel %vm12387_vm15, %v1394_v28, 0.0  ;;  %v931_v55 = vsel %vm12444_vm13, %v895_v37, %v16575_v61  ;;  %v16579_v45 = vmov 0  ;;  %v10421_v37 = vld [vmem:[#allocation2 + $0xa0] sm:$0xff]   ;;  %vm16585_vm5 = vmmov %vm16574_vm10 }
 0x175   : > { %v1847_v54 = vrot.slane %v1845_v34, 6  ;;  %v1850_v51 = vrot.slane %v1848_v0, 7  ;;  %v9940_v41 = vpack.c.bf16 %v1502_v38, %v1502_v38  ;;  %v1827_v32 = vrot.slane %v1825_v12, 6  ;;  %vm16588_vm10 = vmmov %vm16585_vm5 }
 0x176   : > { %v1830_v46 = vrot.slane %v1828_v24, 7  ;;  %vm12461_vm14 = vcmp.lt.s32.totalorder %v931_v55, 16  ;;  %v1392_v56 = vmax.f32 %v1312_v35, 0.0  ;;  %v16209_v27 = vrot.slane %v12449_v5, 2 }
 0x177   : > { %v16580_v45 = vsel %vm12461_vm14, 4294967295, %v16579_v45  ;;  %v1851_v28 = vor.u32 %v1850_v51, %v1847_v54  ;;  %v1855_v49 = vshrl.u32 %v9940_v41, 16  ;;  %v1858_v4 = vshll.u32 %v9940_v41, 16 }
 0x178   : > { %16581 = vst [vmem:[#allocation29_spill] sm:$0xff] %v16580_v45  ;;  %v1831_v6 = vor.u32 %v1830_v46, %v1827_v32  ;;  %v1500_v34 = vsel %vm12461_vm14, %v1392_v56, 0.0  ;;  %v16207_v0 = vrot.slane %v12456_v19, 2  ;;  %v662_v61 = vshrl.u32 %v16582_v2, 4  ;;  %v10422_v32 = vld [vmem:[#allocation2 + $0xa8] sm:$0xff]  }
 0x179   : > { %v1853_v12 = vrot.slane %v1851_v28, 4  ;;  %v1857_v24 = vrot.slane %v1855_v49, 6  ;;  %v1860_v38 = vrot.slane %v1858_v4, 7  ;;  %v9938_v55 = vpack.c.bf16 %v1500_v34, %v1500_v34  ;;  %v16587_v2 = vld [vmem:[#allocation8_spill] sm:$0xff] }
 0x17a   : > { %v16583_v35 = vrot.slane %v12396_v25, 4  ;;  %v1833_v51 = vrot.slane %v1831_v6, 4  ;;  %vm16584_vm13 = vcmask 1045504   ;;  %v663_v41 = vmul.u32 18, %v662_v61 }
 0x17b   : > { %v6785_v46 = vsel %vm16584_vm13, %v16209_v27, %v16207_v0  ;;  %v12480_v56 = vor.u32 %v1860_v38, %v1857_v24  ;;  %v1835_v4 = vshrl.u32 %v9938_v55, 16  ;;  %v1838_v49 = vshll.u32 %v9938_v55, 16 }
 0x17c   : > { %v1832_v54 = vsel %vm11792_vm1, %v16583_v35, %v1831_v6  ;;  %6862 = vrot.lane.b32.xlu0 %v6785_v46, %s10855_s26  ;;  %v1333_v25 = vadd.f32 %v12281_v10, %v12086_v22  ;;  %v16586_v6 = vld [vmem:[#allocation38_spill] sm:$0xff]  ;;  %v358_v35 = vadd.s32 192, %v16587_v2  ;;  %v12489_v0 = vadd.f32 %v12281_v10, %v12090_v18 }
 0x17d   : > { %2043 = vst.msk [vmem:[#allocation2 + $0x58] sm:$0xf] %vm16585_vm5, %v1832_v54  ;;  %v664_v34 = vsub.s32 %v16586_v6, %v663_v41  ;;  %v3856_v61 = vshll.u32 %v10421_v37, 16  ;;  %v1862_v24 = vsel %vm11792_vm1, %v1853_v12, %v12480_v56  ;;  %v1837_v55 = vrot.slane %v1835_v4, 6 }
 0x17e   : > { %v1840_v54 = vrot.slane %v1838_v49, 7  ;;  %2046 = vst.msk [vmem:[#allocation2 + $0x64] sm:$0xf] %vm16588_vm10, %v1862_v24  ;;  %v1397_v46 = vmax.f32 %v1333_v25, 0.0  ;;  %v12496_v6 = vmul.u32.u64.low 3817748708, %v358_v35  ;;  %v12497_v18 = vmul.u32.u64.high 3817748708, %v358_v35, %v12496_v6 }
 0x17f   : > { %vm792_vm13 = vcmp.ne.s32.totalorder %v664_v34, 0  ;;  %vm828_vm5 = vcmp.lt.s32.totalorder %v664_v34, 0  ;;  %v900_v22 = vadd.s32 18, %v664_v34  ;;  %v12500_v45 = vrot.slane %v3856_v61, 1 }
 0x180   : > { %v1841_v41 = vor.u32 %v1840_v54, %v1837_v55  ;;  %vm864_vm12 = vmand %vm828_vm5, %vm792_vm13  ;;  %v3860_v12 = vshrl.u32 %v10421_v37, 16  ;;  %v3864_v38 = vshll.u32 %v10422_v32, 16  ;;  %v16590_v24 = vmov 0  ;;  %v10423_v55 = vld [vmem:[#allocation2 + $0x18] sm:$0xff]  }
 0x181   : > { %v936_v19 = vsel %vm864_vm12, %v900_v22, %v664_v34  ;;  %16589 = vst [vmem:[#allocation19_spill] sm:$0xff] %v12500_v45  ;;  %v361_v25 = vadd.s32 216, %v16587_v2  ;;  %vm16593_vm13 = vcmask 125952   ;;  %v640_v54 = vshrl.u32 %v12497_v18, 4 }
 0x182   : > { %v1842_v4 = vsel %vm11792_vm1, %v1833_v51, %v1841_v41  ;;  %v1843_v49 = vrot.slane %v1841_v41, 4  ;;  %vm12504_vm10 = vcmp.lt.s32.totalorder %v936_v19, 16  ;;  %v3862_v61 = vor.u32 %v3860_v12, %v12500_v45  ;;  %v12523_v41 = vpop.f32.mrb[20].mxu1  ;;  %vm16594_vm12 = vmmov %vm16593_vm13 }
 0x183   : > { %v16591_v24 = vsel %vm12504_vm10, 4294967295, %v16590_v24  ;;  %2044 = vst.msk [vmem:[#allocation2 + $0x5c] sm:$0xf] %vm16593_vm13, %v1842_v4  ;;  %v1505_v34 = vsel %vm12504_vm10, %v1397_v46, 0.0  ;;  %v12513_v37 = vrot.slane %v3864_v38, 1  ;;  %v12517_v51 = vadd.f32 %v12281_v10, %v12096_v9 }
 0x184   : > { %16592 = vst [vmem:[#allocation30_spill] sm:$0xff] %v16591_v24  ;;  %v1852_v19 = vsel %vm11792_vm1, %v1843_v49, %v1851_v28  ;;  %v9943_v32 = vpack.c.bf16 %v1505_v34, %v1505_v34  ;;  %v359_v22 = vadd.s32 200, %v16587_v2  ;;  %vm16595_vm5 = vsmask.f32 7424  ;;  %v12537_v49 = vpop.f32.mrb[21].mxu1 }
 0x185   : > { %2045 = vst.msk [vmem:[#allocation2 + $0x60] sm:$0xf] %vm16594_vm12, %v1852_v19  ;;  %v3867_v38 = vsel %vm16595_vm5, %v3862_v61, %v12513_v37  ;;  %v12528_v46 = vmul.u32.u64.low 3817748708, %v361_v25  ;;  %v12529_v6 = vmul.u32.u64.high 3817748708, %v361_v25, %v12528_v46  ;;  %v641_v28 = vmul.u32 18, %v640_v54 }
 0x186   : > { %v1885_v12 = vshrl.u32 %v9943_v32, 16  ;;  %v1888_v4 = vshll.u32 %v9943_v32, 16  ;;  %4052 = vrot.lane.b32.xlu1 %v3867_v38, %s10854_s25  ;;  %v12535_v18 = vadd.f32 %v12281_v10, %v12132_v23  ;;  %v3716_v61 = vshrl.u32 %v12367_v33, 16  ;;  %v12543_v46 = vpop.f32.mrb[22].mxu1  ;;  %v12546_v38 = vld [vmem:[#allocation2 + $0x8] sm:$0xfe]  }
 0x187   : > { %v12539_v34 = vmul.u32.u64.low 3817748708, %v359_v22  ;;  %v12540_v19 = vmul.u32.u64.high 3817748708, %v359_v22, %v12539_v34  ;;  %v3720_v27 = vshll.u32 %v10423_v55, 16  ;;  %v642_v32 = vsub.s32 %v358_v35, %v641_v28  ;;  %v12553_v16 = vpop.f32.mrb[23].mxu1 }
 0x188   : > { %v1887_v9 = vrot.slane %v1885_v12, 6  ;;  %v1890_v45 = vrot.slane %v1888_v4, 7  ;;  %v673_v23 = vshrl.u32 %v12529_v6, 4  ;;  %v3718_v24 = vor.u32 %v3716_v61, %v12414_v36  ;;  %16597 = vst [vmem:[#allocation20_spill] sm:$0xff] %v12553_v16 }
 0x189   : > { %v12550_v42 = vrot.slane %v3720_v27, 1  ;;  %v364_v34 = vadd.s32 240, %v16587_v2  ;;  %vm790_vm13 = vcmp.ne.s32.totalorder %v642_v32, 0  ;;  %vm826_vm12 = vcmp.lt.s32.totalorder %v642_v32, 0 }
 0x18a   : > { %v12555_v33 = vor.u32 %v1890_v45, %v1887_v9  ;;  %v898_v55 = vadd.s32 18, %v642_v32  ;;  %vm862_vm5 = vmand %vm826_vm12, %vm790_vm13  ;;  %v674_v35 = vmul.u32 18, %v673_v23  ;;  %v651_v12 = vshrl.u32 %v12540_v19, 4 }
 0x18b   : > { %16596 = vst [vmem:[#allocation31_spill] sm:$0xff] %v12550_v42  ;;  %vm16598_vm10 = vsmask.f32 7424  ;;  %v12562_v36 = vadd.f32 %v12281_v10, %v12139_v62  ;;  %v12566_v45 = vmul.u32.u64.low 3817748708, %v364_v34  ;;  %v12567_v9 = vmul.u32.u64.high 3817748708, %v364_v34, %v12566_v45 }
 0x18c   : > { %v3723_v6 = vsel %vm16598_vm10, %v3718_v24, %v12550_v42  ;;  %v934_v4 = vsel %vm862_vm5, %v898_v55, %v642_v32  ;;  %v16599_v28 = vmov 0  ;;  %v675_v19 = vsub.s32 %v361_v25, %v674_v35  ;;  %v10467_v35 = vld [vmem:[%s10979_s20 + $0x100] sm:$0xff]  }
 0x18d   : > { %4016 = vrot.lane.b32.xlu0 %v3723_v6, %s10854_s25  ;;  %vm12569_vm13 = vcmp.lt.s32.totalorder %v934_v4, 16  ;;  %v652_v24 = vmul.u32 18, %v651_v12  ;;  %v16602_v62 = vmax.f32 %v12489_v0, 0.0  ;;  %v362_v32 = vadd.s32 224, %v16587_v2 }
 0x18e   : > { %v16600_v28 = vsel %vm12569_vm13, 4294967295, %v16599_v28  ;;  %v12581_v55 = vadd.f32 %v12281_v10, %v12146_v43  ;;  %v5475_v6 = vshrl.u32 %v12546_v38, 16  ;;  %vm793_vm10 = vcmp.ne.s32.totalorder %v675_v19, 0 }
 0x18f   : > { %16601 = vst [vmem:[#allocation32_spill] sm:$0xff] %v16600_v28  ;;  %v1503_v23 = vsel %vm12569_vm13, %v16602_v62, 0.0  ;;  %vm829_vm12 = vcmp.lt.s32.totalorder %v675_v19, 0  ;;  %v901_v25 = vadd.s32 18, %v675_v19  ;;  %v653_v12 = vsub.s32 %v359_v22, %v652_v24  ;;  %v10468_v62 = vld [vmem:[%s10979_s20 + $0x108] sm:$0xff]  }
 0x190   : > { %v9941_v4 = vpack.c.bf16 %v1503_v23, %v1503_v23  ;;  %vm865_vm5 = vmand %vm829_vm12, %vm793_vm10  ;;  %v706_v0 = vshrl.u32 %v12567_v9, 4  ;;  %v12586_v45 = vmul.u32.u64.low 3817748708, %v362_v32  ;;  %v12587_v61 = vmul.u32.u64.high 3817748708, %v362_v32, %v12586_v45 }
 0x191   : > { %v937_v28 = vsel %vm865_vm5, %v901_v25, %v675_v19  ;;  %vm16603_vm13 = vcmask 293888   ;;  %v16604_v23 = vmov 0  ;;  %vm791_vm15 = vcmp.ne.s32.totalorder %v653_v12, 0 }
 0x192   : > { %v1865_v27 = vshrl.u32 %v9941_v4, 16  ;;  %v1868_v54 = vshll.u32 %v9941_v4, 16  ;;  %10168 = vmatprep.mubr.msk.bf16.mxu1 %vm16603_vm13, %v10467_v35  ;;  %vm12592_vm14 = vcmp.lt.s32.totalorder %v937_v28, 16  ;;  %vm827_vm10 = vcmp.lt.s32.totalorder %v653_v12, 0  ;;  %vm16607_vm12 = vmmov %vm16603_vm13 }
 0x193   : > { %v16605_v23 = vsel %vm12592_vm14, 4294967295, %v16604_v23  ;;  %v899_v22 = vadd.s32 18, %v653_v12  ;;  %10169 = vmatmul.mubr.msk.bf16.gmra.mrb[28].mxu1 %vm16607_vm12, %v10468_v62  ;;  %v16608_v45 = vmax.f32 %v12517_v51, 0.0  ;;  %vm863_vm5 = vmand %vm827_vm10, %vm791_vm15  ;;  %v707_v4 = vmul.u32 18, %v706_v0 }
 0x194   : > { %16606 = vst [vmem:[#allocation33_spill] sm:$0xff] %v16605_v23  ;;  %v1867_v9 = vrot.slane %v1865_v27, 6  ;;  %v1870_v24 = vrot.slane %v1868_v54, 7  ;;  %v684_v28 = vshrl.u32 %v12587_v61, 4  ;;  %v12602_v43 = vrot.slane %v5475_v6, 1  ;;  %v10425_v54 = vld [vmem:[#allocation2 + $0x10] sm:$0xff]  }
 0x195   : > { %v1506_v19 = vsel %vm12592_vm14, %v16608_v45, 0.0  ;;  %v935_v35 = vsel %vm863_vm5, %v899_v22, %v653_v12  ;;  %v16609_v16 = vmov 0  ;;  %v708_v27 = vsub.s32 %v364_v34, %v707_v4  ;;  %v10474_v4 = vld [vmem:[%s10979_s20 + $0x110] sm:$0xff]  }
 0x196   : > { %v9944_v25 = vpack.c.bf16 %v1506_v19, %v1506_v19  ;;  %v1871_v42 = vor.u32 %v1870_v24, %v1867_v9  ;;  %vm12604_vm13 = vcmp.lt.s32.totalorder %v935_v35, 16  ;;  %v5478_v51 = vshll.u32 %v12546_v38, 16 }
 0x197   : > { %v16610_v16 = vsel %vm12604_vm13, 4294967295, %v16609_v16  ;;  %v16612_v0 = vmax.f32 %v12535_v18, 0.0  ;;  %v685_v6 = vmul.u32 18, %v684_v28  ;;  %v16613_v12 = vrot.slane %v12480_v56, 4  ;;  %v10475_v18 = vld [vmem:[%s10979_s20 + $0x118] sm:$0xff]  }
 0x198   : > { %16611 = vst [vmem:[#allocation22_spill] sm:$0xff] %v16610_v16  ;;  %v1895_v62 = vshrl.u32 %v9944_v25, 16  ;;  %v1898_v45 = vshll.u32 %v9944_v25, 16  ;;  %v1873_v9 = vrot.slane %v1871_v42, 4  ;;  %vm796_vm15 = vcmp.ne.s32.totalorder %v708_v27, 0 }
 0x199   : > { %v1504_v61 = vsel %vm12604_vm13, %v16612_v0, 0.0  ;;  %v1872_v22 = vsel %vm11792_vm1, %v16613_v12, %v1871_v42  ;;  %vm16614_vm10 = vcmask 125952   ;;  %vm832_vm12 = vcmp.lt.s32.totalorder %v708_v27, 0 }
 0x19a   : > { %v9942_v34 = vpack.c.bf16 %v1504_v61, %v1504_v61  ;;  %2047 = vst.msk [vmem:[#allocation2 + $0x68] sm:$0xf] %vm16614_vm10, %v1872_v22  ;;  %v1897_v24 = vrot.slane %v1895_v62, 6  ;;  %v1900_v38 = vrot.slane %v1898_v45, 7  ;;  %v904_v19 = vadd.s32 18, %v708_v27  ;;  %vm868_vm5 = vmand %vm832_vm12, %vm796_vm15 }
 0x19b   : > { %v686_v28 = vsub.s32 %v362_v32, %v685_v6  ;;  %v5480_v0 = vrot.slane %v5478_v51, 2  ;;  %v5483_v12 = vshrl.u32 %v10425_v54, 16  ;;  %v5486_v42 = vshll.u32 %v10425_v54, 16 }
 0x19c   : > { %v1875_v25 = vshrl.u32 %v9942_v34, 16  ;;  %v1878_v35 = vshll.u32 %v9942_v34, 16  ;;  %v12620_v56 = vor.u32 %v1900_v38, %v1897_v24  ;;  %v940_v16 = vsel %vm868_vm5, %v904_v19, %v708_v27 }
 0x19d   : > { %vm16615_vm13 = vcmask 293888   ;;  %vm12623_vm10 = vcmp.lt.s32.totalorder %v940_v16, 16  ;;  %v16616_v62 = vmov 0  ;;  %vm794_vm14 = vcmp.ne.s32.totalorder %v686_v28, 0 }
 0x19e   : > { %10172 = vmatprep.mubr.msk.bf16.mxu1 %vm16615_vm13, %v10474_v4  ;;  %v1877_v61 = vrot.slane %v1875_v25, 6  ;;  %v1880_v22 = vrot.slane %v1878_v35, 7  ;;  %v16617_v62 = vsel %vm12623_vm10, 4294967295, %v16616_v62  ;;  %vm16619_vm3 = vmmov %vm16615_vm13  ;;  %v16620_v32 = vrot.slane %v12555_v33, 4  ;;  %v12649_v25 = vld [vmem:[#allocation2 + $0x18] sm:$0xff]  }
 0x19f   : > { %16618 = vst [vmem:[#allocation36_spill] sm:$0xff] %v16617_v62  ;;  %10173 = vmatmul.mubr.msk.bf16.gmra.mrb[32].mxu1 %vm16619_vm3, %v10475_v18  ;;  %v1903_v27 = vrot.slane %v12620_v56, 4  ;;  %v16621_v54 = vmax.f32 %v12562_v36, 0.0  ;;  %vm830_vm13 = vcmp.lt.s32.totalorder %v686_v28, 0  ;;  %vm16622_vm15 = vcmask 125952  }
 0x1a0   : > { %v1902_v51 = vsel %vm11792_vm1, %v16620_v32, %v12620_v56  ;;  %v1881_v16 = vor.u32 %v1880_v22, %v1877_v61  ;;  %vm12639_vm12 = vmand %vm830_vm13, %vm794_vm14  ;;  %v902_v24 = vadd.s32 18, %v686_v28  ;;  %v5481_v38 = vor.u32 %v5480_v0, %v12602_v43 }
 0x1a1   : > { %v1509_v45 = vsel %vm12623_vm10, %v16621_v54, 0.0  ;;  %2050 = vst.msk [vmem:[#allocation2 + $0x74] sm:$0xf] %vm16622_vm15, %v1902_v51  ;;  %v5485_v19 = vrot.slane %v5483_v12, 1  ;;  %v5488_v4 = vrot.slane %v5486_v42, 2  ;;  %v365_v18 = vadd.s32 248, %v16587_v2  ;;  %vm16625_vm3 = vmmov %vm16622_vm15 }
 0x1a2   : > { %v9947_v6 = vpack.c.bf16 %v1509_v45, %v1509_v45  ;;  %v12647_v36 = vadd.f32 %v12281_v10, %v12153_v31  ;;  %v1882_v35 = vsel %vm11792_vm1, %v1873_v9, %v1881_v16  ;;  %v1883_v61 = vrot.slane %v1881_v16, 4  ;;  %v12653_v51 = vld [vmem:[#allocation2 + $0x20] sm:$0xff]   ;;  %vm16629_vm5 = vmmov %vm16625_vm3 }
 0x1a3   : > { %2048 = vst.msk [vmem:[#allocation2 + $0x6c] sm:$0xf] %vm16625_vm3, %v1882_v35  ;;  %v938_v43 = vsel %vm12639_vm12, %v902_v24, %v686_v28  ;;  %v12658_v0 = vor.u32 %v5488_v4, %v5485_v19  ;;  %v12660_v12 = vmul.u32.u64.low 3817748708, %v365_v18  ;;  %v12661_v31 = vmul.u32.u64.high 3817748708, %v365_v18, %v12660_v12  ;;  %v10487_v16 = vld [vmem:[#allocation2] sm:$0xff]   ;;  %v10494_v19 = vld [vmem:[#allocation2 + $0x8] sm:$0xff]  }
 0x1a4   : > { %v1925_v22 = vshrl.u32 %v9947_v6, 16  ;;  %v1928_v32 = vshll.u32 %v9947_v6, 16  ;;  %v1892_v42 = vsel %vm11792_vm1, %v1883_v61, %v12555_v33  ;;  %vm12666_vm14 = vcmp.lt.s32.totalorder %v938_v43, 16 }
 0x1a5   : > { %v16626_v45 = vmov 0  ;;  %2049 = vst.msk [vmem:[#allocation2 + $0x70] sm:$0xf] %vm16629_vm5, %v1892_v42  ;;  %v16630_v28 = vmax.f32 %v12581_v55, 0.0  ;;  %vm16631_vm13 = vsmask.f32 6400  ;;  %v12684_v61 = vadd.f32 %v12281_v10, %v12181_v29 }
 0x1a6   : > { %v1927_v9 = vrot.slane %v1925_v22, 6  ;;  %v1930_v54 = vrot.slane %v1928_v32, 7  ;;  %v16627_v45 = vsel %vm12666_vm14, 4294967295, %v16626_v45  ;;  %v5490_v34 = vsel %vm16631_vm13, %v5481_v38, %v12658_v0  ;;  %v10498_v22 = vld [vmem:[#allocation2 + $0xa0] sm:$0xff]  }
 0x1a7   : > { %16628 = vst [vmem:[#allocation34_spill] sm:$0xff] %v16627_v45  ;;  %v1507_v6 = vsel %vm12666_vm14, %v16630_v28, 0.0  ;;  %v1402_v24 = vmax.f32 %v12647_v36, 0.0  ;;  %v363_v33 = vadd.s32 232, %v16587_v2  ;;  %5833 = vrot.lane.b32.xlu1 %v5490_v34, %s10858_s18  ;;  %v16227_v55 = vrot.slane %v12649_v25, 1 }
 0x1a8   : > { %v12679_v4 = vor.u32 %v1930_v54, %v1927_v9  ;;  %v9945_v35 = vpack.c.bf16 %v1507_v6, %v1507_v6  ;;  %vm16632_vm15 = vcmask 130048   ;;  %v717_v38 = vshrl.u32 %v12661_v31, 4 }
 0x1a9   : > { %3379 = vst.msk [vmem:[#allocation3] sm:$0xff] %vm16632_vm15, %v10487_v16  ;;  %v12689_v36 = vmul.u32.u64.low 3817748708, %v363_v33  ;;  %v12690_v32 = vmul.u32.u64.high 3817748708, %v363_v33, %v12689_v36  ;;  %v16226_v43 = vrot.slane %v12653_v51, 1  ;;  %vm16633_vm12 = vmmov %vm16632_vm15  ;;  %vm16635_vm5 = vcmask 1046528  }
 0x1aa   : > { %3380 = vst.msk [vmem:[#allocation3 + $0x10] sm:$0xff] %vm16633_vm12, %v10494_v19  ;;  %v1905_v42 = vshrl.u32 %v9945_v35, 16  ;;  %v1908_v9 = vshll.u32 %v9945_v35, 16  ;;  %vm16634_vm3 = vmmov %vm16633_vm12  ;;  %v718_v54 = vmul.u32 18, %v717_v38  ;;  %v368_v16 = vadd.s32 272, %v16587_v2  ;;  %v10501_v38 = vld [vmem:[#allocation2 + $0x10] sm:$0xff]  }
 0x1ab   : > { %3399 = vst.msk [vmem:[#allocation3 + $0x140] sm:$0xff] %vm16634_vm3, %v10498_v22  ;;  %v4966_v31 = vsel %vm16635_vm5, %v16227_v55, %v16226_v43  ;;  %v12705_v28 = vadd.f32 %v12281_v10, %v12200_v57  ;;  %v366_v19 = vadd.s32 256, %v16587_v2  ;;  %v12711_v35 = vadd.f32 %v12281_v10, %v12217_v14  ;;  %v12713_v22 = vld [vmem:[#allocation2 + $0xb0] sm:$0xff]   ;;  %vm16636_vm13 = vmmov %vm16634_vm3 }
 0x1ac   : > { %v1907_v6 = vrot.slane %v1905_v42, 6  ;;  %v1910_v34 = vrot.slane %v1908_v9, 7  ;;  %5043 = vrot.lane.b32.xlu0 %v4966_v31, %s10853_s24  ;;  %v719_v36 = vsub.s32 %v365_v18, %v718_v54  ;;  %v695_v43 = vshrl.u32 %v12690_v32, 4  ;;  %3381 = vst.msk [vmem:[#allocation3 + $0x20] sm:$0xff] %vm16636_vm13, %v10501_v38 }
 0x1ad   : > { %v12716_v55 = vmul.u32.u64.low 3817748708, %v368_v16  ;;  %v12717_v12 = vmul.u32.u64.high 3817748708, %v368_v16, %v12716_v55  ;;  %v12722_v9 = vmul.u32.u64.low 3817748708, %v366_v19  ;;  %v12723_v31 = vmul.u32.u64.high 3817748708, %v366_v19, %v12722_v9 }
 0x1ae   : > { %v12719_v57 = vor.u32 %v1910_v34, %v1907_v6  ;;  %vm797_vm15 = vcmp.ne.s32.totalorder %v719_v36, 0  ;;  %vm833_vm12 = vcmp.lt.s32.totalorder %v719_v36, 0  ;;  %v905_v14 = vadd.s32 18, %v719_v36  ;;  %v12734_v6 = vld [vmem:[#allocation2 + $0x18] sm:$0xff]   ;;  %v12741_v9 = vld [vmem:[#allocation2 + $0x20] sm:$0xff]  }
 0x1af   : > { %v696_v10 = vmul.u32 18, %v695_v43  ;;  %vm869_vm3 = vmand %vm833_vm12, %vm797_vm15  ;;  %v16228_v54 = vrot.slane %v12713_v22, 2  ;;  %vm16637_vm5 = vcmask 125952   ;;  %v750_v43 = vshrl.u32 %v12717_v12, 4  ;;  %v12758_v12 = vld [vmem:[%s16111_s2] ss:$0 sm:$0xff] }
 0x1b0   : > { %v1912_v18 = vsel %vm11792_vm1, %v1903_v27, %v12719_v57  ;;  %v941_v34 = vsel %vm869_vm3, %v905_v14, %v719_v36  ;;  %v12739_v56 = vadd.s32 280, %v16587_v2  ;;  %v12743_v27 = vld [vmem:[#allocation2 + $0xb0] sm:$0xff]   ;;  %v16638_v55 = vmov 0 }
 0x1b1   : > { %2051 = vst.msk [vmem:[#allocation2 + $0x78] sm:$0xf] %vm16637_vm5, %v1912_v18  ;;  %v697_v38 = vsub.s32 %v363_v33, %v696_v10  ;;  %vm12745_vm13 = vcmp.lt.s32.totalorder %v941_v34, 16  ;;  %v728_v32 = vshrl.u32 %v12723_v31, 4  ;;  %v16641_v36 = vrot.slane %v12094_v8, 2 }
 0x1b2   : > { %v16639_v55 = vsel %vm12745_vm13, 4294967295, %v16638_v55  ;;  %vm16642_vm15 = vcmask 1045504   ;;  %v12762_v14 = vadd.f32 %v12758_v12, %v12224_v40  ;;  %v1510_v10 = vsel %vm12745_vm13, %v1402_v24, 0.0 }
 0x1b3   : > { %16640 = vst [vmem:[#allocation24_spill] sm:$0xff] %v16639_v55  ;;  %v6821_v33 = vsel %vm16642_vm15, %v16641_v36, %v16228_v54  ;;  %vm795_vm12 = vcmp.ne.s32.totalorder %v697_v38, 0  ;;  %vm831_vm3 = vcmp.lt.s32.totalorder %v697_v38, 0  ;;  %v903_v31 = vadd.s32 18, %v697_v38  ;;  %v10497_v54 = vld [vmem:[%s16112_s3] sm:$0xff]   ;;  %v12786_v36 = vld [vmem:[#allocation2 + $0x18] sm:$0xff]  }
 0x1b4   : > { %6898 = vrot.lane.b32.xlu1 %v6821_v33, %s10855_s26  ;;  %v9948_v8 = vpack.c.bf16 %v1510_v10, %v1510_v10  ;;  %vm867_vm5 = vmand %vm831_vm3, %vm795_vm12  ;;  %v751_v18 = vmul.u32 18, %v750_v43  ;;  %v729_v34 = vmul.u32 18, %v728_v32  ;;  %v16643_v33 = vmov 0  ;;  %8521 = vmatpush1.bf16.msra.mxu0 %v10497_v54 }
 0x1b5   : > { %v939_v40 = vsel %vm867_vm5, %v903_v31, %v697_v38  ;;  %v12772_v42 = vmul.u32.u64.low 3817748708, %v12739_v56  ;;  %v12773_v29 = vmul.u32.u64.high 3817748708, %v12739_v56, %v12772_v42  ;;  %10223 = vmatpush1.bf16.msra.mxu1 %v10497_v54  ;;  %v16646_v43 = vmax.f32 %v12684_v61, 0.0  ;;  %v10502_v61 = vld [vmem:[%s16112_s3 + $0x8] sm:$0xff]  }
 0x1b6   : > { %v1935_v55 = vshrl.u32 %v9948_v8, 16  ;;  %v1938_v45 = vshll.u32 %v9948_v8, 16  ;;  %vm12776_vm15 = vcmp.lt.s32.totalorder %v939_v40, 16  ;;  %v752_v32 = vsub.s32 %v368_v16, %v751_v18  ;;  %v10522_v40 = vld [vmem:[#allocation2 + $0x20] sm:$0xff]  }
 0x1b7   : > { %v16644_v33 = vsel %vm12776_vm15, 4294967295, %v16643_v33  ;;  %v1508_v38 = vsel %vm12776_vm15, %v16646_v43, 0.0  ;;  %v730_v10 = vsub.s32 %v366_v19, %v729_v34  ;;  %v16647_v8 = vmov 0  }
 0x1b8   : > { %16645 = vst [vmem:[#allocation39_spill] sm:$0xff] %v16644_v33  ;;  %8522 = vmatprep.subr.bf16.mxu0 %v16647_v8  ;;  %10215 = vmatprep.subr.bf16.mxu1 %v16647_v8  ;;  %v1937_v16 = vrot.slane %v1935_v55, 6  ;;  %v1940_v18 = vrot.slane %v1938_v45, 7  ;;  %v9946_v54 = vpack.c.bf16 %v1508_v38, %v1508_v38  ;;  %vm800_vm12 = vcmp.ne.s32.totalorder %v752_v32, 0  ;;  %v12800_v55 = vld [vmem:[#allocation2 + $0x20] sm:$0xff]   ;;  %v12802_v38 = vld [vmem:[#allocation2 + $0xb0] sm:$0xff]  }
 0x1b9   : > { %vm836_vm3 = vcmp.lt.s32.totalorder %v752_v32, 0  ;;  %v908_v19 = vadd.s32 18, %v752_v32  ;;  %vm798_vm5 = vcmp.ne.s32.totalorder %v730_v10, 0  ;;  %vm834_vm15 = vcmp.lt.s32.totalorder %v730_v10, 0  ;;  %16651 = vst [vmem:[#allocation37_spill] sm:$0xff] %v12802_v38  ;;  %8523 = vmatpush1.bf16.msra.mxu0 %v10502_v61  ;;  %10224 = vmatpush1.bf16.msra.mxu1 %v10502_v61 }
 0x1ba   : > { %vm16648_vm13 = vcmask 130048   ;;  %v12794_v34 = vor.u32 %v1940_v18, %v1937_v16  ;;  %v1915_v43 = vshrl.u32 %v9946_v54, 16  ;;  %v1918_v42 = vshll.u32 %v9946_v54, 16  ;;  %vm12796_vm14 = vmand %vm836_vm3, %vm800_vm12  ;;  %8524 = vmatprep.subr.bf16.mxu0 %v16647_v8  ;;  %10216 = vmatprep.subr.bf16.mxu1 %v16647_v8 }
 0x1bb   : > { %3383 = vst.msk [vmem:[#allocation3 + $0x40] sm:$0xff] %vm16648_vm13, %v10522_v40  ;;  %v906_v45 = vadd.s32 18, %v730_v10  ;;  %v944_v31 = vsel %vm12796_vm14, %v908_v19, %v752_v32  ;;  %vm12806_vm10 = vmand %vm834_vm15, %vm798_vm5  ;;  %v761_v16 = vshrl.u32 %v12773_v29, 4  ;;  %v16654_v18 = vrot.slane %v12741_v9, 2 }
 0x1bc   : > { %v16655_v54 = vrot.slane %v12734_v6, 2  ;;  %vm16656_vm13 = vcmask 1045504   ;;  %v16657_v62 = vrot.slane %v12743_v27, 1  ;;  %v16658_v2 = vrot.slane %v12110_v21, 1  ;;  %v10505_v21 = vld [vmem:[%s16112_s3 + $0x10] sm:$0xff]  }
 0x1bd   : > { %vm16659_vm12 = vcmask 1046528   ;;  %v16660_v24 = vrot.slane %v12679_v4, 4  ;;  %v1917_v19 = vrot.slane %v1915_v43, 6  ;;  %vm16661_vm14 = vcmask 125952   ;;  %v10435_v43 = vld [vmem:[#allocation2 + $0x10] sm:$0xfc]   ;;  %8525 = vmatpush1.bf16.msra.mxu0 %v10505_v21  ;;  %10225 = vmatpush1.bf16.msra.mxu1 %v10505_v21 }
 0x1be   : > { %v6274_v33 = vsel %vm16656_vm13, %v16655_v54, %v16654_v18  ;;  %v5002_v61 = vsel %vm16659_vm12, %v16658_v2, %v16657_v62  ;;  %v1920_v18 = vrot.slane %v1918_v42, 7  ;;  %vm12835_vm15 = vcmp.lt.s32.totalorder %v944_v31, 16  ;;  %8526 = vmatprep.subr.bf16.mxu0 %v16647_v8  ;;  %10217 = vmatprep.subr.bf16.mxu1 %v16647_v8  ;;  %vm16672_vm5 = vmmov %vm16661_vm14 }
 0x1bf   : > { %v1942_v29 = vsel %vm11792_vm1, %v16660_v24, %v12794_v34  ;;  %6351 = vrot.lane.b32.xlu0 %v6274_v33, %s10856_s10  ;;  %5079 = vrot.lane.b32.xlu1 %v5002_v61, %s10853_s24  ;;  %v16662_v2 = vmov 0  ;;  %v942_v62 = vsel %vm12806_vm10, %v906_v45, %v730_v10  ;;  %v762_v54 = vmul.u32 18, %v761_v16  ;;  %vm16671_vm10 = vmmov %vm16659_vm12 }
 0x1c0   : > { %2054 = vst.msk [vmem:[#allocation2 + $0x84] sm:$0xf] %vm16661_vm14, %v1942_v29  ;;  %v16663_v2 = vsel %vm12835_vm15, 4294967295, %v16662_v2  ;;  %v16239_v42 = vrot.slane %v12786_v36, 1  ;;  %v1921_v33 = vor.u32 %v1920_v18, %v1917_v19  ;;  %v16665_v61 = vmax.f32 %v12705_v28, 0.0  ;;  %v12857_v29 = vld [vmem:[#allocation2 + $0x18] sm:$0xff]  }
 0x1c1   : > { %16664 = vst [vmem:[#allocation25_spill] sm:$0xff] %v16663_v2  ;;  %vm12846_vm3 = vcmp.lt.s32.totalorder %v942_v62, 16  ;;  %v16666_v32 = vmov 0  ;;  %v16238_v31 = vrot.slane %v12800_v55, 1  ;;  %v16669_v10 = vmax.f32 %v12711_v35, 0.0  ;;  %v12859_v19 = vpop.f32.mrb[24].mxu1 }
 0x1c2   : > { %v1513_v24 = vsel %vm12835_vm15, %v16665_v61, 0.0  ;;  %v16667_v32 = vsel %vm12846_vm3, 4294967295, %v16666_v32  ;;  %v763_v16 = vsub.s32 %v12739_v56, %v762_v54  ;;  %v16670_v18 = vrot.slane %v12719_v57, 4  ;;  %v12872_v54 = vpop.f32.mrb[25].mxu1  ;;  %v10508_v61 = vld [vmem:[%s16112_s3 + $0x18] sm:$0xff]  }
 0x1c3   : > { %16668 = vst [vmem:[#allocation41_spill] sm:$0xff] %v16667_v32  ;;  %v9951_v40 = vpack.c.bf16 %v1513_v24, %v1513_v24  ;;  %v1511_v45 = vsel %vm12846_vm3, %v16669_v10, 0.0  ;;  %v1923_v21 = vrot.slane %v1921_v33, 4  ;;  %v4455_v56 = vsel %vm16671_vm10, %v16239_v42, %v16238_v31  ;;  %v10529_v24 = vld [vmem:[#allocation2 + $0xa8] sm:$0xff]   ;;  %v12888_v32 = vld [vmem:[#allocation2 + $0xb0] sm:$0xff]   ;;  %8527 = vmatpush1.bf16.msra.mxu0 %v10508_v61  ;;  %10226 = vmatpush1.bf16.msra.mxu1 %v10508_v61 }
 0x1c4   : > { %v1922_v35 = vsel %vm11792_vm1, %v16670_v18, %v1921_v33  ;;  %v9949_v62 = vpack.c.bf16 %v1511_v45, %v1511_v45  ;;  %vm801_vm13 = vcmp.ne.s32.totalorder %v763_v16, 0  ;;  %vm837_vm12 = vcmp.lt.s32.totalorder %v763_v16, 0  ;;  %4532 = vrot.lane.b32.xlu0 %v4455_v56, %s10852_s23  ;;  %v12879_v33 = vpop.f32.mrb[26].mxu1  ;;  %v10541_v45 = vld [vmem:[#allocation2 + $0x18] sm:$0xff]   ;;  %16675 = vst [vmem:[#allocation40_spill] sm:$0xff] %v12888_v32  ;;  %8528 = vmatprep.subr.bf16.mxu0 %v16647_v8 }
 0x1c5   : > { %2052 = vst.msk [vmem:[#allocation2 + $0x7c] sm:$0xf] %vm16672_vm5, %v1922_v35  ;;  %v1965_v57 = vshrl.u32 %v9951_v40, 16  ;;  %v1968_v10 = vshll.u32 %v9951_v40, 16  ;;  %v1932_v18 = vsel %vm11792_vm1, %v1923_v21, %v12679_v4  ;;  %vm12884_vm14 = vmand %vm837_vm12, %vm801_vm13  ;;  %v909_v35 = vadd.s32 18, %v763_v16  ;;  %v12897_v23 = vpop.f32.mrb[27].mxu1  ;;  %10218 = vmatprep.subr.bf16.mxu1 %v16647_v8 }
 0x1c6   : > { %v1945_v31 = vshrl.u32 %v9949_v62, 16  ;;  %v1948_v42 = vshll.u32 %v9949_v62, 16  ;;  %vm16676_vm10 = vcmask 130048   ;;  %2053 = vst.msk [vmem:[#allocation2 + $0x80] sm:$0xf] %vm16672_vm5, %v1932_v18  ;;  %v16677_v2 = vrot.slane %v12802_v38, 2  ;;  %vm16689_vm12 = vmmov %vm16672_vm5 }
 0x1c7   : > { %3400 = vst.msk [vmem:[#allocation3 + $0x150] sm:$0xff] %vm16676_vm10, %v10529_v24  ;;  %v1967_v40 = vrot.slane %v1965_v57, 6  ;;  %v1970_v56 = vrot.slane %v1968_v10, 7  ;;  %v16678_v4 = vrot.slane %v12179_v59, 2  ;;  %vm16679_vm3 = vcmask 1045504   ;;  %16680 = vst [vmem:[#allocation35_spill] sm:$0xff] %v12897_v23 }
 0x1c8   : > { %v7296_v62 = vshrl.u32 %v10435_v43, 16  ;;  %vm16681_vm13 = vmmov %vm16676_vm10  ;;  %v1947_v61 = vrot.slane %v1945_v31, 6  ;;  %v1950_v24 = vrot.slane %v1948_v42, 7  ;;  %v945_v57 = vsel %vm12884_vm14, %v909_v35, %v763_v16  ;;  %v10439_v59 = vld [vmem:[#allocation2 + $0x10] sm:$0xfc]   ;;  %v10438_v31 = vld [vmem:[#allocation2 + $0x18] sm:$0xff]  }
 0x1c9   : > { %v6310_v21 = vsel %vm16679_vm3, %v16678_v4, %v16677_v2  ;;  %3382 = vst.msk [vmem:[#allocation3 + $0x30] sm:$0xff] %vm16681_vm13, %v10541_v45  ;;  %v7299_v10 = vshll.u32 %v10435_v43, 16  ;;  %v10512_v2 = vld [vmem:[%s16112_s3 + $0x20] sm:$0xff]   ;;  %v12908_v18 = vor.u32 %v1970_v56, %v1967_v40  ;;  %vm12910_vm3 = vcmp.lt.s32.totalorder %v945_v57, 16  ;;  %v12922_v40 = vld [vmem:[#allocation2 + $0x28] sm:$0xff]  }
 0x1ca   : > { %6387 = vrot.lane.b32.xlu1 %v6310_v21, %s10856_s10  ;;  %v16683_v4 = vmov 0  ;;  %v7298_v45 = vrot.slane %v7296_v62, 2  ;;  %v7304_v42 = vshrl.u32 %v12857_v29, 16  ;;  %v12915_v28 = vor.u32 %v1950_v24, %v1947_v61  ;;  %8529 = vmatpush1.bf16.msra.mxu0 %v10512_v2  ;;  %v12926_v61 = vld [vmem:[#allocation2 + $0x30] sm:$0xff]   ;;  %v10443_v23 = vld [vmem:[#allocation2 + $0x28] sm:$0xff]  }
 0x1cb   : > { %16682 = vst [vmem:[#allocation43_spill] sm:$0xff] %v12908_v18  ;;  %v16684_v4 = vsel %vm12910_vm3, 4294967295, %v16683_v4  ;;  %v16687_v16 = vmax.f32 %v12762_v14, 0.0  ;;  %v7301_v35 = vrot.slane %v7299_v10, 3  ;;  %v7307_v21 = vshll.u32 %v12857_v29, 16  ;;  %10227 = vmatpush1.bf16.msra.mxu1 %v10512_v2  ;;  %8530 = vmatprep.subr.bf16.mxu0 %v16647_v8 }
 0x1cc   : > { %16685 = vst [vmem:[#allocation42_spill] sm:$0xff] %v16684_v4  ;;  %16686 = vst [vmem:[#allocation38_spill] sm:$0xff] %v12915_v28  ;;  %v7306_v57 = vrot.slane %v7304_v42, 2  ;;  %v16249_v38 = vrot.slane %v12888_v32, 1  ;;  %10219 = vmatprep.subr.bf16.mxu1 %v16647_v8  ;;  %v1973_v14 = vrot.slane %v12908_v18, 4  ;;  %v16688_v29 = vrot.slane %v12794_v34, 4 }
 0x1cd   : > { %v1514_v43 = vsel %vm12910_vm3, %v16687_v16, 0.0  ;;  %v7302_v10 = vor.u32 %v7301_v35, %v7298_v45  ;;  %v7309_v2 = vrot.slane %v7307_v21, 3  ;;  %v10516_v42 = vld [vmem:[%s16112_s3 + $0x28] sm:$0xff]   ;;  %v16690_v56 = vrot.slane %v12285_v26, 1  ;;  %v2059_v26 = vld [vmem:[#allocation2 + $0x98] sm:$0x3] }
 0x1ce   : > { %v9952_v62 = vpack.c.bf16 %v1514_v43, %v1514_v43  ;;  %v1952_v24 = vsel %vm11792_vm1, %v16688_v29, %v12915_v28  ;;  %vm16691_vm14 = vcmask 1046528   ;;  %v5492_v34 = vshrl.u32 %v10438_v31, 16  ;;  %v10442_v29 = vld [vmem:[#allocation2 + $0x20] sm:$0xff]   ;;  %8531 = vmatpush1.bf16.msra.mxu0 %v10516_v42 }
 0x1cf   : > { %2055 = vst.msk [vmem:[#allocation2 + $0x88] sm:$0xf] %vm16689_vm12, %v1952_v24  ;;  %v4491_v4 = vsel %vm16691_vm14, %v16690_v56, %v16249_v38  ;;  %v12945_v18 = vor.u32 %v7309_v2, %v7306_v57  ;;  %v5495_v45 = vshll.u32 %v10438_v31, 16  ;;  %v6781_v35 = vrot.slane %v10439_v59, 2  ;;  %8532 = vmatprep.subr.bf16.mxu0 %v16647_v8  ;;  %10228 = vmatpush1.bf16.msra.mxu1 %v10516_v42  ;;  %v10518_v2 = vld [vmem:[%s16112_s3 + $0x30] sm:$0xff]   ;;  %vm16698_vm12 = vmmov %vm16691_vm14 }
 0x1d0   : > { %v1975_v16 = vshrl.u32 %v9952_v62, 16  ;;  %v1978_v43 = vshll.u32 %v9952_v62, 16  ;;  %4568 = vrot.lane.b32.xlu1 %v4491_v4, %s10852_s23  ;;  %v16261_v21 = vrot.slane %v12922_v40, 2  ;;  %v5494_v62 = vrot.slane %v5492_v34, 1  ;;  %10220 = vmatprep.subr.bf16.mxu1 %v16647_v8  ;;  %v10454_v38 = vld [vmem:[#allocation2 + $0xb0] sm:$0xff]  }
 0x1d1   : > { %v16255_v32 = vrot.slane %v12926_v61, 2  ;;  %vm16692_vm10 = vsmask.f32 5376  ;;  %v5497_v4 = vrot.slane %v5495_v45, 2  ;;  %v16693_v59 = vrot.slane %v12449_v5, 2 }
 0x1d2   : > { %v1977_v24 = vrot.slane %v1975_v16, 6  ;;  %v1980_v28 = vrot.slane %v1978_v43, 7  ;;  %v7311_v56 = vsel %vm16692_vm10, %v7302_v10, %v12945_v18  ;;  %vm16694_vm5 = vcmask 1045504   ;;  %8533 = vmatpush1.bf16.msra.mxu0 %v10518_v2 }
 0x1d3   : > { %v6783_v31 = vsel %vm16694_vm5, %v6781_v35, %v16693_v59  ;;  %v2363_v57 = vadd.f32 %v12758_v12, %v12349_v58  ;;  %7654 = vrot.lane.b32.xlu0 %v7311_v56, %s10857_s17  ;;  %vm16695_vm13 = vmmov %vm16694_vm5  ;;  %v16696_v10 = vrot.slane %v12649_v25, 1  ;;  %v16697_v42 = vrot.slane %v12020_v39, 1  ;;  %8534 = vmatprep.subr.bf16.mxu0 %v16647_v8 }
 0x1d4   : > { %v1981_v16 = vor.u32 %v1980_v28, %v1977_v24  ;;  %v6789_v5 = vsel %vm16695_vm13, %v16261_v21, %v16255_v32  ;;  %v2355_v43 = vadd.f32 %v12758_v12, %v12354_v3  ;;  %v12975_v34 = vor.u32 %v5497_v4, %v5494_v62  ;;  %6860 = vrot.lane.b32.xlu1 %v6783_v31, %s10855_s26 }
 0x1d5   : > { %v4964_v58 = vsel %vm16698_vm12, %v16697_v42, %v16696_v10  ;;  %v2463_v28 = vmax.f32 %v2363_v57, 0.0  ;;  %v2366_v45 = vadd.f32 %v12758_v12, %v12369_v11  ;;  %v3728_v35 = vshll.u32 %v10442_v29, 16  ;;  %10229 = vmatpush1.bf16.msra.mxu1 %v10518_v2 }
 0x1d6   : > { %v1982_v25 = vsel %vm11792_vm1, %v1973_v14, %v1981_v16  ;;  %v1983_v24 = vrot.slane %v1981_v16, 4  ;;  %v2461_v39 = vmax.f32 %v2355_v43, 0.0  ;;  %v3732_v56 = vshrl.u32 %v10442_v29, 16  ;;  %v10520_v14 = vld [vmem:[%s16112_s3 + $0x38] sm:$0xff]   ;;  %10221 = vmatprep.subr.bf16.mxu1 %v16647_v8  ;;  %v16701_v29 = vld [vmem:[#allocation7_spill] sm:$0xff]  ;;  %v10563_v43 = vld [vmem:[#allocation2 + $0x28] sm:$0xff]  }
 0x1d7   : > { %vm16699_vm14 = vcmask 125952   ;;  %vm16700_vm10 = vsmask.f32 6400  ;;  %v2499_v11 = vsel %vm12119_vm2, %v2463_v28, 0.0  ;;  %v2464_v62 = vmax.f32 %v2366_v45, 0.0  ;;  %8535 = vmatpush1.bf16.msra.mxu0 %v10520_v14  ;;  %vm16707_vm2 = vmmov %vm16695_vm13 }
 0x1d8   : > { %2058 = vst.msk [vmem:[#allocation2 + $0x94] sm:$0xf] %vm16699_vm14, %v1982_v25  ;;  %v5499_v3 = vsel %vm16700_vm10, %v12658_v0, %v12975_v34  ;;  %v12989_v4 = vrot.slane %v3728_v35, 1  ;;  %vm16702_vm5 = vnez %v16701_v29  ;;  %v9967_v31 = vpack.c.bf16 %v2499_v11, %v2499_v11  ;;  %5041 = vrot.lane.b32.xlu1 %v4964_v58, %s10853_s24  ;;  %v13010_v35 = vld [vmem:[#allocation2 + $0x30] sm:$0xff]   ;;  %8536 = vmatprep.subr.bf16.mxu0 %v16647_v8  ;;  %v10523_v11 = vld [vmem:[%s16112_s3 + $0x40] sm:$0xff]   ;;  %vm16713_vm13 = vmmov %vm16698_vm12 }
 0x1d9   : > { %v2060_v59 = vsel %vm16702_vm5, %v1983_v24, %v2059_v26  ;;  %5835 = vrot.lane.b32.xlu0 %v5499_v3, %s10858_s18  ;;  %v2497_v0 = vsel %vm12128_vm6, %v2461_v39, 0.0  ;;  %v3736_v7 = vshll.u32 %v10443_v23, 16  ;;  %v2500_v16 = vsel %vm12164_vm4, %v2464_v62, 0.0  ;;  %v13006_v26 = vld [vmem:[#allocation2 + $0x28] sm:$0xff]   ;;  %10230 = vmatpush1.bf16.msra.mxu1 %v10520_v14  ;;  %vm16714_vm12 = vmmov %vm16699_vm14  ;;  %v10481_v29 = vld [vmem:[#allocation2 + $0x30] sm:$0xff]  }
 0x1da   : > { %2061 = vst [vmem:[#allocation2 + $0x98] sm:$0x3] %v2060_v59  ;;  %v9965_v57 = vpack.c.bf16 %v2497_v0, %v2497_v0  ;;  %v3734_v10 = vor.u32 %v3732_v56, %v12989_v4  ;;  %v2358_v42 = vadd.f32 %v12758_v12, %v12391_v48  ;;  %v2769_v28 = vshrl.u32 %v9967_v31, 16  ;;  %v16705_v48 = vld [vmem:[#allocation9_spill] sm:$0xff]  ;;  %10222 = vmatprep.subr.bf16.mxu1 %v16647_v8  ;;  %vm16715_vm14 = vmmov %vm16714_vm12 }
 0x1db   : > { %v2772_v13 = vshll.u32 %v9967_v31, 16  ;;  %v9968_v45 = vpack.c.bf16 %v2500_v16, %v2500_v16  ;;  %v13008_v23 = vrot.slane %v3736_v7, 1  ;;  %v16704_v39 = vrot.slane %v12734_v6, 2  ;;  %8537 = vmatpush1.bf16.msra.mxu0 %v10523_v11  ;;  %v10540_v16 = vld [vmem:[#allocation2 + $0x30] sm:$0xff]   ;;  %vm16719_vm10 = vmmov %vm16713_vm13 }
 0x1dc   : > { %v2749_v58 = vshrl.u32 %v9965_v57, 16  ;;  %v2752_v25 = vshll.u32 %v9965_v57, 16  ;;  %v2462_v24 = vmax.f32 %v2358_v42, 0.0  ;;  %v16706_v56 = vrot.slane %v16705_v48, 2  ;;  %v16717_v57 = vld [vmem:[#allocation10_spill] sm:$0xff] }
 0x1dd   : > { %vm16708_vm6 = vcmask 130048   ;;  %6866 = vrot.lane.b32.xlu0 %v6789_v5, %s10855_s26  ;;  %v2771_v62 = vrot.slane %v2769_v28, 6  ;;  %v2774_v14 = vrot.slane %v2772_v13, 7  ;;  %v2779_v59 = vshrl.u32 %v9968_v45, 16  ;;  %v13029_v28 = vld [vmem:[#allocation2 + $0x28] sm:$0xff]   ;;  %10231 = vmatpush1.bf16.msra.mxu1 %v10523_v11 }
 0x1de   : > { %v6272_v3 = vsel %vm16707_vm2, %v16706_v56, %v16704_v39  ;;  %3384 = vst.msk [vmem:[#allocation3 + $0x50] sm:$0xff] %vm16708_vm6, %v10563_v43  ;;  %v2782_v31 = vshll.u32 %v9968_v45, 16  ;;  %v2751_v0 = vrot.slane %v2749_v58, 6  ;;  %v2754_v6 = vrot.slane %v2752_v25, 7  ;;  %v13039_v56 = vld [vmem:[#allocation2 + $0x30] sm:$0xff]  }
 0x1df   : > { %vm16709_vm4 = vsmask.f32 7424  ;;  %v2498_v2 = vsel %vm12173_vm9, %v2462_v24, 0.0  ;;  %6349 = vrot.lane.b32.xlu1 %v6272_v3, %s10856_s10  ;;  %v2775_v42 = vor.u32 %v2774_v14, %v2771_v62  ;;  %v2781_v8 = vrot.slane %v2779_v59, 6  ;;  %vm16711_vm9 = vmmov %vm16708_vm6 }
 0x1e0   : > { %v3739_v7 = vsel %vm16709_vm4, %v3734_v10, %v13008_v23  ;;  %v2784_v43 = vrot.slane %v2782_v31, 7  ;;  %v9966_v5 = vpack.c.bf16 %v2498_v2, %v2498_v2  ;;  %v2755_v13 = vor.u32 %v2754_v6, %v2751_v0  ;;  %3385 = vst.msk [vmem:[#allocation3 + $0x60] sm:$0xff] %vm16711_vm9, %v10540_v16 }
 0x1e1   : > { %v16260_v45 = vrot.slane %v13006_v26, 1  ;;  %v16252_v58 = vrot.slane %v13010_v35, 1  ;;  %v2379_v10 = vadd.f32 %v12758_v12, %v12410_v52  ;;  %v2777_v25 = vrot.slane %v2775_v42, 4  ;;  %4020 = vrot.lane.b32.xlu0 %v3739_v7, %s10854_s25 }
 0x1e2   : > { %v13036_v24 = vor.u32 %v2784_v43, %v2781_v8  ;;  %v2759_v39 = vshrl.u32 %v9966_v5, 16  ;;  %v2762_v48 = vshll.u32 %v9966_v5, 16  ;;  %v16712_v3 = vrot.slane %v12183_v50, 4 }
 0x1e3   : > { %v2757_v62 = vrot.slane %v2755_v13, 4  ;;  %v4970_v52 = vsel %vm16713_vm13, %v16260_v45, %v16252_v58  ;;  %v2467_v14 = vmax.f32 %v2379_v10, 0.0  ;;  %v16716_v7 = vrot.slane %v12786_v36, 1 }
 0x1e4   : > { %v2756_v11 = vsel %vm11792_vm1, %v16712_v3, %v2755_v13  ;;  %v2786_v59 = vsel %vm11792_vm1, %v2777_v25, %v13036_v24  ;;  %v2787_v31 = vrot.slane %v13036_v24, 4  ;;  %v2761_v50 = vrot.slane %v2759_v39, 6 }
 0x1e5   : > { %3039 = vst.msk [vmem:[#allocation2 + $0xd4] sm:$0xf] %vm16714_vm12, %v2756_v11  ;;  %v2764_v0 = vrot.slane %v2762_v48, 7  ;;  %v2503_v6 = vsel %vm12254_vm11, %v2467_v14, 0.0  ;;  %v16718_v2 = vrot.slane %v16717_v57, 1  ;;  %v2371_v8 = vadd.f32 %v12758_v12, %v12416_v53  ;;  %5047 = vrot.lane.b32.xlu0 %v4970_v52, %s10853_s24  ;;  %v10448_v48 = vld [vmem:[#allocation2 + $0xb0] sm:$0xff]   ;;  %vm16720_vm11 = vmmov %vm16714_vm12 }
 0x1e6   : > { %3042 = vst.msk [vmem:[#allocation2 + $0xe0] sm:$0xf] %vm16715_vm14, %v2786_v59  ;;  %v2382_v43 = vadd.f32 %v12758_v12, %v12426_v30  ;;  %v9971_v13 = vpack.c.bf16 %v2503_v6, %v2503_v6  ;;  %v16259_v47 = vrot.slane %v13029_v28, 2  ;;  %v16251_v36 = vrot.slane %v13039_v56, 2  ;;  %v10778_v53 = vld [vmem:[#allocation2 + $0xa8] sm:$0xff]  }
 0x1e7   : > { %v4453_v16 = vsel %vm16719_vm10, %v16718_v2, %v16716_v7  ;;  %v2765_v5 = vor.u32 %v2764_v0, %v2761_v50  ;;  %v2465_v10 = vmax.f32 %v2371_v8, 0.0  ;;  %v2374_v39 = vadd.f32 %v12758_v12, %v12433_v63  ;;  %v13085_v6 = vld [vmem:[#allocation2 + $0x28] sm:$0xff]  }
 0x1e8   : > { %4530 = vrot.lane.b32.xlu1 %v4453_v16, %s10852_s23  ;;  %v2468_v25 = vmax.f32 %v2382_v43, 0.0  ;;  %v3868_v3 = vshrl.u32 %v10778_v53, 16  ;;  %v2809_v52 = vshrl.u32 %v9971_v13, 16  ;;  %v2812_v14 = vshll.u32 %v9971_v13, 16  ;;  %v10452_v13 = vld [vmem:[#allocation2 + $0x20] sm:$0xff]  }
 0x1e9   : > { %v2766_v30 = vsel %vm11792_vm1, %v2757_v62, %v2765_v5  ;;  %v2767_v11 = vrot.slane %v2765_v5, 4  ;;  %v2501_v59 = vsel %vm12271_vm8, %v2465_v10, 0.0  ;;  %v6278_v63 = vsel %vm16707_vm2, %v16259_v47, %v16251_v36  ;;  %vm16721_vm8 = vmmov %vm16720_vm11  ;;  %v10451_v5 = vld [vmem:[#allocation2 + $0xb0] sm:$0xff]  }
 0x1ea   : > { %3040 = vst.msk [vmem:[#allocation2 + $0xd8] sm:$0xf] %vm16720_vm11, %v2766_v30  ;;  %v2504_v50 = vsel %vm12292_vm7, %v2468_v25, 0.0  ;;  %v2466_v0 = vmax.f32 %v2374_v39, 0.0  ;;  %v2811_v7 = vrot.slane %v2809_v52, 6  ;;  %v2814_v57 = vrot.slane %v2812_v14, 7  ;;  %6355 = vrot.lane.b32.xlu0 %v6278_v63, %s10856_s10  ;;  %v13099_v63 = vpop.permute.xlu0 %4526  ;;  %vm16723_vm7 = vmmov %vm16709_vm4 }
 0x1eb   : > { %v2776_v62 = vsel %vm11792_vm1, %v2767_v11, %v2775_v42  ;;  %v9969_v2 = vpack.c.bf16 %v2501_v59, %v2501_v59  ;;  %v9972_v60 = vpack.c.bf16 %v2504_v50, %v2504_v50  ;;  %v3870_v8 = vor.u32 %v3868_v3, %v12513_v37  ;;  %vm16725_vm6 = vmmov %vm16721_vm8 }
 0x1ec   : > { %3041 = vst.msk [vmem:[#allocation2 + $0xdc] sm:$0xf] %vm16721_vm8, %v2776_v62  ;;  %v2502_v16 = vsel %vm12307_vm0, %v2466_v0, 0.0  ;;  %v3872_v43 = vshll.u32 %v10448_v48, 16  ;;  %v2815_v10 = vor.u32 %v2814_v57, %v2811_v7  ;;  %v16257_v52 = vrot.slane %v13085_v6, 1  ;;  %vm16724_vm0 = vmmov %vm16719_vm10 }
 0x1ed   : > { %v2789_v42 = vshrl.u32 %v9969_v2, 16  ;;  %v2792_v25 = vshll.u32 %v9969_v2, 16  ;;  %v9970_v39 = vpack.c.bf16 %v2502_v16, %v2502_v16  ;;  %v2819_v53 = vshrl.u32 %v9972_v60, 16  ;;  %vm16727_vm4 = vmmov %vm16725_vm6 }
 0x1ee   : > { %v2822_v30 = vshll.u32 %v9972_v60, 16  ;;  %v13096_v11 = vrot.slane %v3872_v43, 1  ;;  %v2817_v14 = vrot.slane %v2815_v10, 4  ;;  %v16250_v57 = vrot.slane %v13090_v15, 1  ;;  %v10453_v60 = vld [vmem:[#allocation2 + $0x28] sm:$0xff]   ;;  %vm16728_vm9 = vmmov %vm16727_vm4 }
 0x1ef   : > { %v2791_v59 = vrot.slane %v2789_v42, 6  ;;  %v2794_v50 = vrot.slane %v2792_v25, 7  ;;  %v2799_v20 = vshrl.u32 %v9970_v39, 16  ;;  %v2821_v37 = vrot.slane %v2819_v53, 6  ;;  %vm16731_vm12 = vmmov %vm16727_vm4 }
 0x1f0   : > { %16722 = vst [vmem:[#allocation23_spill] sm:$0xff] %v13096_v11  ;;  %v2824_v48 = vrot.slane %v2822_v30, 7  ;;  %v2802_v3 = vshll.u32 %v9970_v39, 16  ;;  %v3875_v0 = vsel %vm16723_vm7, %v3870_v8, %v13096_v11  ;;  %v7475_v2 = vshrl.u32 %v10451_v5, 16  ;;  %vm16736_vm11 = vmmov %vm16707_vm2 }
 0x1f1   : > { %v2795_v62 = vor.u32 %v2794_v50, %v2791_v59  ;;  %v2801_v7 = vrot.slane %v2799_v20, 6  ;;  %4054 = vrot.lane.b32.xlu1 %v3875_v0, %s10854_s25  ;;  %v7478_v42 = vshll.u32 %v10451_v5, 16  ;;  %v7313_v25 = vshrl.u32 %v10452_v13, 16  ;;  %v10455_v59 = vld [vmem:[#allocation2 + $0x20] sm:$0xff]   ;;  %v13121_v20 = vld [vmem:[#allocation2 + $0xb8] sm:$0xff]  }
 0x1f2   : > { %v13105_v16 = vor.u32 %v2824_v48, %v2821_v37  ;;  %v2804_v43 = vrot.slane %v2802_v3, 7  ;;  %v4459_v53 = vsel %vm16724_vm0, %v16257_v52, %v16250_v57  ;;  %v7477_v30 = vrot.slane %v7475_v2, 2  ;;  %16726 = vst [vmem:[#allocation9_spill] sm:$0xff] %v13121_v20  ;;  %v13126_v2 = vpop.permute.xlu0 %4012  ;;  %v13137_v57 = vld [vmem:[#allocation2 + $0xb8] sm:$0xff]  }
 0x1f3   : > { %v2796_v39 = vsel %vm11792_vm1, %v2787_v31, %v2795_v62  ;;  %v2797_v8 = vrot.slane %v2795_v62, 4  ;;  %4536 = vrot.lane.b32.xlu0 %v4459_v53, %s10852_s23  ;;  %v7480_v24 = vrot.slane %v7478_v42, 3  ;;  %v10456_v31 = vld [vmem:[#allocation2 + $0x28] sm:$0xff]   ;;  %v7315_v37 = vrot.slane %v7313_v25, 2  ;;  %v13124_v62 = vpop.permute.xlu1 %5039  ;;  %v13134_v53 = vld [vmem:[#allocation2 + $0x40] sm:$0xff]   ;;  %16729 = vst [vmem:[#allocation17_spill] sm:$0xff] %v13137_v57 }
 0x1f4   : > { %3043 = vst.msk [vmem:[#allocation2 + $0xe4] sm:$0xf] %vm16725_vm6, %v2796_v39  ;;  %v2826_v5 = vsel %vm11792_vm1, %v2817_v14, %v13105_v16  ;;  %v2805_v50 = vor.u32 %v2804_v43, %v2801_v7  ;;  %v7316_v48 = vshll.u32 %v10452_v13, 16  ;;  %v7322_v3 = vshrl.u32 %v10453_v60, 16  ;;  %v13132_v39 = vld [vmem:[#allocation2 + $0x38] sm:$0xff]  }
 0x1f5   : > { %3046 = vst.msk [vmem:[#allocation2 + $0xf0] sm:$0xf] %vm16727_vm4, %v2826_v5  ;;  %v7325_v0 = vshll.u32 %v10453_v60, 16  ;;  %v13130_v43 = vor.u32 %v7480_v24, %v7477_v30  ;;  %v5663_v42 = vshrl.u32 %v10454_v38, 16  ;;  %v5666_v5 = vshll.u32 %v10454_v38, 16  ;;  %v10779_v52 = vld [vmem:[#allocation2 + $0x18] sm:$0xff]  }
 0x1f6   : > { %v2806_v14 = vsel %vm11792_vm1, %v2797_v8, %v2805_v50  ;;  %v2807_v7 = vrot.slane %v2805_v50, 4  ;;  %v7318_v13 = vrot.slane %v7316_v48, 3  ;;  %v7324_v25 = vrot.slane %v7322_v3, 2 }
 0x1f7   : > { %3044 = vst.msk [vmem:[#allocation2 + $0xe8] sm:$0xf] %vm16728_vm9, %v2806_v14  ;;  %v7327_v60 = vrot.slane %v7325_v0, 3  ;;  %vm16730_vm13 = vsmask.f32 5376  ;;  %v5665_v30 = vrot.slane %v5663_v42, 1 }
 0x1f8   : > { %v2816_v36 = vsel %vm11792_vm1, %v2807_v7, %v2815_v10  ;;  %v7482_v8 = vsel %vm16730_vm13, %v12319_v17, %v13130_v43  ;;  %v5501_v50 = vshrl.u32 %v10455_v59, 16  ;;  %v13146_v24 = vor.u32 %v7318_v13, %v7315_v37  ;;  %vm16732_vm14 = vmmov %vm16730_vm13  ;;  %v10461_v42 = vld [vmem:[#allocation2 + $0x30] sm:$0xff]   ;;  %v13158_v37 = vpop.permute.xlu1 %6896  ;;  %v13160_v13 = vpop.permute.xlu0 %6347 }
 0x1f9   : > { %3045 = vst.msk [vmem:[#allocation2 + $0xec] sm:$0xf] %vm16731_vm12, %v2816_v36  ;;  %7692 = vrot.lane.b32.xlu1 %v7482_v8, %s10857_s17  ;;  %v13148_v48 = vor.u32 %v7327_v60, %v7324_v25  ;;  %v5668_v38 = vrot.slane %v5666_v5, 2  ;;  %v5504_v3 = vshll.u32 %v10455_v59, 16  ;;  %v5510_v14 = vshrl.u32 %v10456_v31, 16  ;;  %v13156_v8 = vld [vmem:[#allocation2 + $0x38] sm:$0xff]  }
 0x1fa   : > { %v5503_v0 = vrot.slane %v5501_v50, 1  ;;  %v5513_v58 = vshll.u32 %v10456_v31, 16  ;;  %v16253_v10 = vrot.slane %v13121_v20, 2  ;;  %16733 = vst [vmem:[#allocation10_spill] sm:$0xff] %v13158_v37  ;;  %v16256_v25 = vrot.slane %v13132_v39, 2  ;;  %v16747_v37 = vld [vmem:[#allocation31_spill] sm:$0xff] }
 0x1fb   : > { %v7329_v17 = vsel %vm16732_vm14, %v13146_v24, %v13148_v48  ;;  %v13154_v7 = vor.u32 %v5668_v38, %v5665_v30  ;;  %v5506_v36 = vrot.slane %v5504_v3, 2  ;;  %v5512_v59 = vrot.slane %v5510_v14, 1  ;;  %vm16757_vm14 = vmmov %vm16724_vm0 }
 0x1fc   : > { %7658 = vrot.lane.b32.xlu0 %v7329_v17, %s10857_s17  ;;  %v5515_v31 = vrot.slane %v5513_v58, 2  ;;  %v16254_v60 = vrot.slane %v13134_v53, 2  ;;  %vm16734_vm10 = vsmask.f32 6400  ;;  %v16735_v30 = vrot.slane %v12713_v22, 2 }
 0x1fd   : > { %v5670_v5 = vsel %vm16734_vm10, %v12408_v44, %v13154_v7  ;;  %v2395_v38 = vadd.f32 %v12758_v12, %v12523_v41  ;;  %v16258_v3 = vrot.slane %v13137_v57, 1  ;;  %v13177_v58 = vor.u32 %v5506_v36, %v5503_v0  ;;  %vm16737_vm8 = vmmov %vm16734_vm10 }
 0x1fe   : > { %v6823_v50 = vsel %vm16736_vm11, %v16735_v30, %v16253_v10  ;;  %5873 = vrot.lane.b32.xlu1 %v5670_v5, %s10858_s18  ;;  %v13179_v14 = vor.u32 %v5515_v31, %v5512_v59  ;;  %v2387_v44 = vadd.f32 %v12758_v12, %v12537_v49  ;;  %v2398_v17 = vadd.f32 %v12758_v12, %v12543_v46  ;;  %v16738_v46 = vld [vmem:[#allocation15_spill] sm:$0xff] }
 0x1ff   : > { %v6793_v41 = vsel %vm16707_vm2, %v16256_v25, %v16254_v60  ;;  %v2471_v22 = vmax.f32 %v2395_v38, 0.0  ;;  %v3744_v30 = vshll.u32 %v10461_v42, 16  ;;  %v3748_v10 = vshrl.u32 %v10461_v42, 16  ;;  %v16741_v60 = vld [vmem:[#allocation20_spill] sm:$0xff]  ;;  %v16745_v25 = vld [vmem:[#allocation18_spill] sm:$0xff] }
 0x200   : > { %v5517_v0 = vsel %vm16737_vm8, %v13177_v58, %v13179_v14  ;;  %v2469_v36 = vmax.f32 %v2387_v44, 0.0  ;;  %v2472_v59 = vmax.f32 %v2398_v17, 0.0  ;;  %v3752_v49 = vshll.u32 %v13156_v8, 16  ;;  %v13206_v44 = vpop.permute.xlu1 %5077  ;;  %v13208_v17 = vpop.permute.xlu0 %4528 }
 0x201   : > { %5839 = vrot.lane.b32.xlu0 %v5517_v0, %s10858_s18  ;;  %vm16739_vm7 = vnez %v16738_v46  ;;  %v16740_v5 = vrot.slane %v12743_v27, 1  ;;  %v13202_v42 = vrot.slane %v3744_v30, 1  ;;  %v2390_v32 = vadd.f32 %v12758_v12, %v16741_v60  ;;  %16742 = vst [vmem:[#allocation15_spill] sm:$0xff] %v13206_v44  ;;  %v16743_v46 = vld [vmem:[#allocation27_spill] sm:$0xff] }
 0x202   : > { %v2507_v31 = vsel %vm16739_vm7, %v2471_v22, 0.0  ;;  %6900 = vrot.lane.b32.xlu1 %v6823_v50, %s10855_s26  ;;  %vm16744_vm6 = vnez %v16743_v46  ;;  %vm16746_vm4 = vnez %v16745_v25  ;;  %v13215_v47 = vrot.slane %v3752_v49, 1  ;;  %v13221_v46 = vld [vmem:[#allocation2 + $0x40] sm:$0xff]  }
 0x203   : > { %v5004_v38 = vsel %vm16724_vm0, %v16740_v5, %v16258_v3  ;;  %v9975_v0 = vpack.c.bf16 %v2507_v31, %v2507_v31  ;;  %v2505_v22 = vsel %vm16744_vm6, %v2469_v36, 0.0  ;;  %v2508_v27 = vsel %vm16746_vm4, %v2472_v59, 0.0  ;;  %v13219_v31 = vld [vmem:[#allocation2 + $0x38] sm:$0xff]   ;;  %16748 = vst [vmem:[#allocation20_spill] sm:$0xff] %v13221_v46 }
 0x204   : > { %v3724_v5 = vshrl.u32 %v10779_v52, 16  ;;  %v9973_v30 = vpack.c.bf16 %v2505_v22, %v2505_v22  ;;  %v9976_v3 = vpack.c.bf16 %v2508_v27, %v2508_v27  ;;  %v2470_v12 = vmax.f32 %v2390_v32, 0.0 }
 0x205   : > { %v2849_v60 = vshrl.u32 %v9975_v0, 16  ;;  %v2852_v45 = vshll.u32 %v9975_v0, 16  ;;  %v3750_v21 = vor.u32 %v3748_v10, %v13202_v42  ;;  %6870 = vrot.lane.b32.xlu0 %v6793_v41, %s10855_s26  ;;  %v2827_v49 = vrot.slane %v13105_v16, 4  ;;  %v16749_v0 = vld [vmem:[#allocation29_spill] sm:$0xff]  ;;  %v13230_v41 = vld [vmem:[#allocation2 + $0x38] sm:$0xff]  }
 0x206   : > { %v3726_v50 = vor.u32 %v3724_v5, %v16747_v37  ;;  %v2829_v25 = vshrl.u32 %v9973_v30, 16  ;;  %v2832_v36 = vshll.u32 %v9973_v30, 16  ;;  %v2859_v52 = vshrl.u32 %v9976_v3, 16  ;;  %5081 = vrot.lane.b32.xlu1 %v5004_v38, %s10853_s24  ;;  %v13228_v37 = vld [vmem:[#allocation2 + $0x40] sm:$0xff]   ;;  %v13232_v30 = vpop.permute.xlu1 %6385 }
 0x207   : > { %v2862_v59 = vshll.u32 %v9976_v3, 16  ;;  %v2851_v22 = vrot.slane %v2849_v60, 6  ;;  %v2854_v32 = vrot.slane %v2852_v45, 7  ;;  %vm16750_vm9 = vnez %v16749_v0  ;;  %16751 = vst [vmem:[#allocation27_spill] sm:$0xff] %v13228_v37  ;;  %16752 = vst [vmem:[#allocation18_spill] sm:$0xff] %v13232_v30  ;;  %v13234_v3 = vpop.permute.xlu0 %7690 }
 0x208   : > { %v2506_v10 = vsel %vm16750_vm9, %v2470_v12, 0.0  ;;  %v2831_v27 = vrot.slane %v2829_v25, 6  ;;  %v2834_v5 = vrot.slane %v2832_v36, 7  ;;  %v2861_v44 = vrot.slane %v2859_v52, 6  ;;  %16753 = vst [vmem:[#allocation31_spill] sm:$0xff] %v13234_v3  ;;  %v13239_v12 = vld [vmem:[#allocation2 + $0x38] sm:$0xff]   ;;  %vm16773_vm9 = vmmov %vm16757_vm14 }
 0x209   : > { %v2864_v57 = vrot.slane %v2862_v59, 7  ;;  %v2855_v16 = vor.u32 %v2854_v32, %v2851_v22  ;;  %vm16754_vm13 = vsmask.f32 7424  ;;  %v9974_v38 = vpack.c.bf16 %v2506_v10, %v2506_v10  ;;  %v10471_v52 = vld [vmem:[#allocation2 + $0xb8] sm:$0xff]  }
 0x20a   : > { %v3755_v45 = vsel %vm16754_vm13, %v3750_v21, %v13215_v47  ;;  %v16263_v60 = vrot.slane %v13221_v46, 1  ;;  %v2835_v0 = vor.u32 %v2834_v5, %v2831_v27  ;;  %vm16755_vm12 = vmmov %vm16754_vm13  ;;  %v16264_v36 = vrot.slane %v13219_v31, 1  ;;  %v13248_v21 = vld [vmem:[#allocation2 + $0x40] sm:$0xff]  }
 0x20b   : > { %4024 = vrot.lane.b32.xlu0 %v3755_v45, %s10854_s25  ;;  %v3731_v25 = vsel %vm16755_vm12, %v3726_v50, %v12989_v4  ;;  %v2857_v59 = vrot.slane %v2855_v16, 4  ;;  %v13245_v3 = vor.u32 %v2864_v57, %v2861_v44  ;;  %v2839_v22 = vshrl.u32 %v9974_v38, 16  ;;  %16756 = vst [vmem:[#allocation29_spill] sm:$0xff] %v13248_v21  ;;  %v10476_v50 = vld [vmem:[#allocation2 + $0xb8] sm:$0xff]  }
 0x20c   : > { %v2842_v32 = vshll.u32 %v9974_v38, 16  ;;  %4018 = vrot.lane.b32.xlu1 %v3731_v25, %s10854_s25  ;;  %v2836_v10 = vsel %vm11792_vm1, %v2827_v49, %v2835_v0  ;;  %v2837_v27 = vrot.slane %v2835_v0, 4  ;;  %v4974_v4 = vsel %vm16757_vm14, %v16264_v36, %v16263_v60  ;;  %v13268_v25 = vld [vmem:[#allocation2 + $0xe0] sm:$0xff]   ;;  %v13281_v36 = vld [vmem:[#allocation2 + $0xd8] sm:$0xff]   ;;  %vm16778_vm14 = vmmov %vm16773_vm9 }
 0x20d   : > { %vm16758_vm10 = vcmask 125952   ;;  %v2866_v57 = vsel %vm11792_vm1, %v2857_v59, %v13245_v3  ;;  %v2841_v44 = vrot.slane %v2839_v22, 6  ;;  %vm16760_vm2 = vsmask.f32 5376  ;;  %16761 = vst [vmem:[#allocation44_spill] sm:$0xff] %v13268_v25  ;;  %v10479_v59 = vld [vmem:[#allocation2 + $0x30] sm:$0xff]   ;;  %v13272_v22 = vpop.permute.xlu1 %4566 }
 0x20e   : > { %3047 = vst.msk [vmem:[#allocation2 + $0xf4] sm:$0xf] %vm16758_vm10, %v2836_v10  ;;  %v2844_v5 = vrot.slane %v2842_v32, 7  ;;  %vm16759_vm11 = vmmov %vm16758_vm10  ;;  %v7320_v49 = vsel %vm16760_vm2, %v12945_v18, %v13146_v24  ;;  %v7484_v0 = vshrl.u32 %v10471_v52, 16  ;;  %v13270_v10 = vld [vmem:[#allocation2 + $0xe8] sm:$0xff]   ;;  %v13274_v32 = vpop.permute.xlu0 %5871  ;;  %v7487_v18 = vshll.u32 %v10471_v52, 16 }
 0x20f   : > { %3050 = vst.msk [vmem:[#allocation2 + $0x100] sm:$0xf] %vm16759_vm11, %v2866_v57  ;;  %5051 = vrot.lane.b32.xlu0 %v4974_v4, %s10853_s24  ;;  %16762 = vst [vmem:[#allocation45_spill] sm:$0xff] %v13270_v10  ;;  %v13279_v24 = vld [vmem:[#allocation2 + $0xd0] sm:$0xff]   ;;  %v10480_v38 = vld [vmem:[#allocation2 + $0x38] sm:$0xff]   ;;  %v5508_v45 = vsel %vm16737_vm8, %v12975_v34, %v13177_v58  ;;  %v5672_v11 = vshrl.u32 %v10476_v50, 16 }
 0x210   : > { %16763 = vst [vmem:[#allocation46_spill] sm:$0xff] %v13274_v32  ;;  %v2845_v60 = vor.u32 %v2844_v5, %v2841_v44  ;;  %7656 = vrot.lane.b32.xlu1 %v7320_v49, %s10857_s17  ;;  %16764 = vst [vmem:[#allocation47_spill] sm:$0xff] %v13279_v24  ;;  %v7486_v30 = vrot.slane %v7484_v0, 2  ;;  %v5675_v32 = vshll.u32 %v10476_v50, 16  ;;  %v13286_v44 = vpop.f32.mrb[35].mxu0  ;;  %v16765_v52 = vrot.slane %v13228_v37, 2 }
 0x211   : > { %v16766_v4 = vrot.slane %v13230_v41, 2  ;;  %vm16767_vm7 = vcmask 1045504   ;;  %v7489_v20 = vrot.slane %v7487_v18, 3  ;;  %vm16768_vm0 = vmmov %vm16758_vm10  ;;  %v5674_v34 = vrot.slane %v5672_v11, 1 }
 0x212   : > { %v2846_v5 = vsel %vm11792_vm1, %v2837_v27, %v2845_v60  ;;  %v2847_v49 = vrot.slane %v2845_v60, 4  ;;  %v5677_v58 = vrot.slane %v5675_v32, 2  ;;  %v16268_v50 = vrot.slane %v13268_v25, 3  ;;  %v10482_v27 = vld [vmem:[#allocation2 + $0x38] sm:$0xff]   ;;  %vm16769_vm6 = vmmov %vm16768_vm0 }
 0x213   : > { %v6282_v57 = vsel %vm16767_vm7, %v16766_v4, %v16765_v52  ;;  %3048 = vst.msk [vmem:[#allocation2 + $0xf8] sm:$0xf] %vm16768_vm0, %v2846_v5  ;;  %v16269_v0 = vrot.slane %v13270_v10, 3  ;;  %v13302_v37 = vor.u32 %v7489_v20, %v7486_v30  ;;  %v7331_v4 = vshrl.u32 %v10479_v59, 16  ;;  %v10483_v52 = vld [vmem:[#allocation2 + $0xd0] sm:$0xff]   ;;  %vm16774_vm13 = vmmov %vm16760_vm2 }
 0x214   : > { %6359 = vrot.lane.b32.xlu0 %v6282_v57, %s10856_s10  ;;  %v2856_v60 = vsel %vm11792_vm1, %v2847_v49, %v2855_v16  ;;  %5837 = vrot.lane.b32.xlu1 %v5508_v45, %s10858_s18  ;;  %v7334_v18 = vshll.u32 %v10479_v59, 16  ;;  %vm16770_vm4 = vcmask 1044480   ;;  %v7340_v57 = vshrl.u32 %v10480_v38, 16  ;;  %v4015_v16 = vpop.permute.xlu1 %4014  ;;  %v13311_v49 = vpop.permute.xlu0 %6862  ;;  %vm16779_vm10 = vmmov %vm16737_vm8 }
 0x215   : > { %3049 = vst.msk [vmem:[#allocation2 + $0xfc] sm:$0xf] %vm16769_vm6, %v2856_v60  ;;  %v8143_v32 = vsel %vm16770_vm4, %v16268_v50, %v16269_v0  ;;  %v7343_v5 = vshll.u32 %v10480_v38, 16  ;;  %v16771_v20 = vrot.slane %v13248_v21, 1  ;;  %v16772_v30 = vrot.slane %v13239_v12, 1  ;;  %vm16782_vm8 = vmmov %vm16774_vm13 }
 0x216   : > { %v7491_v59 = vsel %vm16774_vm13, %v13130_v43, %v13302_v37  ;;  %v4500_v60 = vrot.slane %v13281_v36, 1  ;;  %v13322_v11 = vor.u32 %v5677_v58, %v5674_v34  ;;  %vm16776_vm12 = vcmask 130048   ;;  %vm16788_vm4 = vmmov %vm16779_vm10 }
 0x217   : > { %v4463_v45 = vsel %vm16773_vm9, %v16772_v30, %v16771_v20  ;;  %8233 = vst.msk [vmem:[#allocation3 + $0x1a8] sm:$0xff] %vm16776_vm12, %v8143_v32  ;;  %v7333_v38 = vrot.slane %v7331_v4, 2  ;;  %v7336_v50 = vrot.slane %v7334_v18, 3  ;;  %v7342_v0 = vrot.slane %v7340_v57, 2  ;;  %v13334_v18 = vld [vmem:[#allocation2 + $0xd8] sm:$0xff]   ;;  %vm16781_vm2 = vmmov %vm16776_vm12 }
 0x218   : > { %16775 = vst [vmem:[#allocation48_spill] sm:$0xff] %v13322_v11  ;;  %4540 = vrot.lane.b32.xlu0 %v4463_v45, %s10852_s23  ;;  %v7345_v25 = vrot.slane %v7343_v5, 3  ;;  %7694 = vrot.lane.b32.xlu1 %v7491_v59, %s10857_s17  ;;  %v5519_v10 = vshrl.u32 %v10481_v29, 16  ;;  %v5522_v20 = vshll.u32 %v10481_v29, 16  ;;  %v5528_v30 = vshrl.u32 %v10482_v27, 16  ;;  %v4017_v57 = vpop.permute.xlu0 %4016  ;;  %vm16787_vm6 = vmmov %vm16781_vm2 }
 0x219   : > { %v5531_v21 = vshll.u32 %v10482_v27, 16  ;;  %v3904_v46 = vshll.u32 %v10483_v52, 16  ;;  %v16777_v43 = vrot.slane %v13279_v24, 1  ;;  %v5679_v29 = vsel %vm16779_vm10, %v13154_v7, %v13322_v11  ;;  %v4053_v27 = vpop.permute.xlu1 %4052  ;;  %v13991_v24 = vld [vmem:[#allocation2 + $0x70] sm:$0xff]  }
 0x21a   : > { %v13332_v58 = vor.u32 %v7345_v25, %v7342_v0  ;;  %v5530_v32 = vrot.slane %v5528_v30, 1  ;;  %v13341_v5 = vor.u32 %v7336_v50, %v7333_v38  ;;  %v5521_v45 = vrot.slane %v5519_v10, 1  ;;  %v16784_v10 = vld [vmem:[#allocation28_spill] sm:$0xff] }
 0x21b   : > { %v4501_v34 = vsel %vm16778_vm14, %v16777_v43, %v4500_v60  ;;  %v5533_v4 = vrot.slane %v5531_v21, 2  ;;  %v5524_v59 = vrot.slane %v5522_v20, 2  ;;  %v13343_v0 = vrot.slane %v3904_v46, 1  ;;  %v13379_v20 = vld [vmem:[#allocation2 + $0xe0] sm:$0xff]  }
 0x21c   : > { %4578 = vrot.lane.b32.xlu0 %v4501_v34, %s10852_s23  ;;  %5875 = vrot.lane.b32.xlu1 %v5679_v29, %s10858_s18  ;;  %v3908_v21 = vshrl.u32 %v10483_v52, 16  ;;  %vm4129_vm11 = vcmask 261248   ;;  %v7347_v30 = vsel %vm16782_vm8, %v13341_v5, %v13332_v58  ;;  %v3912_v43 = vshll.u32 %v13334_v18, 16 }
 0x21d   : > { %16780 = vst [vmem:[#allocation49_spill] sm:$0xff] %v13343_v0  ;;  %v13349_v7 = vor.u32 %v5533_v4, %v5530_v32  ;;  %vm4643_vm7 = vcmask 392448   ;;  %4130 = vst.msk [vmem:[#allocation3] sm:$0xff] %vm4129_vm11, %v13126_v2  ;;  %v16783_v46 = vrot.slane %v12922_v40, 2  ;;  %v16785_v50 = vrot.slane %v16784_v10, 2  ;;  %v10557_v2 = vld [vmem:[#allocation2 + $0xd0] sm:$0xff]  }
 0x21e   : > { %v8299_v25 = vld [vmem:[#allocation3 + $0x1a8] sm:$0xff]  ;;  %4131 = vst.msk [vmem:[#allocation3 + $0x10] sm:$0xff] %vm4129_vm11, %v4015_v16  ;;  %4150 = vst.msk [vmem:[#allocation3 + $0x140] sm:$0xff] %vm4129_vm11, %v4053_v27  ;;  %vm16786_vm0 = vcmask 1045504   ;;  %v13370_v16 = vor.u32 %v5524_v59, %v5521_v45  ;;  %v3910_v38 = vor.u32 %v3908_v21, %v13343_v0  ;;  %v13390_v4 = vld [vmem:[#allocation2 + $0xe0] sm:$0xff]   ;;  %v5013_v27 = vrot.slane %v13379_v20, 1 }
 0x21f   : > { %9890 = vmatprep.mubr.msk.bf16.mxu1 %vm16781_vm2, %v8299_v25  ;;  %4132 = vst.msk [vmem:[#allocation3 + $0x20] sm:$0xff] %vm4129_vm11, %v4017_v57  ;;  %v6787_v52 = vsel %vm16786_vm0, %v16785_v50, %v16783_v46  ;;  %v13388_v32 = vld [vmem:[#allocation2 + $0xd8] sm:$0xff]   ;;  %vm16792_vm13 = vsmask.f32 7424  ;;  %v13395_v57 = vld [vmem:[#allocation2 + $0xe0] sm:$0xff]   ;;  %vm5156_vm12 = vcmask 523648   ;;  %vm16795_vm10 = vmmov %vm16786_vm0 }
 0x220   : > { %7662 = vrot.lane.b32.xlu0 %v7347_v30, %s10857_s17  ;;  %4644 = vst.msk [vmem:[#allocation3] sm:$0xff] %vm4643_vm7, %v13099_v63  ;;  %4645 = vst.msk [vmem:[#allocation3 + $0x10] sm:$0xff] %vm4643_vm7, %v13208_v17  ;;  %6864 = vrot.lane.b32.xlu1 %v6787_v52, %s10855_s26  ;;  %v5535_v40 = vsel %vm16788_vm4, %v13370_v16, %v13349_v7  ;;  %v13377_v63 = vrot.slane %v3912_v43, 1  ;;  %v16789_v17 = vrot.slane %v13006_v26, 1  ;;  %vm5950_vm14 = vcmask 654848   ;;  %v5834_v26 = vpop.permute.xlu1 %5833  ;;  %v13403_v25 = vld [vmem:[#allocation2 + $0xd8] sm:$0xff]  }
 0x221   : > { %4664 = vst.msk [vmem:[#allocation3 + $0x140] sm:$0xff] %vm4643_vm7, %v13272_v22  ;;  %v16790_v22 = vrot.slane %v12653_v51, 1  ;;  %16791 = vst [vmem:[#allocation28_spill] sm:$0xff] %v13388_v32  ;;  %v16793_v51 = vrot.slane %v13029_v28, 2  ;;  %v16794_v45 = vrot.slane %v12741_v9, 2  ;;  %v10780_v21 = vld [vmem:[#allocation2 + $0x28] sm:$0xff]  }
 0x222   : > { %3405 = vst.msk [vmem:[#allocation3 + $0x1a0] sm:$0xff] %vm16787_vm6, %v10557_v2  ;;  %v3915_v29 = vsel %vm16792_vm13, %v3910_v38, %v13377_v63  ;;  %16796 = vst [vmem:[#allocation50_spill] sm:$0xff] %v13403_v25  ;;  %v3740_v30 = vshrl.u32 %v10780_v21, 16  ;;  %v16275_v43 = vrot.slane %v13388_v32, 1  ;;  %v13413_v28 = vld [vmem:[%s16111_s2] ss:$0 sm:$0xff] }
 0x223   : > { %v4968_v34 = vsel %vm16773_vm9, %v16790_v22, %v16789_v17  ;;  %v6276_v59 = vsel %vm16795_vm10, %v16794_v45, %v16793_v51  ;;  %5157 = vst.msk [vmem:[#allocation3] sm:$0xff] %vm5156_vm12, %v13124_v62  ;;  %v2411_v9 = vadd.f32 %v13413_v28, %v12859_v19  ;;  %v3756_v46 = vshrl.u32 %v13156_v8, 16  ;;  %v10491_v50 = vld [vmem:[#allocation2 + $0xe0] sm:$0xff]   ;;  %vm16797_vm2 = vmmov %vm16773_vm9  ;;  %v16801_v51 = vld [vmem:[#allocation30_spill] sm:$0xff] }
 0x224   : > { %5843 = vrot.lane.b32.xlu0 %v5535_v40, %s10858_s18  ;;  %5045 = vrot.lane.b32.xlu1 %v4968_v34, %s10853_s24  ;;  %5951 = vst.msk [vmem:[#allocation3] sm:$0xff] %vm5950_vm14, %v5834_v26  ;;  %v16286_v10 = vrot.slane %v13390_v4, 2  ;;  %v2403_v62 = vadd.f32 %v13413_v28, %v12872_v54  ;;  %v2414_v52 = vadd.f32 %v13413_v28, %v12879_v33  ;;  %v16276_v40 = vrot.slane %v13395_v57, 1  ;;  %vm16800_vm8 = vmmov %vm16797_vm2 }
 0x225   : > { %v5014_v2 = vsel %vm16797_vm2, %v16275_v43, %v5013_v27  ;;  %v2475_v19 = vmax.f32 %v2411_v9, 0.0  ;;  %v13430_v8 = vor.u32 %v3756_v46, %v13215_v47  ;;  %v16798_v38 = vrot.slane %v13085_v6, 1  ;;  %v16805_v9 = vld [vmem:[#allocation33_spill] sm:$0xff]  ;;  %vm16807_vm9 = vmmov %vm16795_vm10 }
 0x226   : > { %v16799_v54 = vrot.slane %v12800_v55, 1  ;;  %v3742_v17 = vor.u32 %v3740_v30, %v13008_v23  ;;  %v2473_v22 = vmax.f32 %v2403_v62, 0.0  ;;  %v2476_v34 = vmax.f32 %v2414_v52, 0.0  ;;  %v16803_v55 = vld [vmem:[#allocation32_spill] sm:$0xff]  ;;  %vm16808_vm13 = vmmov %vm16797_vm2  ;;  %v13462_v52 = vld [vmem:[#allocation2 + $0x50] sm:$0xff]  }
 0x227   : > { %v16274_v26 = vrot.slane %v13403_v25, 2  ;;  %v3916_v47 = vshrl.u32 %v13334_v18, 16  ;;  %vm16802_vm0 = vnez %v16801_v51  ;;  %v3920_v6 = vshll.u32 %v10491_v50, 16  ;;  %v10568_v50 = vld [vmem:[#allocation2 + $0xd8] sm:$0xff]  }
 0x228   : > { %4064 = vrot.lane.b32.xlu0 %v3915_v29, %s10854_s25  ;;  %6353 = vrot.lane.b32.xlu1 %v6276_v59, %s10856_s10  ;;  %v4457_v33 = vsel %vm16800_vm8, %v16799_v54, %v16798_v38  ;;  %v2867_v29 = vrot.slane %v13245_v3, 4  ;;  %v2511_v45 = vsel %vm16802_vm0, %v2475_v19, 0.0  ;;  %vm16804_vm6 = vnez %v16803_v55  ;;  %v16810_v54 = vld [vmem:[#allocation35_spill] sm:$0xff] }
 0x229   : > { %v9979_v59 = vpack.c.bf16 %v2511_v45, %v2511_v45  ;;  %v2509_v21 = vsel %vm16804_vm6, %v2473_v22, 0.0  ;;  %vm16806_vm4 = vnez %v16805_v9  ;;  %v6322_v3 = vsel %vm16807_vm9, %v16274_v26, %v16286_v10  ;;  %v13469_v45 = vld [vmem:[#allocation2 + $0x48] sm:$0xff]   ;;  %v10582_v26 = vld [vmem:[#allocation2 + $0x38] sm:$0xff]  }
 0x22a   : > { %v2512_v23 = vsel %vm16806_vm4, %v2476_v34, 0.0  ;;  %v4503_v18 = vsel %vm16808_vm13, %v4500_v60, %v16276_v40  ;;  %v9977_v30 = vpack.c.bf16 %v2509_v21, %v2509_v21  ;;  %vm16809_vm10 = vsmask.f32 7424 }
 0x22b   : > { %v9980_v46 = vpack.c.bf16 %v2512_v23, %v2512_v23  ;;  %v3747_v62 = vsel %vm16809_vm10, %v3742_v17, %v13202_v42  ;;  %v2889_v19 = vshrl.u32 %v9979_v59, 16  ;;  %v2892_v38 = vshll.u32 %v9979_v59, 16  ;;  %vm16816_vm6 = vmmov %vm16809_vm10 }
 0x22c   : > { %5091 = vrot.lane.b32.xlu0 %v5014_v2, %s10853_s24  ;;  %4534 = vrot.lane.b32.xlu1 %v4457_v33, %s10852_s23  ;;  %v10495_v2 = vld [vmem:[#allocation2 + $0x40] sm:$0xff]   ;;  %v2406_v33 = vadd.f32 %v13413_v28, %v16810_v54  ;;  %v2869_v36 = vshrl.u32 %v9977_v30, 16  ;;  %v2872_v60 = vshll.u32 %v9977_v30, 16  ;;  %vm16811_vm2 = vcmask 130048   ;;  %v13475_v30 = vld [vmem:[#allocation2 + $0x48] sm:$0xff]  }
 0x22d   : > { %v2899_v22 = vshrl.u32 %v9980_v46, 16  ;;  %v2902_v34 = vshll.u32 %v9980_v46, 16  ;;  %3406 = vst.msk [vmem:[#allocation3 + $0x1b0] sm:$0xff] %vm16811_vm2, %v10568_v50  ;;  %v3918_v51 = vor.u32 %v3916_v47, %v13377_v63  ;;  %v2891_v42 = vrot.slane %v2889_v19, 6  ;;  %v16813_v50 = vld [vmem:[#allocation22_spill] sm:$0xff]  ;;  %v13482_v19 = vpop.permute.xlu1 %6898  ;;  %vm16819_vm13 = vmmov %vm16811_vm2 }
 0x22e   : > { %v2894_v17 = vrot.slane %v2892_v38, 7  ;;  %v2474_v55 = vmax.f32 %v2406_v33, 0.0  ;;  %v2871_v21 = vrot.slane %v2869_v36, 6  ;;  %v2874_v59 = vrot.slane %v2872_v60, 7  ;;  %16815 = vst [vmem:[#allocation30_spill] sm:$0xff] %v13482_v19 }
 0x22f   : > { %v2901_v9 = vrot.slane %v2899_v22, 6  ;;  %v2904_v23 = vrot.slane %v2902_v34, 7  ;;  %vm16812_vm8 = vsmask.f32 5376  ;;  %vm16814_vm0 = vnez %v16813_v50 }
 0x230   : > { %6399 = vrot.lane.b32.xlu0 %v6322_v3, %s10856_s10  ;;  %4022 = vrot.lane.b32.xlu1 %v3747_v62, %s10854_s25  ;;  %v7338_v3 = vsel %vm16812_vm8, %v13148_v48, %v13341_v5  ;;  %v2895_v46 = vor.u32 %v2894_v17, %v2891_v42  ;;  %v2510_v63 = vsel %vm16814_vm0, %v2474_v55, 0.0  ;;  %v13480_v47 = vrot.slane %v3920_v6, 1  ;;  %v10573_v5 = vld [vmem:[#allocation2 + $0x40] sm:$0xff]  }
 0x231   : > { %v3760_v62 = vshll.u32 %v10495_v2, 16  ;;  %v2875_v38 = vor.u32 %v2874_v59, %v2871_v21  ;;  %v9978_v54 = vpack.c.bf16 %v2510_v63, %v2510_v63  ;;  %v3764_v33 = vshrl.u32 %v10495_v2, 16  ;;  %3387 = vst.msk [vmem:[#allocation3 + $0x80] sm:$0xff] %vm16819_vm13, %v10573_v5  ;;  %v5080_v50 = vpop.permute.xlu1 %5079  ;;  %v13532_v5 = vld [vmem:[#allocation2 + $0x50] sm:$0xff]  }
 0x232   : > { %v2897_v36 = vrot.slane %v2895_v46, 4  ;;  %v13485_v48 = vor.u32 %v2904_v23, %v2901_v9  ;;  %v3923_v60 = vsel %vm16816_vm6, %v3918_v51, %v13480_v47  ;;  %v3768_v22 = vshll.u32 %v13469_v45, 16  ;;  %5177 = vst.msk [vmem:[#allocation3 + $0x140] sm:$0xff] %vm5156_vm12, %v5080_v50  ;;  %v13557_v50 = vld [vmem:[#allocation2 + $0x48] sm:$0xff]  }
 0x233   : > { %v2876_v6 = vsel %vm11792_vm1, %v2867_v29, %v2875_v38  ;;  %v2879_v34 = vshrl.u32 %v9978_v54, 16  ;;  %vm16817_vm4 = vsmask.f32 6400  ;;  %vm16818_vm9 = vcmask 125952  }
 0x234   : > { %4580 = vrot.lane.b32.xlu0 %v4503_v18, %s10852_s23  ;;  %7660 = vrot.lane.b32.xlu1 %v7338_v3, %s10857_s17  ;;  %v16280_v18 = vrot.slane %v13462_v52, 2  ;;  %v5526_v42 = vsel %vm16817_vm4, %v13179_v14, %v13370_v16  ;;  %3051 = vst.msk [vmem:[#allocation2 + $0x104] sm:$0xf] %vm16818_vm9, %v2876_v6  ;;  %v2906_v2 = vsel %vm11792_vm1, %v2897_v36, %v13485_v48  ;;  %v2882_v17 = vshll.u32 %v9978_v54, 16  ;;  %vm16820_vm10 = vmmov %vm16818_vm9  ;;  %v13506_v14 = vpop.permute.xlu0 %5043  ;;  %v13516_v3 = vld [vmem:[#allocation2 + $0x50] sm:$0xff]   ;;  %v13530_v36 = vld [vmem:[#allocation2 + $0x48] sm:$0xff]  }
 0x235   : > { %v16288_v29 = vrot.slane %v13475_v30, 2  ;;  %v13503_v51 = vrot.slane %v3760_v62, 1  ;;  %v2877_v55 = vrot.slane %v2875_v38, 4  ;;  %3054 = vst.msk [vmem:[#allocation2 + $0x110] sm:$0xf] %vm16820_vm10, %v2906_v2  ;;  %v2881_v21 = vrot.slane %v2879_v34, 6  ;;  %vm16825_vm4 = vmmov %vm16818_vm9 }
 0x236   : > { %v2884_v16 = vrot.slane %v2882_v17, 7  ;;  %vm6464_vm2 = vcmask 786048   ;;  %vm16821_vm8 = vcmask 1045504   ;;  %v13514_v23 = vrot.slane %v3768_v22, 1  ;;  %v10510_v22 = vld [vmem:[#allocation2 + $0xe0] sm:$0xff]   ;;  %v13546_v17 = vld [vmem:[#allocation2 + $0x48] sm:$0xff]   ;;  %vm16829_vm13 = vmmov %vm16825_vm4 }
 0x237   : > { %v6797_v59 = vsel %vm16821_vm8, %v16288_v29, %v16280_v18  ;;  %v3766_v9 = vor.u32 %v3764_v33, %v13503_v51  ;;  %6465 = vst.msk [vmem:[#allocation3] sm:$0xff] %vm6464_vm2, %v13160_v13  ;;  %v16822_v63 = vrot.slane %v13132_v39, 2  ;;  %v16823_v62 = vrot.slane %v12926_v61, 2  ;;  %vm16824_vm0 = vmmov %vm16821_vm8  ;;  %v13527_v33 = vld [vmem:[#allocation2 + $0x20] sm:$0xff]  }
 0x238   : > { %4066 = vrot.lane.b32.xlu0 %v3923_v60, %s10854_s25  ;;  %5841 = vrot.lane.b32.xlu1 %v5526_v42, %s10858_s18  ;;  %v2885_v54 = vor.u32 %v2884_v16, %v2881_v21  ;;  %v16278_v39 = vrot.slane %v13516_v3, 1  ;;  %v10511_v6 = vld [vmem:[#allocation2 + $0x40] sm:$0xff]   ;;  %v16826_v34 = vrot.slane %v13219_v31, 1  ;;  %v16827_v42 = vrot.slane %v13010_v35, 1 }
 0x239   : > { %v6791_v38 = vsel %vm16824_vm0, %v16823_v62, %v16822_v63  ;;  %v3771_v61 = vsel %vm16816_vm6, %v3766_v9, %v13514_v23  ;;  %vm16828_vm9 = vcmask 1046528   ;;  %v16287_v16 = vrot.slane %v13527_v33, 3  ;;  %v10509_v9 = vld [vmem:[#allocation2 + $0xd8] sm:$0xff]   ;;  %v10515_v31 = vld [vmem:[#allocation2 + $0x40] sm:$0xff]   ;;  %v13559_v63 = vld [vmem:[#allocation2 + $0x50] sm:$0xff]  }
 0x23a   : > { %v2886_v13 = vsel %vm11792_vm1, %v2877_v55, %v2885_v54  ;;  %v2887_v60 = vrot.slane %v2885_v54, 4  ;;  %v4972_v2 = vsel %vm16828_vm9, %v16827_v42, %v16826_v34  ;;  %v13548_v55 = vpop.permute.xlu0 %6351  ;;  %v16277_v35 = vrot.slane %v13532_v5, 2  ;;  %v16830_v62 = vld [vmem:[#allocation14_spill] sm:$0xff]  ;;  %vm16833_vm8 = vmmov %vm16828_vm9  ;;  %v10526_v18 = vld [vmem:[#allocation2 + $0xe0] sm:$0xff]  }
 0x23b   : > { %3052 = vst.msk [vmem:[#allocation2 + $0x108] sm:$0xf] %vm16825_vm4, %v2886_v13  ;;  %vm16832_vm10 = vcmask 1044480   ;;  %v5717_v13 = vshrl.u32 %v10510_v22, 16  ;;  %vm16834_vm0 = vcmask 130048   ;;  %v16835_v34 = vrot.slane %v13230_v41, 2  ;;  %vm16841_vm9 = vmmov %vm16833_vm8 }
 0x23c   : > { %6874 = vrot.lane.b32.xlu0 %v6797_v59, %s10855_s26  ;;  %6868 = vrot.lane.b32.xlu1 %v6791_v38, %s10855_s26  ;;  %v2896_v21 = vsel %vm11792_vm1, %v2887_v60, %v2895_v46  ;;  %v16285_v59 = vrot.slane %v13530_v36, 1  ;;  %v16831_v46 = vrot.slane %v16830_v62, 3  ;;  %v5720_v60 = vshll.u32 %v10510_v22, 16 }
 0x23d   : > { %3053 = vst.msk [vmem:[#allocation2 + $0x10c] sm:$0xf] %vm16829_vm13, %v2896_v21  ;;  %v16836_v42 = vrot.slane %v13039_v56, 2  ;;  %vm16837_vm6 = vcmask 1045504   ;;  %v16282_v21 = vrot.slane %v13546_v17, 2  ;;  %v7349_v62 = vshrl.u32 %v10511_v6, 16  ;;  %vm16842_vm13 = vmmov %vm16834_vm0 }
 0x23e   : > { %v8093_v38 = vsel %vm16832_vm10, %v16831_v46, %v16287_v16  ;;  %v4978_v54 = vsel %vm16833_vm8, %v16285_v59, %v16278_v39  ;;  %v7352_v46 = vshll.u32 %v10511_v6, 16  ;;  %v5708_v22 = vshrl.u32 %v10509_v9, 16  ;;  %vm16838_vm4 = vmmov %vm16837_vm6  ;;  %3386 = vst.msk [vmem:[#allocation3 + $0x70] sm:$0xff] %vm16842_vm13, %v10582_v26 }
 0x23f   : > { %8208 = vst.msk [vmem:[#allocation3 + $0x18] sm:$0xff] %vm16834_vm0, %v8093_v38  ;;  %v5711_v43 = vshll.u32 %v10509_v9, 16  ;;  %v6286_v38 = vsel %vm16838_vm4, %v16282_v21, %v16277_v35  ;;  %v16839_v41 = vrot.slane %v13239_v12, 1  ;;  %v16840_v56 = vrot.slane %v13090_v15, 1  ;;  %vm16843_vm10 = vmmov %vm16833_vm8 }
 0x240   : > { %4028 = vrot.lane.b32.xlu0 %v3771_v61, %s10854_s25  ;;  %5049 = vrot.lane.b32.xlu1 %v4972_v2, %s10853_s24  ;;  %v13571_v61 = vpop.permute.xlu1 %6387  ;;  %v6280_v2 = vsel %vm16837_vm6, %v16836_v42, %v16835_v34  ;;  %v13592_v34 = vpop.permute.xlu0 %4532  ;;  %v16279_v6 = vrot.slane %v13559_v63, 1  ;;  %v5719_v42 = vrot.slane %v5717_v13, 1  ;;  %v5722_v9 = vrot.slane %v5720_v60, 2  ;;  %v13608_v60 = vld [vmem:[#allocation2 + $0xe0] sm:$0xff]  }
 0x241   : > { %v16281_v40 = vrot.slane %v13557_v50, 1  ;;  %v7351_v35 = vrot.slane %v7349_v62, 2  ;;  %v7354_v39 = vrot.slane %v7352_v46, 3  ;;  %v5540_v12 = vshll.u32 %v10515_v31, 16  ;;  %16844 = vst [vmem:[#allocation32_spill] sm:$0xff] %v13608_v60 }
 0x242   : > { %v5710_v15 = vrot.slane %v5708_v22, 1  ;;  %v13606_v13 = vor.u32 %v5722_v9, %v5719_v42  ;;  %vm6977_vm8 = vcmask 917248   ;;  %vm16845_vm0 = vsmask.f32 7424  ;;  %v10521_v9 = vld [vmem:[#allocation2 + $0x48] sm:$0xff]  }
 0x243   : > { %v4467_v26 = vsel %vm16843_vm10, %v16281_v40, %v16279_v6  ;;  %v5542_v46 = vrot.slane %v5540_v12, 2  ;;  %vm7771_vm6 = vcmask 1048448   ;;  %v13621_v6 = vld [vmem:[#allocation2 + $0xe8] sm:$0xff]   ;;  %vm16847_vm4 = vsmask.f32 6400 }
 0x244   : > { %5055 = vrot.lane.b32.xlu0 %v4978_v54, %s10853_s24  ;;  %6357 = vrot.lane.b32.xlu1 %v6280_v2, %s10856_s10  ;;  %v4461_v54 = vsel %vm16841_vm9, %v16840_v56, %v16839_v41  ;;  %v5537_v2 = vshrl.u32 %v10515_v31, 16  ;;  %v5713_v41 = vrot.slane %v5711_v43, 2  ;;  %v13599_v56 = vpop.permute.xlu1 %4568  ;;  %v3763_v43 = vsel %vm16845_vm0, %v13430_v8, %v13503_v51  ;;  %vm16853_vm0 = vmmov %vm16847_vm4 }
 0x245   : > { %v13616_v31 = vor.u32 %v7354_v39, %v7351_v35  ;;  %v7655_v22 = vpop.permute.xlu0 %7654  ;;  %v16283_v8 = vrot.slane %v13608_v60, 2  ;;  %vm16848_vm9 = vsmask.f32 5376  ;;  %vm16851_vm13 = vcmask 1045504  }
 0x246   : > { %v5539_v62 = vrot.slane %v5537_v2, 1  ;;  %vm16852_vm10 = vcmask 130048   ;;  %v7529_v29 = vshrl.u32 %v10526_v18, 16 }
 0x247   : > { %v7356_v39 = vsel %vm16848_vm9, %v13332_v58, %v13616_v31  ;;  %vm16857_vm9 = vmmov %vm16851_vm13 }
 0x248   : > { %6363 = vrot.lane.b32.xlu0 %v6286_v38, %s10856_s10  ;;  %4538 = vrot.lane.b32.xlu1 %v4461_v54, %s10852_s23  ;;  %v13610_v38 = vld [vmem:[#allocation2 + $0xe8] sm:$0xff]   ;;  %v13619_v54 = vor.u32 %v5713_v41, %v5710_v15  ;;  %v6861_v42 = vpop.permute.xlu1 %6860  ;;  %v13634_v35 = vor.u32 %v5542_v46, %v5539_v62  ;;  %v16289_v62 = vrot.slane %v13621_v6, 1 }
 0x249   : > { %6978 = vst.msk [vmem:[#allocation3] sm:$0xff] %vm6977_vm8, %v6861_v42  ;;  %v16284_v51 = vrot.slane %v13610_v38, 2  ;;  %v13636_v15 = vld [vmem:[#allocation2 + $0xe8] sm:$0xff]  }
 0x24a   : > { %16846 = vst [vmem:[#allocation33_spill] sm:$0xff] %v13619_v54  ;;  %v5724_v2 = vsel %vm16847_vm4, %v13619_v54, %v13606_v13  ;;  %7772 = vst.msk [vmem:[#allocation3] sm:$0xff] %vm7771_vm6, %v7655_v22  ;;  %v10597_v42 = vld [vmem:[#allocation2 + $0x48] sm:$0xff]   ;;  %vm16854_vm4 = vcmask 1046528  }
 0x24b   : > { %v5836_v12 = vpop.permute.xlu0 %5835  ;;  %16849 = vst [vmem:[#allocation35_spill] sm:$0xff] %v13636_v15  ;;  %v10524_v22 = vld [vmem:[#allocation2 + $0x48] sm:$0xff]   ;;  %v6835_v58 = vsel %vm16851_vm13, %v16283_v8, %v16284_v51  ;;  %3388 = vst.msk [vmem:[#allocation3 + $0x90] sm:$0xff] %vm16852_vm10, %v10597_v42 }
 0x24c   : > { %4544 = vrot.lane.b32.xlu0 %v4467_v26, %s10852_s23  ;;  %4026 = vrot.lane.b32.xlu1 %v3763_v43, %s10854_s25  ;;  %v5042_v41 = vpop.permute.xlu1 %5041  ;;  %v7358_v26 = vshrl.u32 %v10521_v9, 16  ;;  %v7361_v43 = vshll.u32 %v10521_v9, 16  ;;  %v10527_v46 = vld [vmem:[#allocation2 + $0xe8] sm:$0xff]   ;;  %v5544_v9 = vsel %vm16853_vm0, %v13349_v7, %v13634_v35  ;;  %v5546_v42 = vshrl.u32 %v10524_v22, 16  ;;  %vm16858_vm13 = vmmov %vm16852_vm10 }
 0x24d   : > { %5158 = vst.msk [vmem:[#allocation3 + $0x10] sm:$0xff] %vm5156_vm12, %v5042_v41  ;;  %v5016_v7 = vsel %vm16854_vm4, %v5013_v27, %v16289_v62  ;;  %v7541_v27 = vshll.u32 %v10527_v46, 16  ;;  %vm16860_vm10 = vcmask 1044480   ;;  %vm16863_vm0 = vmmov %vm16857_vm9  ;;  %v16867_v62 = vld [vmem:[#allocation20_spill] sm:$0xff] }
 0x24e   : > { %5952 = vst.msk [vmem:[#allocation3 + $0x10] sm:$0xff] %vm5950_vm14, %v5836_v12  ;;  %v7360_v12 = vrot.slane %v7358_v26, 2  ;;  %v7363_v59 = vrot.slane %v7361_v43, 3  ;;  %v7532_v26 = vshll.u32 %v10526_v18, 16  ;;  %v7538_v43 = vshrl.u32 %v10527_v46, 16  ;;  %vm16864_vm4 = vmmov %vm16858_vm13 }
 0x24f   : > { %v13656_v21 = vpop.permute.xlu0 %6866  ;;  %v1360_v18 = vadd.f32 %v13413_v28, %v13286_v44  ;;  %v16862_v46 = vrot.slane %v13390_v4, 2  ;;  %v5548_v28 = vrot.slane %v5546_v42, 1  ;;  %v16866_v4 = vrot.slane %v13530_v36, 1 }
 0x250   : > { %5885 = vrot.lane.b32.xlu0 %v5724_v2, %s10858_s18  ;;  %7664 = vrot.lane.b32.xlu1 %v7356_v39, %s10857_s17  ;;  %v16850_v2 = vld [vmem:[#allocation8_spill] sm:$0xff] }
 0x251   : > { %v367_v40 = vadd.s32 264, %v16850_v2  ;;  %v13648_v39 = vld [vmem:[#allocation2 + $0x28] sm:$0xff]   ;;  %v6350_v10 = vpop.permute.xlu1 %6349  ;;  %v1404_v2 = vmax.f32 %v1360_v18, 0.0  ;;  %v16871_v18 = vrot.slane %v13546_v17, 2 }
 0x252   : > { %6466 = vst.msk [vmem:[#allocation3 + $0x10] sm:$0xff] %vm6464_vm2, %v6350_v10  ;;  %v8246_v16 = vld [vmem:[#allocation3] sm:$0xff]  ;;  %v16855_v10 = vrot.slane %v13475_v30, 2 }
 0x253   : > { %v13658_v8 = vmul.u32.u64.low 3817748708, %v367_v40  ;;  %v13659_v51 = vmul.u32.u64.high 3817748708, %v367_v40, %v13658_v8  ;;  %6979 = vst.msk [vmem:[#allocation3 + $0x10] sm:$0xff] %vm6977_vm8, %v13311_v49  ;;  %8553 = vmatmul.mubr.bf16.vlgmr.msra.gmra.mrb[36].mxu0 %v8246_v16  ;;  %v4021_v20 = vpop.permute.xlu0 %4020  ;;  %v10605_v16 = vld [vmem:[#allocation2 + $0x50] sm:$0xff]  }
 0x254   : > { %6912 = vrot.lane.b32.xlu0 %v6835_v58, %s10855_s26  ;;  %5845 = vrot.lane.b32.xlu1 %v5544_v9, %s10858_s18  ;;  %v5549_v58 = vshll.u32 %v10524_v22, 16  ;;  %v8249_v8 = vld [vmem:[#allocation3 + $0x18] sm:$0xff]  ;;  %v8094_v9 = vrot.slane %v13648_v39, 3  ;;  %v16856_v22 = vrot.slane %v13134_v53, 2  ;;  %v13682_v39 = vor.u32 %v7363_v59, %v7360_v12  ;;  %4134 = vst.msk [vmem:[#allocation3 + $0x40] sm:$0xff] %vm4129_vm11, %v4021_v20  ;;  %v13685_v30 = vld [vmem:[#allocation2 + $0x50] sm:$0xff]  }
 0x255   : > { %9865 = vmatprep.mubr.msk.bf16.mxu0 %vm16858_vm13, %v8249_v8  ;;  %v739_v49 = vshrl.u32 %v13659_v51, 4  ;;  %v16859_v53 = vrot.slane %v13527_v33, 3  ;;  %v13690_v8 = vld [vmem:[#allocation2 + $0x30] sm:$0xff]   ;;  %v16861_v51 = vrot.slane %v13636_v15, 2  ;;  %v10530_v59 = vld [vmem:[#allocation2 + $0xe8] sm:$0xff]   ;;  %v7531_v33 = vrot.slane %v7529_v29, 2 }
 0x256   : > { %v6795_v41 = vsel %vm16857_vm9, %v16856_v22, %v16855_v10  ;;  %v10531_v12 = vld [vmem:[#allocation2 + $0x50] sm:$0xff]   ;;  %vm16865_vm9 = vmmov %vm16864_vm4  ;;  %v7534_v22 = vrot.slane %v7532_v26, 3  ;;  %v7540_v20 = vrot.slane %v7538_v43, 2  ;;  %vm16869_vm13 = vcmask 1046528  }
 0x257   : > { %v6324_v44 = vsel %vm16863_vm0, %v16862_v46, %v16861_v51  ;;  %v740_v10 = vmul.u32 18, %v739_v49  ;;  %3389 = vst.msk [vmem:[#allocation3 + $0xa0] sm:$0xff] %vm16865_vm9, %v10605_v16  ;;  %v16868_v51 = vrot.slane %v16867_v62, 1  ;;  %v7543_v46 = vrot.slane %v7541_v27, 3  ;;  %v10613_v62 = vld [vmem:[#allocation2 + $0x58] sm:$0xff]   ;;  %v13715_v26 = vpop.permute.xlu0 %5047  ;;  %v16872_v16 = vld [vmem:[#allocation27_spill] sm:$0xff] }
 0x258   : > { %5093 = vrot.lane.b32.xlu0 %v5016_v7, %s10853_s24  ;;  %6872 = vrot.lane.b32.xlu1 %v6795_v41, %s10855_s26  ;;  %v8095_v7 = vsel %vm16860_vm10, %v16859_v53, %v8094_v9  ;;  %v5551_v41 = vrot.slane %v5549_v58, 2  ;;  %v3772_v53 = vshrl.u32 %v13469_v45, 16  ;;  %vm16870_vm10 = vsmask.f32 5376 }
 0x259   : > { %8209 = vst.msk [vmem:[#allocation3 + $0x28] sm:$0xff] %vm16864_vm4, %v8095_v7  ;;  %v4976_v42 = vsel %vm16869_vm13, %v16868_v51, %v16866_v4  ;;  %v741_v49 = vsub.s32 %v367_v40, %v740_v10  ;;  %v7365_v29 = vsel %vm16870_vm10, %v13616_v31, %v13682_v39  ;;  %v3776_v40 = vshll.u32 %v13685_v30, 16  ;;  %v16877_v4 = vld [vmem:[#allocation29_spill] sm:$0xff] }
 0x25a   : > { %v4531_v58 = vpop.permute.xlu1 %4530  ;;  %v13711_v45 = vor.u32 %v5551_v41, %v5548_v28  ;;  %v5726_v43 = vshrl.u32 %v10530_v59, 16  ;;  %v5729_v27 = vshll.u32 %v10530_v59, 16  ;;  %v8096_v31 = vrot.slane %v13690_v8, 3  ;;  %v10533_v41 = vld [vmem:[#allocation2 + $0x50] sm:$0xff]  }
 0x25b   : > { %4646 = vst.msk [vmem:[#allocation3 + $0x20] sm:$0xff] %vm4643_vm7, %v4531_v58  ;;  %vm799_vm0 = vcmp.ne.s32.totalorder %v741_v49, 0  ;;  %vm835_vm4 = vcmp.lt.s32.totalorder %v741_v49, 0  ;;  %v907_v36 = vadd.s32 18, %v741_v49  ;;  %v16873_v7 = vrot.slane %v16872_v16, 2 }
 0x25c   : > { %6401 = vrot.lane.b32.xlu0 %v6324_v44, %s10856_s10  ;;  %5053 = vrot.lane.b32.xlu1 %v4976_v42, %s10853_s24  ;;  %5159 = vst.msk [vmem:[#allocation3 + $0x20] sm:$0xff] %vm5156_vm12, %v13506_v14  ;;  %vm871_vm9 = vmand %vm835_vm4, %vm799_vm0  ;;  %vm16874_vm13 = vcmask 1045504   ;;  %v7367_v44 = vshrl.u32 %v10531_v12, 16  ;;  %v7370_v28 = vshll.u32 %v10531_v12, 16  ;;  %vm16875_vm10 = vcmask 130048  }
 0x25d   : > { %v6284_v14 = vsel %vm16874_vm13, %v16873_v7, %v16871_v18  ;;  %v943_v10 = vsel %vm871_vm9, %v907_v36, %v741_v49  ;;  %3390 = vst.msk [vmem:[#allocation3 + $0xb0] sm:$0xff] %vm16875_vm10, %v10613_v62  ;;  %v16876_v59 = vrot.slane %v13557_v50, 1  ;;  %v16878_v51 = vrot.slane %v16877_v4, 1 }
 0x25e   : > { %vm16879_vm0 = vcmask 1046528   ;;  %v3774_v17 = vor.u32 %v3772_v53, %v13514_v23  ;;  %vm13733_vm4 = vcmp.lt.s32.totalorder %v943_v10, 16  ;;  %vm16882_vm13 = vcmask 1044480  }
 0x25f   : > { %v4465_v42 = vsel %vm16879_vm0, %v16878_v51, %v16876_v59  ;;  %v8097_v12 = vsel %vm16882_vm13, %v8094_v9, %v8096_v31  ;;  %vm16883_vm9 = vsmask.f32 6400  ;;  %v13745_v50 = vor.u32 %v7543_v46, %v7540_v20 }
 0x260   : > { %7666 = vrot.lane.b32.xlu0 %v7365_v29, %s10857_s17  ;;  %6361 = vrot.lane.b32.xlu1 %v6284_v14, %s10856_s10  ;;  %v5553_v49 = vsel %vm16883_vm9, %v13634_v35, %v13711_v45  ;;  %v13743_v29 = vor.u32 %v7534_v22, %v7531_v33  ;;  %v1512_v36 = vsel %vm13733_vm4, %v1404_v2, 0.0  ;;  %8210 = vst.msk [vmem:[#allocation3 + $0x38] sm:$0xff] %vm16875_vm10, %v8097_v12  ;;  %v13750_v23 = vrot.slane %v3776_v40, 1  ;;  %v13754_v33 = vpop.permute.xlu0 %6355  ;;  %v16885_v2 = vld [vmem:[#allocation38_spill] sm:$0xff] }
 0x261   : > { %v5728_v53 = vrot.slane %v5726_v43, 1  ;;  %v5731_v62 = vrot.slane %v5729_v27, 2  ;;  %v9950_v18 = vpack.c.bf16 %v1512_v36, %v1512_v36  ;;  %v7369_v9 = vrot.slane %v7367_v44, 2  ;;  %v13763_v27 = vld [vmem:[#allocation2 + $0xf0] sm:$0xff]   ;;  %v13775_v12 = vld [vmem:[#allocation2 + $0x58] sm:$0xff]   ;;  %v13777_v36 = vld [vmem:[#allocation2 + $0x40] sm:$0xff]  }
 0x262   : > { %16884 = vst [vmem:[#allocation22_spill] sm:$0xff] %v13743_v29  ;;  %v7372_v16 = vrot.slane %v7370_v28, 3  ;;  %v5555_v7 = vshrl.u32 %v10533_v41, 16  ;;  %v5558_v35 = vshll.u32 %v10533_v41, 16  ;;  %v1953_v46 = vrot.slane %v16885_v2, 4  ;;  %16887 = vst [vmem:[#allocation14_spill] sm:$0xff] %v13763_v27 }
 0x263   : > { %v1955_v22 = vshrl.u32 %v9950_v18, 16  ;;  %v1958_v20 = vshll.u32 %v9950_v18, 16  ;;  %v4055_v14 = vpop.permute.xlu1 %4054  ;;  %vm16886_vm0 = vsmask.f32 5376  ;;  %v13761_v43 = vor.u32 %v5731_v62, %v5728_v53  ;;  %v10574_v41 = vld [vmem:[#allocation2 + $0x38] sm:$0xff]  }
 0x264   : > { %5847 = vrot.lane.b32.xlu0 %v5553_v49, %s10858_s18  ;;  %4542 = vrot.lane.b32.xlu1 %v4465_v42, %s10852_s23  ;;  %v7545_v40 = vsel %vm16886_vm0, %v13743_v29, %v13745_v50  ;;  %4151 = vst.msk [vmem:[#allocation3 + $0x150] sm:$0xff] %vm4129_vm11, %v4055_v14  ;;  %vm16888_vm13 = vsmask.f32 7424  ;;  %v13770_v59 = vor.u32 %v7372_v16, %v7369_v9  ;;  %v5557_v4 = vrot.slane %v5555_v7, 1  ;;  %v13773_v42 = vld [vmem:[#allocation2 + $0x60] sm:$0xff]   ;;  %vm16889_vm10 = vmmov %vm16886_vm0  ;;  %v10534_v7 = vld [vmem:[#allocation2 + $0x58] sm:$0xff]  }
 0x265   : > { %v1957_v44 = vrot.slane %v1955_v22, 6  ;;  %v1960_v28 = vrot.slane %v1958_v20, 7  ;;  %v3779_v10 = vsel %vm16888_vm13, %v3774_v17, %v13750_v23  ;;  %4665 = vst.msk [vmem:[#allocation3 + $0x150] sm:$0xff] %vm4643_vm7, %v13599_v56  ;;  %v5560_v51 = vrot.slane %v5558_v35, 2  ;;  %v13782_v53 = vpop.permute.xlu0 %4536  ;;  %v16891_v35 = vld [vmem:[#allocation43_spill] sm:$0xff] }
 0x266   : > { %v5733_v17 = vsel %vm16883_vm9, %v13606_v13, %v13761_v43  ;;  %v16290_v56 = vrot.slane %v13763_v27, 2  ;;  %v7374_v9 = vsel %vm16889_vm10, %v13682_v39, %v13770_v59  ;;  %vm16890_vm0 = vcmask 125952   ;;  %v17011_v27 = vld [vmem:[#allocation16_spill] sm:$0xff] }
 0x267   : > { %v1961_v49 = vor.u32 %v1960_v28, %v1957_v44  ;;  %v13791_v16 = vor.u32 %v5560_v51, %v5557_v4  ;;  %v8098_v13 = vrot.slane %v10574_v41, 3  ;;  %v16291_v2 = vrot.slane %v13773_v42, 2  ;;  %vm16893_vm13 = vmmov %vm16890_vm0 }
 0x268   : > { %7706 = vrot.lane.b32.xlu0 %v7545_v40, %s10857_s17  ;;  %4030 = vrot.lane.b32.xlu1 %v3779_v10, %s10854_s25  ;;  %vm16894_vm9 = vcmask 1044480   ;;  %v16895_v14 = vrot.slane %v13610_v38, 2  ;;  %vm16896_vm10 = vcmask 1045504   ;;  %v3784_v44 = vshll.u32 %v13775_v12, 16 }
 0x269   : > { %v1962_v62 = vsel %vm11792_vm1, %v1953_v46, %v1961_v49  ;;  %v1963_v18 = vrot.slane %v1961_v49, 4  ;;  %v3780_v46 = vshrl.u32 %v13685_v30, 16  ;;  %v8099_v39 = vsel %vm16894_vm9, %v8096_v31, %v8098_v13  ;;  %v10537_v31 = vld [vmem:[#allocation2 + $0x58] sm:$0xff]  }
 0x26a   : > { %2056 = vst.msk [vmem:[#allocation2 + $0x8c] sm:$0xf] %vm16890_vm0, %v1962_v62  ;;  %v6837_v40 = vsel %vm16896_vm10, %v16895_v14, %v16290_v56  ;;  %vm16897_vm0 = vcmask 130048   ;;  %v8100_v28 = vrot.slane %v13777_v36, 3  ;;  %v6798_v8 = vrot.slane %v10534_v7, 2  ;;  %v13827_v36 = vld [vmem:[#allocation2 + $0x60] sm:$0xff]  }
 0x26b   : > { %v1972_v22 = vsel %vm11792_vm1, %v1963_v18, %v16891_v35  ;;  %v13798_v20 = vpop.permute.xlu1 %7692  ;;  %8211 = vst.msk [vmem:[#allocation3 + $0x48] sm:$0xff] %vm16897_vm0, %v8099_v39  ;;  %vm16899_vm10 = vmmov %vm16897_vm0  ;;  %vm16900_vm0 = vcmask 1045504   ;;  %v3782_v51 = vor.u32 %v3780_v46, %v13750_v23  ;;  %v3786_v49 = vrot.slane %v3784_v44, 1  ;;  %v10539_v18 = vld [vmem:[#allocation2 + $0x58] sm:$0xff]   ;;  %v13841_v23 = vld [vmem:[#allocation2 + $0x60] sm:$0xff]  }
 0x26c   : > { %5887 = vrot.lane.b32.xlu0 %v5733_v17, %s10858_s18  ;;  %7668 = vrot.lane.b32.xlu1 %v7374_v9, %s10857_s17  ;;  %16892 = vst [vmem:[#allocation20_spill] sm:$0xff] %v13798_v20  ;;  %2057 = vst.msk [vmem:[#allocation2 + $0x90] sm:$0xf] %vm16893_vm13, %v1972_v22  ;;  %vm16898_vm13 = vsmask.f32 6400  ;;  %v8101_v38 = vsel %vm16894_vm9, %v8098_v13, %v8100_v28  ;;  %v6801_v4 = vsel %vm16900_vm0, %v6798_v8, %v16291_v2  ;;  %v4979_v62 = vrot.slane %v10537_v31, 1 }
 0x26d   : > { %v5562_v30 = vsel %vm16898_vm13, %v13711_v45, %v13791_v16  ;;  %8212 = vst.msk [vmem:[#allocation3 + $0x58] sm:$0xff] %vm16899_vm10, %v8101_v38  ;;  %v16901_v45 = vrot.slane %v13462_v52, 2  ;;  %vm16902_vm13 = vmmov %vm16900_vm0  ;;  %v13834_v9 = vld [vmem:[#allocation2 + $0x60] sm:$0xff]   ;;  %v13836_v7 = vld [vmem:[#allocation2 + $0x58] sm:$0xff]   ;;  %vm16903_vm9 = vsmask.f32 7424 }
 0x26e   : > { %v13819_v41 = vpop.permute.xlu0 %7658  ;;  %v10546_v13 = vld [vmem:[#allocation2 + $0x58] sm:$0xff]   ;;  %v10591_v22 = vld [vmem:[#allocation2 + $0x48] sm:$0xff]   ;;  %v3787_v46 = vsel %vm16903_vm9, %v3782_v51, %v3786_v49  ;;  %v16292_v39 = vrot.slane %v13827_v36, 1  ;;  %v10547_v14 = vld [vmem:[#allocation2 + $0x60] sm:$0xff]   ;;  %vm16905_vm10 = vcmask 1046528   ;;  %v6287_v44 = vrot.slane %v10539_v18, 2 }
 0x26f   : > { %v6799_v17 = vsel %vm16902_vm13, %v16901_v45, %v6798_v8  ;;  %v16298_v8 = vrot.slane %v13834_v9, 2  ;;  %v4468_v31 = vrot.slane %v13836_v7, 1  ;;  %v3792_v38 = vshll.u32 %v13841_v23, 16  ;;  %vm16906_vm0 = vmmov %vm16905_vm10  ;;  %v10549_v56 = vld [vmem:[#allocation2 + $0x60] sm:$0xff]  }
 0x270   : > { %6914 = vrot.lane.b32.xlu0 %v6837_v40, %s10855_s26  ;;  %5849 = vrot.lane.b32.xlu1 %v5562_v30, %s10858_s18  ;;  %v5874_v10 = vpop.permute.xlu1 %5873  ;;  %v13852_v30 = vld [vmem:[#allocation2 + $0x60] sm:$0xff]   ;;  %v3788_v51 = vshrl.u32 %v13775_v12, 16  ;;  %v7379_v45 = vshll.u32 %v10546_v13, 16  ;;  %v4982_v18 = vsel %vm16906_vm0, %v4979_v62, %v16292_v39  ;;  %v16907_v7 = vrot.slane %v13532_v5, 2 }
 0x271   : > { %5971 = vst.msk [vmem:[#allocation3 + $0x140] sm:$0xff] %vm5950_vm14, %v5874_v10  ;;  %v7376_v10 = vshrl.u32 %v10546_v13, 16  ;;  %vm16908_vm9 = vcmask 1044480   ;;  %v13877_v39 = vrot.slane %v3792_v38, 1  ;;  %vm16910_vm0 = vcmask 130048   ;;  %v13885_v38 = vld [vmem:[#allocation2 + $0x58] sm:$0xff]  }
 0x272   : > { %6485 = vst.msk [vmem:[#allocation3 + $0x140] sm:$0xff] %vm6464_vm2, %v13571_v61  ;;  %v16904_v61 = vrot.slane %v13516_v3, 1  ;;  %v8102_v3 = vrot.slane %v10591_v22, 3  ;;  %v6288_v12 = vsel %vm16902_vm13, %v16907_v7, %v6287_v44  ;;  %v7388_v22 = vshll.u32 %v10547_v14, 16 }
 0x273   : > { %v13843_v35 = vpop.permute.xlu0 %5839  ;;  %v7381_v13 = vrot.slane %v7379_v45, 3  ;;  %v16914_v45 = vrot.slane %v13852_v30, 1  ;;  %v16934_v20 = vrot.slane %v13827_v36, 1 }
 0x274   : > { %6878 = vrot.lane.b32.xlu0 %v6801_v4, %s10855_s26  ;;  %6876 = vrot.lane.b32.xlu1 %v6799_v17, %s10855_s26  ;;  %v6901_v52 = vpop.permute.xlu1 %6900  ;;  %v4980_v40 = vsel %vm16905_vm10, %v16904_v61, %v4979_v62  ;;  %v10599_v17 = vld [vmem:[#allocation2 + $0x50] sm:$0xff]   ;;  %v10548_v61 = vld [vmem:[#allocation2 + $0x58] sm:$0xff]   ;;  %v8103_v2 = vsel %vm16908_vm9, %v8100_v28, %v8102_v3  ;;  %vm16909_vm10 = vmmov %vm16902_vm13  ;;  %vm16912_vm13 = vcmask 1046528  }
 0x275   : > { %6998 = vst.msk [vmem:[#allocation3 + $0x140] sm:$0xff] %vm6977_vm8, %v6901_v52  ;;  %v6290_v62 = vsel %vm16909_vm10, %v6287_v44, %v16298_v8  ;;  %v8104_v29 = vrot.slane %v10599_v17, 3  ;;  %v5564_v60 = vshrl.u32 %v10548_v61, 16  ;;  %v5567_v25 = vshll.u32 %v10548_v61, 16  ;;  %vm16913_vm10 = vmmov %vm16910_vm0 }
 0x276   : > { %8213 = vst.msk [vmem:[#allocation3 + $0x68] sm:$0xff] %vm16910_vm0, %v8103_v2  ;;  %v5573_v2 = vshrl.u32 %v10549_v56, 16  ;;  %vm16915_vm0 = vmmov %vm16912_vm13 }
 0x277   : > { %v13858_v4 = vpop.permute.xlu0 %6870  ;;  %v4471_v17 = vsel %vm16915_vm0, %v4468_v31, %v16914_v45  ;;  %v10554_v45 = vld [vmem:[#allocation2 + $0x68] sm:$0xff]  }
 0x278   : > { %4032 = vrot.lane.b32.xlu0 %v3787_v46, %s10854_s25  ;;  %5057 = vrot.lane.b32.xlu1 %v4980_v40, %s10853_s24  ;;  %v5082_v52 = vpop.permute.xlu1 %5081  ;;  %v7385_v46 = vshrl.u32 %v10547_v14, 16  ;;  %v13864_v40 = vld [vmem:[#allocation2 + $0xf0] sm:$0xff]   ;;  %v3790_v14 = vor.u32 %v3788_v51, %v3786_v49  ;;  %v8105_v49 = vsel %vm16908_vm9, %v8102_v3, %v8104_v29 }
 0x279   : > { %5178 = vst.msk [vmem:[#allocation3 + $0x150] sm:$0xff] %vm5156_vm12, %v5082_v52  ;;  %v7378_v52 = vrot.slane %v7376_v10, 2  ;;  %v16296_v44 = vrot.slane %v13864_v40, 3  ;;  %v5576_v10 = vshll.u32 %v10549_v56, 16 }
 0x27a   : > { %8214 = vst.msk [vmem:[#allocation3 + $0x78] sm:$0xff] %vm16913_vm10, %v8105_v49 }
 0x27c   : > { %5059 = vrot.lane.b32.xlu0 %v4982_v18, %s10853_s24  ;;  %6365 = vrot.lane.b32.xlu1 %v6288_v12, %s10856_s10  ;;  %v16911_v18 = vrot.slane %v13559_v63, 1  ;;  %v7387_v12 = vrot.slane %v7385_v46, 2  ;;  %v7390_v63 = vrot.slane %v7388_v22, 3  ;;  %v16916_v46 = vld [vmem:[#allocation45_spill] sm:$0xff]  ;;  %v7382_v22 = vor.u32 %v7381_v13, %v7378_v52 }
 0x27d   : > { %v4025_v5 = vpop.permute.xlu0 %4024  ;;  %v16917_v61 = vrot.slane %v16916_v46, 3 }
 0x27e   : > { %v4469_v7 = vsel %vm16912_vm13, %v16911_v18, %v4468_v31  ;;  %4136 = vst.msk [vmem:[#allocation3 + $0x60] sm:$0xff] %vm4129_vm11, %v4025_v5  ;;  %v4019_v28 = vpop.permute.xlu1 %4018  ;;  %vm16918_vm13 = vmmov %vm16908_vm9  ;;  %v16299_v5 = vrot.slane %v13885_v38, 3  ;;  %v13910_v18 = vor.u32 %v7390_v63, %v7387_v12  ;;  %v13921_v12 = vld [vmem:[#allocation2 + $0x70] sm:$0xff]   ;;  %v13923_v63 = vld [vmem:[#allocation2 + $0x68] sm:$0xff]  }
 0x27f   : > { %4133 = vst.msk [vmem:[#allocation3 + $0x30] sm:$0xff] %vm4129_vm11, %v4019_v28  ;;  %v8145_v56 = vsel %vm16918_vm13, %v16917_v61, %v16296_v44  ;;  %vm16919_vm9 = vmmov %vm16913_vm10  ;;  %vm16920_vm10 = vsmask.f32 7424  ;;  %v5578_v28 = vrot.slane %v5576_v10, 2  ;;  %v10551_v10 = vld [vmem:[#allocation2 + $0x68] sm:$0xff]   ;;  %v3804_v19 = vshrl.u32 %v13923_v63, 16 }
 0x280   : > { %6367 = vrot.lane.b32.xlu0 %v6290_v62, %s10856_s10  ;;  %4647 = vst.msk [vmem:[#allocation3 + $0x30] sm:$0xff] %vm4643_vm7, %v13592_v34  ;;  %4546 = vrot.lane.b32.xlu1 %v4469_v7, %s10852_s23  ;;  %v5566_v62 = vrot.slane %v5564_v60, 1  ;;  %v5569_v34 = vrot.slane %v5567_v25, 2  ;;  %v3795_v31 = vsel %vm16920_vm10, %v3790_v14, %v13877_v39  ;;  %v5575_v7 = vrot.slane %v5573_v2, 1  ;;  %vm16921_vm0 = vmmov %vm16918_vm13  ;;  %v10620_v60 = vld [vmem:[#allocation2 + $0x60] sm:$0xff]   ;;  %v13971_v44 = vld [vmem:[#allocation2 + $0x68] sm:$0xff]  }
 0x281   : > { %v13894_v51 = vpop.permute.xlu0 %5051  ;;  %8234 = vst.msk [vmem:[#allocation3 + $0x1b8] sm:$0xff] %vm16919_vm9, %v8145_v56  ;;  %v8107_v25 = vsel %vm16921_vm0, %v8104_v29, %v16299_v5  ;;  %vm16922_vm13 = vmmov %vm16919_vm9  ;;  %vm16923_vm9 = vsmask.f32 5376  ;;  %v16297_v56 = vrot.slane %v13921_v12, 2 }
 0x282   : > { %v7657_v3 = vpop.permute.xlu1 %7656  ;;  %8215 = vst.msk [vmem:[#allocation3 + $0x88] sm:$0xff] %vm16922_vm13, %v8107_v25  ;;  %v7383_v49 = vsel %vm16923_vm9, %v13770_v59, %v7382_v22  ;;  %v5570_v14 = vor.u32 %v5569_v34, %v5566_v62  ;;  %vm16924_vm10 = vmmov %vm16922_vm13  ;;  %v13930_v2 = vor.u32 %v5578_v28, %v5575_v7  ;;  %vm16926_vm13 = vsmask.f32 6400  ;;  %v8251_v62 = vld [vmem:[#allocation3 + $0x28] sm:$0xff] }
 0x283   : > { %7773 = vst.msk [vmem:[#allocation3 + $0x10] sm:$0xff] %vm7771_vm6, %v7657_v3  ;;  %vm16925_vm0 = vmmov %vm16923_vm9  ;;  %v3796_v3 = vshrl.u32 %v13841_v23, 16  ;;  %v6802_v34 = vrot.slane %v10551_v10, 2  ;;  %v10618_v23 = vld [vmem:[#allocation2 + $0x60] sm:$0xff]   ;;  %v13954_v28 = vld [vmem:[#allocation2 + $0x70] sm:$0xff]   ;;  %v16929_v10 = vrot.slane %v13773_v42, 2 }
 0x284   : > { %4548 = vrot.lane.b32.xlu0 %v4471_v17, %s10852_s23  ;;  %4034 = vrot.lane.b32.xlu1 %v3795_v31, %s10854_s25  ;;  %3391 = vst.msk [vmem:[#allocation3 + $0xc0] sm:$0xff] %vm16924_vm10, %v10620_v60  ;;  %v7392_v29 = vsel %vm16925_vm0, %v7382_v22, %v13910_v18  ;;  %v5571_v46 = vsel %vm16926_vm13, %v13791_v16, %v5570_v14  ;;  %v3800_v22 = vshll.u32 %v13923_v63, 16  ;;  %vm16927_vm9 = vmmov %vm16926_vm13  ;;  %v13946_v31 = vld [vmem:[#allocation2 + $0x70] sm:$0xff]   ;;  %v13950_v16 = vld [vmem:[#allocation2 + $0x68] sm:$0xff]   ;;  %vm16928_vm0 = vcmask 1045504  }
 0x285   : > { %v6805_v60 = vsel %vm16928_vm0, %v6802_v34, %v16297_v56  ;;  %vm16930_vm13 = vmmov %vm16928_vm0  ;;  %vm16935_vm0 = vcmask 1046528  }
 0x286   : > { %v13916_v13 = vpop.permute.xlu0 %6359  ;;  %v5838_v52 = vpop.permute.xlu1 %5837 }
 0x287   : > { %5953 = vst.msk [vmem:[#allocation3 + $0x20] sm:$0xff] %vm5950_vm14, %v5838_v52  ;;  %v3798_v52 = vor.u32 %v3796_v3, %v13877_v39  ;;  %v8108_v3 = vrot.slane %v10618_v23, 3 }
 0x288   : > { %7670 = vrot.lane.b32.xlu0 %v7383_v49, %s10857_s17  ;;  %6467 = vst.msk [vmem:[#allocation3 + $0x20] sm:$0xff] %vm6464_vm2, %v13548_v55  ;;  %7672 = vrot.lane.b32.xlu1 %v7392_v29, %s10857_s17  ;;  %v5580_v55 = vsel %vm16927_vm9, %v5570_v14, %v13930_v2  ;;  %v3802_v49 = vrot.slane %v3800_v22, 1  ;;  %v10564_v14 = vld [vmem:[#allocation2 + $0x68] sm:$0xff]   ;;  %v10565_v29 = vld [vmem:[#allocation2 + $0x70] sm:$0xff]   ;;  %vm16931_vm9 = vsmask.f32 7424 }
 0x289   : > { %v13975_v22 = vld [vmem:[#allocation2 + $0x68] sm:$0xff]   ;;  %v7394_v5 = vshrl.u32 %v10564_v14, 16  ;;  %v7397_v54 = vshll.u32 %v10564_v14, 16  ;;  %v7403_v32 = vshrl.u32 %v10565_v29, 16 }
 0x28a   : > { %v13935_v59 = vpop.permute.xlu0 %4540  ;;  %v7695_v17 = vpop.permute.xlu1 %7694  ;;  %v8248_v61 = vld [vmem:[#allocation3 + $0x10] sm:$0xff]  ;;  %v3803_v8 = vsel %vm16931_vm9, %v3798_v52, %v3802_v49  ;;  %v8110_v63 = vrot.slane %v13975_v22, 3 }
 0x28b   : > { %7792 = vst.msk [vmem:[#allocation3 + $0x140] sm:$0xff] %vm7771_vm6, %v7695_v17  ;;  %8561 = vmatmul.mubr.bf16.gmra.mrb[40].mxu0 %v8248_v61  ;;  %v6803_v17 = vsel %vm16930_vm13, %v16929_v10, %v6802_v34  ;;  %v13965_v61 = vld [vmem:[#allocation2 + $0x70] sm:$0xff]   ;;  %v3808_v34 = vshll.u32 %v13954_v28, 16  ;;  %v10628_v10 = vld [vmem:[#allocation2 + $0x68] sm:$0xff]   ;;  %vm16936_vm13 = vcmask 130048   ;;  %v14138_v22 = vld [vmem:[#allocation2 + $0x80] sm:$0xff]  }
 0x28c   : > { %5851 = vrot.lane.b32.xlu0 %v5571_v46, %s10858_s18  ;;  %5853 = vrot.lane.b32.xlu1 %v5580_v55, %s10858_s18  ;;  %v4983_v46 = vrot.slane %v10554_v45, 1  ;;  %v13967_v55 = vld [vmem:[#allocation2 + $0x68] sm:$0xff]   ;;  %v6291_v45 = vrot.slane %v13950_v16, 2  ;;  %vm16937_vm9 = vmmov %vm16936_vm13  ;;  %v6293_v14 = vrot.slane %v13965_v61, 2 }
 0x28d   : > { %9866 = vmatprep.mubr.msk.bf16.mxu0 %vm16924_vm10, %v8251_v62  ;;  %v13969_v62 = vld [vmem:[#allocation2 + $0x70] sm:$0xff]   ;;  %vm16933_vm10 = vcmask 1044480   ;;  %3392 = vst.msk [vmem:[#allocation3 + $0xd0] sm:$0xff] %vm16937_vm9, %v10628_v10  ;;  %v14008_v10 = vrot.slane %v3808_v34, 1  ;;  %v7405_v34 = vrot.slane %v7403_v32, 2 }
 0x28e   : > { %v13952_v7 = vpop.permute.xlu0 %4578  ;;  %v5876_v25 = vpop.permute.xlu1 %5875  ;;  %v4984_v16 = vsel %vm16935_vm0, %v16934_v20, %v4983_v46  ;;  %v7406_v20 = vshll.u32 %v10565_v29, 16 }
 0x28f   : > { %5972 = vst.msk [vmem:[#allocation3 + $0x150] sm:$0xff] %vm5950_vm14, %v5876_v25  ;;  %v10170_v25 = vpop.f32.mrb[28].mxu1 }
 0x290   : > { %6882 = vrot.lane.b32.xlu0 %v6805_v60, %s10855_s26  ;;  %6880 = vrot.lane.b32.xlu1 %v6803_v17, %s10855_s26  ;;  %v2418_v60 = vpop.f32.mrb[29].mxu1  ;;  %v16932_v17 = vrot.slane %v13885_v38, 3  ;;  %v5582_v38 = vshrl.u32 %v13971_v44, 16 }
 0x291   : > { %v10171_v23 = vpop.f32.mrb[30].mxu1 }
 0x292   : > { %v13977_v42 = vpop.permute.xlu0 %7662  ;;  %v6865_v56 = vpop.permute.xlu1 %6864  ;;  %v8109_v39 = vsel %vm16933_vm10, %v16932_v17, %v8108_v3  ;;  %vm16939_vm10 = vmmov %vm16935_vm0  ;;  %vm16941_vm0 = vcmask 1045504  }
 0x293   : > { %6980 = vst.msk [vmem:[#allocation3 + $0x20] sm:$0xff] %vm6977_vm8, %v6865_v56  ;;  %v2421_v56 = vpop.f32.mrb[31].mxu1 }
 0x294   : > { %4036 = vrot.lane.b32.xlu0 %v3803_v8, %s10854_s25  ;;  %8216 = vst.msk [vmem:[#allocation3 + $0x98] sm:$0xff] %vm16936_vm13, %v8109_v39  ;;  %5061 = vrot.lane.b32.xlu1 %v4984_v16, %s10853_s24  ;;  %v16938_v8 = vrot.slane %v13946_v31, 1  ;;  %v4472_v39 = vrot.slane %v13967_v55, 1  ;;  %v16940_v16 = vrot.slane %v13834_v9, 2  ;;  %vm16942_vm13 = vcmask 1044480  }
 0x295   : > { %7774 = vst.msk [vmem:[#allocation3 + $0x20] sm:$0xff] %vm7771_vm6, %v13819_v41  ;;  %v8111_v0 = vsel %vm16942_vm13, %v8108_v3, %v8110_v63  ;;  %v3806_v55 = vor.u32 %v3804_v19, %v3802_v49  ;;  %v7399_v41 = vrot.slane %v7397_v54, 3  ;;  %v14023_v9 = vld [vmem:[%s16111_s2] ss:$0 sm:$0xff]  ;;  %v14029_v3 = vrot.slane %v5582_v38, 1 }
 0x296   : > { %v4986_v36 = vsel %vm16939_vm10, %v4983_v46, %v16938_v8  ;;  %v14003_v52 = vpop.permute.xlu0 %5843  ;;  %v5046_v17 = vpop.permute.xlu1 %5045  ;;  %v6292_v29 = vsel %vm16941_vm0, %v16940_v16, %v6291_v45  ;;  %v7396_v46 = vrot.slane %v7394_v5, 2  ;;  %v5585_v8 = vshll.u32 %v13971_v44, 16  ;;  %8217 = vst.msk [vmem:[#allocation3 + $0xa8] sm:$0xff] %vm16937_vm9, %v8111_v0  ;;  %vm16943_vm10 = vmmov %vm16941_vm0 }
 0x297   : > { %5160 = vst.msk [vmem:[#allocation3 + $0x30] sm:$0xff] %vm5156_vm12, %v5046_v17  ;;  %v2427_v44 = vadd.f32 %v14023_v9, %v10170_v25  ;;  %v7408_v5 = vrot.slane %v7406_v20, 3  ;;  %v2419_v19 = vadd.f32 %v14023_v9, %v2418_v60  ;;  %v2430_v32 = vadd.f32 %v14023_v9, %v10171_v23 }
 0x298   : > { %5063 = vrot.lane.b32.xlu0 %v4986_v36, %s10853_s24  ;;  %5954 = vst.msk [vmem:[#allocation3 + $0x30] sm:$0xff] %vm5950_vm14, %v13843_v35  ;;  %6369 = vrot.lane.b32.xlu1 %v6292_v29, %s10856_s10  ;;  %v6294_v54 = vsel %vm16943_vm10, %v6291_v45, %v6293_v14  ;;  %v16944_v49 = vrot.slane %v13852_v30, 1  ;;  %vm16945_vm0 = vcmask 1046528   ;;  %v5591_v35 = vshrl.u32 %v13991_v24, 16  ;;  %v8253_v45 = vld [vmem:[#allocation3 + $0x38] sm:$0xff] }
 0x299   : > { %v2479_v36 = vmax.f32 %v2427_v44, 0.0  ;;  %v5594_v38 = vshll.u32 %v13991_v24, 16  ;;  %v2477_v60 = vmax.f32 %v2419_v19, 0.0  ;;  %v2480_v17 = vmax.f32 %v2430_v32, 0.0  ;;  %vm16947_vm13 = vmmov %vm16945_vm0  ;;  %v16949_v19 = vld [vmem:[#allocation36_spill] sm:$0xff] }
 0x29a   : > { %v4065_v0 = vpop.permute.xlu0 %4064  ;;  %v4473_v25 = vsel %vm16945_vm0, %v16944_v49, %v4472_v39  ;;  %v6354_v20 = vpop.permute.xlu1 %6353  ;;  %v2422_v23 = vadd.f32 %v14023_v9, %v2421_v56  ;;  %v16946_v16 = vrot.slane %v13969_v62, 1  ;;  %vm16948_vm9 = vsmask.f32 7424  ;;  %v16953_v49 = vld [vmem:[#allocation24_spill] sm:$0xff] }
 0x29b   : > { %4156 = vst.msk [vmem:[#allocation3 + $0x1a0] sm:$0xff] %vm4129_vm11, %v4065_v0  ;;  %v3811_v24 = vsel %vm16948_vm9, %v3806_v55, %v14008_v10  ;;  %v5587_v44 = vrot.slane %v5585_v8, 2  ;;  %vm16950_vm10 = vnez %v16949_v19  ;;  %v16951_v0 = vld [vmem:[#allocation34_spill] sm:$0xff]  ;;  %vm16955_vm9 = vcmask 130048  }
 0x29c   : > { %4670 = vst.msk [vmem:[#allocation3 + $0x1a0] sm:$0xff] %vm4643_vm7, %v13952_v7  ;;  %6371 = vrot.lane.b32.xlu0 %v6294_v54, %s10856_s10  ;;  %v8250_v30 = vld [vmem:[#allocation3 + $0x20] sm:$0xff]  ;;  %v4475_v29 = vsel %vm16947_vm13, %v4472_v39, %v16946_v16  ;;  %v2515_v56 = vsel %vm16950_vm10, %v2479_v36, 0.0  ;;  %4550 = vrot.lane.b32.xlu1 %v4473_v25, %s10852_s23  ;;  %v7400_v7 = vor.u32 %v7399_v41, %v7396_v46  ;;  %vm16952_vm0 = vnez %v16951_v0 }
 0x29d   : > { %6468 = vst.msk [vmem:[#allocation3 + $0x30] sm:$0xff] %vm6464_vm2, %v6354_v20  ;;  %8569 = vmatmul.mubr.bf16.gmra.mrb[44].mxu0 %v8250_v30  ;;  %v9983_v32 = vpack.c.bf16 %v2515_v56, %v2515_v56  ;;  %v2513_v54 = vsel %vm16952_vm0, %v2477_v60, 0.0  ;;  %vm16954_vm13 = vnez %v16953_v49  ;;  %v14062_v8 = vor.u32 %v7408_v5, %v7405_v34  ;;  %v14067_v60 = vld [vmem:[#allocation2 + $0x80] sm:$0xff]  }
 0x29e   : > { %6981 = vst.msk [vmem:[#allocation3 + $0x30] sm:$0xff] %vm6977_vm8, %v13656_v21  ;;  %v2516_v39 = vsel %vm16954_vm13, %v2480_v17, 0.0  ;;  %v5092_v20 = vpop.permute.xlu0 %5091  ;;  %9867 = vmatprep.mubr.msk.bf16.mxu0 %vm16955_vm9, %v8253_v45  ;;  %v9981_v55 = vpack.c.bf16 %v2513_v54, %v2513_v54  ;;  %v2478_v16 = vmax.f32 %v2422_v23, 0.0  ;;  %v4535_v21 = vpop.permute.xlu1 %4534  ;;  %v5593_v25 = vrot.slane %v5591_v35, 1  ;;  %v14073_v35 = vld [vmem:[#allocation2 + $0x78] sm:$0xff]   ;;  %v16956_v56 = vld [vmem:[#allocation39_spill] sm:$0xff]  ;;  %vm16959_vm13 = vmmov %vm16955_vm9 }
 0x29f   : > { %v9984_v36 = vpack.c.bf16 %v2516_v39, %v2516_v39  ;;  %5183 = vst.msk [vmem:[#allocation3 + $0x1a0] sm:$0xff] %vm5156_vm12, %v5092_v20  ;;  %v5596_v41 = vrot.slane %v5594_v38, 2  ;;  %v2929_v46 = vshrl.u32 %v9983_v32, 16  ;;  %v2932_v30 = vshll.u32 %v9983_v32, 16  ;;  %v10638_v32 = vld [vmem:[#allocation2 + $0x70] sm:$0xff]  }
 0x2a0   : > { %4648 = vst.msk [vmem:[#allocation3 + $0x40] sm:$0xff] %vm4643_vm7, %v4535_v21  ;;  %4552 = vrot.lane.b32.xlu0 %v4475_v29, %s10852_s23  ;;  %v2909_v17 = vshrl.u32 %v9981_v55, 16  ;;  %v2912_v45 = vshll.u32 %v9981_v55, 16  ;;  %v2907_v19 = vrot.slane %v13485_v48, 4  ;;  %4038 = vrot.lane.b32.xlu1 %v3811_v24, %s10854_s25  ;;  %vm16957_vm10 = vnez %v16956_v56 }
 0x2a1   : > { %v2939_v34 = vshrl.u32 %v9984_v36, 16  ;;  %v2942_v5 = vshll.u32 %v9984_v36, 16  ;;  %5161 = vst.msk [vmem:[#allocation3 + $0x40] sm:$0xff] %vm5156_vm12, %v13715_v26  ;;  %v2931_v38 = vrot.slane %v2929_v46, 6  ;;  %v2934_v23 = vrot.slane %v2932_v30, 7  ;;  %v10569_v46 = vld [vmem:[#allocation2 + $0x78] sm:$0xff]  }
 0x2a2   : > { %v2514_v29 = vsel %vm16957_vm10, %v2478_v16, 0.0  ;;  %v14077_v0 = vpop.permute.xlu0 %6399  ;;  %v2911_v54 = vrot.slane %v2909_v17, 6  ;;  %v2914_v49 = vrot.slane %v2912_v45, 7  ;;  %v4023_v48 = vpop.permute.xlu1 %4022  ;;  %vm16958_vm0 = vsmask.f32 5376  ;;  %3393 = vst.msk [vmem:[#allocation3 + $0xe0] sm:$0xff] %vm16959_vm13, %v10638_v32 }
 0x2a3   : > { %v2941_v39 = vrot.slane %v2939_v34, 6  ;;  %v2944_v20 = vrot.slane %v2942_v5, 7  ;;  %v7401_v26 = vsel %vm16958_vm0, %v13910_v18, %v7400_v7  ;;  %v5588_v24 = vor.u32 %v5587_v44, %v14029_v3  ;;  %4135 = vst.msk [vmem:[#allocation3 + $0x50] sm:$0xff] %vm4129_vm11, %v4023_v48  ;;  %vm16960_vm9 = vmmov %vm16958_vm0  ;;  %v10636_v34 = vld [vmem:[#allocation2 + $0x70] sm:$0xff]  }
 0x2a4   : > { %v2935_v55 = vor.u32 %v2934_v23, %v2931_v38  ;;  %v9982_v36 = vpack.c.bf16 %v2514_v29, %v2514_v29  ;;  %7674 = vrot.lane.b32.xlu0 %v7401_v26, %s10857_s17  ;;  %v7410_v16 = vsel %vm16960_vm9, %v7400_v7, %v14062_v8  ;;  %v14087_v21 = vor.u32 %v5596_v41, %v5593_v25 }
 0x2a5   : > { %v6808_v30 = vrot.slane %v14067_v60, 2  ;;  %v2915_v17 = vor.u32 %v2914_v49, %v2911_v54  ;;  %4649 = vst.msk [vmem:[#allocation3 + $0x50] sm:$0xff] %vm4643_vm7, %v13782_v53  ;;  %7676 = vrot.lane.b32.xlu1 %v7410_v16, %s10857_s17  ;;  %v14093_v3 = vor.u32 %v2944_v20, %v2941_v39  ;;  %v3812_v7 = vshrl.u32 %v13954_v28, 16  ;;  %v10572_v54 = vld [vmem:[#allocation2 + $0x78] sm:$0xff]  }
 0x2a6   : > { %v2937_v18 = vrot.slane %v2935_v55, 4  ;;  %v2919_v44 = vshrl.u32 %v9982_v36, 16  ;;  %v2922_v45 = vshll.u32 %v9982_v36, 16  ;;  %v4581_v5 = vpop.permute.xlu0 %4580  ;;  %v3816_v25 = vshll.u32 %v14073_v35, 16  ;;  %v7661_v23 = vpop.permute.xlu1 %7660  ;;  %v14111_v39 = vld [vmem:[#allocation2 + $0x78] sm:$0xff]   ;;  %v14117_v36 = vld [vmem:[#allocation2 + $0x80] sm:$0xff]  }
 0x2a7   : > { %v2916_v41 = vsel %vm11792_vm1, %v2907_v19, %v2915_v17  ;;  %v2917_v38 = vrot.slane %v2915_v17, 4  ;;  %vm16961_vm10 = vsmask.f32 6400  ;;  %vm16962_vm0 = vcmask 125952   ;;  %7775 = vst.msk [vmem:[#allocation3 + $0x30] sm:$0xff] %vm7771_vm6, %v7661_v23 }
 0x2a8   : > { %v5589_v53 = vsel %vm16961_vm10, %v13930_v2, %v5588_v24  ;;  %3055 = vst.msk [vmem:[#allocation2 + $0x114] sm:$0xf] %vm16962_vm0, %v2916_v41  ;;  %v2946_v56 = vsel %vm11792_vm1, %v2937_v18, %v14093_v3  ;;  %v2921_v29 = vrot.slane %v2919_v44, 6  ;;  %v2924_v32 = vrot.slane %v2922_v45, 7  ;;  %vm16963_vm13 = vmmov %vm16961_vm10  ;;  %v10583_v41 = vld [vmem:[#allocation2 + $0x78] sm:$0xff]  }
 0x2a9   : > { %5855 = vrot.lane.b32.xlu0 %v5589_v53, %s10858_s18  ;;  %v5598_v28 = vsel %vm16963_vm13, %v5588_v24, %v14087_v21  ;;  %v6806_v19 = vrot.slane %v10569_v46, 2  ;;  %vm16964_vm9 = vmmov %vm16962_vm0  ;;  %v8112_v49 = vrot.slane %v10636_v34, 3  ;;  %vm16965_vm10 = vcmask 1045504   ;;  %v10576_v34 = vld [vmem:[#allocation2 + $0x78] sm:$0xff]  }
 0x2aa   : > { %3058 = vst.msk [vmem:[#allocation2 + $0x120] sm:$0xf] %vm16964_vm9, %v2946_v56  ;;  %5857 = vrot.lane.b32.xlu1 %v5598_v28, %s10858_s18  ;;  %v2925_v2 = vor.u32 %v2924_v32, %v2921_v29  ;;  %v4067_v20 = vpop.permute.xlu0 %4066  ;;  %v3814_v26 = vor.u32 %v3812_v7, %v14008_v10  ;;  %v5842_v24 = vpop.permute.xlu1 %5841  ;;  %v14120_v16 = vrot.slane %v3816_v25, 1  ;;  %vm16966_vm0 = vcmask 1044480   ;;  %vm16968_vm13 = vmmov %vm16965_vm10  ;;  %v14147_v25 = vld [vmem:[#allocation2 + $0x78] sm:$0xff]   ;;  %v10584_v29 = vld [vmem:[#allocation2 + $0x80] sm:$0xff]  }
 0x2ab   : > { %v6809_v48 = vsel %vm16965_vm10, %v6806_v19, %v6808_v30  ;;  %4157 = vst.msk [vmem:[#allocation3 + $0x1b0] sm:$0xff] %vm4129_vm11, %v4067_v20  ;;  %v8113_v18 = vsel %vm16966_vm0, %v8110_v63, %v8112_v49  ;;  %v16967_v10 = vrot.slane %v13921_v12, 2  ;;  %v4987_v45 = vrot.slane %v10572_v54, 1  ;;  %v14140_v63 = vld [vmem:[#allocation2 + $0x80] sm:$0xff]   ;;  %vm16970_vm0 = vmmov %vm16964_vm9 }
 0x2ac   : > { %v2926_v46 = vsel %vm11792_vm1, %v2917_v38, %v2925_v2  ;;  %v2927_v17 = vrot.slane %v2925_v2, 4  ;;  %4671 = vst.msk [vmem:[#allocation3 + $0x1b0] sm:$0xff] %vm4643_vm7, %v4581_v5  ;;  %vm16969_vm10 = vcmask 130048   ;;  %v8114_v5 = vrot.slane %v14111_v39, 3  ;;  %v10646_v38 = vld [vmem:[#allocation2 + $0x78] sm:$0xff]  }
 0x2ad   : > { %5955 = vst.msk [vmem:[#allocation3 + $0x40] sm:$0xff] %vm5950_vm14, %v5842_v24  ;;  %6886 = vrot.lane.b32.xlu0 %v6809_v48, %s10855_s26  ;;  %v6807_v44 = vsel %vm16968_vm13, %v16967_v10, %v6806_v19  ;;  %vm16971_vm13 = vsmask.f32 7424  ;;  %v4989_v56 = vrot.slane %v14117_v36, 1  ;;  %v16973_v32 = vrot.slane %v13946_v31, 1  ;;  %v8255_v19 = vld [vmem:[#allocation3 + $0x48] sm:$0xff] }
 0x2ae   : > { %3056 = vst.msk [vmem:[#allocation2 + $0x118] sm:$0xf] %vm16964_vm9, %v2926_v46  ;;  %6884 = vrot.lane.b32.xlu1 %v6807_v44, %s10855_s26  ;;  %v2936_v12 = vsel %vm11792_vm1, %v2927_v17, %v2935_v55  ;;  %v14145_v7 = vpop.permute.xlu0 %6874  ;;  %v3819_v23 = vsel %vm16971_vm13, %v3814_v26, %v14120_v16  ;;  %v8252_v53 = vld [vmem:[#allocation3 + $0x30] sm:$0xff]  ;;  %vm16972_vm9 = vcmask 1044480   ;;  %v6295_v54 = vrot.slane %v10576_v34, 2 }
 0x2af   : > { %8218 = vst.msk [vmem:[#allocation3 + $0xb8] sm:$0xff] %vm16969_vm10, %v8113_v18  ;;  %v8115_v55 = vsel %vm16972_vm9, %v8112_v49, %v8114_v5  ;;  %8577 = vmatmul.mubr.bf16.gmra.mrb[48].mxu0 %v8252_v53  ;;  %vm16974_vm10 = vcmask 1046528   ;;  %v16310_v2 = vrot.slane %v14138_v22, 2  ;;  %v14168_v49 = vld [vmem:[#allocation2 + $0x80] sm:$0xff]   ;;  %v3824_v31 = vshll.u32 %v14140_v63, 16  ;;  %v10585_v18 = vld [vmem:[#allocation2 + $0x78] sm:$0xff]  }
 0x2b0   : > { %6469 = vst.msk [vmem:[#allocation3 + $0x40] sm:$0xff] %vm6464_vm2, %v13754_v33  ;;  %v6869_v33 = vpop.permute.xlu1 %6868  ;;  %v4988_v28 = vsel %vm16974_vm10, %v16973_v32, %v4987_v45  ;;  %v4476_v48 = vrot.slane %v14147_v25, 1  ;;  %v7412_v26 = vshrl.u32 %v10583_v41, 16  ;;  %v7415_v46 = vshll.u32 %v10583_v41, 16 }
 0x2b1   : > { %3057 = vst.msk [vmem:[#allocation2 + $0x11c] sm:$0xf] %vm16970_vm0, %v2936_v12  ;;  %4040 = vrot.lane.b32.xlu0 %v3819_v23, %s10854_s25  ;;  %vm16975_vm0 = vcmask 130048   ;;  %v7421_v17 = vshrl.u32 %v10584_v29, 16  ;;  %v3820_v44 = vshrl.u32 %v14073_v35, 16  ;;  %v7424_v34 = vshll.u32 %v10584_v29, 16 }
 0x2b2   : > { %6982 = vst.msk [vmem:[#allocation3 + $0x40] sm:$0xff] %vm6977_vm8, %v6869_v33  ;;  %vm16976_vm13 = vmmov %vm16975_vm0  ;;  %5065 = vrot.lane.b32.xlu1 %v4988_v28, %s10853_s24  ;;  %v4029_v20 = vpop.permute.xlu0 %4028  ;;  %v10586_v12 = vld [vmem:[#allocation2 + $0x80] sm:$0xff]   ;;  %v14186_v25 = vrot.slane %v3824_v31, 1  ;;  %v5600_v29 = vshrl.u32 %v10585_v18, 16 }
 0x2b3   : > { %8219 = vst.msk [vmem:[#allocation3 + $0xc8] sm:$0xff] %vm16975_vm0, %v8115_v55  ;;  %vm16977_vm9 = vmmov %vm16975_vm0  ;;  %vm16978_vm0 = vcmask 1045504   ;;  %v10684_v33 = vld [vmem:[#allocation2 + $0xe0] sm:$0xff]   ;;  %v7423_v53 = vrot.slane %v7421_v17, 2  ;;  %v5603_v55 = vshll.u32 %v10585_v18, 16  ;;  %v3822_v28 = vor.u32 %v3820_v44, %v14120_v16  ;;  %v14210_v16 = vld [vmem:[#allocation2 + $0x88] sm:$0xff]  }
 0x2b4   : > { %3394 = vst.msk [vmem:[#allocation3 + $0xf0] sm:$0xff] %vm16976_vm13, %v10646_v38  ;;  %9868 = vmatprep.mubr.msk.bf16.mxu0 %vm16977_vm9, %v8255_v19  ;;  %v5050_v24 = vpop.permute.xlu1 %5049  ;;  %v6296_v10 = vsel %vm16978_vm0, %v6293_v14, %v6295_v54  ;;  %vm16979_vm13 = vmmov %vm16978_vm0  ;;  %v16980_v14 = vrot.slane %v13969_v62, 1  ;;  %v7414_v38 = vrot.slane %v7412_v26, 2  ;;  %v7426_v19 = vrot.slane %v7424_v34, 3  ;;  %v14199_v62 = vld [vmem:[#allocation2 + $0x98] sm:$0xff]  }
 0x2b5   : > { %7776 = vst.msk [vmem:[#allocation3 + $0x40] sm:$0xff] %vm7771_vm6, %v13977_v42  ;;  %v4990_v42 = vsel %vm16974_vm10, %v4987_v45, %v4989_v56  ;;  %v16304_v45 = vrot.slane %v14168_v49, 1  ;;  %v6298_v61 = vsel %vm16979_vm13, %v6295_v54, %v16310_v2  ;;  %vm16981_vm9 = vmmov %vm16974_vm10  ;;  %v5609_v54 = vshrl.u32 %v10586_v12, 16  ;;  %v14205_v26 = vld [vmem:[#allocation2 + $0x98] sm:$0xff]  }
 0x2b6   : > { %4138 = vst.msk [vmem:[#allocation3 + $0x80] sm:$0xff] %vm4129_vm11, %v4029_v20  ;;  %5067 = vrot.lane.b32.xlu0 %v4990_v42, %s10853_s24  ;;  %6373 = vrot.lane.b32.xlu1 %v6296_v10, %s10856_s10  ;;  %v14188_v41 = vpop.permute.xlu0 %5055  ;;  %v4477_v35 = vsel %vm16981_vm9, %v16980_v14, %v4476_v48  ;;  %v5612_v31 = vshll.u32 %v10586_v12, 16  ;;  %vm16982_vm10 = vcmask 130048   ;;  %v8257_v20 = vld [vmem:[#allocation3 + $0x58] sm:$0xff]  ;;  %vm16984_vm13 = vmmov %vm16981_vm9  ;;  %v5602_v18 = vrot.slane %v5600_v29, 1  ;;  %v14217_v44 = vld [vmem:[#allocation2 + $0x98] sm:$0xff]  }
 0x2b7   : > { %5162 = vst.msk [vmem:[#allocation3 + $0x50] sm:$0xff] %vm5156_vm12, %v5050_v24  ;;  %vm16983_vm0 = vmmov %vm16982_vm10  ;;  %v14212_v42 = vld [vmem:[#allocation2 + $0x88] sm:$0xff]   ;;  %v4479_v17 = vsel %vm16984_vm13, %v4476_v48, %v16304_v45  ;;  %v5605_v10 = vrot.slane %v5603_v55, 2  ;;  %vm16985_vm9 = vsmask.f32 7424  ;;  %v14223_v12 = vor.u32 %v7426_v19, %v7423_v53  ;;  %v14230_v48 = vld [vmem:[#allocation2 + $0x98] sm:$0xff]  }
 0x2b8   : > { %5956 = vst.msk [vmem:[#allocation3 + $0x50] sm:$0xff] %vm5950_vm14, %v14003_v52  ;;  %v6358_v23 = vpop.permute.xlu1 %6357  ;;  %v7417_v52 = vrot.slane %v7415_v46, 3  ;;  %v3827_v34 = vsel %vm16985_vm9, %v3822_v28, %v14186_v25  ;;  %v5614_v14 = vrot.slane %v5612_v31, 2  ;;  %v10691_v29 = vld [vmem:[#allocation2 + $0xb0] sm:$0xff]   ;;  %v16308_v19 = vrot.slane %v14205_v26, 1 }
 0x2b9   : > { %6470 = vst.msk [vmem:[#allocation3 + $0x50] sm:$0xff] %vm6464_vm2, %v6358_v23  ;;  %v16305_v23 = vrot.slane %v14199_v62, 2  ;;  %v5606_v28 = vor.u32 %v5605_v10, %v5602_v18  ;;  %vm16988_vm13 = vcmask 1044480   ;;  %vm16989_vm9 = vcmask 130048  }
 0x2ba   : > { %6375 = vrot.lane.b32.xlu0 %v6298_v61, %s10856_s10  ;;  %3407 = vst.msk [vmem:[#allocation3 + $0x1c0] sm:$0xff] %vm16982_vm10, %v10684_v33  ;;  %4554 = vrot.lane.b32.xlu1 %v4477_v35, %s10852_s23  ;;  %v14207_v24 = vpop.permute.xlu0 %6363  ;;  %v5611_v61 = vrot.slane %v5609_v54, 1  ;;  %v14225_v35 = vld [vmem:[#allocation2 + $0x88] sm:$0xff]   ;;  %v10654_v33 = vld [vmem:[#allocation2 + $0x80] sm:$0xff]   ;;  %vm16986_vm10 = vsmask.f32 5376 }
 0x2bb   : > { %6983 = vst.msk [vmem:[#allocation3 + $0x50] sm:$0xff] %vm6977_vm8, %v13858_v4  ;;  %v7418_v4 = vor.u32 %v7417_v52, %v7414_v38  ;;  %v16309_v52 = vrot.slane %v14210_v16, 2  ;;  %v8116_v53 = vrot.slane %v10654_v33, 3  ;;  %v14275_v33 = vld [vmem:[#allocation2 + $0x90] sm:$0xff]  }
 0x2bc   : > { %v8254_v32 = vld [vmem:[#allocation3 + $0x40] sm:$0xff]  ;;  %v4539_v46 = vpop.permute.xlu1 %4538  ;;  %v14245_v31 = vor.u32 %v5614_v14, %v5611_v61  ;;  %3401 = vst.msk [vmem:[#allocation3 + $0x160] sm:$0xff] %vm16989_vm9, %v10691_v29 }
 0x2bd   : > { %8585 = vmatmul.mubr.bf16.gmra.mrb[52].mxu0 %v8254_v32  ;;  %4650 = vst.msk [vmem:[#allocation3 + $0x60] sm:$0xff] %vm4643_vm7, %v4539_v46  ;;  %v7419_v32 = vsel %vm16986_vm10, %v14062_v8, %v7418_v4  ;;  %v14248_v46 = vld [vmem:[#allocation2 + $0x90] sm:$0xff]   ;;  %v8117_v8 = vsel %vm16988_vm13, %v8114_v5, %v8116_v53  ;;  %v14298_v5 = vld [vmem:[#allocation2 + $0x88] sm:$0xff]  }
 0x2be   : > { %9869 = vmatprep.mubr.msk.bf16.mxu0 %vm16983_vm0, %v8257_v20  ;;  %4556 = vrot.lane.b32.xlu0 %v4479_v17, %s10852_s23  ;;  %5163 = vst.msk [vmem:[#allocation3 + $0x60] sm:$0xff] %vm5156_vm12, %v13894_v51  ;;  %v14232_v38 = vpop.permute.xlu0 %4544  ;;  %v14239_v51 = vld [vmem:[#allocation2 + $0x88] sm:$0xff]   ;;  %vm16987_vm0 = vmmov %vm16986_vm10  ;;  %v16307_v20 = vrot.slane %v14212_v42, 1  ;;  %v14266_v61 = vld [vmem:[#allocation2 + $0x90] sm:$0xff]  }
 0x2bf   : > { %4042 = vrot.lane.b32.xlu1 %v3827_v34, %s10854_s25  ;;  %v7428_v54 = vsel %vm16987_vm0, %v7418_v4, %v14223_v12  ;;  %v14250_v17 = vld [vmem:[#allocation2 + $0x88] sm:$0xff]   ;;  %v16311_v4 = vrot.slane %v14217_v44, 2  ;;  %vm16990_vm10 = vmmov %vm16989_vm9  ;;  %vm16991_vm0 = vsmask.f32 6400  ;;  %v14277_v29 = vld [vmem:[#allocation2 + $0x90] sm:$0xff]   ;;  %vm16995_vm9 = vcmask 1045504  }
 0x2c0   : > { %v4027_v55 = vpop.permute.xlu1 %4026  ;;  %8220 = vst.msk [vmem:[#allocation3 + $0xd8] sm:$0xff] %vm16990_vm10, %v8117_v8  ;;  %v5607_v39 = vsel %vm16991_vm0, %v14087_v21, %v5606_v28  ;;  %vm16992_vm13 = vmmov %vm16991_vm0  ;;  %v14279_v21 = vld [vmem:[#allocation2 + $0x90] sm:$0xff]   ;;  %v16997_v8 = vld [vmem:[#allocation12_spill] sm:$0xff]  ;;  %vm16999_vm0 = vcmask 1046528   ;;  %v3840_v14 = vshll.u32 %v14266_v61, 16 }
 0x2c1   : > { %4137 = vst.msk [vmem:[#allocation3 + $0x70] sm:$0xff] %vm4129_vm11, %v4027_v55  ;;  %v14281_v55 = vld [vmem:[#allocation2 + $0x88] sm:$0xff]   ;;  %vm16996_vm10 = vmmov %vm16995_vm9 }
 0x2c2   : > { %7678 = vrot.lane.b32.xlu0 %v7419_v32, %s10857_s17  ;;  %4651 = vst.msk [vmem:[#allocation3 + $0x70] sm:$0xff] %vm4643_vm7, %v13935_v59  ;;  %v5886_v10 = vpop.permute.xlu0 %5885  ;;  %v5616_v59 = vsel %vm16992_vm13, %v5606_v28, %v14245_v31  ;;  %v14285_v32 = vld [vmem:[#allocation2 + $0x88] sm:$0xff]   ;;  %v14288_v28 = vld [vmem:[#allocation2 + $0x98] sm:$0xff]   ;;  %vm17000_vm13 = vcmask 1044480  }
 0x2c3   : > { %7680 = vrot.lane.b32.xlu1 %v7428_v54, %s10857_s17  ;;  %5977 = vst.msk [vmem:[#allocation3 + $0x1a0] sm:$0xff] %vm5950_vm14, %v5886_v10  ;;  %v16306_v10 = vrot.slane %v14281_v55, 3  ;;  %v7451_v36 = vshll.u32 %v14288_v28, 16 }
 0x2c4   : > { %v7665_v34 = vpop.permute.xlu1 %7664  ;;  %6491 = vst.msk [vmem:[#allocation3 + $0x1a0] sm:$0xff] %vm6464_vm2, %v14077_v0  ;;  %v3832_v0 = vshll.u32 %v14250_v17, 16 }
 0x2c5   : > { %7777 = vst.msk [vmem:[#allocation3 + $0x50] sm:$0xff] %vm7771_vm6, %v7665_v34 }
 0x2c6   : > { %5859 = vrot.lane.b32.xlu0 %v5607_v39, %s10858_s18  ;;  %v6913_v54 = vpop.permute.xlu0 %6912  ;;  %v16993_v39 = vld [vmem:[#allocation11_spill] sm:$0xff] }
 0x2c7   : > { %5861 = vrot.lane.b32.xlu1 %v5616_v59, %s10858_s18  ;;  %7004 = vst.msk [vmem:[#allocation3 + $0x1a0] sm:$0xff] %vm6977_vm8, %v6913_v54  ;;  %v16994_v45 = vrot.slane %v16993_v39, 2  ;;  %v6811_v54 = vsel %vm16996_vm10, %v6808_v30, %v16309_v52  ;;  %v16998_v39 = vrot.slane %v16997_v8, 1  ;;  %v14324_v30 = vrot.slane %v3832_v0, 1 }
 0x2c8   : > { %v5846_v34 = vpop.permute.xlu1 %5845  ;;  %v7430_v8 = vshrl.u32 %v14285_v32, 16  ;;  %vm17002_vm10 = vcmask 130048  }
 0x2c9   : > { %v6817_v59 = vsel %vm16995_vm9, %v16305_v23, %v16994_v45  ;;  %5957 = vst.msk [vmem:[#allocation3 + $0x60] sm:$0xff] %vm5950_vm14, %v5846_v34  ;;  %v4998_v45 = vsel %vm16999_vm0, %v16308_v19, %v16998_v39  ;;  %v8119_v34 = vsel %vm17000_vm13, %v8116_v53, %v16306_v10  ;;  %v10174_v23 = vpop.f32.mrb[32].mxu1  ;;  %vm17001_vm9 = vmmov %vm16999_vm0  ;;  %v17003_v39 = vld [vmem:[#allocation13_spill] sm:$0xff]  ;;  %vm17005_vm0 = vcmask 1045504  }
 0x2ca   : > { %6894 = vrot.lane.b32.xlu0 %v6817_v59, %s10855_s26  ;;  %6471 = vst.msk [vmem:[#allocation3 + $0x60] sm:$0xff] %vm6464_vm2, %v13916_v13  ;;  %v4992_v60 = vsel %vm17001_vm9, %v4989_v56, %v16307_v20  ;;  %v2443_v53 = vadd.f32 %v14023_v9, %v10174_v23  ;;  %v5094_v59 = vpop.permute.xlu0 %5093  ;;  %v17004_v10 = vrot.slane %v17003_v39, 2  ;;  %v2434_v0 = vpop.f32.mrb[33].mxu1  ;;  %v7433_v19 = vshll.u32 %v14285_v32, 16  ;;  %vm17006_vm13 = vmmov %vm17002_vm10 }
 0x2cb   : > { %6888 = vrot.lane.b32.xlu1 %v6811_v54, %s10855_s26  ;;  %8221 = vst.msk [vmem:[#allocation3 + $0xe8] sm:$0xff] %vm17002_vm10, %v8119_v34  ;;  %v2435_v52 = vadd.f32 %v14023_v9, %v2434_v0  ;;  %v10175_v2 = vpop.f32.mrb[34].mxu1  ;;  %v14343_v56 = vrot.slane %v3840_v14, 1  ;;  %v14350_v32 = vrot.slane %v7430_v8, 2  ;;  %v10665_v0 = vld [vmem:[#allocation2 + $0x80] sm:$0xff]   ;;  %v17009_v8 = vrot.slane %v14138_v22, 2  ;;  %vm17010_vm9 = vmmov %vm17005_vm0 }
 0x2cc   : > { %v6306_v13 = vsel %vm17005_vm0, %v16311_v4, %v17004_v10  ;;  %5184 = vst.msk [vmem:[#allocation3 + $0x1b0] sm:$0xff] %vm5156_vm12, %v5094_v59  ;;  %v6873_v20 = vpop.permute.xlu1 %6872  ;;  %v8256_v34 = vld [vmem:[#allocation3 + $0x50] sm:$0xff]  ;;  %v2483_v39 = vmax.f32 %v2443_v53, 0.0  ;;  %v8259_v10 = vld [vmem:[#allocation3 + $0x68] sm:$0xff]  ;;  %v7448_v59 = vshrl.u32 %v14288_v28, 16  ;;  %v2446_v23 = vadd.f32 %v14023_v9, %v10175_v2  ;;  %v2437_v4 = vpop.f32.mrb[35].mxu1  ;;  %vm17017_vm0 = vmmov %vm17006_vm13 }
 0x2cd   : > { %6984 = vst.msk [vmem:[#allocation3 + $0x60] sm:$0xff] %vm6977_vm8, %v6873_v20  ;;  %8593 = vmatmul.mubr.bf16.gmra.mrb[56].mxu0 %v8256_v34  ;;  %v5618_v20 = vshrl.u32 %v14298_v5, 16  ;;  %v2481_v14 = vmax.f32 %v2435_v52, 0.0  ;;  %v2438_v18 = vadd.f32 %v14023_v9, %v2437_v4  ;;  %v17013_v52 = vrot.slane %v14230_v48, 1  ;;  %v17015_v28 = vld [vmem:[#allocation41_spill] sm:$0xff] }
 0x2ce   : > { %5075 = vrot.lane.b32.xlu0 %v4998_v45, %s10853_s24  ;;  %9870 = vmatprep.mubr.msk.bf16.mxu0 %vm17006_vm13, %v8259_v10  ;;  %v2519_v53 = vsel %vm12835_vm15, %v2483_v39, 0.0  ;;  %v14355_v34 = vpop.permute.xlu0 %6401  ;;  %v2484_v2 = vmax.f32 %v2446_v23, 0.0  ;;  %v17008_v10 = vrot.slane %v14225_v35, 2  ;;  %v17012_v45 = vrot.slane %v17011_v27, 1  ;;  %3395 = vst.msk [vmem:[#allocation3 + $0x100] sm:$0xff] %vm17017_vm0, %v10665_v0 }
 0x2cf   : > { %5069 = vrot.lane.b32.xlu1 %v4992_v60, %s10853_s24  ;;  %v9987_v54 = vpack.c.bf16 %v2519_v53, %v2519_v53  ;;  %vm17014_vm15 = vcmask 1046528   ;;  %v14369_v15 = vrot.slane %v7433_v19, 3  ;;  %vm17016_vm10 = vnez %v17015_v28 }
 0x2d0   : > { %v5054_v60 = vpop.permute.xlu1 %5053  ;;  %v6300_v11 = vsel %vm17010_vm9, %v17009_v8, %v17008_v10  ;;  %v4487_v39 = vsel %vm17014_vm15, %v17013_v52, %v17012_v45  ;;  %v2517_v23 = vsel %vm17016_vm10, %v2481_v14, 0.0  ;;  %v2520_v27 = vsel %vm12910_vm3, %v2484_v2, 0.0  ;;  %vm17021_vm13 = vmmov %vm17014_vm15 }
 0x2d1   : > { %5164 = vst.msk [vmem:[#allocation3 + $0x70] sm:$0xff] %vm5156_vm12, %v5054_v60  ;;  %v2969_v9 = vshrl.u32 %v9987_v54, 16  ;;  %v2972_v22 = vshll.u32 %v9987_v54, 16  ;;  %v9985_v4 = vpack.c.bf16 %v2517_v23, %v2517_v23  ;;  %v17019_v19 = vrot.slane %v14239_v51, 1  ;;  %vm17024_vm3 = vmmov %vm17010_vm9 }
 0x2d2   : > { %6383 = vrot.lane.b32.xlu0 %v6306_v13, %s10856_s10  ;;  %v17020_v10 = vrot.slane %v14168_v49, 1  ;;  %v14384_v28 = vrot.slane %v7448_v59, 2  ;;  %v9988_v0 = vpack.c.bf16 %v2520_v27, %v2520_v27  ;;  %v2482_v60 = vmax.f32 %v2438_v18, 0.0  ;;  %v7667_v8 = vpop.permute.xlu0 %7666  ;;  %v14391_v59 = vld [vmem:[#allocation2 + $0x98] sm:$0xff]  }
 0x2d3   : > { %6377 = vrot.lane.b32.xlu1 %v6300_v11, %s10856_s10  ;;  %v2971_v13 = vrot.slane %v2969_v9, 6  ;;  %v2974_v45 = vrot.slane %v2972_v22, 7  ;;  %v2949_v54 = vshrl.u32 %v9985_v4, 16  ;;  %v2952_v52 = vshll.u32 %v9985_v4, 16  ;;  %7778 = vst.msk [vmem:[#allocation3 + $0x60] sm:$0xff] %vm7771_vm6, %v7667_v8 }
 0x2d4   : > { %v4481_v14 = vsel %vm17021_vm13, %v17020_v10, %v17019_v19  ;;  %v6362_v2 = vpop.permute.xlu1 %6361  ;;  %v2947_v11 = vrot.slane %v14093_v3, 4  ;;  %v2979_v23 = vshrl.u32 %v9988_v0, 16  ;;  %v2982_v53 = vshll.u32 %v9988_v0, 16  ;;  %v14400_v3 = vld [vmem:[#allocation2 + $0x90] sm:$0xff]   ;;  %vm17034_vm13 = vmmov %vm17017_vm0 }
 0x2d5   : > { %v2518_v49 = vsel %vm13733_vm4, %v2482_v60, 0.0  ;;  %v14393_v18 = vor.u32 %v2974_v45, %v2971_v13  ;;  %v2951_v9 = vrot.slane %v2949_v54, 6  ;;  %v2954_v22 = vrot.slane %v2952_v52, 7  ;;  %v14403_v45 = vld [vmem:[#allocation2 + $0xf8] sm:$0xff]   ;;  %vm17027_vm4 = vmmov %vm17024_vm3 }
 0x2d6   : > { %4564 = vrot.lane.b32.xlu0 %v4487_v39, %s10852_s23  ;;  %v9986_v27 = vpack.c.bf16 %v2518_v49, %v2518_v49  ;;  %v14396_v4 = vrot.slane %v7451_v36, 3  ;;  %v14398_v19 = vrot.slane %v5618_v20, 1  ;;  %v2981_v10 = vrot.slane %v2979_v23, 6  ;;  %v5848_v0 = vpop.permute.xlu0 %5847 }
 0x2d7   : > { %4558 = vrot.lane.b32.xlu1 %v4481_v14, %s10852_s23  ;;  %v2984_v58 = vrot.slane %v2982_v53, 7  ;;  %v2977_v39 = vrot.slane %v14393_v18, 4  ;;  %v2955_v60 = vor.u32 %v2954_v22, %v2951_v9  ;;  %5958 = vst.msk [vmem:[#allocation3 + $0x70] sm:$0xff] %vm5950_vm14, %v5848_v0  ;;  %v17022_v36 = vrot.slane %v14248_v46, 2 }
 0x2d8   : > { %v2959_v8 = vshrl.u32 %v9986_v27, 16  ;;  %v2962_v13 = vshll.u32 %v9986_v27, 16  ;;  %v4543_v54 = vpop.permute.xlu1 %4542  ;;  %v17023_v20 = vrot.slane %v14210_v16, 2  ;;  %v17025_v52 = vrot.slane %v14199_v62, 2  ;;  %v3063_v27 = vld [vmem:[#allocation2 + $0x134] sm:$0x3] }
 0x2d9   : > { %v17026_v23 = vmov %v17022_v36  ;;  %v17028_v49 = vshrl.u32 %v14140_v63, 16  ;;  %v2985_v22 = vor.u32 %v2984_v58, %v2981_v10  ;;  %6472 = vst.msk [vmem:[#allocation3 + $0x70] sm:$0xff] %vm6464_vm2, %v6362_v2  ;;  %v14422_v16 = vld [vmem:[#allocation2 + $0x98] sm:$0xff]   ;;  %v2956_v62 = vsel %vm11792_vm1, %v2947_v11, %v2955_v60  ;;  %v8261_v63 = vld [vmem:[#allocation3 + $0x78] sm:$0xff] }
 0x2da   : > { %v6813_v14 = vsel %vm17024_vm3, %v17023_v20, %v17022_v36  ;;  %v6815_v53 = vsel %vm17027_vm4, %v17026_v23, %v17025_v52  ;;  %4652 = vst.msk [vmem:[#allocation3 + $0x80] sm:$0xff] %vm4643_vm7, %v4543_v54  ;;  %v2957_v46 = vrot.slane %v2955_v60, 4  ;;  %v2961_v0 = vrot.slane %v2959_v8, 6  ;;  %v14426_v20 = vld [vmem:[#allocation2 + $0x98] sm:$0xff]   ;;  %v10704_v11 = vld [vmem:[#allocation2 + $0xe8] sm:$0xff]   ;;  %v7707_v10 = vpop.permute.xlu0 %7706 }
 0x2db   : > { %v3830_v9 = vor.u32 %v17028_v49, %v14186_v25  ;;  %6890 = vrot.lane.b32.xlu0 %v6813_v14, %s10855_s26  ;;  %v2964_v36 = vrot.slane %v2962_v13, 7  ;;  %6985 = vst.msk [vmem:[#allocation3 + $0x70] sm:$0xff] %vm6977_vm8, %v14145_v7  ;;  %6892 = vrot.lane.b32.xlu1 %v6815_v53, %s10855_s26  ;;  %vm17029_vm9 = vcmask 125952   ;;  %v2986_v25 = vsel %vm11792_vm1, %v2977_v39, %v2985_v22  ;;  %v8258_v58 = vld [vmem:[#allocation3 + $0x60] sm:$0xff]  ;;  %v10690_v14 = vld [vmem:[#allocation2 + $0xa0] sm:$0xff]  }
 0x2dc   : > { %5165 = vst.msk [vmem:[#allocation3 + $0x80] sm:$0xff] %vm5156_vm12, %v14188_v41  ;;  %v2987_v2 = vrot.slane %v2985_v22, 4  ;;  %v17030_v60 = vshll.u32 %v14298_v5, 16  ;;  %v5636_v7 = vshrl.u32 %v14391_v59, 16  ;;  %vm17031_vm15 = vmmov %vm17029_vm9  ;;  %v10672_v13 = vld [vmem:[#allocation2 + $0x88] sm:$0xff]   ;;  %v8146_v54 = vrot.slane %v14403_v45, 3  ;;  %8601 = vmatmul.mubr.bf16.gmra.mrb[60].mxu0 %v8258_v58  ;;  %v4031_v39 = vpop.permute.xlu1 %4030 }
 0x2dd   : > { %3059 = vst.msk [vmem:[#allocation2 + $0x124] sm:$0xf] %vm17029_vm9, %v2956_v62  ;;  %v2965_v41 = vor.u32 %v2964_v36, %v2961_v0  ;;  %vm17032_vm10 = vsmask.f32 7424  ;;  %v5639_v5 = vshll.u32 %v14391_v59, 16  ;;  %v7439_v23 = vshrl.u32 %v14400_v3, 16  ;;  %9871 = vmatprep.mubr.msk.bf16.mxu0 %vm17034_vm13, %v8261_v63  ;;  %vm17039_vm4 = vmmov %vm17029_vm9 }
 0x2de   : > { %v14438_v8 = vrot.slane %v17030_v60, 2  ;;  %3062 = vst.msk [vmem:[#allocation2 + $0x130] sm:$0xf] %vm17031_vm15, %v2986_v25  ;;  %v3835_v52 = vsel %vm17032_vm10, %v3830_v9, %v14324_v30  ;;  %v3064_v49 = vsel %vm16702_vm5, %v2987_v2, %v3063_v27  ;;  %v10696_v22 = vld [vmem:[#allocation2 + $0xa8] sm:$0xff]   ;;  %v10711_v62 = vld [vmem:[#allocation2 + $0xb8] sm:$0xff]   ;;  %v17035_v0 = vrot.slane %v14205_v26, 1  ;;  %vm17038_vm5 = vmmov %vm17017_vm0 }
 0x2df   : > { %7798 = vst.msk [vmem:[#allocation3 + $0x1a0] sm:$0xff] %vm7771_vm6, %v7707_v10  ;;  %4044 = vrot.lane.b32.xlu0 %v3835_v52, %s10854_s25  ;;  %v17036_v9 = vrot.slane %v14275_v33, 1  ;;  %vm17037_vm3 = vcmask 1046528   ;;  %3065 = vst [vmem:[#allocation2 + $0x134] sm:$0x3] %v3064_v49  ;;  %v2966_v27 = vsel %vm11792_vm1, %v2957_v46, %v2965_v41  ;;  %v2967_v25 = vrot.slane %v2965_v41, 4 }
 0x2e0   : > { %3408 = vst.msk [vmem:[#allocation3 + $0x1d0] sm:$0xff] %vm17017_vm0, %v10704_v11  ;;  %v10701_v2 = vld [vmem:[#allocation2 + $0xb0] sm:$0xff]   ;;  %v7442_v63 = vshll.u32 %v14400_v3, 16  ;;  %v8122_v26 = vrot.slane %v14426_v20, 3  ;;  %vm17040_vm9 = vmmov %vm17017_vm0  ;;  %v5888_v11 = vpop.permute.xlu0 %5887  ;;  %v3848_v46 = vshll.u32 %v14422_v16, 16  ;;  %vm17042_vm15 = vcmask 1044480   ;;  %v7669_v41 = vpop.permute.xlu1 %7668 }
 0x2e1   : > { %4139 = vst.msk [vmem:[#allocation3 + $0x90] sm:$0xff] %vm4129_vm11, %v4031_v39  ;;  %v4996_v36 = vsel %vm17037_vm3, %v17036_v9, %v17035_v0  ;;  %v2976_v10 = vsel %vm11792_vm1, %v2967_v25, %v14393_v18  ;;  %v10707_v60 = vld [vmem:[#allocation2 + $0xb8] sm:$0xff]   ;;  %v17044_v39 = vrot.slane %v14212_v42, 1  ;;  %vm17045_vm10 = vmmov %vm17037_vm3  ;;  %v8124_v1 = vrot.slane %v10690_v14, 3  ;;  %v14495_v49 = vld [vmem:[#allocation2 + $0xc0] sm:$0xff]  }
 0x2e2   : > { %3396 = vst.msk [vmem:[#allocation3 + $0x110] sm:$0xff] %vm17038_vm5, %v10672_v13  ;;  %5073 = vrot.lane.b32.xlu1 %v4996_v36, %s10853_s24  ;;  %v17043_v13 = vmov %v17036_v9  ;;  %vm17046_vm0 = vmmov %vm17039_vm4  ;;  %v8126_v18 = vrot.slane %v10696_v22, 3  ;;  %v17049_v33 = vrot.slane %v14277_v29, 2  ;;  %vm17050_vm1 = vcmask 1045504   ;;  %v8301_v14 = vld [vmem:[#allocation3 + $0x1b8] sm:$0xff] }
 0x2e3   : > { %4653 = vst.msk [vmem:[#allocation3 + $0x90] sm:$0xff] %vm4643_vm7, %v14232_v38  ;;  %v17041_v38 = vrot.slane %v13864_v40, 3  ;;  %v4994_v52 = vsel %vm17045_vm10, %v17044_v39, %v17043_v13  ;;  %vm17047_vm13 = vmmov %vm17038_vm5  ;;  %v17048_v40 = vrot.slane %v14217_v44, 2  ;;  %v8128_v53 = vrot.slane %v10701_v2, 3 }
 0x2e4   : > { %3060 = vst.msk [vmem:[#allocation2 + $0x128] sm:$0xf] %vm17039_vm4, %v2966_v27  ;;  %5071 = vrot.lane.b32.xlu0 %v4994_v52, %s10853_s24  ;;  %vm17051_vm3 = vmmov %vm17042_vm15  ;;  %v8130_v9 = vrot.slane %v10707_v60, 3  ;;  %v5850_v36 = vpop.permute.xlu1 %5849  ;;  %v17056_v27 = vmov %v17049_v33  ;;  %v17057_v25 = vrot.slane %v14225_v35, 2  ;;  %v17064_v29 = vshrl.u32 %v14250_v17, 16 }
 0x2e5   : > { %3402 = vst.msk [vmem:[#allocation3 + $0x170] sm:$0xff] %vm17040_vm9, %v10711_v62  ;;  %v8147_v58 = vsel %vm17042_vm15, %v17041_v38, %v8146_v54  ;;  %v6304_v42 = vsel %vm17050_vm1, %v17049_v33, %v17048_v40  ;;  %vm17052_vm5 = vmmov %vm17051_vm3  ;;  %v6915_v62 = vpop.permute.xlu0 %6914  ;;  %v8132_v13 = vrot.slane %v14495_v49, 3  ;;  %v17067_v17 = vrot.slane %v14239_v51, 1  ;;  %v10677_v33 = vld [vmem:[#allocation2 + $0x98] sm:$0xff]  }
 0x2e6   : > { %5978 = vst.msk [vmem:[#allocation3 + $0x1b0] sm:$0xff] %vm5950_vm14, %v5888_v11  ;;  %6381 = vrot.lane.b32.xlu1 %v6304_v42, %s10856_s10  ;;  %v8127_v22 = vsel %vm17052_vm5, %v8124_v1, %v8126_v18  ;;  %v8298_v0 = vld [vmem:[#allocation3 + $0x1a0] sm:$0xff]  ;;  %vm17053_vm4 = vmmov %vm17040_vm9  ;;  %v17061_v11 = vrot.slane %v14230_v48, 1  ;;  %v3838_v35 = vor.u32 %v17064_v29, %v14324_v30  ;;  %v8263_v48 = vld [vmem:[#allocation3 + $0x88] sm:$0xff]  ;;  %v5641_v40 = vrot.slane %v5639_v5, 2 }
 0x2e7   : > { %3061 = vst.msk [vmem:[#allocation2 + $0x12c] sm:$0xf] %vm17046_vm0, %v2976_v10  ;;  %vm17054_vm9 = vmmov %vm17053_vm4  ;;  %8761 = vmatmul.mubr.bf16.vlgmr.msra.gmra.mrb[36].mxu1 %v8298_v0  ;;  %v17062_v10 = vrot.slane %v14279_v21, 1  ;;  %v7454_v21 = vor.u32 %v14396_v4, %v14384_v28  ;;  %v7444_v59 = vrot.slane %v7442_v63, 3  ;;  %v14563_v4 = vrot.slane %v3848_v46, 1  ;;  %v17074_v63 = vld [vmem:[#allocation21_spill] sm:$0xff] }
 0x2e8   : > { %8235 = vst.msk [vmem:[#allocation3 + $0x1c8] sm:$0xff] %vm17047_vm13, %v8147_v58  ;;  %vm17055_vm15 = vmmov %vm17051_vm3  ;;  %v8131_v58 = vsel %vm17051_vm3, %v8128_v53, %v8130_v9  ;;  %v6877_v39 = vpop.permute.xlu1 %6876  ;;  %v3852_v5 = vshrl.u32 %v14422_v16, 16  ;;  %v10681_v0 = vld [vmem:[#allocation2 + $0x90] sm:$0xff]  }
 0x2e9   : > { %6492 = vst.msk [vmem:[#allocation3 + $0x1b0] sm:$0xff] %vm6464_vm2, %v14355_v34  ;;  %v8125_v34 = vsel %vm17051_vm3, %v8122_v26, %v8124_v1  ;;  %v8129_v44 = vsel %vm17055_vm15, %v8126_v18, %v8128_v53  ;;  %vm17058_vm10 = vmmov %vm17050_vm1  ;;  %vm17063_vm1 = vcmask 1046528   ;;  %v14528_v60 = vpop.permute.xlu0 %6878  ;;  %v17066_v52 = vmov %v17062_v10 }
 0x2ea   : > { %7779 = vst.msk [vmem:[#allocation3 + $0x70] sm:$0xff] %vm7771_vm6, %v7669_v41  ;;  %v6302_v2 = vsel %vm17058_vm10, %v17057_v25, %v17056_v27  ;;  %vm17059_vm0 = vmmov %vm17053_vm4  ;;  %v4485_v38 = vsel %vm17063_vm1, %v17062_v10, %v17061_v11  ;;  %v10614_v41 = vld [vmem:[#allocation2 + $0x90] sm:$0xff]   ;;  %v5638_v18 = vrot.slane %v5636_v7, 1 }
 0x2eb   : > { %8224 = vst.msk [vmem:[#allocation3 + $0x118] sm:$0xff] %vm17053_vm4, %v8125_v34  ;;  %6379 = vrot.lane.b32.xlu0 %v6302_v2, %s10856_s10  ;;  %vm17060_vm13 = vmmov %vm17059_vm0  ;;  %4562 = vrot.lane.b32.xlu1 %v4485_v38, %s10852_s23  ;;  %v10615_v7 = vld [vmem:[#allocation2 + $0xf0] sm:$0xff]   ;;  %v5627_v16 = vshrl.u32 %v10614_v41, 16 }
 0x2ec   : > { %8225 = vst.msk [vmem:[#allocation3 + $0x128] sm:$0xff] %vm17054_vm9, %v8127_v22  ;;  %9891 = vmatprep.mubr.msk.bf16.mxu1 %vm17060_vm13, %v8301_v14  ;;  %vm17065_vm5 = vmmov %vm17059_vm0  ;;  %vm17069_vm9 = vsmask.f32 7424  ;;  %v5058_v42 = vpop.permute.xlu1 %5057  ;;  %v5642_v53 = vor.u32 %v5641_v40, %v5638_v18  ;;  %v5630_v14 = vshll.u32 %v10614_v41, 16  ;;  %v3844_v22 = vshrl.u32 %v14266_v61, 16  ;;  %v14602_v41 = vld [vmem:[#allocation2 + $0xb8] sm:$0xff]  }
 0x2ed   : > { %7005 = vst.msk [vmem:[#allocation3 + $0x1b0] sm:$0xff] %vm6977_vm8, %v6915_v62  ;;  %vm17068_vm4 = vmmov %vm17063_vm1  ;;  %v3843_v51 = vsel %vm17069_vm9, %v3838_v35, %v14343_v56  ;;  %v4033_v28 = vpop.permute.xlu0 %4032  ;;  %vm17073_vm1 = vsmask.f32 5376  ;;  %v10679_v62 = vld [vmem:[#allocation2 + $0x90] sm:$0xff]   ;;  %v5629_v27 = vrot.slane %v5627_v16, 1  ;;  %v7550_v11 = vshll.u32 %v10615_v7, 16 }
 0x2ee   : > { %8226 = vst.msk [vmem:[#allocation3 + $0x138] sm:$0xff] %vm17059_vm0, %v8129_v44  ;;  %v4483_v30 = vsel %vm17068_vm4, %v17067_v17, %v17066_v52  ;;  %vm17070_vm15 = vmmov %vm17051_vm3  ;;  %v17077_v44 = vld [vmem:[#allocation26_spill] sm:$0xff]  ;;  %v8120_v25 = vrot.slane %v10679_v62, 3  ;;  %v5632_v2 = vrot.slane %v5630_v14, 2  ;;  %v14606_v52 = vld [vmem:[#allocation2 + $0xe8] sm:$0xff]  }
 0x2ef   : > { %5959 = vst.msk [vmem:[#allocation3 + $0x80] sm:$0xff] %vm5950_vm14, %v5850_v36  ;;  %4560 = vrot.lane.b32.xlu0 %v4483_v30, %s10852_s23  ;;  %4046 = vrot.lane.b32.xlu1 %v3843_v51, %s10854_s25  ;;  %vm17071_vm10 = vmmov %vm17059_vm0  ;;  %v3854_v36 = vor.u32 %v3852_v5, %v14563_v4  ;;  %v10719_v17 = vld [vmem:[#allocation2 + $0xc8] sm:$0xff]   ;;  %v10622_v51 = vld [vmem:[#allocation2 + $0xc0] sm:$0xff]  }
 0x2f0   : > { %6473 = vst.msk [vmem:[#allocation3 + $0x80] sm:$0xff] %vm6464_vm2, %v14207_v24  ;;  %v14538_v24 = vor.u32 %v14369_v15, %v14350_v32  ;;  %v8133_v15 = vsel %vm17070_vm15, %v8130_v9, %v8132_v13  ;;  %v7441_v32 = vrot.slane %v7439_v23, 2  ;;  %vm17072_vm13 = vmmov %vm17059_vm0  ;;  %v14572_v23 = vor.u32 %v14438_v8, %v14398_v19  ;;  %v14580_v19 = vpop.permute.xlu1 %6365  ;;  %v14625_v5 = vld [vmem:[#allocation2 + $0xc0] sm:$0xff]   ;;  %v10626_v14 = vld [vmem:[#allocation2 + $0xf0] sm:$0xff]  }
 0x2f1   : > { %8227 = vst.msk [vmem:[#allocation3 + $0x148] sm:$0xff] %vm17065_vm5, %v8131_v58  ;;  %v8260_v1 = vld [vmem:[#allocation3 + $0x70] sm:$0xff]  ;;  %vm17075_vm3 = vmmov %vm17073_vm1  ;;  %v5060_v34 = vpop.permute.xlu0 %5059  ;;  %vm17076_vm5 = vsmask.f32 6400  ;;  %v7496_v16 = vshll.u32 %v10622_v51, 16 }
 0x2f2   : > { %6986 = vst.msk [vmem:[#allocation3 + $0x80] sm:$0xff] %vm6977_vm8, %v6877_v39  ;;  %8609 = vmatmul.mubr.bf16.gmra.mrb[64].mxu0 %v8260_v1  ;;  %v7437_v3 = vsel %vm17073_vm1, %v14223_v12, %v14538_v24  ;;  %v7464_v46 = vsel %vm17075_vm3, %v7454_v21, %v17074_v63  ;;  %v7547_v12 = vshrl.u32 %v10615_v7, 16  ;;  %v5625_v8 = vsel %vm17076_vm5, %v14245_v31, %v14572_v23  ;;  %vm17078_vm4 = vmmov %vm17076_vm5  ;;  %v17082_v58 = vld [vmem:[#allocation19_spill] sm:$0xff]  ;;  %v10725_v63 = vld [vmem:[#allocation2 + $0xd0] sm:$0xff]  }
 0x2f3   : > { %9872 = vmatprep.mubr.msk.bf16.mxu0 %vm17071_vm10, %v8263_v48  ;;  %3398 = vst.msk [vmem:[#allocation3 + $0x130] sm:$0xff] %vm17059_vm0, %v10677_v33  ;;  %7682 = vrot.lane.b32.xlu0 %v7437_v3, %s10857_s17  ;;  %v5652_v9 = vsel %vm17078_vm4, %v5642_v53, %v17077_v44  ;;  %vm17079_vm9 = vmmov %vm17059_vm0  ;;  %v7445_v61 = vor.u32 %v7444_v59, %v7441_v32  ;;  %v17080_v31 = vrot.slane %v14281_v55, 3  ;;  %v7552_v33 = vrot.slane %v7550_v11, 3  ;;  %v10724_v32 = vld [vmem:[#allocation2 + $0xf0] sm:$0xff]   ;;  %v10783_v7 = vld [vmem:[#allocation2 + $0xe0] sm:$0xff]  }
 0x2f4   : > { %8228 = vst.msk [vmem:[#allocation3 + $0x158] sm:$0xff] %vm17072_vm13, %v8133_v15  ;;  %7688 = vrot.lane.b32.xlu1 %v7464_v46, %s10857_s17  ;;  %v4547_v29 = vpop.permute.xlu1 %4546  ;;  %vm17081_vm10 = vmmov %vm17073_vm1  ;;  %vm17083_vm13 = vsmask.f32 7424  ;;  %v5633_v55 = vor.u32 %v5632_v2, %v5629_v27  ;;  %v7549_v39 = vrot.slane %v7547_v12, 2  ;;  %v3846_v1 = vor.u32 %v3844_v22, %v14343_v56  ;;  %v14634_v3 = vld [vmem:[#allocation2 + $0xe8] sm:$0xff]   ;;  %v10736_v44 = vld [vmem:[#allocation2 + $0xd8] sm:$0xff]  }
 0x2f5   : > { %4140 = vst.msk [vmem:[#allocation3 + $0xa0] sm:$0xff] %vm4129_vm11, %v4033_v28  ;;  %v14591_v10 = vpop.permute.xlu0 %6367  ;;  %v8121_v38 = vsel %vm17070_vm15, %v17080_v31, %v8120_v25  ;;  %v7455_v35 = vsel %vm17081_vm10, %v7445_v61, %v7454_v21  ;;  %v3859_v48 = vsel %vm17083_vm13, %v3854_v36, %v17082_v58  ;;  %vm17084_vm1 = vmmov %vm17078_vm4  ;;  %v8134_v15 = vrot.slane %v10719_v17, 3  ;;  %v14668_v11 = vld [vmem:[#allocation2 + $0xf0] sm:$0xff]  }
 0x2f6   : > { %5166 = vst.msk [vmem:[#allocation3 + $0x90] sm:$0xff] %vm5156_vm12, %v5058_v42  ;;  %v5643_v40 = vsel %vm17084_vm1, %v5633_v55, %v5642_v53  ;;  %vm17085_vm3 = vmmov %vm17070_vm15  ;;  %v3924_v28 = vshrl.u32 %v10783_v7, 16  ;;  %v14631_v49 = vor.u32 %v7552_v33, %v7549_v39  ;;  %v7493_v53 = vshrl.u32 %v10622_v51, 16  ;;  %v17100_v39 = vld [vmem:[#allocation44_spill] sm:$0xff] }
 0x2f7   : > { %5863 = vrot.lane.b32.xlu0 %v5625_v8, %s10858_s18  ;;  %3397 = vst.msk [vmem:[#allocation3 + $0x120] sm:$0xff] %vm17079_vm9, %v10681_v0  ;;  %v8123_v21 = vsel %vm17085_vm3, %v8120_v25, %v8122_v26  ;;  %vm17086_vm5 = vmmov %vm17081_vm10  ;;  %v6311_v26 = vrot.slane %v14602_v41, 2  ;;  %v7498_v25 = vrot.slane %v7496_v16, 3  ;;  %v4504_v2 = vrot.slane %v14634_v3, 1  ;;  %v17113_v16 = vld [vmem:[#allocation23_spill] sm:$0xff] }
 0x2f8   : > { %5869 = vrot.lane.b32.xlu1 %v5652_v9, %s10858_s18  ;;  %8222 = vst.msk [vmem:[#allocation3 + $0xf8] sm:$0xff] %vm17059_vm0, %v8121_v38  ;;  %v4035_v18 = vpop.permute.xlu1 %4034  ;;  %v7446_v59 = vsel %vm17086_vm5, %v14538_v24, %v7445_v61  ;;  %vm17087_vm4 = vmmov %vm17059_vm0  ;;  %v3926_v0 = vor.u32 %v3924_v28, %v13480_v47  ;;  %v17094_v9 = vld [vmem:[#allocation37_spill] sm:$0xff]  ;;  %v6824_v47 = vrot.slane %v14625_v5, 2  ;;  %v7495_v27 = vrot.slane %v7493_v53, 2  ;;  %v14658_v61 = vld [vmem:[#allocation2 + $0xb8] sm:$0xff]  }
 0x2f9   : > { %4654 = vst.msk [vmem:[#allocation3 + $0xa0] sm:$0xff] %vm4643_vm7, %v4547_v29  ;;  %v4549_v30 = vpop.permute.xlu0 %4548  ;;  %vm17088_vm9 = vmmov %vm17085_vm3  ;;  %v17095_v36 = vrot.slane %v17094_v9, 2  ;;  %v8138_v31 = vrot.slane %v10736_v44, 3  ;;  %v5738_v58 = vshll.u32 %v10626_v14, 16  ;;  %v17101_v17 = vrot.slane %v17100_v39, 3 }
 0x2fa   : > { %5167 = vst.msk [vmem:[#allocation3 + $0xa0] sm:$0xff] %vm5156_vm12, %v5060_v34  ;;  %v8135_v56 = vsel %vm17088_vm9, %v8132_v13, %v8134_v15  ;;  %vm17089_vm15 = vmmov %vm17059_vm0  ;;  %v3928_v13 = vshll.u32 %v14606_v52, 16  ;;  %v8136_v34 = vrot.slane %v10725_v63, 3  ;;  %v14687_v33 = vor.u32 %v7498_v25, %v7495_v27  ;;  %v14708_v63 = vld [vmem:[#allocation2 + $0xb8] sm:$0xff]  }
 0x2fb   : > { %7686 = vrot.lane.b32.xlu0 %v7455_v35, %s10857_s17  ;;  %4141 = vst.msk [vmem:[#allocation3 + $0xb0] sm:$0xff] %vm4129_vm11, %v4035_v18  ;;  %vm17090_vm10 = vmmov %vm17059_vm0  ;;  %v5735_v35 = vshrl.u32 %v10626_v14, 16  ;;  %v3880_v51 = vshll.u32 %v14658_v61, 16  ;;  %v5740_v7 = vrot.slane %v5738_v58, 2  ;;  %v4492_v9 = vrot.slane %v14708_v63, 1 }
 0x2fc   : > { %4050 = vrot.lane.b32.xlu1 %v3859_v48, %s10854_s25  ;;  %8223 = vst.msk [vmem:[#allocation3 + $0x108] sm:$0xff] %vm17087_vm4, %v8123_v21  ;;  %v7673_v24 = vpop.permute.xlu1 %7672  ;;  %vm17091_vm0 = vmmov %vm17083_vm13  ;;  %v14645_v8 = vrot.slane %v3928_v13, 1  ;;  %v10749_v48 = vld [vmem:[#allocation2 + $0xc8] sm:$0xff]  }
 0x2fd   : > { %4655 = vst.msk [vmem:[#allocation3 + $0xb0] sm:$0xff] %vm4643_vm7, %v4549_v30  ;;  %v7671_v20 = vpop.permute.xlu0 %7670  ;;  %v3851_v42 = vsel %vm17091_vm0, %v3846_v1, %v14563_v4  ;;  %vm17092_vm13 = vmmov %vm17084_vm1  ;;  %v10731_v4 = vld [vmem:[#allocation2 + $0xc0] sm:$0xff]   ;;  %v17104_v1 = vld [vmem:[#allocation9_spill] sm:$0xff]  ;;  %v14706_v13 = vrot.slane %v3880_v51, 1 }
 0x2fe   : > { %3409 = vst.msk [vmem:[#allocation3 + $0x1e0] sm:$0xff] %vm17089_vm15, %v10724_v32  ;;  %v5634_v46 = vsel %vm17092_vm13, %v14572_v23, %v5633_v55  ;;  %vm17093_vm1 = vmmov %vm17086_vm5  ;;  %v8137_v23 = vsel %vm17085_vm3, %v8134_v15, %v8136_v34  ;;  %vm17096_vm5 = vcmask 1045504   ;;  %v17105_v18 = vrot.slane %v17104_v1, 2 }
 0x2ff   : > { %5867 = vrot.lane.b32.xlu0 %v5643_v40, %s10858_s18  ;;  %8229 = vst.msk [vmem:[#allocation3 + $0x168] sm:$0xff] %vm17090_vm10, %v8135_v56  ;;  %v7554_v62 = vsel %vm17093_vm1, %v13745_v50, %v14631_v49  ;;  %v6312_v50 = vsel %vm17096_vm5, %v17095_v36, %v6311_v26  ;;  %vm17097_vm9 = vmmov %vm17087_vm4  ;;  %v5017_v15 = vrot.slane %v14668_v11, 1  ;;  %v14887_v11 = vld [vmem:[%s16113_s4] ss:$0 sm:$0xff] }
 0x300   : > { %7684 = vrot.lane.b32.xlu1 %v7446_v59, %s10857_s17  ;;  %7780 = vst.msk [vmem:[#allocation3 + $0x80] sm:$0xff] %vm7771_vm6, %v7671_v20  ;;  %v5854_v12 = vpop.permute.xlu1 %5853  ;;  %vm17098_vm15 = vmmov %vm17091_vm0  ;;  %v17110_v59 = vrot.slane %v13395_v57, 1  ;;  %v5737_v20 = vrot.slane %v5735_v35, 1 }
 0x301   : > { %v5852_v22 = vpop.permute.xlu0 %5851  ;;  %5961 = vst.msk [vmem:[#allocation3 + $0xa0] sm:$0xff] %vm5950_vm14, %v5854_v12  ;;  %vm17099_vm10 = vmmov %vm17085_vm3 }
 0x302   : > { %5960 = vst.msk [vmem:[#allocation3 + $0x90] sm:$0xff] %vm5950_vm14, %v5852_v22  ;;  %v8139_v55 = vsel %vm17099_vm10, %v8136_v34, %v8138_v31  ;;  %vm17102_vm0 = vmmov %vm17085_vm3  ;;  %v14712_v34 = vld [vmem:[#allocation2 + $0xf0] sm:$0xff]   ;;  %v14714_v22 = vld [vmem:[#allocation2 + $0xc0] sm:$0xff]  }
 0x303   : > { %4048 = vrot.lane.b32.xlu0 %v3851_v42, %s10854_s25  ;;  %6474 = vst.msk [vmem:[#allocation3 + $0x90] sm:$0xff] %vm6464_vm2, %v14580_v19  ;;  %6475 = vst.msk [vmem:[#allocation3 + $0xa0] sm:$0xff] %vm6464_vm2, %v14591_v10  ;;  %v8265_v19 = vld [vmem:[#allocation3 + $0x98] sm:$0xff]  ;;  %v3931_v10 = vsel %vm17098_vm15, %v3926_v0, %v14645_v8  ;;  %v8141_v30 = vsel %vm17102_vm0, %v8138_v31, %v17101_v17  ;;  %vm17112_vm15 = vsmask.f32 5376  ;;  %v14723_v0 = vor.u32 %v5740_v7, %v5737_v20 }
 0x304   : > { %5865 = vrot.lane.b32.xlu1 %v5634_v46, %s10858_s18  ;;  %8230 = vst.msk [vmem:[#allocation3 + $0x178] sm:$0xff] %vm17087_vm4, %v8137_v23  ;;  %vm17103_vm13 = vmmov %vm17087_vm4  ;;  %v7500_v28 = vsel %vm17112_vm15, %v13302_v37, %v14687_v33  ;;  %v10632_v46 = vld [vmem:[#allocation2 + $0xc0] sm:$0xff]   ;;  %v17114_v37 = vrot.slane %v13621_v6, 1  ;;  %v10633_v23 = vld [vmem:[#allocation2 + $0xf8] sm:$0xff]   ;;  %v6325_v25 = vrot.slane %v14712_v34, 2 }
 0x305   : > { %3403 = vst.msk [vmem:[#allocation3 + $0x180] sm:$0xff] %vm17097_vm9, %v10731_v4  ;;  %v14671_v38 = vpop.permute.xlu0 %6882  ;;  %vm17106_vm1 = vmmov %vm17096_vm5  ;;  %vm17111_vm9 = vcmask 1046528   ;;  %v5681_v36 = vshrl.u32 %v10632_v46, 16  ;;  %v14731_v6 = vld [vmem:[#allocation2 + $0xf8] sm:$0xff]   ;;  %v7556_v35 = vshrl.u32 %v10633_v23, 16  ;;  %v7559_v58 = vshll.u32 %v10633_v23, 16 }
 0x306   : > { %6987 = vst.msk [vmem:[#allocation3 + $0x90] sm:$0xff] %vm6977_vm8, %v14528_v60  ;;  %v6881_v60 = vpop.permute.xlu1 %6880  ;;  %v6825_v40 = vsel %vm17106_vm1, %v17105_v18, %v6824_v47  ;;  %vm17107_vm3 = vmmov %vm17087_vm4  ;;  %v4505_v56 = vsel %vm17111_vm9, %v17110_v59, %v4504_v2  ;;  %vm17118_vm1 = vsmask.f32 6400  ;;  %v17125_v59 = vld [vmem:[#allocation17_spill] sm:$0xff] }
 0x307   : > { %7708 = vrot.lane.b32.xlu0 %v7554_v62, %s10857_s17  ;;  %7781 = vst.msk [vmem:[#allocation3 + $0x90] sm:$0xff] %vm7771_vm6, %v7673_v24  ;;  %v8262_v29 = vld [vmem:[#allocation3 + $0x80] sm:$0xff]  ;;  %vm17108_vm5 = vmmov %vm17107_vm3  ;;  %v8267_v62 = vld [vmem:[#allocation3 + $0xa8] sm:$0xff]  ;;  %v7558_v51 = vrot.slane %v7556_v35, 2 }
 0x308   : > { %6389 = vrot.lane.b32.xlu1 %v6312_v50, %s10856_s10  ;;  %8617 = vmatmul.mubr.bf16.gmra.mrb[68].mxu0 %v8262_v29  ;;  %6988 = vst.msk [vmem:[#allocation3 + $0xa0] sm:$0xff] %vm6977_vm8, %v6881_v60  ;;  %vm17109_vm4 = vmmov %vm17107_vm3  ;;  %v10784_v24 = vld [vmem:[#allocation2 + $0xb0] sm:$0xff]   ;;  %v5684_v50 = vshll.u32 %v10632_v46, 16  ;;  %v5742_v29 = vsel %vm17118_vm1, %v13761_v43, %v14723_v0  ;;  %v14788_v35 = vld [vmem:[#allocation2 + $0x108] sm:$0xff]  }
 0x309   : > { %9873 = vmatprep.mubr.msk.bf16.mxu0 %vm17103_vm13, %v8265_v19  ;;  %8231 = vst.msk [vmem:[#allocation3 + $0x188] sm:$0xff] %vm17107_vm3, %v8139_v55  ;;  %v4037_v21 = vpop.permute.xlu0 %4036  ;;  %v3876_v42 = vshrl.u32 %v10784_v24, 16  ;;  %vm17115_vm10 = vmmov %vm17111_vm9  ;;  %vm17117_vm13 = vsmask.f32 7424  ;;  %v5005_v19 = vrot.slane %v14714_v22, 1  ;;  %v5683_v55 = vrot.slane %v5681_v36, 1 }
 0x30a   : > { %3404 = vst.msk [vmem:[#allocation3 + $0x190] sm:$0xff] %vm17108_vm5, %v10749_v48  ;;  %v5062_v32 = vpop.permute.xlu1 %5061  ;;  %v5018_v12 = vsel %vm17115_vm10, %v17114_v37, %v5017_v15  ;;  %vm17116_vm0 = vmmov %vm17107_vm3  ;;  %v17119_v48 = vld [vmem:[#allocation40_spill] sm:$0xff]  ;;  %v5686_v39 = vrot.slane %v5684_v50, 2  ;;  %vm17124_vm5 = vcmask 1045504   ;;  %v14768_v24 = vld [vmem:[#allocation2 + $0xf0] sm:$0xff]  }
 0x30b   : > { %4068 = vrot.lane.b32.xlu0 %v3931_v10, %s10854_s25  ;;  %8232 = vst.msk [vmem:[#allocation3 + $0x198] sm:$0xff] %vm17109_vm4, %v8141_v30  ;;  %v3878_v14 = vor.u32 %v3876_v42, %v17113_v16  ;;  %v17120_v60 = vrot.slane %v17119_v48, 1  ;;  %vm17121_vm3 = vmmov %vm17111_vm9  ;;  %v17122_v30 = vld [vmem:[#allocation35_spill] sm:$0xff]  ;;  %vm17133_vm10 = vsmask.f32 5376 }
 0x30c   : > { %6902 = vrot.lane.b32.xlu1 %v6825_v40, %s10855_s26  ;;  %4142 = vst.msk [vmem:[#allocation3 + $0xc0] sm:$0xff] %vm4129_vm11, %v4037_v21  ;;  %v17123_v1 = vrot.slane %v17122_v30, 2  ;;  %v6838_v40 = vrot.slane %v14731_v6, 2  ;;  %v7561_v21 = vrot.slane %v7559_v58, 3  ;;  %vm17127_vm4 = vmmov %vm17121_vm3  ;;  %v14764_v7 = vor.u32 %v5686_v39, %v5683_v55  ;;  %v10743_v58 = vld [vmem:[#allocation2 + $0xf8] sm:$0xff]   ;;  %v10753_v48 = vld [vmem:[#allocation2 + $0x100] sm:$0xff]  }
 0x30d   : > { %5168 = vst.msk [vmem:[#allocation3 + $0xb0] sm:$0xff] %vm5156_vm12, %v5062_v32  ;;  %v5064_v53 = vpop.permute.xlu0 %5063  ;;  %v3883_v44 = vsel %vm17117_vm13, %v3878_v14, %v14706_v13  ;;  %v4493_v10 = vsel %vm17121_vm3, %v17120_v60, %v4492_v9  ;;  %v14755_v32 = vld [vmem:[#allocation2 + $0xc0] sm:$0xff]   ;;  %vm17130_vm9 = vmmov %vm17124_vm5  ;;  %v10644_v30 = vld [vmem:[#allocation2 + $0xf8] sm:$0xff]   ;;  %vm17135_vm13 = vcmask 130048   ;;  %vm17137_vm3 = vcmask 1044480  }
 0x30e   : > { %v8264_v57 = vld [vmem:[#allocation3 + $0x90] sm:$0xff]  ;;  %v14716_v4 = vpop.permute.xlu1 %6369  ;;  %v6326_v18 = vsel %vm17124_vm5, %v17123_v1, %v6325_v25  ;;  %v14776_v14 = vor.u32 %v7561_v21, %v7558_v51  ;;  %v6313_v37 = vrot.slane %v14755_v32, 2  ;;  %vm17132_vm15 = vmmov %vm17118_vm1  ;;  %v8150_v1 = vrot.slane %v14788_v35, 3  ;;  %3410 = vst.msk [vmem:[#allocation3 + $0x1f0] sm:$0xff] %vm17135_vm13, %v10743_v58  ;;  %v8269_v21 = vld [vmem:[#allocation3 + $0xb8] sm:$0xff] }
 0x30f   : > { %4582 = vrot.lane.b32.xlu0 %v4505_v56, %s10852_s23  ;;  %v17126_v56 = vrot.slane %v17125_v59, 1  ;;  %vm17136_vm1 = vmmov %vm17135_vm13  ;;  %v14827_v51 = vld [vmem:[#allocation2 + $0xc0] sm:$0xff]   ;;  %vm17143_vm13 = vcmask 1046528   ;;  %v14866_v58 = vld [vmem:[#allocation2 + $0xf8] sm:$0xff]  }
 0x310   : > { %7696 = vrot.lane.b32.xlu1 %v7500_v28, %s10857_s17  ;;  %8625 = vmatmul.mubr.bf16.gmra.mrb[72].mxu0 %v8264_v57  ;;  %v10640_v28 = vld [vmem:[#allocation2 + $0xc8] sm:$0xff]   ;;  %v17128_v57 = vld [vmem:[#allocation14_spill] sm:$0xff]  ;;  %v7563_v55 = vsel %vm17133_vm10, %v14631_v49, %v14776_v14  ;;  %3411 = vst.msk [vmem:[#allocation3 + $0x200] sm:$0xff] %vm17136_vm1, %v10753_v48  ;;  %vm17142_vm10 = vmmov %vm17136_vm1 }
 0x311   : > { %9874 = vmatprep.mubr.msk.bf16.mxu0 %vm17116_vm0, %v8267_v62  ;;  %v14733_v27 = vpop.permute.xlu0 %6371  ;;  %v5006_v20 = vsel %vm17127_vm4, %v17126_v56, %v5005_v19  ;;  %v17131_v62 = vld [vmem:[#allocation48_spill] sm:$0xff]  ;;  %v7502_v36 = vshrl.u32 %v10640_v28, 16  ;;  %v7505_v50 = vshll.u32 %v10640_v28, 16  ;;  %vm17134_vm0 = vmmov %vm17124_vm5  ;;  %v14833_v56 = vld [vmem:[#allocation2 + $0xf8] sm:$0xff]   ;;  %v5747_v28 = vshll.u32 %v10644_v30, 16 }
 0x312   : > { %v4551_v31 = vpop.permute.xlu1 %4550  ;;  %v5688_v23 = vsel %vm17132_vm15, %v17131_v62, %v14764_v7  ;;  %v6314_v39 = vsel %vm17134_vm0, %v6311_v26, %v6313_v37  ;;  %vm17138_vm5 = vmmov %vm17136_vm1  ;;  %vm17141_vm15 = vsmask.f32 7424 }
 0x313   : > { %5095 = vrot.lane.b32.xlu0 %v5018_v12, %s10853_s24  ;;  %4656 = vst.msk [vmem:[#allocation3 + $0xc0] sm:$0xff] %vm4643_vm7, %v4551_v31  ;;  %v3932_v12 = vshrl.u32 %v14606_v52, 16  ;;  %v10709_v31 = vld [vmem:[#allocation2 + $0x100] sm:$0xff]   ;;  %v7504_v26 = vrot.slane %v7502_v36, 2  ;;  %v7507_v49 = vrot.slane %v7505_v50, 3  ;;  %vm17139_vm4 = vmmov %vm17137_vm3 }
 0x314   : > { %4056 = vrot.lane.b32.xlu1 %v3883_v44, %s10854_s25  ;;  %5169 = vst.msk [vmem:[#allocation3 + $0xc0] sm:$0xff] %vm5156_vm12, %v5064_v53  ;;  %v17129_v53 = vrot.slane %v17128_v57, 2  ;;  %v14784_v44 = vld [vmem:[#allocation2 + $0xc8] sm:$0xff]   ;;  %v8148_v60 = vrot.slane %v10709_v31, 3  ;;  %v3884_v57 = vshrl.u32 %v14658_v61, 16  ;;  %v14861_v50 = vld [vmem:[#allocation2 + $0xc0] sm:$0xff]  }
 0x315   : > { %v4553_v17 = vpop.permute.xlu0 %4552  ;;  %v6826_v41 = vrot.slane %v14784_v44, 2  ;;  %v10650_v31 = vld [vmem:[#allocation2 + $0xc8] sm:$0xff]  }
 0x316   : > { %v4039_v43 = vpop.permute.xlu1 %4038  ;;  %v6839_v16 = vsel %vm17130_vm9, %v17129_v53, %v6838_v40  ;;  %vm17140_vm9 = vmmov %vm17136_vm1  ;;  %vm17144_vm1 = vsmask.f32 5376  ;;  %v3886_v36 = vor.u32 %v3884_v57, %v14706_v13  ;;  %v8271_v13 = vld [vmem:[#allocation3 + $0xc8] sm:$0xff] }
 0x317   : > { %5889 = vrot.lane.b32.xlu0 %v5742_v29, %s10858_s18  ;;  %4143 = vst.msk [vmem:[#allocation3 + $0xd0] sm:$0xff] %vm4129_vm11, %v4039_v43  ;;  %v3936_v29 = vshll.u32 %v14768_v24, 16  ;;  %v14800_v43 = vld [vmem:[#allocation2 + $0xf0] sm:$0xff]  }
 0x318   : > { %4570 = vrot.lane.b32.xlu1 %v4493_v10, %s10852_s23  ;;  %4657 = vst.msk [vmem:[#allocation3 + $0xd0] sm:$0xff] %vm4643_vm7, %v4553_v17  ;;  %v3934_v17 = vor.u32 %v3932_v12, %v14645_v8  ;;  %v8149_v8 = vsel %vm17137_vm3, %v8146_v54, %v8148_v60  ;;  %v4506_v59 = vrot.slane %v14800_v43, 1  ;;  %vm17145_vm3 = vmmov %vm17143_vm13  ;;  %v10667_v43 = vld [vmem:[#allocation2 + $0xd0] sm:$0xff]  }
 0x319   : > { %v7675_v42 = vpop.permute.xlu0 %7674  ;;  %8236 = vst.msk [vmem:[#allocation3 + $0x1d8] sm:$0xff] %vm17138_vm5, %v8149_v8 }
 0x31a   : > { %7782 = vst.msk [vmem:[#allocation3 + $0xa0] sm:$0xff] %vm7771_vm6, %v7675_v42  ;;  %v7677_v46 = vpop.permute.xlu1 %7676  ;;  %v6827_v42 = vsel %vm17134_vm0, %v6824_v47, %v6826_v41  ;;  %v4507_v5 = vsel %vm17143_vm13, %v4504_v2, %v4506_v59  ;;  %v5019_v47 = vrot.slane %v14833_v56, 1  ;;  %v5699_v56 = vshrl.u32 %v10667_v43, 16 }
 0x31b   : > { %6403 = vrot.lane.b32.xlu0 %v6326_v18, %s10856_s10  ;;  %v8151_v18 = vsel %vm17139_vm4, %v8148_v60, %v8150_v1  ;;  %v10651_v60 = vld [vmem:[#allocation2 + $0x100] sm:$0xff]   ;;  %vm17146_vm4 = vmmov %vm17141_vm15 }
 0x31c   : > { %5083 = vrot.lane.b32.xlu1 %v5006_v20, %s10853_s24  ;;  %8237 = vst.msk [vmem:[#allocation3 + $0x1e8] sm:$0xff] %vm17140_vm9, %v8151_v18  ;;  %v5744_v20 = vshrl.u32 %v10644_v30, 16  ;;  %v5693_v30 = vshll.u32 %v10650_v31, 16  ;;  %vm17147_vm9 = vsmask.f32 6400 }
 0x31d   : > { %v5856_v52 = vpop.permute.xlu0 %5855 }
 0x31e   : > { %5962 = vst.msk [vmem:[#allocation3 + $0xb0] sm:$0xff] %vm5950_vm14, %v5856_v52  ;;  %v5858_v10 = vpop.permute.xlu1 %5857  ;;  %v5746_v62 = vrot.slane %v5744_v20, 1 }
 0x31f   : > { %6916 = vrot.lane.b32.xlu0 %v6839_v16, %s10855_s26  ;;  %6476 = vst.msk [vmem:[#allocation3 + $0xb0] sm:$0xff] %vm6464_vm2, %v14716_v4  ;;  %v14818_v4 = vrot.slane %v3936_v29, 1  ;;  %v3888_v16 = vshll.u32 %v14827_v51, 16 }
 0x320   : > { %5877 = vrot.lane.b32.xlu1 %v5688_v23, %s10858_s18  ;;  %5963 = vst.msk [vmem:[#allocation3 + $0xc0] sm:$0xff] %vm5950_vm14, %v5858_v10  ;;  %v5749_v23 = vrot.slane %v5747_v28, 2 }
 0x321   : > { %6989 = vst.msk [vmem:[#allocation3 + $0xb0] sm:$0xff] %vm6977_vm8, %v14671_v38  ;;  %v14825_v45 = vpop.permute.xlu0 %6886  ;;  %v8266_v54 = vld [vmem:[#allocation3 + $0xa0] sm:$0xff]  ;;  %v14864_v29 = vrot.slane %v3888_v16, 1 }
 0x322   : > { %6477 = vst.msk [vmem:[#allocation3 + $0xc0] sm:$0xff] %vm6464_vm2, %v14733_v27  ;;  %8633 = vmatmul.mubr.bf16.gmra.mrb[76].mxu0 %v8266_v54  ;;  %v6885_v38 = vpop.permute.xlu1 %6884  ;;  %v3939_v27 = vsel %vm17141_vm15, %v3934_v17, %v14818_v4  ;;  %v14875_v52 = vor.u32 %v5749_v23, %v5746_v62  ;;  %v5690_v17 = vshrl.u32 %v10650_v31, 16  ;;  %vm17148_vm15 = vmmov %vm17145_vm3 }
 0x323   : > { %7710 = vrot.lane.b32.xlu0 %v7563_v55, %s10857_s17  ;;  %7783 = vst.msk [vmem:[#allocation3 + $0xb0] sm:$0xff] %vm7771_vm6, %v7677_v46  ;;  %9875 = vmatprep.mubr.msk.bf16.mxu0 %vm17142_vm10, %v8269_v21  ;;  %v14843_v46 = vor.u32 %v7507_v49, %v7504_v26  ;;  %v3891_v10 = vsel %vm17146_vm4, %v3886_v36, %v14864_v29  ;;  %v4494_v55 = vrot.slane %v14861_v50, 1  ;;  %v6327_v26 = vrot.slane %v14866_v58, 2  ;;  %v14893_v49 = vld [vmem:[#allocation2 + $0x100] sm:$0xff]   ;;  %vm17149_vm10 = vmmov %vm17134_vm0 }
 0x324   : > { %6391 = vrot.lane.b32.xlu1 %v6314_v39, %s10856_s10  ;;  %6990 = vst.msk [vmem:[#allocation3 + $0xc0] sm:$0xff] %vm6977_vm8, %v6885_v38  ;;  %v14882_v39 = vld [vmem:[#allocation2 + $0xc8] sm:$0xff]   ;;  %v5751_v54 = vsel %vm17147_vm9, %v14723_v0, %v14875_v52  ;;  %v7565_v38 = vshrl.u32 %v10651_v60, 16  ;;  %v5692_v57 = vrot.slane %v5690_v17, 1  ;;  %vm17150_vm0 = vmmov %vm17145_vm3  ;;  %v3940_v17 = vshrl.u32 %v14768_v24, 16  ;;  %v15075_v58 = vld [vmem:[#allocation2 + $0x100] sm:$0xff]  }
 0x325   : > { %v4041_v53 = vpop.permute.xlu0 %4040  ;;  %v7509_v61 = vsel %vm17144_vm1, %v14687_v33, %v14843_v46  ;;  %v5020_v33 = vsel %vm17145_vm3, %v5017_v15, %v5019_v47  ;;  %v4495_v28 = vsel %vm17148_vm15, %v4492_v9, %v4494_v55  ;;  %v6328_v63 = vsel %vm17149_vm10, %v6325_v25, %v6327_v26  ;;  %vm17151_vm13 = vmmov %vm17149_vm10 }
 0x326   : > { %4144 = vst.msk [vmem:[#allocation3 + $0xe0] sm:$0xff] %vm4129_vm11, %v4041_v53  ;;  %v5066_v12 = vpop.permute.xlu1 %5065  ;;  %v8554_v8 = vpop.f32.mrb[36].mxu0  ;;  %v5695_v53 = vrot.slane %v5693_v30, 2  ;;  %v6840_v9 = vrot.slane %v14893_v49, 2  ;;  %v7567_v23 = vrot.slane %v7565_v38, 2  ;;  %vm17152_vm1 = vmmov %vm17147_vm9  ;;  %vm17155_vm9 = vcmask 130048  }
 0x327   : > { %4070 = vrot.lane.b32.xlu0 %v3939_v27, %s10854_s25  ;;  %5170 = vst.msk [vmem:[#allocation3 + $0xd0] sm:$0xff] %vm5156_vm12, %v5066_v12  ;;  %v7568_v27 = vshll.u32 %v10651_v60, 16  ;;  %v8555_v21 = vadd.f32 %v14887_v11, %v8554_v8  ;;  %v8556_v20 = vpop.f32.mrb[37].mxu0  ;;  %vm17153_vm3 = vsmask.f32 5376 }
 0x328   : > { %6904 = vrot.lane.b32.xlu1 %v6827_v42, %s10855_s26  ;;  %v5007_v42 = vrot.slane %v14882_v39, 1  ;;  %v8557_v0 = vpop.f32.mrb[38].mxu0  ;;  %v14925_v25 = vor.u32 %v5695_v53, %v5692_v57  ;;  %v6841_v22 = vsel %vm17151_vm13, %v6838_v40, %v6840_v9 }
 0x329   : > { %v5068_v2 = vpop.permute.xlu0 %5067  ;;  %v8558_v16 = vadd.f32 %v14887_v11, %v8557_v0  ;;  %v8559_v12 = vpop.f32.mrb[39].mxu0  ;;  %v8865_v36 = vmax.f32 %v8555_v21, 0.0  ;;  %v3942_v21 = vor.u32 %v3940_v17, %v14818_v4  ;;  %v14970_v0 = vld [vmem:[#allocation2 + $0xc8] sm:$0xff]  }
 0x32a   : > { %v8268_v3 = vld [vmem:[#allocation3 + $0xb0] sm:$0xff]  ;;  %v14868_v48 = vpop.permute.xlu1 %6373  ;;  %v5008_v34 = vsel %vm17150_vm0, %v5005_v19, %v5007_v42  ;;  %v5697_v8 = vsel %vm17152_vm1, %v14764_v7, %v14925_v25  ;;  %v8273_v12 = vld [vmem:[#allocation3 + $0xd8] sm:$0xff]  ;;  %vm17160_vm1 = vmmov %vm17155_vm9 }
 0x32b   : > { %4584 = vrot.lane.b32.xlu0 %v4507_v5, %s10852_s23  ;;  %8641 = vmatmul.mubr.bf16.gmra.mrb[80].mxu0 %v8268_v3  ;;  %v8866_v31 = vmax.f32 %v8558_v16, 0.0  ;;  %v14916_v3 = vld [vmem:[#allocation2 + $0xf8] sm:$0xff]   ;;  %v15014_v17 = vld [vmem:[#allocation2 + $0xc8] sm:$0xff]  }
 0x32c   : > { %7698 = vrot.lane.b32.xlu1 %v7509_v61, %s10857_s17  ;;  %9876 = vmatprep.mubr.msk.bf16.mxu0 %vm17138_vm5, %v8271_v13  ;;  %v7570_v61 = vrot.slane %v7568_v27, 3  ;;  %v3944_v30 = vshll.u32 %v14916_v3, 16  ;;  %v14958_v7 = vld [vmem:[#allocation2 + $0xf8] sm:$0xff]   ;;  %vm17154_vm5 = vmmov %vm17149_vm10 }
 0x32d   : > { %v14890_v15 = vpop.permute.xlu0 %6375  ;;  %v14931_v13 = vpack.c.bf16 %v8866_v31, %v8865_v36  ;;  %vm17156_vm15 = vmmov %vm17154_vm5  ;;  %v3896_v36 = vshll.u32 %v14970_v0, 16 }
 0x32e   : > { %v4555_v18 = vpop.permute.xlu1 %4554  ;;  %v14939_v19 = vor.u32 %v7570_v61, %v7567_v23  ;;  %v14956_v20 = vrot.slane %v3944_v30, 1  ;;  %v3892_v61 = vshrl.u32 %v14827_v51, 16  ;;  %vm17157_vm10 = vmmov %vm17150_vm0 }
 0x32f   : > { %5097 = vrot.lane.b32.xlu0 %v5020_v33, %s10853_s24  ;;  %4658 = vst.msk [vmem:[#allocation3 + $0xe0] sm:$0xff] %vm4643_vm7, %v4555_v18  ;;  %v10657_v33 = vld [vmem:[#allocation2 + $0xd0] sm:$0xff]   ;;  %vm17158_vm0 = vmmov %vm17153_vm3 }
 0x330   : > { %4058 = vrot.lane.b32.xlu1 %v3891_v10, %s10854_s25  ;;  %5171 = vst.msk [vmem:[#allocation3 + $0xe0] sm:$0xff] %vm5156_vm12, %v5068_v2  ;;  %v14927_v2 = vld [vmem:[#allocation2 + $0xc8] sm:$0xff]   ;;  %v7511_v38 = vshrl.u32 %v10657_v33, 16  ;;  %v7514_v6 = vshll.u32 %v10657_v33, 16  ;;  %v7572_v27 = vsel %vm17153_vm3, %v14776_v14, %v14939_v19  ;;  %v3947_v16 = vsel %vm17146_vm4, %v3942_v21, %v14956_v20  ;;  %vm17159_vm13 = vmmov %vm17157_vm10  ;;  %v15035_v21 = vld [vmem:[#allocation2 + $0xd0] sm:$0xff]  }
 0x331   : > { %v4557_v5 = vpop.permute.xlu0 %4556  ;;  %v6315_v18 = vrot.slane %v14927_v2, 2  ;;  %vm17161_vm3 = vmmov %vm17146_vm4 }
 0x332   : > { %v4043_v62 = vpop.permute.xlu1 %4042  ;;  %v7513_v57 = vrot.slane %v7511_v38, 2  ;;  %v7516_v53 = vrot.slane %v7514_v6, 3  ;;  %v15028_v6 = vld [vmem:[#allocation2 + $0x100] sm:$0xff]   ;;  %vm17163_vm4 = vmmov %vm17157_vm10 }
 0x333   : > { %5891 = vrot.lane.b32.xlu0 %v5751_v54, %s10858_s18  ;;  %4145 = vst.msk [vmem:[#allocation3 + $0xf0] sm:$0xff] %vm4129_vm11, %v4043_v62  ;;  %v14948_v54 = vld [vmem:[#allocation2 + $0xd0] sm:$0xff]   ;;  %v6316_v14 = vsel %vm17154_vm5, %v6313_v37, %v6315_v18  ;;  %vm17162_vm5 = vsmask.f32 6400 }
 0x334   : > { %4572 = vrot.lane.b32.xlu1 %v4495_v28, %s10852_s23  ;;  %4659 = vst.msk [vmem:[#allocation3 + $0xf0] sm:$0xff] %vm4643_vm7, %v4557_v5  ;;  %v10661_v28 = vld [vmem:[#allocation2 + $0x100] sm:$0xff]   ;;  %v6828_v4 = vrot.slane %v14948_v54, 2  ;;  %v4508_v5 = vrot.slane %v14958_v7, 1  ;;  %v14993_v23 = vor.u32 %v7516_v53, %v7513_v57  ;;  %v6329_v53 = vrot.slane %v15028_v6, 2 }
 0x335   : > { %v7679_v60 = vpop.permute.xlu0 %7678  ;;  %v5756_v62 = vshll.u32 %v10661_v28, 16 }
 0x336   : > { %7784 = vst.msk [vmem:[#allocation3 + $0xc0] sm:$0xff] %vm7771_vm6, %v7679_v60  ;;  %v7681_v10 = vpop.permute.xlu1 %7680  ;;  %v4509_v33 = vsel %vm17157_vm10, %v4506_v59, %v4508_v5  ;;  %v7518_v51 = vsel %vm17158_vm0, %v14843_v46, %v14993_v23  ;;  %vm17167_vm0 = vmmov %vm17162_vm5 }
 0x337   : > { %6405 = vrot.lane.b32.xlu0 %v6328_v63, %s10856_s10  ;;  %v14983_v63 = vld [vmem:[#allocation2 + $0x100] sm:$0xff]   ;;  %v5758_v60 = vrot.slane %v5756_v62, 2  ;;  %v5701_v62 = vrot.slane %v5699_v56, 1 }
 0x338   : > { %5085 = vrot.lane.b32.xlu1 %v5008_v34, %s10853_s24  ;;  %v5021_v44 = vrot.slane %v14983_v63, 1 }
 0x339   : > { %v5860_v40 = vpop.permute.xlu0 %5859 }
 0x33a   : > { %5964 = vst.msk [vmem:[#allocation3 + $0xd0] sm:$0xff] %vm5950_vm14, %v5860_v40  ;;  %v5862_v24 = vpop.permute.xlu1 %5861  ;;  %v5022_v46 = vsel %vm17159_vm13, %v5019_v47, %v5021_v44  ;;  %v10668_v40 = vld [vmem:[#allocation2 + $0x108] sm:$0xff]   ;;  %vm17168_vm13 = vsmask.f32 5376 }
 0x33b   : > { %6918 = vrot.lane.b32.xlu0 %v6841_v22, %s10855_s26  ;;  %6478 = vst.msk [vmem:[#allocation3 + $0xd0] sm:$0xff] %vm6464_vm2, %v14868_v48  ;;  %v15012_v22 = vrot.slane %v3896_v36, 1 }
 0x33c   : > { %5879 = vrot.lane.b32.xlu1 %v5697_v8, %s10858_s18  ;;  %5965 = vst.msk [vmem:[#allocation3 + $0xe0] sm:$0xff] %vm5950_vm14, %v5862_v24 }
 0x33d   : > { %6991 = vst.msk [vmem:[#allocation3 + $0xd0] sm:$0xff] %vm6977_vm8, %v14825_v45  ;;  %v14978_v48 = vpop.permute.xlu0 %6894  ;;  %v8270_v32 = vld [vmem:[#allocation3 + $0xc0] sm:$0xff]  ;;  %v5753_v45 = vshrl.u32 %v10661_v28, 16  ;;  %v5702_v28 = vshll.u32 %v10667_v43, 16  ;;  %v3948_v43 = vshrl.u32 %v14916_v3, 16 }
 0x33e   : > { %6479 = vst.msk [vmem:[#allocation3 + $0xe0] sm:$0xff] %vm6464_vm2, %v14890_v15  ;;  %8649 = vmatmul.mubr.bf16.gmra.mrb[84].mxu0 %v8270_v32  ;;  %v6889_v37 = vpop.permute.xlu1 %6888  ;;  %v6829_v15 = vsel %vm17156_vm15, %v6826_v41, %v6828_v4  ;;  %v15044_v32 = vld [vmem:[#allocation2 + $0x108] sm:$0xff]  }
 0x33f   : > { %7712 = vrot.lane.b32.xlu0 %v7572_v27, %s10857_s17  ;;  %7785 = vst.msk [vmem:[#allocation3 + $0xd0] sm:$0xff] %vm7771_vm6, %v7681_v10  ;;  %9877 = vmatprep.mubr.msk.bf16.mxu0 %vm17155_vm9, %v8273_v12  ;;  %v5755_v41 = vrot.slane %v5753_v45, 1  ;;  %v3894_v10 = vor.u32 %v3892_v61, %v14864_v29  ;;  %v8275_v29 = vld [vmem:[#allocation3 + $0xe8] sm:$0xff]  ;;  %v4496_v27 = vrot.slane %v15014_v17, 1  ;;  %v5009_v45 = vrot.slane %v15035_v21, 1  ;;  %vm17164_vm9 = vmmov %vm17156_vm15 }
 0x340   : > { %6393 = vrot.lane.b32.xlu1 %v6316_v14, %s10856_s10  ;;  %6992 = vst.msk [vmem:[#allocation3 + $0xe0] sm:$0xff] %vm6977_vm8, %v6889_v37  ;;  %v7574_v37 = vshrl.u32 %v10668_v40, 16  ;;  %v6330_v36 = vsel %vm17164_vm9, %v6327_v26, %v6329_v53  ;;  %v6842_v50 = vrot.slane %v15044_v32, 2  ;;  %vm17165_vm15 = vmmov %vm17163_vm4 }
 0x341   : > { %v14998_v31 = vpop.permute.xlu0 %5075  ;;  %v15026_v38 = vor.u32 %v5758_v60, %v5755_v41  ;;  %v3899_v24 = vsel %vm17161_vm3, %v3894_v10, %v15012_v22  ;;  %v4497_v12 = vsel %vm17163_vm4, %v4494_v55, %v4496_v27  ;;  %v15072_v60 = vld [vmem:[#allocation2 + $0xd0] sm:$0xff]   ;;  %vm17166_vm10 = vmmov %vm17164_vm9  ;;  %vm17170_vm3 = vcmask 1044480  }
 0x342   : > { %v5070_v34 = vpop.permute.xlu1 %5069  ;;  %v6843_v39 = vsel %vm17166_vm10, %v6840_v9, %v6842_v50  ;;  %v3952_v9 = vshll.u32 %v15075_v58, 16  ;;  %vm17172_vm4 = vsmask.f32 7424  ;;  %vm17174_vm10 = vmmov %vm17168_vm13 }
 0x343   : > { %4072 = vrot.lane.b32.xlu0 %v3947_v16, %s10854_s25  ;;  %5172 = vst.msk [vmem:[#allocation3 + $0xf0] sm:$0xff] %vm5156_vm12, %v5070_v34  ;;  %v5760_v57 = vsel %vm17162_vm5, %v14875_v52, %v15026_v38  ;;  %v7577_v16 = vshll.u32 %v10668_v40, 16  ;;  %v7576_v34 = vrot.slane %v7574_v37, 2  ;;  %v15107_v37 = vld [vmem:[#allocation2 + $0x100] sm:$0xff]   ;;  %vm17171_vm5 = vcmask 130048  }
 0x344   : > { %6906 = vrot.lane.b32.xlu1 %v6829_v15, %s10855_s26  ;;  %v5704_v15 = vrot.slane %v5702_v28, 2 }
 0x345   : > { %v15017_v30 = vpop.permute.xlu0 %6383  ;;  %v7579_v55 = vrot.slane %v7577_v16, 3  ;;  %v10676_v16 = vld [vmem:[#allocation2 + $0x108] sm:$0xff]  }
 0x346   : > { %v8272_v59 = vld [vmem:[#allocation3 + $0xd0] sm:$0xff]  ;;  %v15019_v8 = vpop.permute.xlu1 %6377  ;;  %v15070_v41 = vor.u32 %v5704_v15, %v5701_v62  ;;  %v5762_v35 = vshrl.u32 %v10676_v16, 16 }
 0x347   : > { %4586 = vrot.lane.b32.xlu0 %v4509_v33, %s10852_s23  ;;  %8657 = vmatmul.mubr.bf16.gmra.mrb[88].mxu0 %v8272_v59  ;;  %v5010_v33 = vsel %vm17165_vm15, %v5007_v42, %v5009_v45  ;;  %v15083_v42 = vor.u32 %v7579_v55, %v7576_v34  ;;  %v15086_v59 = vld [vmem:[#allocation2 + $0xd8] sm:$0xff]   ;;  %v15131_v55 = vld [vmem:[#allocation2 + $0x108] sm:$0xff]  }
 0x348   : > { %7700 = vrot.lane.b32.xlu1 %v7518_v51, %s10857_s17  ;;  %9878 = vmatprep.mubr.msk.bf16.mxu0 %vm17160_vm1, %v8275_v29  ;;  %v10674_v51 = vld [vmem:[#allocation2 + $0xd8] sm:$0xff]   ;;  %v6317_v29 = vrot.slane %v15072_v60, 2  ;;  %vm17169_vm1 = vmmov %vm17164_vm9 }
 0x349   : > { %v15038_v47 = vpop.permute.xlu0 %4564  ;;  %v7520_v40 = vshrl.u32 %v10674_v51, 16  ;;  %v7523_v49 = vshll.u32 %v10674_v51, 16  ;;  %vm17173_vm9 = vmmov %vm17169_vm1 }
 0x34a   : > { %v4559_v14 = vpop.permute.xlu1 %4558 }
 0x34b   : > { %5099 = vrot.lane.b32.xlu0 %v5022_v46, %s10853_s24  ;;  %v5706_v46 = vsel %vm17167_vm0, %v14925_v25, %v15070_v41  ;;  %v7581_v25 = vsel %vm17168_vm13, %v14939_v19, %v15083_v42  ;;  %v7522_v62 = vrot.slane %v7520_v40, 2  ;;  %v7525_v15 = vrot.slane %v7523_v49, 3  ;;  %vm17175_vm0 = vmmov %vm17165_vm15 }
 0x34c   : > { %4060 = vrot.lane.b32.xlu1 %v3899_v24, %s10854_s25  ;;  %v15094_v24 = vld [vmem:[#allocation2 + $0x110] sm:$0xff]   ;;  %v5023_v40 = vrot.slane %v15131_v55, 1  ;;  %v5764_v49 = vrot.slane %v5762_v35, 1  ;;  %vm17177_vm13 = vmmov %vm17172_vm4 }
 0x34d   : > { %v15054_v52 = vpop.permute.xlu0 %6890  ;;  %v8152_v56 = vrot.slane %v15094_v24, 3  ;;  %v15139_v51 = vor.u32 %v7525_v15, %v7522_v62 }
 0x34e   : > { %v15056_v61 = vpop.permute.xlu1 %6892 }
 0x34f   : > { %5893 = vrot.lane.b32.xlu0 %v5760_v57, %s10858_s18  ;;  %v6830_v57 = vrot.slane %v15086_v59, 2  ;;  %v8153_v19 = vsel %vm17170_vm3, %v8150_v1, %v8152_v56  ;;  %vm17181_vm3 = vmmov %vm17175_vm0 }
 0x350   : > { %4574 = vrot.lane.b32.xlu1 %v4497_v12, %s10852_s23  ;;  %v6318_v12 = vsel %vm17169_vm1, %v6315_v18, %v6317_v29  ;;  %8238 = vst.msk [vmem:[#allocation3 + $0x1f8] sm:$0xff] %vm17171_vm5, %v8153_v19  ;;  %v4510_v18 = vrot.slane %v15107_v37, 1  ;;  %vm17178_vm1 = vsmask.f32 6400  ;;  %vm17182_vm5 = vmmov %vm17173_vm9  ;;  %v10755_v37 = vld [vmem:[#allocation2 + $0x108] sm:$0xff]  }
 0x351   : > { %v4045_v26 = vpop.permute.xlu0 %4044  ;;  %v6831_v1 = vsel %vm17173_vm9, %v6828_v4, %v6830_v57  ;;  %v7527_v4 = vsel %vm17174_vm10, %v14993_v23, %v15139_v51  ;;  %vm17186_vm9 = vmmov %vm17175_vm0 }
 0x352   : > { %4146 = vst.msk [vmem:[#allocation3 + $0x100] sm:$0xff] %vm4129_vm11, %v4045_v26  ;;  %v3900_v26 = vshrl.u32 %v14970_v0, 16  ;;  %vm17192_vm10 = vmmov %vm17178_vm1 }
 0x353   : > { %6407 = vrot.lane.b32.xlu0 %v6330_v36, %s10856_s10  ;;  %4660 = vst.msk [vmem:[#allocation3 + $0x100] sm:$0xff] %vm4643_vm7, %v4559_v14  ;;  %v3950_v14 = vor.u32 %v3948_v43, %v14956_v20  ;;  %v15121_v20 = vrot.slane %v3952_v9, 1  ;;  %v5024_v9 = vsel %vm17175_vm0, %v5021_v44, %v5023_v40  ;;  %vm17195_vm0 = vsmask.f32 5376 }
 0x354   : > { %5087 = vrot.lane.b32.xlu1 %v5010_v33, %s10853_s24  ;;  %v5074_v10 = vpop.permute.xlu1 %5073  ;;  %v5765_v33 = vshll.u32 %v10676_v16, 16  ;;  %v3902_v0 = vor.u32 %v3900_v26, %v15012_v22  ;;  %v15168_v22 = vld [vmem:[#allocation2 + $0x108] sm:$0xff]   ;;  %v17176_v16 = vld [vmem:[#allocation49_spill] sm:$0xff] }
 0x355   : > { %v3955_v2 = vsel %vm17172_vm4, %v3950_v14, %v15121_v20  ;;  %v6331_v35 = vrot.slane %v15168_v22, 2  ;;  %vm17183_vm4 = vcmask 130048   ;;  %v15375_v22 = vld [vmem:[#allocation2 + $0x120] sm:$0xff]  }
 0x356   : > { %v5072_v3 = vpop.permute.xlu0 %5071  ;;  %v5767_v54 = vrot.slane %v5765_v33, 2  ;;  %v15183_v33 = vld [vmem:[#allocation2 + $0x110] sm:$0xff]  }
 0x357   : > { %6920 = vrot.lane.b32.xlu0 %v6843_v39, %s10855_s26  ;;  %5173 = vst.msk [vmem:[#allocation3 + $0x100] sm:$0xff] %vm5156_vm12, %v5072_v3  ;;  %v6332_v17 = vsel %vm17182_vm5, %v6329_v53, %v6331_v35  ;;  %v17187_v53 = vld [vmem:[#allocation15_spill] sm:$0xff] }
 0x358   : > { %5881 = vrot.lane.b32.xlu1 %v5706_v46, %s10858_s18  ;;  %v15100_v28 = vpop.permute.xlu1 %6381  ;;  %v4511_v46 = vsel %vm17165_vm15, %v4508_v5, %v4510_v18  ;;  %v15166_v3 = vor.u32 %v5767_v54, %v5764_v49  ;;  %vm17189_vm15 = vmmov %vm17182_vm5 }
 0x35b   : > { %7714 = vrot.lane.b32.xlu0 %v7581_v25, %s10857_s17  ;;  %v10682_v25 = vld [vmem:[#allocation2 + $0x110] sm:$0xff]  }
 0x35c   : > { %6395 = vrot.lane.b32.xlu1 %v6318_v12, %s10856_s10  ;;  %v3907_v12 = vsel %vm17177_vm13, %v3902_v0, %v17176_v16  ;;  %v7586_v26 = vshll.u32 %v10682_v25, 16  ;;  %v17188_v16 = vld [vmem:[#allocation46_spill] sm:$0xff]  ;;  %vm17198_vm13 = vmmov %vm17182_vm5  ;;  %vm17201_vm5 = vsmask.f32 7424 }
 0x35d   : > { %v15124_v36 = vpop.permute.xlu0 %6379  ;;  %v15126_v34 = vpop.permute.xlu1 %4562 }
 0x35e   : > { %v8562_v23 = vpop.f32.mrb[40].mxu0 }
 0x35f   : > { %4074 = vrot.lane.b32.xlu0 %v3955_v2, %s10854_s25  ;;  %v8564_v14 = vpop.f32.mrb[41].mxu0  ;;  %v5769_v2 = vsel %vm17178_vm1, %v15026_v38, %v15166_v3  ;;  %vm17199_vm1 = vcmask 1044480  }
 0x360   : > { %6908 = vrot.lane.b32.xlu1 %v6831_v1, %s10855_s26  ;;  %v8565_v62 = vpop.f32.mrb[42].mxu0  ;;  %v7583_v1 = vshrl.u32 %v10682_v25, 16  ;;  %v17184_v25 = vld [vmem:[#allocation28_spill] sm:$0xff] }
 0x361   : > { %v4561_v39 = vpop.permute.xlu0 %4560  ;;  %v4047_v43 = vpop.permute.xlu1 %4046  ;;  %v8566_v44 = vadd.f32 %v14887_v11, %v8565_v62 }
 0x362   : > { %4147 = vst.msk [vmem:[#allocation3 + $0x110] sm:$0xff] %vm4129_vm11, %v4047_v43  ;;  %v8567_v15 = vpop.f32.mrb[43].mxu0 }
 0x363   : > { %4588 = vrot.lane.b32.xlu0 %v4511_v46, %s10852_s23  ;;  %4661 = vst.msk [vmem:[#allocation3 + $0x110] sm:$0xff] %vm4643_vm7, %v4561_v39  ;;  %v8868_v43 = vmax.f32 %v8566_v44, 0.0  ;;  %v17179_v46 = vld [vmem:[#allocation47_spill] sm:$0xff]  ;;  %v17191_v44 = vld [vmem:[#allocation33_spill] sm:$0xff]  ;;  %v15242_v15 = vld [vmem:[#allocation2 + $0x118] sm:$0xff]  }
 0x364   : > { %7702 = vrot.lane.b32.xlu1 %v7527_v4, %s10857_s17  ;;  %5174 = vst.msk [vmem:[#allocation3 + $0x110] sm:$0xff] %vm5156_vm12, %v5074_v10  ;;  %v8563_v10 = vadd.f32 %v14887_v11, %v8562_v23  ;;  %v17180_v49 = vrot.slane %v17179_v46, 1  ;;  %v15206_v23 = vld [vmem:[#allocation2 + $0x108] sm:$0xff]   ;;  %v5715_v32 = vsel %vm17192_vm10, %v15070_v41, %v17191_v44  ;;  %v8154_v41 = vrot.slane %v15242_v15, 3  ;;  %v17196_v46 = vld [vmem:[#allocation50_spill] sm:$0xff]  ;;  %v15321_v44 = vld [vmem:[#allocation2 + $0x110] sm:$0xff]  }
 0x365   : > { %v7683_v7 = vpop.permute.xlu0 %7682  ;;  %v3960_v62 = vshll.u32 %v15206_v23, 16  ;;  %vm17210_vm10 = vmmov %vm17195_vm0 }
 0x366   : > { %7786 = vst.msk [vmem:[#allocation3 + $0xe0] sm:$0xff] %vm7771_vm6, %v7683_v7  ;;  %v15159_v5 = vpop.permute.xlu1 %7688  ;;  %v8867_v39 = vmax.f32 %v8563_v10, 0.0  ;;  %v4499_v54 = vsel %vm17181_vm3, %v4496_v27, %v17180_v49  ;;  %v8277_v7 = vld [vmem:[#allocation3 + $0xf8] sm:$0xff]  ;;  %v6844_v27 = vrot.slane %v15183_v33, 2  ;;  %v17185_v10 = vrot.slane %v17184_v25, 1  ;;  %vm17200_vm3 = vmmov %vm17183_vm4  ;;  %v8279_v25 = vld [vmem:[#allocation3 + $0x108] sm:$0xff] }
 0x367   : > { %5101 = vrot.lane.b32.xlu0 %v5024_v9, %s10853_s24  ;;  %v7585_v9 = vrot.slane %v7583_v1, 2  ;;  %v17197_v49 = vrot.slane %v17196_v46, 2 }
 0x368   : > { %4062 = vrot.lane.b32.xlu1 %v3907_v12, %s10854_s25  ;;  %v15196_v38 = vpack.c.bf16 %v8868_v43, %v8867_v39  ;;  %v5012_v6 = vsel %vm17186_vm9, %v5009_v45, %v17185_v10  ;;  %v6845_v21 = vsel %vm17189_vm15, %v6842_v50, %v6844_v27  ;;  %v10689_v50 = vld [vmem:[#allocation2 + $0x110] sm:$0xff]   ;;  %v15259_v39 = vrot.slane %v3960_v62, 1  ;;  %v15261_v43 = vld [vmem:[#allocation2 + $0x108] sm:$0xff]   ;;  %vm17207_vm9 = vmmov %vm17200_vm3 }
 0x369   : > { %v5864_v63 = vpop.permute.xlu0 %5863  ;;  %vm17208_vm15 = vcmask 1046528  }
 0x36a   : > { %5966 = vst.msk [vmem:[#allocation3 + $0xf0] sm:$0xff] %vm5950_vm14, %v5864_v63  ;;  %v15177_v19 = vpop.permute.xlu1 %5869  ;;  %v17190_v63 = vld [vmem:[#allocation18_spill] sm:$0xff] }
 0x36b   : > { %6480 = vst.msk [vmem:[#allocation3 + $0xf0] sm:$0xff] %vm6464_vm2, %v15019_v8  ;;  %5895 = vrot.lane.b32.xlu0 %v5769_v2, %s10858_s18 }
 0x36c   : > { %6993 = vst.msk [vmem:[#allocation3 + $0xf0] sm:$0xff] %vm6977_vm8, %v15054_v52  ;;  %4576 = vrot.lane.b32.xlu1 %v4499_v54, %s10852_s23  ;;  %v7588_v52 = vrot.slane %v7586_v26, 3  ;;  %v5771_v54 = vshrl.u32 %v10689_v50, 16 }
 0x36d   : > { %v15198_v4 = vpop.permute.xlu0 %7686  ;;  %v8274_v0 = vld [vmem:[#allocation3 + $0xe0] sm:$0xff] }
 0x36e   : > { %8665 = vmatmul.mubr.bf16.gmra.mrb[92].mxu0 %v8274_v0  ;;  %v4051_v8 = vpop.permute.xlu1 %4050  ;;  %v15229_v45 = vor.u32 %v7588_v52, %v7585_v9  ;;  %v8155_v0 = vsel %vm17199_vm1, %v8152_v56, %v8154_v41  ;;  %v10694_v56 = vld [vmem:[#allocation2 + $0x118] sm:$0xff]   ;;  %v5773_v10 = vrot.slane %v5771_v54, 1  ;;  %vm17213_vm1 = vmmov %vm17200_vm3 }
 0x36f   : > { %4149 = vst.msk [vmem:[#allocation3 + $0x130] sm:$0xff] %vm4129_vm11, %v4051_v8  ;;  %6409 = vrot.lane.b32.xlu0 %v6332_v17, %s10856_s10  ;;  %9879 = vmatprep.mubr.msk.bf16.mxu0 %vm17183_vm4, %v8277_v7  ;;  %v15297_v7 = vld [vmem:[#allocation2 + $0x110] sm:$0xff]   ;;  %v17202_v9 = vld [vmem:[#allocation10_spill] sm:$0xff]  ;;  %vm17205_vm4 = vmmov %vm17198_vm13 }
 0x370   : > { %4663 = vst.msk [vmem:[#allocation3 + $0x130] sm:$0xff] %vm4643_vm7, %v15038_v47  ;;  %5089 = vrot.lane.b32.xlu1 %v5012_v6, %s10853_s24  ;;  %v3956_v47 = vshrl.u32 %v15075_v58, 16  ;;  %v17193_v58 = vld [vmem:[#allocation30_spill] sm:$0xff]  ;;  %v7590_v26 = vsel %vm17195_vm0, %v15083_v42, %v15229_v45  ;;  %v6320_v42 = vsel %vm17198_vm13, %v6317_v29, %v17197_v49  ;;  %vm17211_vm0 = vmmov %vm17208_vm15 }
 0x371   : > { %5176 = vst.msk [vmem:[#allocation3 + $0x130] sm:$0xff] %vm5156_vm12, %v17187_v53  ;;  %v5868_v14 = vpop.permute.xlu0 %5867  ;;  %v17206_v53 = vld [vmem:[#allocation31_spill] sm:$0xff]  ;;  %v8303_v49 = vld [vmem:[#allocation3 + $0x1c8] sm:$0xff]  ;;  %vm17212_vm13 = vmmov %vm17200_vm3 }
 0x372   : > { %5970 = vst.msk [vmem:[#allocation3 + $0x130] sm:$0xff] %vm5950_vm14, %v17188_v16  ;;  %5968 = vst.msk [vmem:[#allocation3 + $0x110] sm:$0xff] %vm5950_vm14, %v5868_v14  ;;  %v7685_v12 = vpop.permute.xlu1 %7684  ;;  %v10699_v54 = vld [vmem:[#allocation2 + $0x118] sm:$0xff]  }
 0x373   : > { %6484 = vst.msk [vmem:[#allocation3 + $0x130] sm:$0xff] %vm6464_vm2, %v17190_v63  ;;  %6482 = vst.msk [vmem:[#allocation3 + $0x110] sm:$0xff] %vm6464_vm2, %v15100_v28  ;;  %6922 = vrot.lane.b32.xlu0 %v6845_v21, %s10855_s26  ;;  %v17194_v28 = vld [vmem:[#allocation20_spill] sm:$0xff]  ;;  %v7592_v21 = vshrl.u32 %v10694_v56, 16  ;;  %v5025_v63 = vrot.slane %v15297_v7, 1 }
 0x374   : > { %7787 = vst.msk [vmem:[#allocation3 + $0xf0] sm:$0xff] %vm7771_vm6, %v7685_v12  ;;  %5883 = vrot.lane.b32.xlu1 %v5715_v32, %s10858_s18  ;;  %v17209_v32 = vld [vmem:[#allocation22_spill] sm:$0xff] }
 0x375   : > { %6997 = vst.msk [vmem:[#allocation3 + $0x130] sm:$0xff] %vm6977_vm8, %v17193_v58  ;;  %6995 = vst.msk [vmem:[#allocation3 + $0x110] sm:$0xff] %vm6977_vm8, %v14978_v48  ;;  %v4049_v2 = vpop.permute.xlu0 %4048  ;;  %v3958_v48 = vor.u32 %v3956_v47, %v15121_v20  ;;  %v5774_v20 = vshll.u32 %v10689_v50, 16  ;;  %v7595_v47 = vshll.u32 %v10694_v56, 16  ;;  %v7536_v50 = vsel %vm17210_vm10, %v15139_v51, %v17209_v32  ;;  %v15364_v56 = vld [vmem:[#allocation2 + $0x118] sm:$0xff]  }
 0x376   : > { %7791 = vst.msk [vmem:[#allocation3 + $0x130] sm:$0xff] %vm7771_vm6, %v17194_v28  ;;  %7789 = vst.msk [vmem:[#allocation3 + $0x110] sm:$0xff] %vm7771_vm6, %v15159_v5  ;;  %v5866_v1 = vpop.permute.xlu1 %5865  ;;  %v8570_v5 = vpop.f32.mrb[44].mxu0  ;;  %v15330_v28 = vld [vmem:[#allocation2 + $0x118] sm:$0xff]   ;;  %v5026_v51 = vsel %vm17211_vm0, %v5023_v40, %v5025_v63  ;;  %v3964_v40 = vshrl.u32 %v15206_v23, 16  ;;  %vm17219_vm0 = vcmask 1044480  }
 0x377   : > { %4148 = vst.msk [vmem:[#allocation3 + $0x120] sm:$0xff] %vm4129_vm11, %v4049_v2  ;;  %7716 = vrot.lane.b32.xlu0 %v7590_v26, %s10857_s17  ;;  %v8572_v60 = vpop.f32.mrb[45].mxu0  ;;  %v5776_v6 = vrot.slane %v5774_v20, 2  ;;  %v7594_v26 = vrot.slane %v7592_v21, 2  ;;  %v6846_v55 = vrot.slane %v15330_v28, 2 }
 0x378   : > { %4662 = vst.msk [vmem:[#allocation3 + $0x120] sm:$0xff] %vm4643_vm7, %v15126_v34  ;;  %v8571_v34 = vadd.f32 %v14887_v11, %v8570_v5  ;;  %6397 = vrot.lane.b32.xlu1 %v6320_v42, %s10856_s10  ;;  %v8573_v24 = vpop.f32.mrb[46].mxu0  ;;  %v15333_v5 = vld [vmem:[#allocation2 + $0x110] sm:$0xff]   ;;  %v6333_v42 = vrot.slane %v15321_v44, 2 }
 0x379   : > { %5967 = vst.msk [vmem:[#allocation3 + $0x100] sm:$0xff] %vm5950_vm14, %v5866_v1  ;;  %v7709_v29 = vpop.permute.xlu0 %7708  ;;  %v8575_v8 = vpop.f32.mrb[47].mxu0  ;;  %v15328_v58 = vor.u32 %v5776_v6, %v5773_v10  ;;  %v15385_v10 = vld [vmem:[#allocation2 + $0x118] sm:$0xff]   ;;  %v8156_v6 = vrot.slane %v15375_v22, 3 }
 0x37a   : > { %5175 = vst.msk [vmem:[#allocation3 + $0x120] sm:$0xff] %vm5156_vm12, %v14998_v31  ;;  %v8574_v31 = vadd.f32 %v14887_v11, %v8573_v24  ;;  %v8869_v14 = vmax.f32 %v8571_v34, 0.0  ;;  %v15356_v24 = vld [vmem:[#allocation2 + $0x110] sm:$0xff]   ;;  %v6334_v23 = vsel %vm17205_vm4, %v6331_v35, %v6333_v42  ;;  %v3966_v8 = vor.u32 %v3964_v40, %v15259_v39 }
 0x37b   : > { %6481 = vst.msk [vmem:[#allocation3 + $0x100] sm:$0xff] %vm6464_vm2, %v15124_v36  ;;  %v6390_v36 = vpop.permute.xlu1 %6389  ;;  %v8276_v17 = vld [vmem:[#allocation3 + $0xf0] sm:$0xff]  ;;  %v8157_v32 = vsel %vm17219_vm0, %v8154_v41, %v8156_v6 }
 0x37c   : > { %8239 = vst.msk [vmem:[#allocation3 + $0x208] sm:$0xff] %vm17200_vm3, %v8155_v0  ;;  %8673 = vmatmul.mubr.bf16.gmra.mrb[96].mxu0 %v8276_v17  ;;  %v8870_v16 = vmax.f32 %v8574_v31, 0.0  ;;  %vm17214_vm3 = vsmask.f32 6400  ;;  %v8281_v0 = vld [vmem:[#allocation3 + $0x118] sm:$0xff]  ;;  %v5780_v31 = vshrl.u32 %v10699_v54, 16 }
 0x37d   : > { %5969 = vst.msk [vmem:[#allocation3 + $0x120] sm:$0xff] %vm5950_vm14, %v15177_v19  ;;  %v3963_v19 = vsel %vm17201_vm5, %v3958_v48, %v15259_v39  ;;  %9880 = vmatprep.mubr.msk.bf16.mxu0 %vm17207_vm9, %v8279_v25  ;;  %v4069_v12 = vpop.permute.xlu0 %4068  ;;  %v7597_v48 = vrot.slane %v7595_v47, 3  ;;  %v5778_v20 = vsel %vm17214_vm3, %v15166_v3, %v15328_v58  ;;  %vm17215_vm5 = vmmov %vm17213_vm1  ;;  %v10703_v17 = vld [vmem:[#allocation2 + $0x120] sm:$0xff]   ;;  %v5027_v39 = vrot.slane %v15364_v56, 1  ;;  %v10757_v47 = vld [vmem:[#allocation2 + $0x110] sm:$0xff]  }
 0x37e   : > { %6994 = vst.msk [vmem:[#allocation3 + $0x100] sm:$0xff] %vm6977_vm8, %v15056_v61  ;;  %v4512_v61 = vrot.slane %v15261_v43, 1  ;;  %4076 = vrot.lane.b32.xlu0 %v3963_v19, %s10854_s25  ;;  %v15312_v62 = vpack.c.bf16 %v8870_v16, %v8869_v14  ;;  %vm17216_vm9 = vmmov %vm17205_vm4  ;;  %v8280_v14 = vld [vmem:[#allocation3 + $0x110] sm:$0xff]  ;;  %v7604_v21 = vshll.u32 %v10703_v17, 16 }
 0x37f   : > { %6483 = vst.msk [vmem:[#allocation3 + $0x120] sm:$0xff] %vm6464_vm2, %v15017_v30  ;;  %6486 = vst.msk [vmem:[#allocation3 + $0x150] sm:$0xff] %vm6464_vm2, %v6390_v36  ;;  %v17203_v30 = vld [vmem:[#allocation32_spill] sm:$0xff]  ;;  %v6903_v59 = vpop.permute.xlu1 %6902  ;;  %v15353_v60 = vor.u32 %v7597_v48, %v7594_v26  ;;  %v5783_v36 = vshll.u32 %v10699_v54, 16  ;;  %v6847_v19 = vsel %vm17216_vm9, %v6844_v27, %v6846_v55  ;;  %v6335_v26 = vrot.slane %v15385_v10, 2  ;;  %v15417_v48 = vld [vmem:[#allocation2 + $0x120] sm:$0xff]  }
 0x380   : > { %7788 = vst.msk [vmem:[#allocation3 + $0x100] sm:$0xff] %vm7771_vm6, %v15198_v4  ;;  %7799 = vst.msk [vmem:[#allocation3 + $0x1b0] sm:$0xff] %vm7771_vm6, %v7709_v29  ;;  %v17204_v4 = vrot.slane %v17203_v30, 2  ;;  %v3968_v29 = vshll.u32 %v15333_v5, 16  ;;  %v10710_v54 = vld [vmem:[#allocation2 + $0x120] sm:$0xff]  }
 0x381   : > { %6996 = vst.msk [vmem:[#allocation3 + $0x120] sm:$0xff] %vm6977_vm8, %v17202_v9  ;;  %6999 = vst.msk [vmem:[#allocation3 + $0x150] sm:$0xff] %vm6977_vm8, %v6903_v59  ;;  %v5785_v25 = vrot.slane %v5783_v36, 2  ;;  %vm17224_vm9 = vsmask.f32 6400  ;;  %v8289_v10 = vld [vmem:[#allocation3 + $0x158] sm:$0xff] }
 0x382   : > { %v6833_v52 = vsel %vm17205_vm4, %v6830_v57, %v17204_v4  ;;  %7790 = vst.msk [vmem:[#allocation3 + $0x120] sm:$0xff] %vm7771_vm6, %v17206_v53  ;;  %v4513_v57 = vsel %vm17208_vm15, %v4510_v18, %v4512_v61  ;;  %v4583_v18 = vpop.permute.xlu0 %4582  ;;  %vm17217_vm15 = vmmov %vm17210_vm10  ;;  %v15380_v30 = vrot.slane %v3968_v29, 1  ;;  %v4514_v4 = vrot.slane %v15356_v24, 1  ;;  %v8578_v27 = vpop.f32.mrb[48].mxu0  ;;  %v10720_v24 = vld [vmem:[#allocation2 + $0x128] sm:$0xff]  }
 0x383   : > { %6910 = vrot.lane.b32.xlu1 %v6833_v52, %s10855_s26  ;;  %4158 = vst.msk [vmem:[#allocation3 + $0x1c0] sm:$0xff] %vm4129_vm11, %v4069_v12  ;;  %4590 = vrot.lane.b32.xlu0 %v4513_v57, %s10852_s23  ;;  %v7697_v46 = vpop.permute.xlu1 %7696  ;;  %v7599_v9 = vsel %vm17217_vm15, %v15229_v45, %v15353_v60  ;;  %v5782_v52 = vrot.slane %v5780_v31, 1  ;;  %v8579_v45 = vadd.f32 %v14887_v11, %v8578_v27  ;;  %v8580_v53 = vpop.f32.mrb[49].mxu0  ;;  %vm17218_vm10 = vsmask.f32 7424  ;;  %v8283_v57 = vld [vmem:[#allocation3 + $0x128] sm:$0xff]  ;;  %vm17221_vm3 = vmmov %vm17213_vm1 }
 0x384   : > { %4672 = vst.msk [vmem:[#allocation3 + $0x1c0] sm:$0xff] %vm4643_vm7, %v4583_v18  ;;  %v3971_v16 = vsel %vm17218_vm10, %v3966_v8, %v15380_v30  ;;  %v7601_v12 = vshrl.u32 %v10703_v17, 16  ;;  %v8581_v59 = vpop.f32.mrb[50].mxu0  ;;  %vm17225_vm15 = vcmask 1045504   ;;  %v15444_v8 = vld [vmem:[#allocation2 + $0x128] sm:$0xff]   ;;  %vm17226_vm10 = vmmov %vm17213_vm1 }
 0x385   : > { %3412 = vst.msk [vmem:[#allocation3 + $0x210] sm:$0xff] %vm17212_vm13, %v10755_v37  ;;  %v8582_v37 = vadd.f32 %v14887_v11, %v8581_v59  ;;  %vm17220_vm13 = vmmov %vm17213_vm1  ;;  %v8583_v18 = vpop.f32.mrb[51].mxu0 }
 0x386   : > { %7793 = vst.msk [vmem:[#allocation3 + $0x150] sm:$0xff] %vm7771_vm6, %v7697_v46  ;;  %v5096_v34 = vpop.permute.xlu0 %5095  ;;  %v15419_v46 = vld [vmem:[#allocation2 + $0x118] sm:$0xff]   ;;  %v7603_v43 = vrot.slane %v7601_v12, 2  ;;  %vm17227_vm0 = vmmov %vm17225_vm15 }
 0x387   : > { %7704 = vrot.lane.b32.xlu1 %v7536_v50, %s10857_s17  ;;  %v8300_v2 = vld [vmem:[#allocation3 + $0x1b0] sm:$0xff]  ;;  %v8278_v1 = vld [vmem:[#allocation3 + $0x100] sm:$0xff]  ;;  %5103 = vrot.lane.b32.xlu0 %v5026_v51, %s10853_s24  ;;  %5185 = vst.msk [vmem:[#allocation3 + $0x1c0] sm:$0xff] %vm5156_vm12, %v5096_v34  ;;  %v4057_v3 = vpop.permute.xlu1 %4056  ;;  %v8871_v51 = vmax.f32 %v8579_v45, 0.0  ;;  %v6848_v34 = vrot.slane %v15417_v48, 2  ;;  %v3976_v29 = vshll.u32 %v15419_v46, 16 }
 0x388   : > { %8769 = vmatmul.mubr.bf16.gmra.mrb[40].mxu1 %v8300_v2  ;;  %8681 = vmatmul.mubr.bf16.gmra.mrb[100].mxu0 %v8278_v1  ;;  %4152 = vst.msk [vmem:[#allocation3 + $0x160] sm:$0xff] %vm4129_vm11, %v4057_v3  ;;  %v15414_v1 = vor.u32 %v5785_v25, %v5782_v52  ;;  %v15433_v3 = vld [vmem:[#allocation2 + $0x118] sm:$0xff]   ;;  %v8158_v52 = vrot.slane %v15444_v8, 3  ;;  %v3980_v56 = vshrl.u32 %v15419_v46, 16  ;;  %v5801_v46 = vshll.u32 %v10720_v24, 16 }
 0x389   : > { %9892 = vmatprep.mubr.msk.bf16.mxu1 %vm17213_vm1, %v8303_v49  ;;  %9881 = vmatprep.mubr.msk.bf16.mxu0 %vm17215_vm5, %v8281_v0  ;;  %8240 = vst.msk [vmem:[#allocation3 + $0x218] sm:$0xff] %vm17213_vm1, %v8157_v32  ;;  %vm17222_vm5 = vcmask 1046528   ;;  %v8872_v49 = vmax.f32 %v8582_v37, 0.0  ;;  %v8282_v31 = vld [vmem:[#allocation3 + $0x120] sm:$0xff]  ;;  %v6849_v53 = vsel %vm17227_vm0, %v6846_v55, %v6848_v34  ;;  %v4516_v12 = vrot.slane %v15433_v3, 1  ;;  %vm17234_vm0 = vmmov %vm17221_vm3 }
 0x38a   : > { %v5890_v35 = vpop.permute.xlu0 %5889  ;;  %3413 = vst.msk [vmem:[#allocation3 + $0x220] sm:$0xff] %vm17221_vm3, %v10757_v47  ;;  %v4515_v15 = vsel %vm17222_vm5, %v4512_v61, %v4514_v4  ;;  %vm17223_vm4 = vmmov %vm17222_vm5  ;;  %v7606_v61 = vrot.slane %v7604_v21, 3  ;;  %v5787_v0 = vsel %vm17224_vm9, %v15328_v58, %v15414_v1  ;;  %v5789_v58 = vshrl.u32 %v10710_v54, 16 }
 0x38b   : > { %5897 = vrot.lane.b32.xlu1 %v5778_v20, %s10858_s18  ;;  %6411 = vrot.lane.b32.xlu0 %v6334_v23, %s10856_s10  ;;  %5979 = vst.msk [vmem:[#allocation3 + $0x1c0] sm:$0xff] %vm5950_vm14, %v5890_v35  ;;  %v4571_v33 = vpop.permute.xlu1 %4570  ;;  %v5028_v41 = vsel %vm17223_vm4, %v5025_v63, %v5027_v39  ;;  %v15424_v7 = vpack.c.bf16 %v8872_v49, %v8871_v51  ;;  %v3972_v20 = vshrl.u32 %v15333_v5, 16  ;;  %vm17229_vm1 = vcmask 1044480   ;;  %v15492_v51 = vld [vmem:[#allocation2 + $0x128] sm:$0xff]   ;;  %v8287_v49 = vld [vmem:[#allocation3 + $0x148] sm:$0xff]  ;;  %vm17231_vm9 = vmmov %vm17221_vm3 }
 0x38c   : > { %4666 = vst.msk [vmem:[#allocation3 + $0x160] sm:$0xff] %vm4643_vm7, %v4571_v33  ;;  %v6336_v5 = vsel %vm17225_vm15, %v6333_v42, %v6335_v26  ;;  %v15442_v36 = vor.u32 %v7606_v61, %v7603_v43  ;;  %v10715_v42 = vld [vmem:[#allocation2 + $0x128] sm:$0xff]   ;;  %v5791_v21 = vrot.slane %v5789_v58, 1  ;;  %v8159_v28 = vsel %vm17229_vm1, %v8156_v6, %v8158_v52  ;;  %v15481_v6 = vld [vmem:[#allocation2 + $0x120] sm:$0xff]   ;;  %v10759_v43 = vld [vmem:[#allocation2 + $0x118] sm:$0xff]  }
 0x38d   : > { %v3974_v44 = vor.u32 %v3972_v20, %v15380_v30  ;;  %v15461_v30 = vld [vmem:[#allocation2 + $0x120] sm:$0xff]   ;;  %8241 = vst.msk [vmem:[#allocation3 + $0x228] sm:$0xff] %vm17221_vm3, %v8159_v28  ;;  %v7610_v32 = vshrl.u32 %v10715_v42, 16  ;;  %vm17230_vm5 = vsmask.f32 7424  ;;  %vm17232_vm15 = vmmov %vm17223_vm4  ;;  %vm17236_vm1 = vcmask 1045504  }
 0x38e   : > { %v6404_v50 = vpop.permute.xlu0 %6403  ;;  %v5029_v22 = vrot.slane %v15461_v30, 1 }
 0x38f   : > { %6924 = vrot.lane.b32.xlu1 %v6847_v19, %s10855_s26  ;;  %7718 = vrot.lane.b32.xlu0 %v7599_v9, %s10857_s17  ;;  %6493 = vst.msk [vmem:[#allocation3 + $0x1c0] sm:$0xff] %vm6464_vm2, %v6404_v50  ;;  %v5084_v2 = vpop.permute.xlu1 %5083  ;;  %v5792_v19 = vshll.u32 %v10710_v54, 16  ;;  %v8285_v9 = vld [vmem:[#allocation3 + $0x138] sm:$0xff]  ;;  %v7613_v50 = vshll.u32 %v10715_v42, 16 }
 0x390   : > { %8689 = vmatmul.mubr.bf16.gmra.mrb[104].mxu0 %v8280_v14  ;;  %5179 = vst.msk [vmem:[#allocation3 + $0x160] sm:$0xff] %vm5156_vm12, %v5084_v2  ;;  %v8586_v23 = vpop.f32.mrb[52].mxu0  ;;  %v8284_v2 = vld [vmem:[#allocation3 + $0x130] sm:$0xff] }
 0x391   : > { %9882 = vmatprep.mubr.msk.bf16.mxu0 %vm17220_vm13, %v8283_v57  ;;  %v8587_v17 = vadd.f32 %v14887_v11, %v8586_v23  ;;  %v8588_v35 = vpop.f32.mrb[53].mxu0  ;;  %vm17228_vm13 = vsmask.f32 5376  ;;  %v5794_v47 = vrot.slane %v5792_v19, 2  ;;  %v7615_v20 = vrot.slane %v7613_v50, 3 }
 0x392   : > { %v6917_v63 = vpop.permute.xlu0 %6916  ;;  %v8589_v27 = vpop.f32.mrb[54].mxu0  ;;  %v6337_v23 = vrot.slane %v15481_v6, 2  ;;  %v5798_v35 = vshrl.u32 %v10720_v24, 16 }
 0x393   : > { %4078 = vrot.lane.b32.xlu1 %v3971_v16, %s10854_s25  ;;  %4592 = vrot.lane.b32.xlu0 %v4515_v15, %s10852_s23  ;;  %7006 = vst.msk [vmem:[#allocation3 + $0x1c0] sm:$0xff] %vm6977_vm8, %v6917_v63  ;;  %v5878_v40 = vpop.permute.xlu1 %5877  ;;  %v8590_v25 = vadd.f32 %v14887_v11, %v8589_v27  ;;  %v8591_v14 = vpop.f32.mrb[55].mxu0  ;;  %v15458_v16 = vrot.slane %v3976_v29, 1  ;;  %v7608_v11 = vsel %vm17228_vm13, %v15353_v60, %v15442_v36  ;;  %v8873_v55 = vmax.f32 %v8587_v17, 0.0  ;;  %v8305_v29 = vld [vmem:[#allocation3 + $0x1d8] sm:$0xff]  ;;  %v8286_v27 = vld [vmem:[#allocation3 + $0x140] sm:$0xff] }
 0x394   : > { %5973 = vst.msk [vmem:[#allocation3 + $0x160] sm:$0xff] %vm5950_vm14, %v5878_v40  ;;  %v4517_v15 = vsel %vm17223_vm4, %v4514_v4, %v4516_v12  ;;  %v7612_v63 = vrot.slane %v7610_v32, 2  ;;  %v15496_v40 = vld [vmem:[#allocation2 + $0x120] sm:$0xff]   ;;  %vm17235_vm13 = vsmask.f32 6400  ;;  %v5800_v14 = vrot.slane %v5798_v35, 1 }
 0x395   : > { %v8874_v59 = vmax.f32 %v8590_v25, 0.0  ;;  %v3979_v18 = vsel %vm17230_vm5, %v3974_v44, %v15458_v16  ;;  %v3984_v19 = vshll.u32 %v15496_v40, 16  ;;  %v15518_v17 = vld [vmem:[#allocation2 + $0x120] sm:$0xff]   ;;  %v3982_v42 = vor.u32 %v3980_v56, %v15458_v16  ;;  %v15534_v25 = vld [vmem:[#allocation2 + $0x128] sm:$0xff]   ;;  %vm17238_vm5 = vmmov %vm17234_vm0 }
 0x396   : > { %v7711_v33 = vpop.permute.xlu0 %7710  ;;  %v15515_v58 = vor.u32 %v7615_v20, %v7612_v63  ;;  %vm17239_vm4 = vsmask.f32 5376  ;;  %v5031_v50 = vrot.slane %v15534_v25, 1  ;;  %v10730_v56 = vld [vmem:[#allocation2 + $0x130] sm:$0xff]  }
 0x397   : > { %5105 = vrot.lane.b32.xlu1 %v5028_v41, %s10853_s24  ;;  %5899 = vrot.lane.b32.xlu0 %v5787_v0, %s10858_s18  ;;  %7800 = vst.msk [vmem:[#allocation3 + $0x1c0] sm:$0xff] %vm7771_vm6, %v7711_v33  ;;  %v6392_v45 = vpop.permute.xlu1 %6391  ;;  %v15475_v37 = vpack.c.bf16 %v8874_v59, %v8873_v55  ;;  %v15490_v41 = vor.u32 %v5794_v47, %v5791_v21  ;;  %v10723_v33 = vld [vmem:[#allocation2 + $0x130] sm:$0xff]   ;;  %v15543_v48 = vrot.slane %v3984_v19, 1  ;;  %v5803_v21 = vrot.slane %v5801_v46, 2 }
 0x398   : > { %8697 = vmatmul.mubr.bf16.gmra.mrb[108].mxu0 %v8282_v31  ;;  %6487 = vst.msk [vmem:[#allocation3 + $0x160] sm:$0xff] %vm6464_vm2, %v6392_v45  ;;  %v5030_v0 = vsel %vm17232_vm15, %v5027_v39, %v5029_v22  ;;  %v7619_v47 = vshrl.u32 %v10723_v33, 16  ;;  %v7622_v28 = vshll.u32 %v10723_v33, 16  ;;  %vm17241_vm15 = vcmask 1044480  }
 0x399   : > { %9883 = vmatprep.mubr.msk.bf16.mxu0 %vm17226_vm10, %v8285_v9  ;;  %vm17233_vm10 = vmmov %vm17221_vm3  ;;  %v5796_v31 = vsel %vm17235_vm13, %v15414_v1, %v15490_v41  ;;  %v6338_v1 = vsel %vm17236_vm1, %v6335_v26, %v6337_v23  ;;  %v15537_v26 = vld [vmem:[#allocation2 + $0x130] sm:$0xff]   ;;  %vm17243_vm13 = vcmask 1046528   ;;  %v3988_v46 = vshrl.u32 %v15496_v40, 16 }
 0x39a   : > { %v4071_v57 = vpop.permute.xlu0 %4070  ;;  %3414 = vst.msk [vmem:[#allocation3 + $0x230] sm:$0xff] %vm17233_vm10, %v10759_v43  ;;  %vm17237_vm3 = vmmov %vm17236_vm1  ;;  %v8160_v55 = vrot.slane %v15537_v26, 3  ;;  %v7621_v20 = vrot.slane %v7619_v47, 2  ;;  %v7624_v24 = vrot.slane %v7622_v28, 3 }
 0x39b   : > { %6413 = vrot.lane.b32.xlu1 %v6336_v5, %s10856_s10  ;;  %6926 = vrot.lane.b32.xlu0 %v6849_v53, %s10855_s26  ;;  %4159 = vst.msk [vmem:[#allocation3 + $0x1d0] sm:$0xff] %vm4129_vm11, %v4071_v57  ;;  %v6905_v60 = vpop.permute.xlu1 %6904  ;;  %v6850_v5 = vrot.slane %v15492_v51, 2  ;;  %v7617_v53 = vsel %vm17239_vm4, %v15442_v36, %v15515_v58  ;;  %v15553_v36 = vld [vmem:[%s16113_s4] ss:$0 sm:$0xff]  ;;  %vm17242_vm10 = vmmov %vm17234_vm0  ;;  %vm17247_vm4 = vcmask 1045504  }
 0x39c   : > { %7000 = vst.msk [vmem:[#allocation3 + $0x160] sm:$0xff] %vm6977_vm8, %v6905_v60  ;;  %v15559_v60 = vld [vmem:[#allocation2 + $0x128] sm:$0xff]   ;;  %vm17244_vm1 = vmmov %vm17243_vm13 }
 0x39d   : > { %v6851_v44 = vsel %vm17237_vm3, %v6848_v34, %v6850_v5  ;;  %v4518_v34 = vrot.slane %v15518_v17, 1  ;;  %v5032_v3 = vsel %vm17244_vm1, %v5029_v22, %v5031_v50  ;;  %vm17245_vm3 = vmmov %vm17234_vm0  ;;  %v15599_v22 = vor.u32 %v7624_v24, %v7621_v20  ;;  %v15657_v24 = vld [vmem:[#allocation2 + $0x138] sm:$0xff]  }
 0x39e   : > { %v4585_v61 = vpop.permute.xlu0 %4584  ;;  %v8302_v54 = vld [vmem:[#allocation3 + $0x1c0] sm:$0xff]  ;;  %vm17252_vm1 = vsmask.f32 7424 }
 0x39f   : > { %7720 = vrot.lane.b32.xlu1 %v7608_v11, %s10857_s17  ;;  %4080 = vrot.lane.b32.xlu0 %v3979_v18, %s10854_s25  ;;  %4673 = vst.msk [vmem:[#allocation3 + $0x1d0] sm:$0xff] %vm4643_vm7, %v4585_v61  ;;  %v7699_v4 = vpop.permute.xlu1 %7698  ;;  %v10761_v18 = vld [vmem:[#allocation2 + $0x120] sm:$0xff]   ;;  %v4519_v8 = vsel %vm17243_vm13, %v4516_v12, %v4518_v34  ;;  %v6339_v12 = vrot.slane %v15559_v60, 2  ;;  %vm17251_vm13 = vmmov %vm17234_vm0 }
 0x3a0   : > { %8705 = vmatmul.mubr.bf16.gmra.mrb[112].mxu0 %v8284_v2  ;;  %8777 = vmatmul.mubr.bf16.gmra.mrb[44].mxu1 %v8302_v54  ;;  %7794 = vst.msk [vmem:[#allocation3 + $0x160] sm:$0xff] %vm7771_vm6, %v7699_v4  ;;  %v8594_v11 = vpop.f32.mrb[56].mxu0  ;;  %v15568_v54 = vld [vmem:[#allocation2 + $0x130] sm:$0xff]   ;;  %v15580_v4 = vld [vmem:[#allocation2 + $0x128] sm:$0xff]  }
 0x3a1   : > { %9884 = vmatprep.mubr.msk.bf16.mxu0 %vm17231_vm9, %v8287_v49  ;;  %9893 = vmatprep.mubr.msk.bf16.mxu1 %vm17234_vm0, %v8305_v29  ;;  %v8595_v59 = vadd.f32 %v15553_v36, %v8594_v11  ;;  %v8596_v57 = vpop.f32.mrb[57].mxu0  ;;  %vm17240_vm9 = vsmask.f32 7424  ;;  %3415 = vst.msk [vmem:[#allocation3 + $0x240] sm:$0xff] %vm17234_vm0, %v10761_v18  ;;  %v3992_v33 = vshll.u32 %v15580_v4, 16  ;;  %v3996_v25 = vshrl.u32 %v15580_v4, 16 }
 0x3a2   : > { %v5098_v39 = vpop.permute.xlu0 %5097  ;;  %v3987_v32 = vsel %vm17240_vm9, %v3982_v42, %v15543_v48  ;;  %v8597_v2 = vpop.f32.mrb[58].mxu0  ;;  %v5807_v42 = vshrl.u32 %v10730_v56, 16  ;;  %vm17248_vm9 = vmmov %vm17247_vm4 }
 0x3a3   : > { %4594 = vrot.lane.b32.xlu1 %v4517_v15, %s10852_s23  ;;  %5107 = vrot.lane.b32.xlu0 %v5030_v0, %s10853_s24  ;;  %5186 = vst.msk [vmem:[#allocation3 + $0x1d0] sm:$0xff] %vm5156_vm12, %v5098_v39  ;;  %v4059_v9 = vpop.permute.xlu1 %4058  ;;  %v8161_v15 = vsel %vm17241_vm15, %v8158_v52, %v8160_v55  ;;  %v8598_v43 = vadd.f32 %v15553_v36, %v8597_v2  ;;  %v8599_v61 = vpop.f32.mrb[59].mxu0  ;;  %v8875_v0 = vmax.f32 %v8595_v59, 0.0  ;;  %v8291_v39 = vld [vmem:[#allocation3 + $0x168] sm:$0xff]  ;;  %vm17249_vm15 = vsmask.f32 5376 }
 0x3a4   : > { %4153 = vst.msk [vmem:[#allocation3 + $0x170] sm:$0xff] %vm4129_vm11, %v4059_v9  ;;  %v15578_v52 = vor.u32 %v5803_v21, %v5800_v14  ;;  %v6852_v9 = vrot.slane %v15568_v54, 2  ;;  %v15626_v11 = vrot.slane %v3992_v33, 1  ;;  %v15628_v21 = vld [vmem:[#allocation2 + $0x130] sm:$0xff]   ;;  %v5809_v51 = vrot.slane %v5807_v42, 1  ;;  %v10763_v61 = vld [vmem:[#allocation2 + $0x128] sm:$0xff]  }
 0x3a5   : > { %8242 = vst.msk [vmem:[#allocation3 + $0x238] sm:$0xff] %vm17242_vm10, %v8161_v15  ;;  %v8876_v29 = vmax.f32 %v8598_v43, 0.0  ;;  %vm17250_vm10 = vcmask 1044480   ;;  %v15646_v43 = vld [vmem:[#allocation2 + $0x130] sm:$0xff]  }
 0x3a6   : > { %v5892_v45 = vpop.permute.xlu0 %5891  ;;  %v6853_v6 = vsel %vm17248_vm9, %v6850_v5, %v6852_v9  ;;  %v6341_v33 = vrot.slane %v15646_v43, 2  ;;  %vm17256_vm9 = vmmov %vm17234_vm0 }
 0x3a7   : > { %5901 = vrot.lane.b32.xlu1 %v5796_v31, %s10858_s18  ;;  %6415 = vrot.lane.b32.xlu0 %v6338_v1, %s10856_s10  ;;  %5980 = vst.msk [vmem:[#allocation3 + $0x1d0] sm:$0xff] %vm5950_vm14, %v5892_v45  ;;  %v4573_v16 = vpop.permute.xlu1 %4572  ;;  %v8288_v31 = vld [vmem:[#allocation3 + $0x150] sm:$0xff]  ;;  %v15591_v19 = vpack.c.bf16 %v8876_v29, %v8875_v0  ;;  %v8290_v47 = vld [vmem:[#allocation3 + $0x160] sm:$0xff] }
 0x3a8   : > { %8713 = vmatmul.mubr.bf16.gmra.mrb[116].mxu0 %v8286_v27  ;;  %4667 = vst.msk [vmem:[#allocation3 + $0x170] sm:$0xff] %vm4643_vm7, %v4573_v16  ;;  %v6340_v27 = vsel %vm17247_vm4, %v6337_v23, %v6339_v12  ;;  %v10734_v45 = vld [vmem:[#allocation2 + $0x138] sm:$0xff]   ;;  %v7626_v23 = vsel %vm17249_vm15, %v15515_v58, %v15599_v22  ;;  %v3990_v16 = vor.u32 %v3988_v46, %v15543_v48  ;;  %v8293_v58 = vld [vmem:[#allocation3 + $0x178] sm:$0xff]  ;;  %vm17257_vm15 = vsmask.f32 6400 }
 0x3a9   : > { %9885 = vmatprep.mubr.msk.bf16.mxu0 %vm17238_vm5, %v8289_v10  ;;  %vm17246_vm5 = vsmask.f32 6400  ;;  %v15612_v10 = vld [vmem:[#allocation2 + $0x138] sm:$0xff]   ;;  %v7631_v18 = vshll.u32 %v10734_v45, 16 }
 0x3aa   : > { %v6406_v49 = vpop.permute.xlu0 %6405  ;;  %v5805_v30 = vsel %vm17246_vm5, %v15490_v41, %v15578_v52  ;;  %v5810_v41 = vshll.u32 %v10730_v56, 16  ;;  %vm17254_vm5 = vmmov %vm17234_vm0  ;;  %v8307_v46 = vld [vmem:[#allocation3 + $0x1e8] sm:$0xff] }
 0x3ab   : > { %6928 = vrot.lane.b32.xlu1 %v6851_v44, %s10855_s26  ;;  %7722 = vrot.lane.b32.xlu0 %v7617_v53, %s10857_s17  ;;  %6494 = vst.msk [vmem:[#allocation3 + $0x1d0] sm:$0xff] %vm6464_vm2, %v6406_v49  ;;  %v5086_v63 = vpop.permute.xlu1 %5085  ;;  %v15610_v44 = vld [vmem:[#allocation2 + $0x128] sm:$0xff]   ;;  %v8162_v53 = vrot.slane %v15612_v10, 3  ;;  %v5033_v49 = vrot.slane %v15628_v21, 1 }
 0x3ac   : > { %5180 = vst.msk [vmem:[#allocation3 + $0x170] sm:$0xff] %vm5156_vm12, %v5086_v63  ;;  %v4520_v28 = vrot.slane %v15610_v44, 1  ;;  %v5812_v59 = vrot.slane %v5810_v41, 2  ;;  %v6854_v41 = vrot.slane %v15657_v24, 2 }
 0x3ad   : > { %v8163_v5 = vsel %vm17250_vm10, %v8160_v55, %v8162_v53  ;;  %v3995_v55 = vsel %vm17252_vm1, %v3990_v16, %v15626_v11  ;;  %3416 = vst.msk [vmem:[#allocation3 + $0x250] sm:$0xff] %vm17254_vm5, %v10763_v61  ;;  %v10742_v16 = vld [vmem:[#allocation2 + $0x140] sm:$0xff]   ;;  %vm17258_vm10 = vcmask 1045504  }
 0x3ae   : > { %v6919_v35 = vpop.permute.xlu0 %6918  ;;  %8243 = vst.msk [vmem:[#allocation3 + $0x248] sm:$0xff] %vm17234_vm0, %v8163_v5  ;;  %v15655_v20 = vor.u32 %v5812_v59, %v5809_v51  ;;  %v6342_v4 = vsel %vm17258_vm10, %v6339_v12, %v6341_v33  ;;  %vm17259_vm0 = vmmov %vm17258_vm10 }
 0x3af   : > { %4082 = vrot.lane.b32.xlu1 %v3987_v32, %s10854_s25  ;;  %4596 = vrot.lane.b32.xlu0 %v4519_v8, %s10852_s23  ;;  %7007 = vst.msk [vmem:[#allocation3 + $0x1d0] sm:$0xff] %vm6977_vm8, %v6919_v35  ;;  %v5880_v1 = vpop.permute.xlu1 %5879  ;;  %v8602_v57 = vpop.f32.mrb[60].mxu0  ;;  %v7628_v32 = vshrl.u32 %v10734_v45, 16  ;;  %v7633_v35 = vrot.slane %v7631_v18, 3  ;;  %vm17265_vm10 = vmmov %vm17259_vm0 }
 0x3b0   : > { %8721 = vmatmul.mubr.bf16.gmra.mrb[120].mxu0 %v8288_v31  ;;  %5974 = vst.msk [vmem:[#allocation3 + $0x170] sm:$0xff] %vm5950_vm14, %v5880_v1  ;;  %v8603_v2 = vadd.f32 %v15553_v36, %v8602_v57  ;;  %v8604_v15 = vpop.f32.mrb[61].mxu0  ;;  %v15661_v31 = vld [vmem:[#allocation2 + $0x130] sm:$0xff]   ;;  %v5814_v42 = vsel %vm17257_vm15, %v15578_v52, %v15655_v20  ;;  %v3998_v57 = vor.u32 %v3996_v25, %v15626_v11 }
 0x3b1   : > { %9886 = vmatprep.mubr.msk.bf16.mxu0 %vm17245_vm3, %v8291_v39  ;;  %v8605_v63 = vpop.f32.mrb[62].mxu0  ;;  %vm17253_vm3 = vcmask 1046528   ;;  %v7630_v39 = vrot.slane %v7628_v32, 2  ;;  %v15702_v32 = vld [vmem:[#allocation2 + $0x138] sm:$0xff]  }
 0x3b2   : > { %v7713_v40 = vpop.permute.xlu0 %7712  ;;  %v4521_v8 = vsel %vm17253_vm3, %v4518_v34, %v4520_v28  ;;  %v8606_v0 = vadd.f32 %v15553_v36, %v8605_v63  ;;  %v8607_v29 = vpop.f32.mrb[63].mxu0  ;;  %v8877_v17 = vmax.f32 %v8603_v2, 0.0  ;;  %vm17255_vm4 = vmmov %vm17253_vm3 }
 0x3b3   : > { %5109 = vrot.lane.b32.xlu1 %v5032_v3, %s10853_s24  ;;  %5903 = vrot.lane.b32.xlu0 %v5805_v30, %s10858_s18  ;;  %7801 = vst.msk [vmem:[#allocation3 + $0x1d0] sm:$0xff] %vm7771_vm6, %v7713_v40  ;;  %v6394_v14 = vpop.permute.xlu1 %6393  ;;  %v5034_v30 = vsel %vm17255_vm4, %v5031_v50, %v5033_v49  ;;  %v4000_v50 = vshll.u32 %v15661_v31, 16  ;;  %vm17261_vm3 = vmmov %vm17254_vm5 }
 0x3b4   : > { %6488 = vst.msk [vmem:[#allocation3 + $0x170] sm:$0xff] %vm6464_vm2, %v6394_v14  ;;  %v8878_v1 = vmax.f32 %v8606_v0, 0.0  ;;  %vm17262_vm5 = vmmov %vm17255_vm4 }
 0x3b5   : > { %v15706_v18 = vrot.slane %v4000_v50, 1 }
 0x3b6   : > { %v4073_v48 = vpop.permute.xlu0 %4072  ;;  %v15679_v40 = vpack.c.bf16 %v8878_v1, %v8877_v17  ;;  %v15719_v17 = vld [vmem:[#allocation2 + $0x138] sm:$0xff]  }
 0x3b7   : > { %6417 = vrot.lane.b32.xlu1 %v6340_v27, %s10856_s10  ;;  %6930 = vrot.lane.b32.xlu0 %v6853_v6, %s10855_s26  ;;  %4160 = vst.msk [vmem:[#allocation3 + $0x1e0] sm:$0xff] %vm4129_vm11, %v4073_v48  ;;  %v6907_v26 = vpop.permute.xlu1 %6906  ;;  %v10739_v27 = vld [vmem:[#allocation2 + $0x138] sm:$0xff]   ;;  %v15683_v6 = vor.u32 %v7633_v35, %v7630_v39  ;;  %v6855_v48 = vsel %vm17259_vm0, %v6852_v9, %v6854_v41  ;;  %v7640_v9 = vshll.u32 %v10742_v16, 16  ;;  %v5035_v35 = vrot.slane %v15702_v32, 1 }
 0x3b8   : > { %8729 = vmatmul.mubr.bf16.gmra.mrb[124].mxu0 %v8290_v47  ;;  %7001 = vst.msk [vmem:[#allocation3 + $0x170] sm:$0xff] %vm6977_vm8, %v6907_v26  ;;  %v5816_v59 = vshrl.u32 %v10739_v27, 16  ;;  %v5819_v5 = vshll.u32 %v10739_v27, 16  ;;  %v7637_v26 = vshrl.u32 %v10742_v16, 16  ;;  %v8295_v39 = vld [vmem:[#allocation3 + $0x188] sm:$0xff] }
 0x3b9   : > { %9887 = vmatprep.mubr.msk.bf16.mxu0 %vm17251_vm13, %v8293_v58  ;;  %vm17260_vm13 = vsmask.f32 5376  ;;  %v7642_v50 = vrot.slane %v7640_v9, 3 }
 0x3ba   : > { %v4587_v3 = vpop.permute.xlu0 %4586  ;;  %v8304_v56 = vld [vmem:[#allocation3 + $0x1d0] sm:$0xff]  ;;  %v8762_v45 = vpop.f32.mrb[36].mxu1  ;;  %v7635_v15 = vsel %vm17260_vm13, %v15599_v22, %v15683_v6  ;;  %v5818_v0 = vrot.slane %v5816_v59, 1  ;;  %v5821_v29 = vrot.slane %v5819_v5, 2  ;;  %v7639_v25 = vrot.slane %v7637_v26, 2 }
 0x3bb   : > { %7724 = vrot.lane.b32.xlu1 %v7626_v23, %s10857_s17  ;;  %4084 = vrot.lane.b32.xlu0 %v3995_v55, %s10854_s25  ;;  %4674 = vst.msk [vmem:[#allocation3 + $0x1e0] sm:$0xff] %vm4643_vm7, %v4587_v3  ;;  %v7701_v34 = vpop.permute.xlu1 %7700  ;;  %v15685_v23 = vld [vmem:[#allocation2 + $0x130] sm:$0xff]   ;;  %v8763_v47 = vadd.f32 %v15553_v36, %v8762_v45  ;;  %v8764_v52 = vpop.f32.mrb[37].mxu1  ;;  %v10748_v45 = vld [vmem:[#allocation2 + $0x140] ss:$0 sps:$4 sm:$0x33]   ;;  %v5036_v59 = vsel %vm17255_vm4, %v5033_v49, %v5035_v35 }
 0x3bc   : > { %8785 = vmatmul.mubr.bf16.gmra.mrb[48].mxu1 %v8304_v56  ;;  %7795 = vst.msk [vmem:[#allocation3 + $0x170] sm:$0xff] %vm7771_vm6, %v7701_v34  ;;  %v8765_v58 = vpop.f32.mrb[38].mxu1  ;;  %v4522_v54 = vrot.slane %v15685_v23, 1  ;;  %v4003_v56 = vsel %vm17252_vm1, %v3998_v57, %v15706_v18  ;;  %v10744_v52 = vld [vmem:[#allocation2 + $0x138] ss:$0 sps:$4 sm:$0x11]   ;;  %v15748_v57 = vor.u32 %v7642_v50, %v7639_v25 }
 0x3bd   : > { %9894 = vmatprep.mubr.msk.bf16.mxu1 %vm17256_vm9, %v8307_v46  ;;  %v8766_v60 = vadd.f32 %v15553_v36, %v8765_v58  ;;  %v8767_v12 = vpop.f32.mrb[39].mxu1  ;;  %v8917_v55 = vmax.f32 %v8763_v47, 0.0  ;;  %v15734_v47 = vor.u32 %v5821_v29, %v5818_v0  ;;  %v6343_v5 = vrot.slane %v15719_v17, 2  ;;  %vm17263_vm9 = vmmov %vm17257_vm15  ;;  %v15756_v26 = vld [vmem:[#allocation2 + $0x140] sm:$0xff]  }
 0x3be   : > { %v5100_v14 = vpop.permute.xlu0 %5099  ;;  %v4523_v16 = vsel %vm17262_vm5, %v4520_v28, %v4522_v54  ;;  %v10764_v28 = vld [vmem:[#allocation2 + $0x130] sm:$0xff]   ;;  %v5828_v12 = vshll.u32 %v10748_v45, 16  ;;  %v4004_v49 = vshrl.u32 %v15661_v31, 16  ;;  %vm17264_vm15 = vmmov %vm17261_vm3  ;;  %v10752_v31 = vld [vmem:[#allocation2 + $0x148] ss:$0 sps:$4 sm:$0x77]   ;;  %v7644_v43 = vsel %vm17260_vm13, %v15683_v6, %v15748_v57 }
 0x3bf   : > { %4598 = vrot.lane.b32.xlu1 %v4521_v8, %s10852_s23  ;;  %5111 = vrot.lane.b32.xlu0 %v5034_v30, %s10853_s24  ;;  %5187 = vst.msk [vmem:[#allocation3 + $0x1e0] sm:$0xff] %vm5156_vm12, %v5100_v14  ;;  %v4061_v51 = vpop.permute.xlu1 %4060  ;;  %v8918_v11 = vmax.f32 %v8766_v60, 0.0  ;;  %v15725_v30 = vld [vmem:[#allocation2 + $0x140] sm:$0xff]   ;;  %v5825_v60 = vshrl.u32 %v10748_v45, 16  ;;  %v5823_v21 = vsel %vm17263_vm9, %v15655_v20, %v15734_v47  ;;  %v6344_v9 = vsel %vm17265_vm10, %v6341_v33, %v6343_v5  ;;  %vm17268_vm9 = vmmov %vm17255_vm4 }
 0x3c0   : > { %4154 = vst.msk [vmem:[#allocation3 + $0x180] sm:$0xff] %vm4129_vm11, %v4061_v51  ;;  %v6856_v44 = vrot.slane %v15725_v30, 2  ;;  %v5830_v33 = vrot.slane %v5828_v12, 2  ;;  %v4006_v29 = vor.u32 %v4004_v49, %v15706_v18  ;;  %vm17266_vm1 = vcmask 1044480   ;;  %vm17270_vm10 = vmmov %vm17261_vm3 }
 0x3c1   : > { %v15721_v1 = vpack.c.bf16 %v8918_v11, %v8917_v55  ;;  %3417 = vst.msk [vmem:[#allocation3 + $0x260] sm:$0xff] %vm17264_vm15, %v10764_v28  ;;  %v10745_v55 = vld [vmem:[#allocation2 + $0x138] ss:$0 sps:$4 sm:$0x11]   ;;  %v7649_v18 = vshll.u32 %v10752_v31, 16  ;;  %vm17271_vm13 = vmmov %vm17259_vm0 }
 0x3c2   : > { %v5894_v2 = vpop.permute.xlu0 %5893  ;;  %v10746_v11 = vld [vmem:[#allocation2 + $0x140] ss:$0 sps:$4 sm:$0x11]   ;;  %v6857_v20 = vsel %vm17259_vm0, %v6854_v41, %v6856_v44  ;;  %v4524_v41 = vrot.slane %v10745_v55, 1  ;;  %vm17267_vm5 = vsmask.f32 7424 }
 0x3c3   : > { %5905 = vrot.lane.b32.xlu1 %v5814_v42, %s10858_s18  ;;  %6419 = vrot.lane.b32.xlu0 %v6342_v4, %s10856_s10  ;;  %5981 = vst.msk [vmem:[#allocation3 + $0x1e0] sm:$0xff] %vm5950_vm14, %v5894_v2  ;;  %v4575_v61 = vpop.permute.xlu1 %4574  ;;  %v8292_v8 = vld [vmem:[#allocation3 + $0x170] sm:$0xff]  ;;  %v5037_v6 = vrot.slane %v10746_v11, 1  ;;  %v7651_v45 = vrot.slane %v7649_v18, 3  ;;  %vm17269_vm15 = vsmask.f32 6400 }
 0x3c4   : > { %4668 = vst.msk [vmem:[#allocation3 + $0x180] sm:$0xff] %vm4643_vm7, %v4575_v61  ;;  %8737 = vmatmul.mubr.bf16.gmra.mrb[128].mxu0 %v8292_v8  ;;  %v8164_v61 = vrot.slane %v15756_v26, 3  ;;  %v5827_v8 = vrot.slane %v5825_v60, 1  ;;  %v10766_v12 = vld [vmem:[#allocation2 + $0x148] ss:$0 sps:$4 sm:$0x77]  }
 0x3c5   : > { %v8610_v63 = vpop.f32.mrb[64].mxu0  ;;  %9888 = vmatprep.mubr.msk.bf16.mxu0 %vm17261_vm3, %v8295_v39 }
 0x3c6   : > { %v8611_v3 = vadd.f32 %v15553_v36, %v8610_v63  ;;  %v8612_v22 = vpop.f32.mrb[65].mxu0  ;;  %v6408_v46 = vpop.permute.xlu0 %6407  ;;  %v8165_v24 = vsel %vm17266_vm1, %v8162_v53, %v8164_v61  ;;  %vm17272_vm1 = vsmask.f32 5376 }
 0x3c7   : > { %6932 = vrot.lane.b32.xlu1 %v6855_v48, %s10855_s26  ;;  %7726 = vrot.lane.b32.xlu0 %v7635_v15, %s10857_s17  ;;  %v8613_v34 = vpop.f32.mrb[66].mxu0  ;;  %6495 = vst.msk [vmem:[#allocation3 + $0x1e0] sm:$0xff] %vm6464_vm2, %v6408_v46  ;;  %v5088_v14 = vpop.permute.xlu1 %5087  ;;  %v4008_v15 = vshll.u32 %v10744_v52, 16  ;;  %v10750_v22 = vld [vmem:[#allocation2 + $0x140] ss:$0 sps:$4 sm:$0x33]  }
 0x3c8   : > { %v8614_v27 = vadd.f32 %v15553_v36, %v8613_v34  ;;  %v8615_v42 = vpop.f32.mrb[67].mxu0  ;;  %v8879_v51 = vmax.f32 %v8611_v3, 0.0  ;;  %5181 = vst.msk [vmem:[#allocation3 + $0x180] sm:$0xff] %vm5156_vm12, %v5088_v14  ;;  %v5831_v34 = vor.u32 %v5830_v33, %v5827_v8  ;;  %v10751_v46 = vld [vmem:[#allocation2 + $0x148] ss:$0 sps:$4 sm:$0x33]  }
 0x3c9   : > { %v4010_v3 = vrot.slane %v4008_v15, 1  ;;  %8244 = vst.msk [vmem:[#allocation3 + $0x258] sm:$0xff] %vm17261_vm3, %v8165_v24  ;;  %v5038_v42 = vsel %vm17268_vm9, %v5035_v35, %v5037_v6  ;;  %v6345_v25 = vrot.slane %v10750_v22, 2  ;;  %v8166_v15 = vrot.slane %v10766_v12, 3  ;;  %vm17275_vm9 = vmmov %vm17261_vm3 }
 0x3ca   : > { %v8880_v4 = vmax.f32 %v8614_v27, 0.0  ;;  %v6921_v48 = vpop.permute.xlu0 %6920  ;;  %v4525_v27 = vsel %vm17255_vm4, %v4522_v54, %v4524_v41  ;;  %v5832_v52 = vsel %vm17269_vm15, %v15734_v47, %v5831_v34  ;;  %v8309_v54 = vld [vmem:[#allocation3 + $0x1f8] sm:$0xff]  ;;  %vm17274_vm4 = vmmov %vm17261_vm3 }
 0x3cb   : > { %4086 = vrot.lane.b32.xlu1 %v4003_v56, %s10854_s25  ;;  %4600 = vrot.lane.b32.xlu0 %v4523_v16, %s10852_s23  ;;  %7008 = vst.msk [vmem:[#allocation3 + $0x1e0] sm:$0xff] %vm6977_vm8, %v6921_v48  ;;  %v5882_v2 = vpop.permute.xlu1 %5881  ;;  %v7646_v56 = vshrl.u32 %v10752_v31, 16  ;;  %v4011_v53 = vsel %vm17267_vm5, %v4006_v29, %v4010_v3  ;;  %v6346_v32 = vsel %vm17259_vm0, %v6343_v5, %v6345_v25  ;;  %vm17273_vm5 = vcmask 1044480   ;;  %vm17276_vm15 = vmmov %vm17261_vm3 }
 0x3cc   : > { %v15746_v58 = vpack.c.bf16 %v8880_v4, %v8879_v51  ;;  %5975 = vst.msk [vmem:[#allocation3 + $0x180] sm:$0xff] %vm5950_vm14, %v5882_v2  ;;  %v6858_v51 = vrot.slane %v10751_v46, 2  ;;  %v8167_v31 = vsel %vm17273_vm5, %v8164_v61, %v8166_v15  ;;  %vm17278_vm0 = vmmov %vm17261_vm3 }
 0x3cd   : > { %v7648_v50 = vrot.slane %v7646_v56, 2  ;;  %8245 = vst.msk [vmem:[#allocation3 + $0x268] sm:$0xff] %vm17274_vm4, %v8167_v31 }
 0x3ce   : > { %v7715_v63 = vpop.permute.xlu0 %7714  ;;  %v6859_v4 = vsel %vm17271_vm13, %v6856_v44, %v6858_v51  ;;  %vm17279_vm13 = vmmov %vm17278_vm0 }
 0x3cf   : > { %5113 = vrot.lane.b32.xlu1 %v5036_v59, %s10853_s24  ;;  %5907 = vrot.lane.b32.xlu0 %v5823_v21, %s10858_s18  ;;  %7802 = vst.msk [vmem:[#allocation3 + $0x1e0] sm:$0xff] %vm7771_vm6, %v7715_v63  ;;  %v6396_v0 = vpop.permute.xlu1 %6395  ;;  %v7652_v35 = vor.u32 %v7651_v45, %v7648_v50  ;;  %v8297_v21 = vld [vmem:[#allocation3 + $0x198] sm:$0xff] }
 0x3d0   : > { %6489 = vst.msk [vmem:[#allocation3 + $0x180] sm:$0xff] %vm6464_vm2, %v6396_v0 }
 0x3d1   : > { %v7653_v17 = vsel %vm17272_vm1, %v15748_v57, %v7652_v35  ;;  %vm17280_vm1 = vmmov %vm17278_vm0 }
 0x3d2   : > { %v4075_v39 = vpop.permute.xlu0 %4074 }
 0x3d3   : > { %6421 = vrot.lane.b32.xlu1 %v6344_v9, %s10856_s10  ;;  %6934 = vrot.lane.b32.xlu0 %v6857_v20, %s10855_s26  ;;  %4161 = vst.msk [vmem:[#allocation3 + $0x1f0] sm:$0xff] %vm4129_vm11, %v4075_v39  ;;  %v6909_v10 = vpop.permute.xlu1 %6908 }
 0x3d4   : > { %7002 = vst.msk [vmem:[#allocation3 + $0x180] sm:$0xff] %vm6977_vm8, %v6909_v10  ;;  %v8311_v10 = vld [vmem:[#allocation3 + $0x208] sm:$0xff] }
 0x3d6   : > { %v4589_v14 = vpop.permute.xlu0 %4588  ;;  %v8306_v16 = vld [vmem:[#allocation3 + $0x1e0] sm:$0xff] }
 0x3d7   : > { %7728 = vrot.lane.b32.xlu1 %v7644_v43, %s10857_s17  ;;  %4088 = vrot.lane.b32.xlu0 %v4011_v53, %s10854_s25  ;;  %4675 = vst.msk [vmem:[#allocation3 + $0x1f0] sm:$0xff] %vm4643_vm7, %v4589_v14  ;;  %v7703_v23 = vpop.permute.xlu1 %7702 }
 0x3d8   : > { %8793 = vmatmul.mubr.bf16.gmra.mrb[52].mxu1 %v8306_v16  ;;  %7796 = vst.msk [vmem:[#allocation3 + $0x180] sm:$0xff] %vm7771_vm6, %v7703_v23 }
 0x3d9   : > { %9895 = vmatprep.mubr.msk.bf16.mxu1 %vm17270_vm10, %v8309_v54  ;;  %vm17277_vm10 = vmmov %vm17261_vm3 }
 0x3da   : > { %v5102_v47 = vpop.permute.xlu0 %5101 }
 0x3db   : > { %4602 = vrot.lane.b32.xlu1 %v4525_v27, %s10852_s23  ;;  %5115 = vrot.lane.b32.xlu0 %v5038_v42, %s10853_s24  ;;  %5188 = vst.msk [vmem:[#allocation3 + $0x1f0] sm:$0xff] %vm5156_vm12, %v5102_v47  ;;  %v4063_v59 = vpop.permute.xlu1 %4062  ;;  %v8618_v5 = vpop.f32.mrb[68].mxu0  ;;  %s9278_s23 = sshll.u32 %s298_s22, 4  ;;  %s16069_s23 = int_to_ptr.vmem [resolvable:$true] %s9278_s23 }
 0x3dc   : > { %4155 = vst.msk [vmem:[#allocation3 + $0x190] sm:$0xff] %vm4129_vm11, %v4063_v59  ;;  %v8619_v30 = vadd.f32 %v15553_v36, %v8618_v5  ;;  %v8620_v48 = vpop.f32.mrb[69].mxu0  ;;  %s10787_s9 = scalar_lea.vmem %s16069_s23, 32 }
 0x3dd   : > { %v8621_v2 = vpop.f32.mrb[70].mxu0  ;;  %p10788_p11 = scmp.ne.s32.totalorder %s16069_s23, %s10787_s9 }
 0x3de   : > { %v5896_v28 = vpop.permute.xlu0 %5895  ;;  %v8622_v49 = vadd.f32 %v15553_v36, %v8621_v2  ;;  %v8623_v57 = vpop.f32.mrb[71].mxu0  ;;  %v8881_v55 = vmax.f32 %v8619_v30, 0.0 }
 0x3df   : > { %5909 = vrot.lane.b32.xlu1 %v5832_v52, %s10858_s18  ;;  %6423 = vrot.lane.b32.xlu0 %v6346_v32, %s10856_s10  ;;  %5982 = vst.msk [vmem:[#allocation3 + $0x1f0] sm:$0xff] %vm5950_vm14, %v5896_v28  ;;  %v4577_v44 = vpop.permute.xlu1 %4576  ;;  %v8294_v60 = vld [vmem:[#allocation3 + $0x180] sm:$0xff]  ;;  %v8313_v57 = vld [vmem:[#allocation3 + $0x218] sm:$0xff]  ;;  %s9265_s10 = scalar_lea.sflag [#allocation5], %s296_s12  ;;  %p10789_p12 = pnand %p10788_p11, %p10946_p5 }
 0x3e0   : > { %4669 = vst.msk [vmem:[#allocation3 + $0x190] sm:$0xff] %vm4643_vm7, %v4577_v44  ;;  %8745 = vmatmul.mubr.bf16.gmra.mrb[132].mxu0 %v8294_v60  ;;  %v8882_v11 = vmax.f32 %v8622_v49, 0.0 }
 0x3e1   : > { %9889 = vmatprep.mubr.msk.bf16.mxu0 %vm17261_vm3, %v8297_v21  ;;  %p10790_p13 = pneg %p10789_p12 }
 0x3e2   : > { %v6410_v9 = vpop.permute.xlu0 %6409  ;;  %v8951_v63 = vpack.c.bf16 %v8882_v11, %v8881_v55 }
 0x3e3   : > { %6936 = vrot.lane.b32.xlu1 %v6859_v4, %s10855_s26  ;;  %7730 = vrot.lane.b32.xlu0 %v7653_v17, %s10857_s17  ;;  %6496 = vst.msk [vmem:[#allocation3 + $0x1f0] sm:$0xff] %vm6464_vm2, %v6410_v9  ;;  %v5090_v20 = vpop.permute.xlu1 %5089  ;;  %v8626_v8 = vpop.f32.mrb[72].mxu0  ;;  %s16067_s26 = scalar_lea.hbm %s16117_s8, %s9914_s21  ;;  %s10862_s17 = smov [#allocation4]  }
 0x3e4   : > { %5182 = vst.msk [vmem:[#allocation3 + $0x190] sm:$0xff] %vm5156_vm12, %v5090_v20  ;;  %v8627_v33 = vadd.f32 %v15553_v36, %v8626_v8  ;;  %v8628_v0 = vpop.f32.mrb[73].mxu0  ;;  %10031 = vmatprep.subr.bf16.mxu1 %v8951_v63  ;;  %s10791_s18 = sshll.u32 %s10862_s17, 4  ;;  %s10792_s18 = int_to_ptr.vmem [resolvable:$false] %s10791_s18 }
 0x3e5   : > { %v8629_v3 = vpop.f32.mrb[74].mxu0  ;;  %10032 = vmatpush3.bf16.msra.mxu1 %v14931_v13  ;;  %s10793_s13 = scalar_lea.vmem %s10792_s18, 64  ;;  %p10794_p0 = scmp.lt.s32.totalorder %s16069_s23, %s10792_s18 }
 0x3e6   : > { %v6923_v43 = vpop.permute.xlu0 %6922  ;;  %v8630_v26 = vadd.f32 %v15553_v36, %v8629_v3  ;;  %v8631_v61 = vpop.f32.mrb[75].mxu0  ;;  %v8883_v41 = vmax.f32 %v8627_v33, 0.0  ;;  %p10795_p1 = scmp.lt.s32.totalorder %s10793_s13, %s10787_s9 }
 0x3e7   : > { %7009 = vst.msk [vmem:[#allocation3 + $0x1f0] sm:$0xff] %vm6977_vm8, %v6923_v43  ;;  %v5884_v29 = vpop.permute.xlu1 %5883  ;;  %v8315_v43 = vld [vmem:[#allocation3 + $0x228] sm:$0xff] }
 0x3e8   : > { %5976 = vst.msk [vmem:[#allocation3 + $0x190] sm:$0xff] %vm5950_vm14, %v5884_v29  ;;  %v8884_v6 = vmax.f32 %v8630_v26, 0.0  ;;  %p10796_p2 = por %p10795_p1, %p10794_p0 }
 0x3ea   : > { %v7717_v24 = vpop.permute.xlu0 %7716  ;;  %v8952_v56 = vpack.c.bf16 %v8884_v6, %v8883_v41  ;;  %p10797_p3 = pnand %p10796_p2, %p10790_p13 }
 0x3eb   : > { %7803 = vst.msk [vmem:[#allocation3 + $0x1f0] sm:$0xff] %vm7771_vm6, %v7717_v24  ;;  %v6398_v22 = vpop.permute.xlu1 %6397 }
 0x3ec   : > { %6490 = vst.msk [vmem:[#allocation3 + $0x190] sm:$0xff] %vm6464_vm2, %v6398_v22  ;;  %10033 = vmatprep.subr.bf16.mxu1 %v8952_v56 }
 0x3ed   : > { %10034 = vmatpush3.bf16.msra.mxu1 %v15196_v38 }
 0x3f0   : > { %v4077_v18 = vpop.permute.xlu0 %4076 }
 0x3f1   : > { %4162 = vst.msk [vmem:[#allocation3 + $0x200] sm:$0xff] %vm4129_vm11, %v4077_v18 }
 0x3f2   : > { %v8308_v34 = vld [vmem:[#allocation3 + $0x1f0] sm:$0xff] }
 0x3f3   : > { %8801 = vmatmul.mubr.bf16.gmra.mrb[56].mxu1 %v8308_v34 }
 0x3f4   : > { %9896 = vmatprep.mubr.msk.bf16.mxu1 %vm17275_vm9, %v8311_v10 }
 0x3f5   : > { %v6911_v39 = vpop.permute.xlu1 %6910  ;;  %v4591_v13 = vpop.permute.xlu0 %4590 }
 0x3f6   : > { %7003 = vst.msk [vmem:[#allocation3 + $0x190] sm:$0xff] %vm6977_vm8, %v6911_v39  ;;  %v8634_v25 = vpop.f32.mrb[76].mxu0 }
 0x3f7   : > { %4676 = vst.msk [vmem:[#allocation3 + $0x200] sm:$0xff] %vm4643_vm7, %v4591_v13  ;;  %v8635_v38 = vadd.f32 %v15553_v36, %v8634_v25  ;;  %v8636_v50 = vpop.f32.mrb[77].mxu0 }
 0x3f8   : > { %v8637_v16 = vpop.f32.mrb[78].mxu0 }
 0x3f9   : > { %v7705_v46 = vpop.permute.xlu1 %7704  ;;  %v5104_v53 = vpop.permute.xlu0 %5103  ;;  %v8638_v52 = vadd.f32 %v15553_v36, %v8637_v16  ;;  %v8885_v54 = vmax.f32 %v8635_v38, 0.0 }
 0x3fa   : > { %7797 = vst.msk [vmem:[#allocation3 + $0x190] sm:$0xff] %vm7771_vm6, %v7705_v46  ;;  %v8639_v51 = vpop.f32.mrb[79].mxu0 }
 0x3fb   : > { %5189 = vst.msk [vmem:[#allocation3 + $0x200] sm:$0xff] %vm5156_vm12, %v5104_v53  ;;  %v8886_v32 = vmax.f32 %v8638_v52, 0.0 }
 0x3fd   : > { %v5898_v27 = vpop.permute.xlu1 %5897  ;;  %v6412_v42 = vpop.permute.xlu0 %6411  ;;  %v8953_v47 = vpack.c.bf16 %v8886_v32, %v8885_v54 }
 0x3fe   : > { %5983 = vst.msk [vmem:[#allocation3 + $0x200] sm:$0xff] %vm5950_vm14, %v5898_v27  ;;  %v8642_v59 = vpop.f32.mrb[80].mxu0 }
 0x3ff   : > { %6497 = vst.msk [vmem:[#allocation3 + $0x200] sm:$0xff] %vm6464_vm2, %v6412_v42  ;;  %v8643_v17 = vadd.f32 %v15553_v36, %v8642_v59  ;;  %v8644_v28 = vpop.f32.mrb[81].mxu0  ;;  %10035 = vmatprep.subr.bf16.mxu1 %v8953_v47  ;;  %v8319_v47 = vld [vmem:[#allocation3 + $0x248] sm:$0xff] }
 0x400   : > { %v8645_v30 = vpop.f32.mrb[82].mxu0  ;;  %10036 = vmatpush3.bf16.msra.mxu1 %v15312_v62 }
 0x401   : > { %v6925_v45 = vpop.permute.xlu1 %6924  ;;  %v8296_v14 = vld [vmem:[#allocation3 + $0x190] sm:$0xff]  ;;  %v7719_v23 = vpop.permute.xlu0 %7718  ;;  %v8646_v48 = vadd.f32 %v15553_v36, %v8645_v30  ;;  %v8887_v2 = vmax.f32 %v8643_v17, 0.0  ;;  %v8321_v30 = vld [vmem:[#allocation3 + $0x258] sm:$0xff] }
 0x402   : > { %7010 = vst.msk [vmem:[#allocation3 + $0x200] sm:$0xff] %vm6977_vm8, %v6925_v45  ;;  %8753 = vmatmul.mubr.bf16.gmra.mrb[136].mxu0 %v8296_v14  ;;  %v8647_v44 = vpop.f32.mrb[83].mxu0  ;;  %v8317_v14 = vld [vmem:[#allocation3 + $0x238] sm:$0xff] }
 0x403   : > { %7804 = vst.msk [vmem:[#allocation3 + $0x200] sm:$0xff] %vm7771_vm6, %v7719_v23  ;;  %v8888_v21 = vmax.f32 %v8646_v48, 0.0 }
 0x405   : > { %v4079_v35 = vpop.permute.xlu1 %4078  ;;  %v4593_v4 = vpop.permute.xlu0 %4592  ;;  %v8954_v15 = vpack.c.bf16 %v8888_v21, %v8887_v2 }
 0x406   : > { %4163 = vst.msk [vmem:[#allocation3 + $0x210] sm:$0xff] %vm4129_vm11, %v4079_v35 }
 0x407   : > { %4677 = vst.msk [vmem:[#allocation3 + $0x210] sm:$0xff] %vm4643_vm7, %v4593_v4  ;;  %10037 = vmatprep.subr.bf16.mxu1 %v8954_v15 }
 0x408   : > { %10038 = vmatpush3.bf16.msra.mxu1 %v15424_v7 }
 0x409   : > { %v5106_v5 = vpop.permute.xlu1 %5105  ;;  %v5900_v60 = vpop.permute.xlu0 %5899 }
 0x40a   : > { %5190 = vst.msk [vmem:[#allocation3 + $0x210] sm:$0xff] %vm5156_vm12, %v5106_v5  ;;  %v8310_v12 = vld [vmem:[#allocation3 + $0x200] sm:$0xff] }
 0x40b   : > { %5984 = vst.msk [vmem:[#allocation3 + $0x210] sm:$0xff] %vm5950_vm14, %v5900_v60  ;;  %8809 = vmatmul.mubr.bf16.gmra.mrb[60].mxu1 %v8310_v12 }
 0x40c   : > { %9897 = vmatprep.mubr.msk.bf16.mxu1 %vm17276_vm15, %v8313_v57 }
 0x40d   : > { %v6414_v49 = vpop.permute.xlu1 %6413  ;;  %v6927_v9 = vpop.permute.xlu0 %6926 }
 0x40e   : > { %6498 = vst.msk [vmem:[#allocation3 + $0x210] sm:$0xff] %vm6464_vm2, %v6414_v49 }
 0x40f   : > { %7011 = vst.msk [vmem:[#allocation3 + $0x210] sm:$0xff] %vm6977_vm8, %v6927_v9  ;;  %v10859_v9 = vmov 1966171168  }
 0x411   : > { %v7721_v62 = vpop.permute.xlu1 %7720  ;;  %v4081_v55 = vpop.permute.xlu0 %4080 }
 0x412   : > { %7805 = vst.msk [vmem:[#allocation3 + $0x210] sm:$0xff] %vm7771_vm6, %v7721_v62  ;;  %v8650_v33 = vpop.f32.mrb[84].mxu0  ;;  %v8986_v62 = vunpack.c.l.s4 %v10859_v9 }
 0x413   : > { %4164 = vst.msk [vmem:[#allocation3 + $0x220] sm:$0xff] %vm4129_vm11, %v4081_v55  ;;  %v8651_v7 = vadd.f32 %v15553_v36, %v8650_v33  ;;  %v8652_v0 = vpop.f32.mrb[85].mxu0 }
 0x414   : > { %v8653_v3 = vpop.f32.mrb[86].mxu0 }
 0x415   : > { %v4595_v11 = vpop.permute.xlu1 %4594  ;;  %v5108_v20 = vpop.permute.xlu0 %5107  ;;  %v8654_v26 = vadd.f32 %v15553_v36, %v8653_v3  ;;  %v8889_v41 = vmax.f32 %v8651_v7, 0.0  ;;  %v8323_v3 = vld [vmem:[#allocation3 + $0x268] sm:$0xff] }
 0x416   : > { %4678 = vst.msk [vmem:[#allocation3 + $0x220] sm:$0xff] %vm4643_vm7, %v4595_v11  ;;  %v8655_v61 = vpop.f32.mrb[87].mxu0 }
 0x417   : > { %5191 = vst.msk [vmem:[#allocation3 + $0x220] sm:$0xff] %vm5156_vm12, %v5108_v20  ;;  %v8890_v6 = vmax.f32 %v8654_v26, 0.0  ;;  %v17281_v26 = vld [vmem:[#allocation8_spill] sm:$0xff] }
 0x419   : > { %v5902_v31 = vpop.permute.xlu1 %5901  ;;  %v8312_v63 = vld [vmem:[#allocation3 + $0x210] sm:$0xff]  ;;  %v6416_v8 = vpop.permute.xlu0 %6415  ;;  %v8955_v56 = vpack.c.bf16 %v8890_v6, %v8889_v41 }
 0x41a   : > { %5985 = vst.msk [vmem:[#allocation3 + $0x220] sm:$0xff] %vm5950_vm14, %v5902_v31  ;;  %8817 = vmatmul.mubr.bf16.gmra.mrb[64].mxu1 %v8312_v63  ;;  %v8658_v39 = vpop.f32.mrb[88].mxu0 }
 0x41b   : > { %9898 = vmatprep.mubr.msk.bf16.mxu1 %vm17277_vm10, %v8315_v43  ;;  %6499 = vst.msk [vmem:[#allocation3 + $0x220] sm:$0xff] %vm6464_vm2, %v6416_v8  ;;  %v8659_v13 = vadd.f32 %v15553_v36, %v8658_v39  ;;  %v8660_v34 = vpop.f32.mrb[89].mxu0  ;;  %10039 = vmatprep.subr.bf16.mxu1 %v8955_v56  ;;  %v8987_v8 = vunpack.c.0.s8 %v8986_v62 }
 0x41c   : > { %v8661_v10 = vpop.f32.mrb[90].mxu0  ;;  %10040 = vmatpush3.bf16.msra.mxu1 %v15475_v37 }
 0x41d   : > { %v6929_v29 = vpop.permute.xlu1 %6928  ;;  %v7723_v24 = vpop.permute.xlu0 %7722  ;;  %v8662_v53 = vadd.f32 %v15553_v36, %v8661_v10  ;;  %v8891_v38 = vmax.f32 %v8659_v13, 0.0  ;;  %v15906_v61 = vsub.s32 %v8987_v8, %v17281_v26 }
 0x41e   : > { %7012 = vst.msk [vmem:[#allocation3 + $0x220] sm:$0xff] %vm6977_vm8, %v6929_v29  ;;  %v8663_v27 = vpop.f32.mrb[91].mxu0 }
 0x41f   : > { %7806 = vst.msk [vmem:[#allocation3 + $0x220] sm:$0xff] %vm7771_vm6, %v7723_v24  ;;  %v8892_v50 = vmax.f32 %v8662_v53, 0.0  ;;  %v15911_v24 = vld [vmem:[%s16116_s7] sm:$0x1f] }
 0x421   : > { %v4083_v22 = vpop.permute.xlu1 %4082  ;;  %v4597_v18 = vpop.permute.xlu0 %4596  ;;  %v8956_v16 = vpack.c.bf16 %v8892_v50, %v8891_v38  ;;  %v15924_v38 = vld [vmem:[%s16113_s4] ss:$0 sm:$0xff] }
 0x422   : > { %4165 = vst.msk [vmem:[#allocation3 + $0x230] sm:$0xff] %vm4129_vm11, %v4083_v22 }
 0x423   : > { %4679 = vst.msk [vmem:[#allocation3 + $0x230] sm:$0xff] %vm4643_vm7, %v4597_v18  ;;  %10041 = vmatprep.subr.bf16.mxu1 %v8956_v16  ;;  %v8991_v18 = vrot.slane %v15911_v24, %v15906_v61 }
 0x424   : > { %10042 = vmatpush3.bf16.msra.mxu1 %v15591_v19 }
 0x425   : > { %v5110_v46 = vpop.permute.xlu1 %5109  ;;  %v5904_v42 = vpop.permute.xlu0 %5903  ;;  %v8999_v27 = vcombine.high %v8991_v18, %v8991_v18 }
 0x426   : > { %5192 = vst.msk [vmem:[#allocation3 + $0x230] sm:$0xff] %vm5156_vm12, %v5110_v46  ;;  %v8314_v25 = vld [vmem:[#allocation3 + $0x220] sm:$0xff] }
 0x427   : > { %5986 = vst.msk [vmem:[#allocation3 + $0x230] sm:$0xff] %vm5950_vm14, %v5904_v42  ;;  %8825 = vmatmul.mubr.bf16.gmra.mrb[68].mxu1 %v8314_v25 }
 0x428   : > { %9899 = vmatprep.mubr.msk.bf16.mxu1 %vm17278_vm0, %v8317_v14 }
 0x429   : > { %v6418_v45 = vpop.permute.xlu1 %6417  ;;  %v6931_v52 = vpop.permute.xlu0 %6930 }
 0x42a   : > { %6500 = vst.msk [vmem:[#allocation3 + $0x230] sm:$0xff] %vm6464_vm2, %v6418_v45 }
 0x42b   : > { %7013 = vst.msk [vmem:[#allocation3 + $0x230] sm:$0xff] %vm6977_vm8, %v6931_v52 }
 0x42d   : > { %v7725_v37 = vpop.permute.xlu1 %7724  ;;  %v4085_v51 = vpop.permute.xlu0 %4084 }
 0x42e   : > { %7807 = vst.msk [vmem:[#allocation3 + $0x230] sm:$0xff] %vm7771_vm6, %v7725_v37 }
 0x42f   : > { %4166 = vst.msk [vmem:[#allocation3 + $0x240] sm:$0xff] %vm4129_vm11, %v4085_v51 }
 0x431   : > { %v4599_v23 = vpop.permute.xlu1 %4598  ;;  %v5112_v54 = vpop.permute.xlu0 %5111 }
 0x432   : > { %4680 = vst.msk [vmem:[#allocation3 + $0x240] sm:$0xff] %vm4643_vm7, %v4599_v23 }
 0x433   : > { %5193 = vst.msk [vmem:[#allocation3 + $0x240] sm:$0xff] %vm5156_vm12, %v5112_v54 }
 0x435   : > { %v5906_v32 = vpop.permute.xlu1 %5905  ;;  %v8316_v35 = vld [vmem:[#allocation3 + $0x230] sm:$0xff]  ;;  %v6420_v4 = vpop.permute.xlu0 %6419 }
 0x436   : > { %5987 = vst.msk [vmem:[#allocation3 + $0x240] sm:$0xff] %vm5950_vm14, %v5906_v32  ;;  %8833 = vmatmul.mubr.bf16.gmra.mrb[72].mxu1 %v8316_v35 }
 0x437   : > { %9900 = vmatprep.mubr.msk.bf16.mxu1 %vm17279_vm13, %v8319_v47  ;;  %6501 = vst.msk [vmem:[#allocation3 + $0x240] sm:$0xff] %vm6464_vm2, %v6420_v4 }
 0x439   : > { %v6933_v19 = vpop.permute.xlu1 %6932  ;;  %v7727_v59 = vpop.permute.xlu0 %7726 }
 0x43a   : > { %7014 = vst.msk [vmem:[#allocation3 + $0x240] sm:$0xff] %vm6977_vm8, %v6933_v19 }
 0x43b   : > { %7808 = vst.msk [vmem:[#allocation3 + $0x240] sm:$0xff] %vm7771_vm6, %v7727_v59 }
 0x43d   : > { %v4087_v17 = vpop.permute.xlu1 %4086  ;;  %v4601_v28 = vpop.permute.xlu0 %4600 }
 0x43e   : > { %4167 = vst.msk [vmem:[#allocation3 + $0x250] sm:$0xff] %vm4129_vm11, %v4087_v17 }
 0x43f   : > { %4681 = vst.msk [vmem:[#allocation3 + $0x250] sm:$0xff] %vm4643_vm7, %v4601_v28 }
 0x441   : > { %v5114_v5 = vpop.permute.xlu1 %5113  ;;  %v5908_v48 = vpop.permute.xlu0 %5907 }
 0x442   : > { %5194 = vst.msk [vmem:[#allocation3 + $0x250] sm:$0xff] %vm5156_vm12, %v5114_v5  ;;  %v8318_v44 = vld [vmem:[#allocation3 + $0x240] sm:$0xff]  ;;  %v8666_v2 = vpop.f32.mrb[92].mxu0 }
 0x443   : > { %5988 = vst.msk [vmem:[#allocation3 + $0x250] sm:$0xff] %vm5950_vm14, %v5908_v48  ;;  %8841 = vmatmul.mubr.bf16.gmra.mrb[76].mxu1 %v8318_v44  ;;  %v8667_v21 = vadd.f32 %v15553_v36, %v8666_v2  ;;  %v8668_v49 = vpop.f32.mrb[93].mxu0 }
 0x444   : > { %9901 = vmatprep.mubr.msk.bf16.mxu1 %vm17280_vm1, %v8321_v30  ;;  %v8669_v15 = vpop.f32.mrb[94].mxu0  ;;  %v15937_v30 = vrot.slane %v8991_v18, %v15906_v61 }
 0x445   : > { %v6422_v60 = vpop.permute.xlu1 %6421  ;;  %v6935_v12 = vpop.permute.xlu0 %6934  ;;  %v8670_v55 = vadd.f32 %v15553_v36, %v8669_v15  ;;  %v8893_v31 = vmax.f32 %v8667_v21, 0.0 }
 0x446   : > { %6502 = vst.msk [vmem:[#allocation3 + $0x250] sm:$0xff] %vm6464_vm2, %v6422_v60  ;;  %v8671_v11 = vpop.f32.mrb[95].mxu0 }
 0x447   : > { %7015 = vst.msk [vmem:[#allocation3 + $0x250] sm:$0xff] %vm6977_vm8, %v6935_v12  ;;  %v8894_v63 = vmax.f32 %v8670_v55, 0.0 }
 0x449   : > { %v7729_v57 = vpop.permute.xlu1 %7728  ;;  %v4089_v20 = vpop.permute.xlu0 %4088  ;;  %v8957_v33 = vpack.c.bf16 %v8894_v63, %v8893_v31 }
 0x44a   : > { %7809 = vst.msk [vmem:[#allocation3 + $0x250] sm:$0xff] %vm7771_vm6, %v7729_v57 }
 0x44b   : > { %4168 = vst.msk [vmem:[#allocation3 + $0x260] sm:$0xff] %vm4129_vm11, %v4089_v20  ;;  %10043 = vmatprep.subr.bf16.mxu1 %v8957_v33  ;;  %vm17282_vm11 = vmmov %vm17278_vm0 }
 0x44c   : > { %10044 = vmatpush3.bf16.msra.mxu1 %v15679_v40 }
 0x44d   : > { %v4603_v43 = vpop.permute.xlu1 %4602  ;;  %v5116_v7 = vpop.permute.xlu0 %5115 }
 0x44e   : > { %4682 = vst.msk [vmem:[#allocation3 + $0x260] sm:$0xff] %vm4643_vm7, %v4603_v43  ;;  %vm10861_vm7 = vmmov 0  }
 0x44f   : > { %5195 = vst.msk [vmem:[#allocation3 + $0x260] sm:$0xff] %vm5156_vm12, %v5116_v7  ;;  %v8674_v6 = vpop.f32.mrb[96].mxu0  ;;  %vm9027_vm12 = vcmask 916480  }
 0x450   : > { %v8675_v40 = vadd.f32 %v15553_v36, %v8674_v6  ;;  %v8676_v56 = vpop.f32.mrb[97].mxu0 }
 0x451   : > { %v5910_v0 = vpop.permute.xlu1 %5909  ;;  %v8320_v29 = vld [vmem:[#allocation3 + $0x250] sm:$0xff]  ;;  %v6424_v41 = vpop.permute.xlu0 %6423 }
 0x452   : > { %5989 = vst.msk [vmem:[#allocation3 + $0x260] sm:$0xff] %vm5950_vm14, %v5910_v0  ;;  %8849 = vmatmul.mubr.bf16.gmra.mrb[80].mxu1 %v8320_v29  ;;  %v8677_v39 = vpop.f32.mrb[98].mxu0  ;;  %v8895_v10 = vmax.f32 %v8675_v40, 0.0 }
 0x453   : > { %9902 = vmatprep.mubr.msk.bf16.mxu1 %vm17282_vm11, %v8323_v3  ;;  %6503 = vst.msk [vmem:[#allocation3 + $0x260] sm:$0xff] %vm6464_vm2, %v6424_v41  ;;  %v8678_v34 = vadd.f32 %v15553_v36, %v8677_v39  ;;  %v8679_v46 = vpop.f32.mrb[99].mxu0  ;;  %v9020_v36 = vrot.slane %v8999_v27, %v15906_v61 }
 0x455   : > { %v6937_v22 = vpop.permute.xlu1 %6936  ;;  %v7731_v13 = vpop.permute.xlu0 %7730  ;;  %v8896_v53 = vmax.f32 %v8678_v34, 0.0  ;;  %v9022_v0 = vcombine.high %v9020_v36, %v9020_v36 }
 0x456   : > { %7016 = vst.msk [vmem:[#allocation3 + $0x260] sm:$0xff] %vm6977_vm8, %v6937_v22 }
 0x457   : > { %7810 = vst.msk [vmem:[#allocation3 + $0x260] sm:$0xff] %vm7771_vm6, %v7731_v13  ;;  %v8958_v42 = vpack.c.bf16 %v8896_v53, %v8895_v10 }
 0x459   : > { %10045 = vmatprep.subr.bf16.mxu1 %v8958_v42 }
 0x45a   : > { %10046 = vmatpush3.bf16.msra.mxu1 %v15746_v58 }
 0x45b   : > { %v8770_v25 = vpop.f32.mrb[40].mxu1  ;;  %v8682_v14 = vpop.f32.mrb[100].mxu0 }
 0x45c   : > { %v8771_v50 = vadd.f32 %v15924_v38, %v8770_v25  ;;  %v8772_v45 = vpop.f32.mrb[41].mxu1  ;;  %v8683_v52 = vadd.f32 %v15924_v38, %v8682_v14  ;;  %v8684_v51 = vpop.f32.mrb[101].mxu0 }
 0x45d   : > { %v8773_v16 = vpop.f32.mrb[42].mxu1  ;;  %v8685_v54 = vpop.f32.mrb[102].mxu0 }
 0x45e   : > { %v8774_v37 = vadd.f32 %v15924_v38, %v8773_v16  ;;  %v8775_v23 = vpop.f32.mrb[43].mxu1  ;;  %v8322_v32 = vld [vmem:[#allocation3 + $0x260] sm:$0xff]  ;;  %v8919_v35 = vmax.f32 %v8771_v50, 0.0  ;;  %v8686_v4 = vadd.f32 %v15924_v38, %v8685_v54  ;;  %v8687_v19 = vpop.f32.mrb[103].mxu0  ;;  %v8897_v59 = vmax.f32 %v8683_v52, 0.0 }
 0x45f   : > { %8857 = vmatmul.mubr.bf16.gmra.mrb[84].mxu1 %v8322_v32 }
 0x460   : > { %v8920_v47 = vmax.f32 %v8774_v37, 0.0  ;;  %9063 = vmatprep.mubr.bf16.mxu1 %v9020_v36  ;;  %v8898_v28 = vmax.f32 %v8686_v4, 0.0 }
 0x462   : > { %v15932_v17 = vpack.c.bf16 %v8920_v47, %v8919_v35  ;;  %v15934_v5 = vpack.c.bf16 %v8898_v28, %v8897_v59 }
 0x463   : > { %v8690_v48 = vpop.f32.mrb[104].mxu0 }
 0x464   : > { %v8691_v58 = vadd.f32 %v15924_v38, %v8690_v48  ;;  %v8692_v44 = vpop.f32.mrb[105].mxu0 }
 0x465   : > { %v8693_v60 = vpop.f32.mrb[106].mxu0 }
 0x466   : > { %v8694_v12 = vadd.f32 %v15924_v38, %v8693_v60  ;;  %v8695_v2 = vpop.f32.mrb[107].mxu0  ;;  %v8899_v21 = vmax.f32 %v8691_v58, 0.0 }
 0x467   : > { %9064 = vmatmul.mubr.bf16.vlgmr.msra.gmra.mrb[88].mxu1 %v15937_v30 }
 0x468   : > { %v8900_v49 = vmax.f32 %v8694_v12, 0.0  ;;  %9103 = vmatprep.mubr.bf16.mxu1 %v9022_v0 }
 0x46a   : > { %v15942_v57 = vpack.c.bf16 %v8900_v49, %v8899_v21 }
 0x46b   : > { %v8698_v15 = vpop.f32.mrb[108].mxu0 }
 0x46c   : > { %v8699_v9 = vadd.f32 %v15924_v38, %v8698_v15  ;;  %v8700_v62 = vpop.f32.mrb[109].mxu0 }
 0x46d   : > { %v8701_v55 = vpop.f32.mrb[110].mxu0 }
 0x46e   : > { %v8702_v11 = vadd.f32 %v15924_v38, %v8701_v55  ;;  %v8703_v20 = vpop.f32.mrb[111].mxu0  ;;  %v8901_v31 = vmax.f32 %v8699_v9, 0.0 }
 0x470   : > { %v8902_v63 = vmax.f32 %v8702_v11, 0.0 }
 0x472   : > { %v15946_v43 = vpack.c.bf16 %v8902_v63, %v8901_v31 }
 0x473   : > { %v8706_v8 = vpop.f32.mrb[112].mxu0  ;;  %v8778_v3 = vpop.f32.mrb[44].mxu1 }
 0x474   : > { %v8707_v33 = vadd.f32 %v15924_v38, %v8706_v8  ;;  %v8708_v7 = vpop.f32.mrb[113].mxu0  ;;  %v8779_v41 = vadd.f32 %v15924_v38, %v8778_v3  ;;  %v8780_v22 = vpop.f32.mrb[45].mxu1 }
 0x475   : > { %v8709_v29 = vpop.f32.mrb[114].mxu0  ;;  %v8781_v40 = vpop.f32.mrb[46].mxu1 }
 0x476   : > { %v8710_v26 = vadd.f32 %v15924_v38, %v8709_v29  ;;  %v8711_v6 = vpop.f32.mrb[115].mxu0  ;;  %v8903_v56 = vmax.f32 %v8707_v33, 0.0  ;;  %v8782_v39 = vadd.f32 %v15924_v38, %v8781_v40  ;;  %v8783_v13 = vpop.f32.mrb[47].mxu1  ;;  %v8921_v46 = vmax.f32 %v8779_v41, 0.0 }
 0x478   : > { %v8904_v18 = vmax.f32 %v8710_v26, 0.0  ;;  %v8922_v10 = vmax.f32 %v8782_v39, 0.0 }
 0x47a   : > { %v15952_v34 = vpack.c.bf16 %v8904_v18, %v8903_v56  ;;  %v15954_v27 = vpack.c.bf16 %v8922_v10, %v8921_v46 }
 0x47b   : > { %v8714_v53 = vpop.f32.mrb[116].mxu0 }
 0x47c   : > { %v8715_v42 = vadd.f32 %v15924_v38, %v8714_v53  ;;  %v8716_v25 = vpop.f32.mrb[117].mxu0 }
 0x47d   : > { %v8717_v50 = vpop.f32.mrb[118].mxu0 }
 0x47e   : > { %v8718_v45 = vadd.f32 %v15924_v38, %v8717_v50  ;;  %v8719_v14 = vpop.f32.mrb[119].mxu0  ;;  %v8905_v16 = vmax.f32 %v8715_v42, 0.0 }
 0x480   : > { %v8906_v36 = vmax.f32 %v8718_v45, 0.0 }
 0x482   : > { %v15958_v52 = vpack.c.bf16 %v8906_v36, %v8905_v16 }
 0x483   : > { %v8722_v37 = vpop.f32.mrb[120].mxu0 }
 0x484   : > { %v8723_v51 = vadd.f32 %v15924_v38, %v8722_v37  ;;  %v8724_v23 = vpop.f32.mrb[121].mxu0 }
 0x485   : > { %v8725_v54 = vpop.f32.mrb[122].mxu0 }
 0x486   : > { %v8726_v32 = vadd.f32 %v15924_v38, %v8725_v54  ;;  %v8727_v35 = vpop.f32.mrb[123].mxu0  ;;  %v8907_v47 = vmax.f32 %v8723_v51, 0.0 }
 0x488   : > { %v8908_v4 = vmax.f32 %v8726_v32, 0.0 }
 0x48a   : > { %v15962_v19 = vpack.c.bf16 %v8908_v4, %v8907_v47 }
 0x48b   : > { %v8730_v59 = vpop.f32.mrb[124].mxu0 }
 0x48c   : > { %v8731_v28 = vadd.f32 %v15924_v38, %v8730_v59  ;;  %v8732_v48 = vpop.f32.mrb[125].mxu0 }
 0x48d   : > { %v8733_v58 = vpop.f32.mrb[126].mxu0 }
 0x48e   : > { %v8734_v44 = vadd.f32 %v15924_v38, %v8733_v58  ;;  %v8735_v60 = vpop.f32.mrb[127].mxu0  ;;  %v8909_v12 = vmax.f32 %v8731_v28, 0.0 }
 0x48f   : > { %v8786_v21 = vpop.f32.mrb[48].mxu1 }
 0x490   : > { %v8910_v2 = vmax.f32 %v8734_v44, 0.0  ;;  %v8787_v15 = vadd.f32 %v15924_v38, %v8786_v21  ;;  %v8788_v9 = vpop.f32.mrb[49].mxu1 }
 0x491   : > { %v8789_v62 = vpop.f32.mrb[50].mxu1 }
 0x492   : > { %v15966_v49 = vpack.c.bf16 %v8910_v2, %v8909_v12  ;;  %v8790_v55 = vadd.f32 %v15924_v38, %v8789_v62  ;;  %v8791_v11 = vpop.f32.mrb[51].mxu1  ;;  %v8923_v20 = vmax.f32 %v8787_v15, 0.0 }
 0x494   : > { %v8924_v31 = vmax.f32 %v8790_v55, 0.0 }
 0x496   : > { %v15970_v63 = vpack.c.bf16 %v8924_v31, %v8923_v20 }
 0x497   : > { %v8738_v8 = vpop.f32.mrb[128].mxu0 }
 0x498   : > { %v8739_v33 = vadd.f32 %v15924_v38, %v8738_v8  ;;  %v8740_v7 = vpop.f32.mrb[129].mxu0 }
 0x499   : > { %v8741_v0 = vpop.f32.mrb[130].mxu0 }
 0x49a   : > { %v8742_v29 = vadd.f32 %v15924_v38, %v8741_v0  ;;  %v8743_v3 = vpop.f32.mrb[131].mxu0  ;;  %v8911_v26 = vmax.f32 %v8739_v33, 0.0 }
 0x49c   : > { %v8912_v41 = vmax.f32 %v8742_v29, 0.0 }
 0x49e   : > { %v15974_v6 = vpack.c.bf16 %v8912_v41, %v8911_v26 }
 0x4ab   : > { %v8794_v22 = vpop.f32.mrb[52].mxu1 }
 0x4ac   : > { %v8795_v40 = vadd.f32 %v15924_v38, %v8794_v22  ;;  %v8796_v56 = vpop.f32.mrb[53].mxu1 }
 0x4ad   : > { %v8797_v18 = vpop.f32.mrb[54].mxu1 }
 0x4ae   : > { %v8798_v39 = vadd.f32 %v15924_v38, %v8797_v18  ;;  %v8799_v13 = vpop.f32.mrb[55].mxu1  ;;  %v8925_v46 = vmax.f32 %v8795_v40, 0.0 }
 0x4b0   : > { %v8926_v10 = vmax.f32 %v8798_v39, 0.0 }
 0x4b2   : > { %v8973_v53 = vpack.c.bf16 %v8926_v10, %v8925_v46 }
 0x4b3   : > { %v8746_v42 = vpop.f32.mrb[132].mxu0 }
 0x4b4   : > { %v8747_v25 = vadd.f32 %v15924_v38, %v8746_v42  ;;  %v8748_v50 = vpop.f32.mrb[133].mxu0 }
 0x4b5   : > { %v8749_v45 = vpop.f32.mrb[134].mxu0 }
 0x4b6   : > { %v8750_v14 = vadd.f32 %v15924_v38, %v8749_v45  ;;  %v8751_v16 = vpop.f32.mrb[135].mxu0  ;;  %v8913_v36 = vmax.f32 %v8747_v25, 0.0 }
 0x4b8   : > { %v8914_v37 = vmax.f32 %v8750_v14, 0.0 }
 0x4ba   : > { %v8967_v51 = vpack.c.bf16 %v8914_v37, %v8913_v36 }
 0x4bc   : > { %10053 = vmatprep.subr.bf16.mxu1 %v8967_v51 }
 0x4bd   : > { %10054 = vmatpush3.bf16.msra.mxu1 %v15934_v5 }
 0x4c6   : > { %v8802_v23 = vpop.f32.mrb[56].mxu1 }
 0x4c7   : > { %v8803_v54 = vadd.f32 %v15924_v38, %v8802_v23  ;;  %v8804_v32 = vpop.f32.mrb[57].mxu1 }
 0x4c8   : > { %v8805_v35 = vpop.f32.mrb[58].mxu1 }
 0x4c9   : > { %v8806_v47 = vadd.f32 %v15924_v38, %v8805_v35  ;;  %v8807_v4 = vpop.f32.mrb[59].mxu1  ;;  %v8927_v59 = vmax.f32 %v8803_v54, 0.0 }
 0x4cb   : > { %v8928_v28 = vmax.f32 %v8806_v47, 0.0 }
 0x4cd   : > { %v8974_v48 = vpack.c.bf16 %v8928_v28, %v8927_v59 }
 0x4d5   : > { %v8754_v58 = vpop.f32.mrb[136].mxu0 }
 0x4d6   : > { %v8755_v44 = vadd.f32 %v15924_v38, %v8754_v58  ;;  %v8756_v60 = vpop.f32.mrb[137].mxu0 }
 0x4d7   : > { %v8757_v12 = vpop.f32.mrb[138].mxu0 }
 0x4d8   : > { %v8758_v2 = vadd.f32 %v15924_v38, %v8757_v12  ;;  %v8759_v21 = vpop.f32.mrb[139].mxu0  ;;  %v8915_v5 = vmax.f32 %v8755_v44, 0.0 }
 0x4da   : > { %v8916_v15 = vmax.f32 %v8758_v2, 0.0  ;;  %v8984_v2 = vcombine.high %v15911_v24, %v15911_v24 }
 0x4dc   : > { %v8968_v9 = vpack.c.bf16 %v8916_v15, %v8915_v5 }
 0x4de   : > { %10055 = vmatprep.subr.bf16.mxu1 %v8968_v9  ;;  %v8810_v62 = vpop.f32.mrb[60].mxu1 }
 0x4df   : > { %10056 = vmatpush3.bf16.msra.mxu1 %v15942_v57  ;;  %v8811_v55 = vadd.f32 %v15924_v38, %v8810_v62  ;;  %v8812_v11 = vpop.f32.mrb[61].mxu1 }
 0x4e0   : > { %10057 = vmatprep.subr.bf16.mxu1 %v15721_v1  ;;  %v8813_v20 = vpop.f32.mrb[62].mxu1  ;;  %v8998_v11 = vrot.slane %v8984_v2, %v15906_v61 }
 0x4e1   : > { %v8814_v31 = vadd.f32 %v15924_v38, %v8813_v20  ;;  %v8815_v8 = vpop.f32.mrb[63].mxu1  ;;  %v8929_v33 = vmax.f32 %v8811_v55, 0.0 }
 0x4e3   : > { %10058 = vmatpush3.bf16.msra.mxu1 %v15946_v43  ;;  %v8930_v7 = vmax.f32 %v8814_v31, 0.0 }
 0x4e4   : > { %10059 = vmatprep.subr.bf16.mxu1 %v15932_v17 }
 0x4e5   : > { %v8975_v0 = vpack.c.bf16 %v8930_v7, %v8929_v33  ;;  %v9013_v33 = vrot.slane %v8998_v11, %v15906_v61  ;;  %v10769_v61 = vld [vmem:[%s16114_s5 + $0x8] sm:$0xff]  }
 0x4e7   : > { %10060 = vmatpush3.bf16.msra.mxu1 %v15952_v34 }
 0x4e8   : > { %10061 = vmatprep.subr.bf16.mxu1 %v15954_v27  ;;  %v9021_v27 = vcombine.high %v15937_v30, %v15937_v30 }
 0x4eb   : > { %10062 = vmatpush3.bf16.msra.mxu1 %v15958_v52  ;;  %v10860_v52 = vmov 0.0  }
 0x4ec   : > { %10063 = vmatprep.subr.bf16.mxu1 %v15970_v63 }
 0x4ed   : > { %v8818_v1 = vpop.f32.mrb[64].mxu1 }
 0x4ee   : > { %v8819_v57 = vadd.f32 %v15924_v38, %v8818_v1  ;;  %v8820_v29 = vpop.f32.mrb[65].mxu1 }
 0x4ef   : > { %v8821_v3 = vpop.f32.mrb[66].mxu1  ;;  %10064 = vmatpush3.bf16.msra.mxu1 %v15962_v19  ;;  %v10770_v29 = vld [vmem:[%s16114_s5 + $0x10] sm:$0xff]  }
 0x4f0   : > { %v8822_v17 = vadd.f32 %v15924_v38, %v8821_v3  ;;  %v8823_v43 = vpop.f32.mrb[67].mxu1  ;;  %10065 = vmatprep.subr.bf16.mxu1 %v8973_v53  ;;  %v8931_v26 = vmax.f32 %v8819_v57, 0.0  ;;  %v10771_v3 = vld [vmem:[%s16114_s5 + $0x18] sm:$0xff]  }
 0x4f1   : > { %v10773_v43 = vld [vmem:[%s16114_s5 + $0x28] sm:$0xff]  }
 0x4f2   : > { %v8932_v41 = vmax.f32 %v8822_v17, 0.0  ;;  %v10772_v17 = vld [vmem:[%s16114_s5 + $0x20] sm:$0xff]  }
 0x4f3   : > { %10066 = vmatpush3.bf16.msra.mxu1 %v15966_v49 }
 0x4f4   : > { %v8976_v34 = vpack.c.bf16 %v8932_v41, %v8931_v26  ;;  %10067 = vmatprep.subr.bf16.mxu1 %v8974_v48  ;;  %v10774_v26 = vld [vmem:[%s16114_s5 + $0x30] sm:$0xff]   ;;  %v10775_v41 = vld [vmem:[%s16114_s5 + $0x38] sm:$0xff]  }
 0x4f7   : > { %10068 = vmatpush3.bf16.msra.mxu1 %v15974_v6 }
 0x4f8   : > { %10176 = vmatprep.subr.bf16.mxu1 %v10860_v52 }
 0x4fa   : > { %9104 = vmatmul.mubr.bf16.vlgmr.msra.gmra.mrb[92].mxu1 %v9021_v27  ;;  %v8826_v19 = vpop.f32.mrb[68].mxu1 }
 0x4fb   : > { %10177 = vmatpush3.bf16.msra.mxu1 %v8975_v0  ;;  %10190 = vmatprep.mubr.msk.bf16.mxu1 %vm10861_vm7, %v10860_v52  ;;  %v8827_v49 = vadd.f32 %v15924_v38, %v8826_v19  ;;  %v8828_v63 = vpop.f32.mrb[69].mxu1 }
 0x4fc   : > { %10178 = vmatprep.subr.bf16.mxu1 %v10860_v52  ;;  %v8829_v22 = vpop.f32.mrb[70].mxu1 }
 0x4fd   : > { %v8830_v30 = vadd.f32 %v15924_v38, %v8829_v22  ;;  %v8831_v40 = vpop.f32.mrb[71].mxu1  ;;  %v8933_v6 = vmax.f32 %v8827_v49, 0.0 }
 0x4ff   : > { %10179 = vmatpush3.bf16.msra.mxu1 %v8976_v34  ;;  %v8934_v56 = vmax.f32 %v8830_v30, 0.0 }
 0x500   : > { %10180 = vmatprep.subr.bf16.mxu1 %v10860_v52 }
 0x501   : > { %v8977_v18 = vpack.c.bf16 %v8934_v56, %v8933_v6 }
 0x503   : > { %10181 = vmatpush3.bf16.msra.mxu1 %v8977_v18 }
 0x504   : > { %10182 = vmatprep.subr.bf16.mxu1 %v10860_v52 }
 0x509   : > { %v8834_v39 = vpop.f32.mrb[72].mxu1 }
 0x50a   : > { %v8835_v13 = vadd.f32 %v15924_v38, %v8834_v39  ;;  %v8836_v46 = vpop.f32.mrb[73].mxu1 }
 0x50b   : > { %v8837_v10 = vpop.f32.mrb[74].mxu1 }
 0x50c   : > { %v8838_v53 = vadd.f32 %v15924_v38, %v8837_v10  ;;  %v8839_v42 = vpop.f32.mrb[75].mxu1  ;;  %v8935_v25 = vmax.f32 %v8835_v13, 0.0 }
 0x50e   : > { %v8936_v50 = vmax.f32 %v8838_v53, 0.0 }
 0x510   : > { %v8978_v45 = vpack.c.bf16 %v8936_v50, %v8935_v25 }
 0x512   : > { %10183 = vmatpush3.bf16.msra.mxu1 %v8978_v45 }
 0x513   : > { %10184 = vmatprep.subr.bf16.mxu1 %v10860_v52 }
 0x516   : > { %v8842_v14 = vpop.f32.mrb[76].mxu1 }
 0x517   : > { %v8843_v16 = vadd.f32 %v15924_v38, %v8842_v14  ;;  %v8844_v36 = vpop.f32.mrb[77].mxu1 }
 0x518   : > { %v8845_v37 = vpop.f32.mrb[78].mxu1 }
 0x519   : > { %v8846_v51 = vadd.f32 %v15924_v38, %v8845_v37  ;;  %v8847_v23 = vpop.f32.mrb[79].mxu1  ;;  %v8937_v54 = vmax.f32 %v8843_v16, 0.0 }
 0x51b   : > { %v8938_v32 = vmax.f32 %v8846_v51, 0.0 }
 0x51d   : > { %v8979_v35 = vpack.c.bf16 %v8938_v32, %v8937_v54 }
 0x51f   : > { %10185 = vmatpush3.bf16.msra.mxu1 %v8979_v35 }
 0x520   : > { %10186 = vmatprep.subr.bf16.mxu1 %v10860_v52 }
 0x525   : > { %v8850_v47 = vpop.f32.mrb[80].mxu1 }
 0x526   : > { %v8851_v4 = vadd.f32 %v15924_v38, %v8850_v47  ;;  %v8852_v59 = vpop.f32.mrb[81].mxu1 }
 0x527   : > { %v8853_v28 = vpop.f32.mrb[82].mxu1 }
 0x528   : > { %v8939_v48 = vmax.f32 %v8851_v4, 0.0  ;;  %v8854_v58 = vadd.f32 %v15924_v38, %v8853_v28  ;;  %v8855_v44 = vpop.f32.mrb[83].mxu1 }
 0x52a   : > { %v8940_v60 = vmax.f32 %v8854_v58, 0.0 }
 0x52c   : > { %v8980_v12 = vpack.c.bf16 %v8940_v60, %v8939_v48 }
 0x52e   : > { %10187 = vmatpush3.bf16.msra.mxu1 %v8980_v12 }
 0x52f   : > { %10188 = vmatprep.subr.bf16.mxu1 %v10860_v52 }
 0x532   : > { %v8858_v21 = vpop.f32.mrb[84].mxu1 }
 0x533   : > { %v8859_v5 = vadd.f32 %v15924_v38, %v8858_v21  ;;  %v8860_v15 = vpop.f32.mrb[85].mxu1 }
 0x534   : > { %v8861_v9 = vpop.f32.mrb[86].mxu1 }
 0x535   : > { %v8862_v62 = vadd.f32 %v15924_v38, %v8861_v9  ;;  %v8863_v55 = vpop.f32.mrb[87].mxu1  ;;  %v8941_v20 = vmax.f32 %v8859_v5, 0.0  ;;  %v10768_v38 = vld [vmem:[%s16114_s5] sm:$0xff]  }
 0x537   : > { %v8942_v31 = vmax.f32 %v8862_v62, 0.0 }
 0x539   : > { %v8981_v8 = vpack.c.bf16 %v8942_v31, %v8941_v20 }
 0x53a   : > { %v10047_v7 = vpop.f32.mrb[88].mxu1 }
 0x53b   : > { %10189 = vmatpush3.bf16.msra.mxu1 %v8981_v8  ;;  %v10048_v0 = vpop.f32.mrb[89].mxu1 }
 0x53c   : > { %v10049_v24 = vadd.f32 %v10048_v0, %v10047_v7  ;;  %v10050_v1 = vpop.f32.mrb[90].mxu1  ;;  %10194 = vmatprep.subr.bf16.mxu1 %v10860_v52 }
 0x53d   : > { %v10051_v57 = vpop.f32.mrb[91].mxu1 }
 0x53e   : > { %10191 = vmatmul.mubr.msk.bf16.vlgmr.msra.gmra.mrb[96].mxu1 %vm9027_vm12, %v9013_v33 }
 0x53f   : > { %10210 = vmatprep.mubr.msk.bf16.mxu1 %vm10861_vm7, %v10860_v52  ;;  %10195 = vmatpush3.bf16.msra.mxu1 %v10768_v38 }
 0x540   : > { %10196 = vmatprep.subr.bf16.mxu1 %v10860_v52 }
 0x543   : > { %10197 = vmatpush3.bf16.msra.mxu1 %v10769_v61 }
 0x544   : > { %10198 = vmatprep.subr.bf16.mxu1 %v10860_v52 }
 0x547   : > { %10199 = vmatpush3.bf16.msra.mxu1 %v10770_v29 }
 0x548   : > { %10200 = vmatprep.subr.bf16.mxu1 %v10860_v52 }
 0x54b   : > { %10201 = vmatpush3.bf16.msra.mxu1 %v10771_v3 }
 0x54c   : > { %10202 = vmatprep.subr.bf16.mxu1 %v10860_v52 }
 0x54f   : > { %10203 = vmatpush3.bf16.msra.mxu1 %v10772_v17 }
 0x550   : > { %10204 = vmatprep.subr.bf16.mxu1 %v10860_v52 }
 0x553   : > { %10205 = vmatpush3.bf16.msra.mxu1 %v10773_v43 }
 0x554   : > { %10206 = vmatprep.subr.bf16.mxu1 %v10860_v52 }
 0x557   : > { %10207 = vmatpush3.bf16.msra.mxu1 %v10774_v26 }
 0x558   : > { %10208 = vmatprep.subr.bf16.mxu1 %v10860_v52  ;;  %v9904_v52 = vld [vmem:[%s16115_s6] ss:$0 sm:$0xff] }
 0x55b   : > { %10209 = vmatpush3.bf16.msra.mxu1 %v10775_v41 }
 0x5cd   : > { %v10069_v34 = vpop.f32.mrb[92].mxu1 }
 0x5ce   : > { %v10070_v27 = vpop.f32.mrb[93].mxu1 }
 0x5cf   : > { %v10071_v19 = vadd.f32 %v10070_v27, %v10069_v34  ;;  %v10072_v49 = vpop.f32.mrb[94].mxu1 }
 0x5d0   : > { %v10073_v63 = vpop.f32.mrb[95].mxu1 }
 0x5d1   : > { %v9106_v22 = vadd.f32 %v10071_v19, %v10049_v24 }
 0x611   : > { %v9145_v30 = vpop.f32.mrb[96].mxu1 }
 0x612   : > { %v9146_v40 = vadd.f32 %v9145_v30, %v9106_v22  ;;  %v10192_v6 = vpop.f32.mrb[97].mxu1 }
 0x613   : > { %v9148_v56 = vpop.f32.mrb[98].mxu1 }
 0x614   : > { %v9151_v18 = vpack.c.bf16 %v9146_v40, %v9146_v40  ;;  %v10193_v39 = vpop.f32.mrb[99].mxu1 }
 0x616   : > { %10211 = vmatmul.mubr.bf16.vlgmr.msra.gmra.mrb[100].mxu1 %v9151_v18 }
 0x6e9   : > { %v9257_v13 = vpop.f32.mrb[100].mxu1 }
 0x6ea   : > { %v9258_v46 = vadd.f32 %v9904_v52, %v9257_v13  ;;  %v10212_v10 = vpop.f32.mrb[101].mxu1 }
 0x6eb   : > { %v9260_v53 = vpop.f32.mrb[102].mxu1 }
 0x6ec   : > { %9263 = vst [vmem:[%s298_s22] sm:$0x3] %v9258_v46  ;;  %v10213_v42 = vpop.f32.mrb[103].mxu1 }
 0x6ed   : > { %10800 = shalt.err (!%p10797_p3)
}
 0x6ee   : > { %s10801_s12 = scalar_lea.hbm %s16067_s26, 32  ;;  %s10805_s21 = scalar_lea.hbm %s16117_s8, 64 }
 0x6ef   : > { %p10802_p4 = scmp.ne.s32.totalorder %s16067_s26, %s10801_s12  ;;  %p10806_p9 = scmp.lt.u32.totalorder %s16067_s26, %s16117_s8 }
 0x6f0   : > { %p10807_p10 = scmp.lt.u32.totalorder %s10805_s21, %s10801_s12  ;;  %p10809_p12 = scmp.lt.u32.totalorder %s10801_s12, %s16067_s26 }
 0x6f1   : > { %p10803_p7 = pnand %p10802_p4, %p10946_p5 }
 0x6f2   : > { %p10808_p11 = por %p10807_p10, %p10806_p9 }
 0x6f3   : > { %p10804_p8 = pneg %p10803_p7 }
 0x6f4   : > { %p10810_p13 = por %p10809_p12, %p10808_p11 }
 0x6f6   : > { %p10811_p0 = pnand %p10810_p13, %p10804_p8 }
 0x6f8   : > { %10814 = shalt.err (!%p10811_p0)
}
 0x6f9   : > { %10307 = dma.vmem_to_hbm [thread:$0]  (%p10946_p5), %s16069_s23, 32, %s16067_s26, %s9265_s10  }
 0x6fa PF: > { %p10313_p1 = scmp.ge.s32.totalorder %s10849_s30, 2  ;;  %s9290_s25 = sand.u32 1, %s10837_s27  }
 0x6fb   : > { %s9291_s9 = scalar_lea.sflag [#allocation5], %s9290_s25 }
 0x6fc   : > { %p10310_p2 = pnand %p10313_p1, %p10950_p6 }
 0x6fe   : > { %10832 = dma.done.wait (!%p10310_p2), %s9291_s9, 32  }
 0x6ff   : > { %10834 = vsyncadd (!%p10310_p2), %s9291_s9, 4294967264  ;;  %p18_p3 = scmp.ge.s32.totalorder %s10933_s11, 4   ;;  %s17283_s27 = smov %s10841_s28 }
 0x700   : > { %s17284_s28 = smov %s10845_s29  ;;  %s17285_s29 = smov %s10944_s14 }
 0x701   : > { %s17286_s30 = smov %s10933_s11  ;;  %20 = sbr.rel (!%p18_p3) target bundleno = 3 (0x3), region = 87 }
 0x708   :  { %9296 = vsyncpa [#allocation5], 1 }
 0x709   :  { %9298 = vsyncpa [#allocation5 + $0x1], 1 }

</bundles_post_ra>
